<compile_context>
chip_gen: v6e
topology: v6e:2x2x1
jax: 0.10.0
libtpu: 0.0.40
codegen_flags: <defaults>
</compile_context>

<pallas_src>
import functools

import jax
import jax.numpy as jnp
from jax.experimental import pallas as pl
from jax.experimental.pallas import tpu as pltpu

_F32 = jnp.float32
_BF16 = jnp.bfloat16

# (Cin, Cout, kernel, stride, pad) for each feature tap (alex-like, downscaled)
_CFG = [
    (3, 16, 3, 1, 1),
    (16, 32, 3, 2, 1),
    (32, 64, 3, 2, 1),
]

# Max rows per grid step.  Per-step VMEM (double-buffered stacked patches +
# feature outputs + f32 intermediates) stays well under the 32 MiB default
# scoped VMEM on all generations (incl. v7x's 64 MiB physical) at Kp<=288.
_TM_MAX = 2048


def _round_up(x, m):
    return (x + m - 1) // m * m


# ----------------------------- Pallas kernel --------------------------------

def _tap_kernel(pb_ref, w_ref, b_ref, lin_ref, *out_refs, want_features):
    """Fused conv(+bias)+ReLU for pred & target + LPIPS distance epilogue.

    pb_ref : (2, tm, Kp) bf16 im2col patches (index 0 = pred, 1 = target)
    w_ref  : (Kp, Cout) bf16 conv weights ((ky,kx,cin) row order)
    b_ref  : (1, Cout) f32 bias
    lin_ref: (1, Cout) f32 LPIPS channel weights
    out_refs: (feat_ref (2, tm, Cout) bf16, dist_ref (1,1,1) f32) when
              want_features else (dist_ref,).
    """
    if want_features:
        feat_ref, dist_ref = out_refs
    else:
        (dist_ref,) = out_refs

    tm = pb_ref.shape[1]
    kp = pb_ref.shape[2]

    # Single MXU matmul for pred+target: row-stack the two patch slabs.
    x = pb_ref[...].reshape(2 * tm, kp)
    f = jnp.dot(x, w_ref[...], preferred_element_type=jnp.float32) + b_ref[...]
    f = jnp.maximum(f, 0.0)                                   # (2*tm, Cout) f32

    # LPIPS distance epilogue (f32, before any bf16 downcast):
    # channel-unit-normalize, squared diff, lin-weighted channel sum, then
    # reduce over the tile's rows to a single scalar (lane-dense output).
    ss = jnp.sum(f * f, axis=-1, keepdims=True)
    fn = f * (1.0 / (jnp.sqrt(ss) + 1e-10))                   # LPIPS normalize_tensor
    d = fn[:tm] - fn[tm:]                                     # (tm, Cout)
    rowd = jnp.sum(lin_ref[...] * d * d, axis=-1, keepdims=True)   # (tm, 1)
    # Padded rows (zero patches) give identical pred/target features -> d == 0,
    # so they contribute exactly 0; no mask needed.
    dist_ref[...] = jnp.sum(rowd, axis=0, keepdims=True).reshape(1, 1, 1)

    if want_features:
        fb = f.astype(feat_ref.dtype)
        feat_ref[0] = fb[:tm]
        feat_ref[1] = fb[tm:]


# ------------------------------ wrappers -------------------------------------

def _im2col(x_nhwc, k, stride, pad, pad_value=None):
    """JAX-glue im2col (bf16 in/out).  pad_value (per-channel) replicates the
    folded ScalingLayer's zero (i.e. the raw-image value mapping to 0 after
    the affine)."""
    B, H, W, C = x_nhwc.shape
    if pad == 0:
        xp = x_nhwc
    elif pad_value is None:
        xp = jnp.pad(x_nhwc, ((0, 0), (pad, pad), (pad, pad), (0, 0)))
    else:
        pv = pad_value.reshape(1, 1, 1, C).astype(x_nhwc.dtype)
        xp = jnp.pad(x_nhwc - pv, ((0, 0), (pad, pad), (pad, pad), (0, 0))) + pv
    OH = (H + 2 * pad - k) // stride + 1
    OW = (W + 2 * pad - k) // stride + 1
    cols = []
    for i in range(k):
        for j in range(k):
            cols.append(xp[:, i:i + stride * OH:stride,
                           j:j + stride * OW:stride, :])
    patches = jnp.concatenate(cols, axis=-1)          # (B, OH, OW, k*k*C)
    return patches.reshape(B * OH * OW, k * k * C), OH, OW


def _conv_relu_dist(x_both, w_oikk, b, lin, stride, pad, pad_value,
                    want_features):
    """One tap: conv+ReLU of stacked pred/target + LPIPS distance, one
    pallas_call.  x_both is (2*B, H, W, Cin) bf16, pred batches first."""
    Cout, Cin, kh, kw = w_oikk.shape
    B2 = x_both.shape[0]
    B = B2 // 2

    patches, OH, OW = _im2col(x_both, kh, stride, pad, pad_value)  # (2*M, K) bf16
    M = B * OH * OW
    K = kh * kw * Cin

    Kp = _round_up(K, 16)                        # bf16 sublane-friendly; no 128 pad
    tm = min(_round_up(M, 8), _TM_MAX)           # VMEM-sized tile, multiple of 8
    Mp = _round_up(M, tm)
    grid_m = Mp // tm

    pb = jnp.pad(patches.reshape(2, M, K), ((0, 0), (0, Mp - M), (0, Kp - K)))
    w2d = jnp.transpose(w_oikk, (2, 3, 1, 0)).reshape(K, Cout)    # (ky,kx,cin) order
    wp = jnp.pad(w2d, ((0, Kp - K), (0, 0))).astype(_BF16)
    bp = b.reshape(1, Cout).astype(_F32)
    lp = lin.reshape(1, Cout).astype(_F32)

    in_specs = [
        pl.BlockSpec((2, tm, Kp), lambda i: (0, i, 0)),
        pl.BlockSpec((Kp, Cout), lambda i: (0, 0)),
        pl.BlockSpec((1, Cout), lambda i: (0, 0)),
        pl.BlockSpec((1, Cout), lambda i: (0, 0)),
    ]
    dist_shape = jax.ShapeDtypeStruct((grid_m, 1, 1), _F32)
    dist_spec = pl.BlockSpec((1, 1, 1), lambda i: (i, 0, 0))
    if want_features:
        out_shape = (jax.ShapeDtypeStruct((2, Mp, Cout), _BF16), dist_shape)
        out_specs = (pl.BlockSpec((2, tm, Cout), lambda i: (0, i, 0)), dist_spec)
    else:
        out_shape = dist_shape
        out_specs = dist_spec

    outs = pl.pallas_call(
        functools.partial(_tap_kernel, want_features=want_features),
        out_shape=out_shape,
        grid=(grid_m,),
        in_specs=in_specs,
        out_specs=out_specs,
        compiler_params=pltpu.CompilerParams(
            dimension_semantics=("parallel",)),
    )(pb, wp, bp, lp)

    if want_features:
        feat, dist = outs
        x_next = feat[:, :M, :].reshape(2 * B, OH, OW, Cout)
    else:
        dist = outs
        x_next = None

    # sum over rows&channels / (B*OH*OW) == batch-mean of spatial-mean
    tap = jnp.sum(dist) / jnp.asarray(M, _F32)
    return x_next, tap


# ------------------------------ module ---------------------------------------

def init_lpips_params(key):
    params = {
        # LPIPS ScalingLayer constants
        "shift": jnp.array([-0.030, -0.088, -0.188], _F32),
        "scale": jnp.array([0.458, 0.448, 0.450], _F32),
        "convs": [],
        "lins": [],
    }
    for (cin, cout, k, _s, _p) in _CFG:
        key, kw_, kb_, kl_ = jax.random.split(key, 4)
        fan_in = cin * k * k
        w = jax.random.normal(kw_, (cout, cin, k, k), _F32) / jnp.sqrt(
            jnp.asarray(fan_in, _F32))
        b = 0.01 * jax.random.normal(kb_, (cout,), _F32)
        lin = jax.random.uniform(kl_, (cout,), _F32)  # nonneg, like trained lins
        params["convs"].append((w, b))
        params["lins"].append(lin)
    return params


def lpips_loss(pred_nchw, target_nchw, params):
    """Equivalent of LPIPSLoss.forward: lpips_fn(pred*2-1, target*2-1).mean()."""
    shift, scale = params["shift"], params["scale"]

    # Fold (x*2 - 1 - shift) / scale into conv1:  y = a*x + d  per input channel.
    a = 2.0 / scale
    d = (-1.0 - shift) / scale
    w1, b1 = params["convs"][0]
    w1f = w1 * a[None, :, None, None]
    b1f = b1 + jnp.sum(w1 * d[None, :, None, None], axis=(1, 2, 3))
    # Padding the raw image with this per-channel value corresponds exactly to
    # zero-padding the scaled input (a*v + d == 0).
    pad_val = (1.0 + shift) * 0.5
    convs = [(w1f, b1f)] + list(params["convs"][1:])

    xp = jnp.transpose(pred_nchw, (0, 2, 3, 1))    # NCHW -> NHWC
    xt = jnp.transpose(target_nchw, (0, 2, 3, 1))
    # Stack pred (first B) and target (last B); all glue from here is bf16.
    x = jnp.concatenate([xp, xt], axis=0).astype(_BF16)

    total = jnp.zeros((), _F32)
    pv = pad_val
    n_taps = len(_CFG)
    for idx, ((cin, cout, k, stride, pad), (w, b), lin) in enumerate(
            zip(_CFG, convs, params["lins"])):
        x, tap = _conv_relu_dist(x, w, b, lin, stride, pad, pad_value=pv,
                                 want_features=(idx < n_taps - 1))
        pv = None  # later taps zero-pad their (ReLU) feature maps
        total = total + tap
    return total


if __name__ == "__main__":
    key = jax.random.PRNGKey(0)
    kp_, kt_, kparam = jax.random.split(key, 3)
    B, C, H, W = 2, 3, 16, 16
    pred = jax.random.uniform(kp_, (B, C, H, W), _F32)    # images in [0, 1]
    target = jax.random.uniform(kt_, (B, C, H, W), _F32)
    params = init_lpips_params(kparam)

    loss = jax.jit(lpips_loss)(pred, target, params)
    jax.block_until_ready(loss)
    assert loss.shape == () and bool(jnp.isfinite(loss))
    print("KERNEL_OK")
</pallas_src>

<mosaic_0001>
module attributes {stable_mosaic.version = 11 : i64} {
  func.func @_tap_kernel(%arg0: i32, %arg1: memref<2x512x32xbf16, #tpu.memory_space<vmem>>, %arg2: memref<32x16xbf16, #tpu.memory_space<vmem>>, %arg3: memref<1x16xf32, #tpu.memory_space<vmem>>, %arg4: memref<1x16xf32, #tpu.memory_space<vmem>>, %arg5: memref<2x512x16xbf16, #tpu.memory_space<vmem>>, %arg6: memref<1x1x1xf32, #tpu.memory_space<vmem>>) attributes {dimension_semantics = [#tpu.dimension_semantics<parallel>], iteration_bounds = array<i64: 1>, scalar_prefetch = 0 : i64, scratch_operands = 0 : i64, tpu.core_type = #tpu.core_type<tc>, window_params = [{transform_indices = @transform_0, window_bounds = array<i64: 2, 512, 32>}, {pipeline_mode = #tpu.pipeline_mode<synchronous>, transform_indices = @transform_1, window_bounds = array<i64: 32, 16>}, {pipeline_mode = #tpu.pipeline_mode<synchronous>, transform_indices = @transform_2, window_bounds = array<i64: 1, 16>}, {pipeline_mode = #tpu.pipeline_mode<synchronous>, transform_indices = @transform_3, window_bounds = array<i64: 1, 16>}, {transform_indices = @transform_4, window_bounds = array<i64: 2, 512, 16>}, {transform_indices = @transform_5, window_bounds = array<i64: 1, 1, 1>}]} {
    %c0 = arith.constant 0 : index
    %c0_0 = arith.constant 0 : index
    %c0_1 = arith.constant 0 : index
    %0 = vector.load %arg1[%c0, %c0_0, %c0_1] : memref<2x512x32xbf16, #tpu.memory_space<vmem>>, vector<2x512x32xbf16>
    %1 = vector.shape_cast %0 : vector<2x512x32xbf16> to vector<1024x32xbf16>
    %c0_2 = arith.constant 0 : index
    %c0_3 = arith.constant 0 : index
    %2 = vector.load %arg2[%c0_2, %c0_3] : memref<32x16xbf16, #tpu.memory_space<vmem>>, vector<32x16xbf16>
    %cst = arith.constant dense<0.000000e+00> : vector<1024x16xf32>
    %3 = tpu.matmul %1, %2, %cst {dimension_numbers = #tpu.dot_dimension_numbers<[1], [0], [0], [1], [0, 0, 1, 1], [], []>} : vector<1024x32xbf16>, vector<32x16xbf16>, vector<1024x16xf32> -> vector<1024x16xf32>
    %c0_4 = arith.constant 0 : index
    %c0_5 = arith.constant 0 : index
    %4 = vector.load %arg3[%c0_4, %c0_5] : memref<1x16xf32, #tpu.memory_space<vmem>>, vector<1x16xf32>
    %5 = vector.broadcast %4 : vector<1x16xf32> to vector<1024x16xf32>
    %6 = arith.addf %3, %5 : vector<1024x16xf32>
    %cst_6 = arith.constant 0.000000e+00 : f32
    %7 = vector.broadcast %cst_6 : f32 to vector<1024x16xf32>
    %8 = arith.maximumf %6, %7 : vector<1024x16xf32>
    %9 = arith.mulf %8, %8 : vector<1024x16xf32>
    %cst_7 = arith.constant dense<0.000000e+00> : vector<1024xf32>
    %10 = vector.multi_reduction <add>, %9, %cst_7 [1] : vector<1024x16xf32> to vector<1024xf32>
    %11 = vector.shape_cast %10 : vector<1024xf32> to vector<1024x1xf32>
    %12 = math.sqrt %11 : vector<1024x1xf32>
    %cst_8 = arith.constant 1.000000e-10 : f32
    %13 = vector.broadcast %cst_8 : f32 to vector<1024x1xf32>
    %14 = arith.addf %12, %13 : vector<1024x1xf32>
    %cst_9 = arith.constant 1.000000e+00 : f32
    %15 = vector.broadcast %cst_9 : f32 to vector<1024x1xf32>
    %16 = arith.divf %15, %14 : vector<1024x1xf32>
    %17 = vector.broadcast %16 : vector<1024x1xf32> to vector<1024x16xf32>
    %18 = arith.mulf %8, %17 : vector<1024x16xf32>
    %19 = vector.extract_strided_slice %18 {offsets = [0, 0], sizes = [512, 16], strides = [1, 1]} : vector<1024x16xf32> to vector<512x16xf32>
    %20 = vector.extract_strided_slice %18 {offsets = [512, 0], sizes = [512, 16], strides = [1, 1]} : vector<1024x16xf32> to vector<512x16xf32>
    %21 = arith.subf %19, %20 : vector<512x16xf32>
    %c0_10 = arith.constant 0 : index
    %c0_11 = arith.constant 0 : index
    %22 = vector.load %arg4[%c0_10, %c0_11] : memref<1x16xf32, #tpu.memory_space<vmem>>, vector<1x16xf32>
    %23 = vector.broadcast %22 : vector<1x16xf32> to vector<512x16xf32>
    %24 = arith.mulf %23, %21 : vector<512x16xf32>
    %25 = arith.mulf %24, %21 : vector<512x16xf32>
    %cst_12 = arith.constant dense<0.000000e+00> : vector<512xf32>
    %26 = vector.multi_reduction <add>, %25, %cst_12 [1] : vector<512x16xf32> to vector<512xf32>
    %27 = vector.shape_cast %26 : vector<512xf32> to vector<512x1xf32>
    %cst_13 = arith.constant dense<0.000000e+00> : vector<1xf32>
    %28 = vector.multi_reduction <add>, %27, %cst_13 [0] : vector<512x1xf32> to vector<1xf32>
    %29 = vector.shape_cast %28 : vector<1xf32> to vector<1x1xf32>
    %30 = vector.shape_cast %29 : vector<1x1xf32> to vector<1x1x1xf32>
    %c0_14 = arith.constant 0 : index
    %c0_15 = arith.constant 0 : index
    %c0_16 = arith.constant 0 : index
    %31 = vector.load %arg6[%c0_14, %c0_15, %c0_16] : memref<1x1x1xf32, #tpu.memory_space<vmem>>, vector<1x1x1xf32>
    tpu.vector_store %arg6[%c0_14, %c0_15, %c0_16], %30 {strides = array<i32>} : memref<1x1x1xf32, #tpu.memory_space<vmem>>, vector<1x1x1xf32>,
    %32 = arith.truncf %8 : vector<1024x16xf32> to vector<1024x16xbf16>
    %33 = vector.extract_strided_slice %32 {offsets = [0, 0], sizes = [512, 16], strides = [1, 1]} : vector<1024x16xbf16> to vector<512x16xbf16>
    %c0_17 = arith.constant 0 : index
    %c0_18 = arith.constant 0 : index
    %c0_19 = arith.constant 0 : index
    %34 = vector.load %arg5[%c0_17, %c0_18, %c0_19] : memref<2x512x16xbf16, #tpu.memory_space<vmem>>, vector<1x512x16xbf16>
    %35 = vector.shape_cast %34 : vector<1x512x16xbf16> to vector<512x16xbf16>
    %36 = vector.shape_cast %33 : vector<512x16xbf16> to vector<1x512x16xbf16>
    tpu.vector_store %arg5[%c0_17, %c0_18, %c0_19], %36 {strides = array<i32>} : memref<2x512x16xbf16, #tpu.memory_space<vmem>>, vector<1x512x16xbf16>,
    %37 = vector.extract_strided_slice %32 {offsets = [512, 0], sizes = [512, 16], strides = [1, 1]} : vector<1024x16xbf16> to vector<512x16xbf16>
    %c1 = arith.constant 1 : index
    %c0_20 = arith.constant 0 : index
    %c0_21 = arith.constant 0 : index
    %38 = vector.load %arg5[%c1, %c0_20, %c0_21] : memref<2x512x16xbf16, #tpu.memory_space<vmem>>, vector<1x512x16xbf16>
    %39 = vector.shape_cast %38 : vector<1x512x16xbf16> to vector<512x16xbf16>
    %40 = vector.shape_cast %37 : vector<512x16xbf16> to vector<1x512x16xbf16>
    tpu.vector_store %arg5[%c1, %c0_20, %c0_21], %40 {strides = array<i32>} : memref<2x512x16xbf16, #tpu.memory_space<vmem>>, vector<1x512x16xbf16>,
    return
  }
  func.func @transform_0(%arg0: i32) -> (i32, i32, i32) {
    %c0_i32 = arith.constant 0 : i32
    %c0_i32_0 = arith.constant 0 : i32
    %c0_i32_1 = arith.constant 0 : i32
    return %c0_i32, %arg0, %c0_i32_0 : i32, i32, i32
  }
  func.func @transform_1(%arg0: i32) -> (i32, i32) {
    %c0_i32 = arith.constant 0 : i32
    %c0_i32_0 = arith.constant 0 : i32
    %c0_i32_1 = arith.constant 0 : i32
    return %c0_i32, %c0_i32_0 : i32, i32
  }
  func.func @transform_2(%arg0: i32) -> (i32, i32) {
    %c0_i32 = arith.constant 0 : i32
    %c0_i32_0 = arith.constant 0 : i32
    %c0_i32_1 = arith.constant 0 : i32
    return %c0_i32, %c0_i32_0 : i32, i32
  }
  func.func @transform_3(%arg0: i32) -> (i32, i32) {
    %c0_i32 = arith.constant 0 : i32
    %c0_i32_0 = arith.constant 0 : i32
    %c0_i32_1 = arith.constant 0 : i32
    return %c0_i32, %c0_i32_0 : i32, i32
  }
  func.func @transform_4(%arg0: i32) -> (i32, i32, i32) {
    %c0_i32 = arith.constant 0 : i32
    %c0_i32_0 = arith.constant 0 : i32
    %c0_i32_1 = arith.constant 0 : i32
    return %c0_i32, %arg0, %c0_i32_0 : i32, i32, i32
  }
  func.func @transform_5(%arg0: i32) -> (i32, i32, i32) {
    %c0_i32 = arith.constant 0 : i32
    %c0_i32_0 = arith.constant 0 : i32
    %c0_i32_1 = arith.constant 0 : i32
    return %arg0, %c0_i32, %c0_i32_0 : i32, i32, i32
  }
}

module attributes {stable_mosaic.version = 11 : i64} {
  func.func @_tap_kernel(%arg0: i32, %arg1: memref<2x128x144xbf16, #tpu.memory_space<vmem>>, %arg2: memref<144x32xbf16, #tpu.memory_space<vmem>>, %arg3: memref<1x32xf32, #tpu.memory_space<vmem>>, %arg4: memref<1x32xf32, #tpu.memory_space<vmem>>, %arg5: memref<2x128x32xbf16, #tpu.memory_space<vmem>>, %arg6: memref<1x1x1xf32, #tpu.memory_space<vmem>>) attributes {dimension_semantics = [#tpu.dimension_semantics<parallel>], iteration_bounds = array<i64: 1>, scalar_prefetch = 0 : i64, scratch_operands = 0 : i64, tpu.core_type = #tpu.core_type<tc>, window_params = [{transform_indices = @transform_0, window_bounds = array<i64: 2, 128, 144>}, {pipeline_mode = #tpu.pipeline_mode<synchronous>, transform_indices = @transform_1, window_bounds = array<i64: 144, 32>}, {pipeline_mode = #tpu.pipeline_mode<synchronous>, transform_indices = @transform_2, window_bounds = array<i64: 1, 32>}, {pipeline_mode = #tpu.pipeline_mode<synchronous>, transform_indices = @transform_3, window_bounds = array<i64: 1, 32>}, {transform_indices = @transform_4, window_bounds = array<i64: 2, 128, 32>}, {transform_indices = @transform_5, window_bounds = array<i64: 1, 1, 1>}]} {
    %c0 = arith.constant 0 : index
    %c0_0 = arith.constant 0 : index
    %c0_1 = arith.constant 0 : index
    %0 = vector.load %arg1[%c0, %c0_0, %c0_1] : memref<2x128x144xbf16, #tpu.memory_space<vmem>>, vector<2x128x144xbf16>
    %1 = vector.shape_cast %0 : vector<2x128x144xbf16> to vector<256x144xbf16>
    %c0_2 = arith.constant 0 : index
    %c0_3 = arith.constant 0 : index
    %2 = vector.load %arg2[%c0_2, %c0_3] : memref<144x32xbf16, #tpu.memory_space<vmem>>, vector<144x32xbf16>
    %cst = arith.constant dense<0.000000e+00> : vector<256x32xf32>
    %3 = tpu.matmul %1, %2, %cst {dimension_numbers = #tpu.dot_dimension_numbers<[1], [0], [0], [1], [0, 0, 1, 1], [], []>} : vector<256x144xbf16>, vector<144x32xbf16>, vector<256x32xf32> -> vector<256x32xf32>
    %c0_4 = arith.constant 0 : index
    %c0_5 = arith.constant 0 : index
    %4 = vector.load %arg3[%c0_4, %c0_5] : memref<1x32xf32, #tpu.memory_space<vmem>>, vector<1x32xf32>
    %5 = vector.broadcast %4 : vector<1x32xf32> to vector<256x32xf32>
    %6 = arith.addf %3, %5 : vector<256x32xf32>
    %cst_6 = arith.constant 0.000000e+00 : f32
    %7 = vector.broadcast %cst_6 : f32 to vector<256x32xf32>
    %8 = arith.maximumf %6, %7 : vector<256x32xf32>
    %9 = arith.mulf %8, %8 : vector<256x32xf32>
    %cst_7 = arith.constant dense<0.000000e+00> : vector<256xf32>
    %10 = vector.multi_reduction <add>, %9, %cst_7 [1] : vector<256x32xf32> to vector<256xf32>
    %11 = vector.shape_cast %10 : vector<256xf32> to vector<256x1xf32>
    %12 = math.sqrt %11 : vector<256x1xf32>
    %cst_8 = arith.constant 1.000000e-10 : f32
    %13 = vector.broadcast %cst_8 : f32 to vector<256x1xf32>
    %14 = arith.addf %12, %13 : vector<256x1xf32>
    %cst_9 = arith.constant 1.000000e+00 : f32
    %15 = vector.broadcast %cst_9 : f32 to vector<256x1xf32>
    %16 = arith.divf %15, %14 : vector<256x1xf32>
    %17 = vector.broadcast %16 : vector<256x1xf32> to vector<256x32xf32>
    %18 = arith.mulf %8, %17 : vector<256x32xf32>
    %19 = vector.extract_strided_slice %18 {offsets = [0, 0], sizes = [128, 32], strides = [1, 1]} : vector<256x32xf32> to vector<128x32xf32>
    %20 = vector.extract_strided_slice %18 {offsets = [128, 0], sizes = [128, 32], strides = [1, 1]} : vector<256x32xf32> to vector<128x32xf32>
    %21 = arith.subf %19, %20 : vector<128x32xf32>
    %c0_10 = arith.constant 0 : index
    %c0_11 = arith.constant 0 : index
    %22 = vector.load %arg4[%c0_10, %c0_11] : memref<1x32xf32, #tpu.memory_space<vmem>>, vector<1x32xf32>
    %23 = vector.broadcast %22 : vector<1x32xf32> to vector<128x32xf32>
    %24 = arith.mulf %23, %21 : vector<128x32xf32>
    %25 = arith.mulf %24, %21 : vector<128x32xf32>
    %cst_12 = arith.constant dense<0.000000e+00> : vector<128xf32>
    %26 = vector.multi_reduction <add>, %25, %cst_12 [1] : vector<128x32xf32> to vector<128xf32>
    %27 = vector.shape_cast %26 : vector<128xf32> to vector<128x1xf32>
    %cst_13 = arith.constant dense<0.000000e+00> : vector<1xf32>
    %28 = vector.multi_reduction <add>, %27, %cst_13 [0] : vector<128x1xf32> to vector<1xf32>
    %29 = vector.shape_cast %28 : vector<1xf32> to vector<1x1xf32>
    %30 = vector.shape_cast %29 : vector<1x1xf32> to vector<1x1x1xf32>
    %c0_14 = arith.constant 0 : index
    %c0_15 = arith.constant 0 : index
    %c0_16 = arith.constant 0 : index
    %31 = vector.load %arg6[%c0_14, %c0_15, %c0_16] : memref<1x1x1xf32, #tpu.memory_space<vmem>>, vector<1x1x1xf32>
    tpu.vector_store %arg6[%c0_14, %c0_15, %c0_16], %30 {strides = array<i32>} : memref<1x1x1xf32, #tpu.memory_space<vmem>>, vector<1x1x1xf32>,
    %32 = arith.truncf %8 : vector<256x32xf32> to vector<256x32xbf16>
    %33 = vector.extract_strided_slice %32 {offsets = [0, 0], sizes = [128, 32], strides = [1, 1]} : vector<256x32xbf16> to vector<128x32xbf16>
    %c0_17 = arith.constant 0 : index
    %c0_18 = arith.constant 0 : index
    %c0_19 = arith.constant 0 : index
    %34 = vector.load %arg5[%c0_17, %c0_18, %c0_19] : memref<2x128x32xbf16, #tpu.memory_space<vmem>>, vector<1x128x32xbf16>
    %35 = vector.shape_cast %34 : vector<1x128x32xbf16> to vector<128x32xbf16>
    %36 = vector.shape_cast %33 : vector<128x32xbf16> to vector<1x128x32xbf16>
    tpu.vector_store %arg5[%c0_17, %c0_18, %c0_19], %36 {strides = array<i32>} : memref<2x128x32xbf16, #tpu.memory_space<vmem>>, vector<1x128x32xbf16>,
    %37 = vector.extract_strided_slice %32 {offsets = [128, 0], sizes = [128, 32], strides = [1, 1]} : vector<256x32xbf16> to vector<128x32xbf16>
    %c1 = arith.constant 1 : index
    %c0_20 = arith.constant 0 : index
    %c0_21 = arith.constant 0 : index
    %38 = vector.load %arg5[%c1, %c0_20, %c0_21] : memref<2x128x32xbf16, #tpu.memory_space<vmem>>, vector<1x128x32xbf16>
    %39 = vector.shape_cast %38 : vector<1x128x32xbf16> to vector<128x32xbf16>
    %40 = vector.shape_cast %37 : vector<128x32xbf16> to vector<1x128x32xbf16>
    tpu.vector_store %arg5[%c1, %c0_20, %c0_21], %40 {strides = array<i32>} : memref<2x128x32xbf16, #tpu.memory_space<vmem>>, vector<1x128x32xbf16>,
    return
  }
  func.func @transform_0(%arg0: i32) -> (i32, i32, i32) {
    %c0_i32 = arith.constant 0 : i32
    %c0_i32_0 = arith.constant 0 : i32
    %c0_i32_1 = arith.constant 0 : i32
    return %c0_i32, %arg0, %c0_i32_0 : i32, i32, i32
  }
  func.func @transform_1(%arg0: i32) -> (i32, i32) {
    %c0_i32 = arith.constant 0 : i32
    %c0_i32_0 = arith.constant 0 : i32
    %c0_i32_1 = arith.constant 0 : i32
    return %c0_i32, %c0_i32_0 : i32, i32
  }
  func.func @transform_2(%arg0: i32) -> (i32, i32) {
    %c0_i32 = arith.constant 0 : i32
    %c0_i32_0 = arith.constant 0 : i32
    %c0_i32_1 = arith.constant 0 : i32
    return %c0_i32, %c0_i32_0 : i32, i32
  }
  func.func @transform_3(%arg0: i32) -> (i32, i32) {
    %c0_i32 = arith.constant 0 : i32
    %c0_i32_0 = arith.constant 0 : i32
    %c0_i32_1 = arith.constant 0 : i32
    return %c0_i32, %c0_i32_0 : i32, i32
  }
  func.func @transform_4(%arg0: i32) -> (i32, i32, i32) {
    %c0_i32 = arith.constant 0 : i32
    %c0_i32_0 = arith.constant 0 : i32
    %c0_i32_1 = arith.constant 0 : i32
    return %c0_i32, %arg0, %c0_i32_0 : i32, i32, i32
  }
  func.func @transform_5(%arg0: i32) -> (i32, i32, i32) {
    %c0_i32 = arith.constant 0 : i32
    %c0_i32_0 = arith.constant 0 : i32
    %c0_i32_1 = arith.constant 0 : i32
    return %arg0, %c0_i32, %c0_i32_0 : i32, i32, i32
  }
}

module attributes {stable_mosaic.version = 11 : i64} {
  func.func @_tap_kernel(%arg0: i32, %arg1: memref<2x32x288xbf16, #tpu.memory_space<vmem>>, %arg2: memref<288x64xbf16, #tpu.memory_space<vmem>>, %arg3: memref<1x64xf32, #tpu.memory_space<vmem>>, %arg4: memref<1x64xf32, #tpu.memory_space<vmem>>, %arg5: memref<1x1x1xf32, #tpu.memory_space<vmem>>) attributes {dimension_semantics = [#tpu.dimension_semantics<parallel>], iteration_bounds = array<i64: 1>, scalar_prefetch = 0 : i64, scratch_operands = 0 : i64, tpu.core_type = #tpu.core_type<tc>, window_params = [{transform_indices = @transform_0, window_bounds = array<i64: 2, 32, 288>}, {pipeline_mode = #tpu.pipeline_mode<synchronous>, transform_indices = @transform_1, window_bounds = array<i64: 288, 64>}, {pipeline_mode = #tpu.pipeline_mode<synchronous>, transform_indices = @transform_2, window_bounds = array<i64: 1, 64>}, {pipeline_mode = #tpu.pipeline_mode<synchronous>, transform_indices = @transform_3, window_bounds = array<i64: 1, 64>}, {transform_indices = @transform_4, window_bounds = array<i64: 1, 1, 1>}]} {
    %c0 = arith.constant 0 : index
    %c0_0 = arith.constant 0 : index
    %c0_1 = arith.constant 0 : index
    %0 = vector.load %arg1[%c0, %c0_0, %c0_1] : memref<2x32x288xbf16, #tpu.memory_space<vmem>>, vector<2x32x288xbf16>
    %1 = vector.shape_cast %0 : vector<2x32x288xbf16> to vector<64x288xbf16>
    %c0_2 = arith.constant 0 : index
    %c0_3 = arith.constant 0 : index
    %2 = vector.load %arg2[%c0_2, %c0_3] : memref<288x64xbf16, #tpu.memory_space<vmem>>, vector<288x64xbf16>
    %cst = arith.constant dense<0.000000e+00> : vector<64x64xf32>
    %3 = tpu.matmul %1, %2, %cst {dimension_numbers = #tpu.dot_dimension_numbers<[1], [0], [0], [1], [0, 0, 1, 1], [], []>} : vector<64x288xbf16>, vector<288x64xbf16>, vector<64x64xf32> -> vector<64x64xf32>
    %c0_4 = arith.constant 0 : index
    %c0_5 = arith.constant 0 : index
    %4 = vector.load %arg3[%c0_4, %c0_5] : memref<1x64xf32, #tpu.memory_space<vmem>>, vector<1x64xf32>
    %5 = vector.broadcast %4 : vector<1x64xf32> to vector<64x64xf32>
    %6 = arith.addf %3, %5 : vector<64x64xf32>
    %cst_6 = arith.constant 0.000000e+00 : f32
    %7 = vector.broadcast %cst_6 : f32 to vector<64x64xf32>
    %8 = arith.maximumf %6, %7 : vector<64x64xf32>
    %9 = arith.mulf %8, %8 : vector<64x64xf32>
    %cst_7 = arith.constant dense<0.000000e+00> : vector<64xf32>
    %10 = vector.multi_reduction <add>, %9, %cst_7 [1] : vector<64x64xf32> to vector<64xf32>
    %11 = vector.shape_cast %10 : vector<64xf32> to vector<64x1xf32>
    %12 = math.sqrt %11 : vector<64x1xf32>
    %cst_8 = arith.constant 1.000000e-10 : f32
    %13 = vector.broadcast %cst_8 : f32 to vector<64x1xf32>
    %14 = arith.addf %12, %13 : vector<64x1xf32>
    %cst_9 = arith.constant 1.000000e+00 : f32
    %15 = vector.broadcast %cst_9 : f32 to vector<64x1xf32>
    %16 = arith.divf %15, %14 : vector<64x1xf32>
    %17 = vector.broadcast %16 : vector<64x1xf32> to vector<64x64xf32>
    %18 = arith.mulf %8, %17 : vector<64x64xf32>
    %19 = vector.extract_strided_slice %18 {offsets = [0, 0], sizes = [32, 64], strides = [1, 1]} : vector<64x64xf32> to vector<32x64xf32>
    %20 = vector.extract_strided_slice %18 {offsets = [32, 0], sizes = [32, 64], strides = [1, 1]} : vector<64x64xf32> to vector<32x64xf32>
    %21 = arith.subf %19, %20 : vector<32x64xf32>
    %c0_10 = arith.constant 0 : index
    %c0_11 = arith.constant 0 : index
    %22 = vector.load %arg4[%c0_10, %c0_11] : memref<1x64xf32, #tpu.memory_space<vmem>>, vector<1x64xf32>
    %23 = vector.broadcast %22 : vector<1x64xf32> to vector<32x64xf32>
    %24 = arith.mulf %23, %21 : vector<32x64xf32>
    %25 = arith.mulf %24, %21 : vector<32x64xf32>
    %cst_12 = arith.constant dense<0.000000e+00> : vector<32xf32>
    %26 = vector.multi_reduction <add>, %25, %cst_12 [1] : vector<32x64xf32> to vector<32xf32>
    %27 = vector.shape_cast %26 : vector<32xf32> to vector<32x1xf32>
    %cst_13 = arith.constant dense<0.000000e+00> : vector<1xf32>
    %28 = vector.multi_reduction <add>, %27, %cst_13 [0] : vector<32x1xf32> to vector<1xf32>
    %29 = vector.shape_cast %28 : vector<1xf32> to vector<1x1xf32>
    %30 = vector.shape_cast %29 : vector<1x1xf32> to vector<1x1x1xf32>
    %c0_14 = arith.constant 0 : index
    %c0_15 = arith.constant 0 : index
    %c0_16 = arith.constant 0 : index
    %31 = vector.load %arg5[%c0_14, %c0_15, %c0_16] : memref<1x1x1xf32, #tpu.memory_space<vmem>>, vector<1x1x1xf32>
    tpu.vector_store %arg5[%c0_14, %c0_15, %c0_16], %30 {strides = array<i32>} : memref<1x1x1xf32, #tpu.memory_space<vmem>>, vector<1x1x1xf32>,
    return
  }
  func.func @transform_0(%arg0: i32) -> (i32, i32, i32) {
    %c0_i32 = arith.constant 0 : i32
    %c0_i32_0 = arith.constant 0 : i32
    %c0_i32_1 = arith.constant 0 : i32
    return %c0_i32, %arg0, %c0_i32_0 : i32, i32, i32
  }
  func.func @transform_1(%arg0: i32) -> (i32, i32) {
    %c0_i32 = arith.constant 0 : i32
    %c0_i32_0 = arith.constant 0 : i32
    %c0_i32_1 = arith.constant 0 : i32
    return %c0_i32, %c0_i32_0 : i32, i32
  }
  func.func @transform_2(%arg0: i32) -> (i32, i32) {
    %c0_i32 = arith.constant 0 : i32
    %c0_i32_0 = arith.constant 0 : i32
    %c0_i32_1 = arith.constant 0 : i32
    return %c0_i32, %c0_i32_0 : i32, i32
  }
  func.func @transform_3(%arg0: i32) -> (i32, i32) {
    %c0_i32 = arith.constant 0 : i32
    %c0_i32_0 = arith.constant 0 : i32
    %c0_i32_1 = arith.constant 0 : i32
    return %c0_i32, %c0_i32_0 : i32, i32
  }
  func.func @transform_4(%arg0: i32) -> (i32, i32, i32) {
    %c0_i32 = arith.constant 0 : i32
    %c0_i32_0 = arith.constant 0 : i32
    %c0_i32_1 = arith.constant 0 : i32
    return %arg0, %c0_i32, %c0_i32_0 : i32, i32, i32
  }
}

</mosaic_0001>

<bundles_post_ra>
// kernel: lpips_loss.4
= control target key start
LH: loop header
LB: loop body
LE: loop exit
PB: predicated region body
PF: predicated region fallthrough
CT: control target
= control target key end

     0   :  { %v1671_v1 = vmov 0   ;;  %vm276_vm0 = vcmask 130048   ;;  %s2716_s0 = inlined_call_operand.vmem [shape: bf16[2,128,144], index: 0, kind: input, shape index: {}]   ;;  %s2717_s1 = inlined_call_operand.vmem [shape: bf16[144,32], index: 1, kind: input, shape index: {}]   ;;  %s2718_s2 = inlined_call_operand.vmem [shape: f32[1,32], index: 2, kind: input, shape index: {}]   ;;  %s2719_s3 = inlined_call_operand.vmem [shape: f32[1,32], index: 3, kind: input, shape index: {}]   ;;  %s2720_s4 = inlined_call_operand.vmem [shape: bf16[2,128,32], index: 4, kind: output, shape index: {0}]   ;;  %s2721_s5 = inlined_call_operand.hbm [shape: f32[1,1,1], index: 5, kind: output, shape index: {1}]  }
   0x1   :  { %v1464_v0 = vld [vmem:[%s2717_s1 + $0x38] sm:$0xff]   ;;  %325 = vmatprep.subr.bf16.mxu0 %v1671_v1  ;;  %1444 = vmatprep.subr.bf16.mxu1 %v1671_v1  ;;  %v1465_v2 = vld [vmem:[%s2717_s1 + $0x30] sm:$0xff]   ;;  %v1466_v3 = vld [vmem:[%s2717_s1 + $0x28] sm:$0xff]  }
   0x2   :  { %326 = vmatpush1.bf16.msra.mxu0 %v1464_v0  ;;  %1453 = vmatpush1.bf16.msra.mxu1 %v1464_v0  ;;  %v1467_v4 = vld [vmem:[%s2717_s1 + $0x20] sm:$0xff]   ;;  %v1468_v7 = vld [vmem:[%s2717_s1 + $0x18] sm:$0xff]   ;;  %v1469_v8 = vld [vmem:[%s2717_s1 + $0x10] sm:$0xff]  }
   0x3   :  { %327 = vmatprep.subr.bf16.mxu0 %v1671_v1  ;;  %1445 = vmatprep.subr.bf16.mxu1 %v1671_v1  ;;  %v1475_v5 = vld [vmem:[%s2716_s0 + $0x4] ss:$8 sps:$4 sm:$0xff]  }
   0x4   :  { %v1478_v6 = vld [vmem:[%s2716_s0 + $0x84] ss:$8 sps:$4 sm:$0xff]   ;;  %1347 = vmatprep.mubr.msk.bf16.mxu0 %vm276_vm0, %v1475_v5 }
   0x5   :  { %1355 = vmatprep.mubr.msk.bf16.mxu1 %vm276_vm0, %v1478_v6  ;;  %v1470_v9 = vld [vmem:[%s2717_s1 + $0x8] sm:$0xff]   ;;  %v1471_v10 = vld [vmem:[%s2717_s1] sm:$0xff]  }
   0x6   :  { %328 = vmatpush1.bf16.msra.mxu0 %v1465_v2  ;;  %1454 = vmatpush1.bf16.msra.mxu1 %v1465_v2  ;;  %v1472_v11 = vld [vmem:[%s2717_s1 + $0x40] sm:$0xff]  }
   0x7   :  { %329 = vmatprep.subr.bf16.mxu0 %v1671_v1  ;;  %1446 = vmatprep.subr.bf16.mxu1 %v1671_v1 }
   0xa   :  { %330 = vmatpush1.bf16.msra.mxu0 %v1466_v3  ;;  %1455 = vmatpush1.bf16.msra.mxu1 %v1466_v3 }
   0xb   :  { %331 = vmatprep.subr.bf16.mxu0 %v1671_v1  ;;  %1447 = vmatprep.subr.bf16.mxu1 %v1671_v1 }
   0xe   :  { %332 = vmatpush1.bf16.msra.mxu0 %v1467_v4  ;;  %1456 = vmatpush1.bf16.msra.mxu1 %v1467_v4 }
   0xf   :  { %333 = vmatprep.subr.bf16.mxu0 %v1671_v1  ;;  %1448 = vmatprep.subr.bf16.mxu1 %v1671_v1 }
  0x12   :  { %334 = vmatpush1.bf16.msra.mxu0 %v1468_v7  ;;  %1457 = vmatpush1.bf16.msra.mxu1 %v1468_v7 }
  0x13   :  { %335 = vmatprep.subr.bf16.mxu0 %v1671_v1  ;;  %1449 = vmatprep.subr.bf16.mxu1 %v1671_v1 }
  0x16   :  { %336 = vmatpush1.bf16.msra.mxu0 %v1469_v8  ;;  %1458 = vmatpush1.bf16.msra.mxu1 %v1469_v8 }
  0x17   :  { %337 = vmatprep.subr.bf16.mxu0 %v1671_v1  ;;  %1450 = vmatprep.subr.bf16.mxu1 %v1671_v1 }
  0x1a   :  { %338 = vmatpush1.bf16.msra.mxu0 %v1470_v9  ;;  %1459 = vmatpush1.bf16.msra.mxu1 %v1470_v9 }
  0x1b   :  { %339 = vmatprep.subr.bf16.mxu0 %v1671_v1  ;;  %1451 = vmatprep.subr.bf16.mxu1 %v1671_v1 }
  0x1e   :  { %340 = vmatpush1.bf16.msra.mxu0 %v1471_v10  ;;  %1460 = vmatpush1.bf16.msra.mxu1 %v1471_v10 }
  0x1f   :  { %11 = vsyncpa [#allocation3], 0  ;;  %355 = vmatprep.subr.bf16.mxu0 %v1671_v1  ;;  %1452 = vmatprep.subr.bf16.mxu1 %v1671_v1  ;;  %v1473_v12 = vld [vmem:[%s2716_s0] ss:$8 sps:$4 sm:$0xff]   ;;  %v1479_v14 = vld [vmem:[%s2716_s0 + $0x14] ss:$8 sps:$4 sm:$0xff]  }
  0x20   :  { %v1476_v13 = vld [vmem:[%s2716_s0 + $0x80] ss:$8 sps:$4 sm:$0xff]   ;;  %v1481_v15 = vld [vmem:[%s2716_s0 + $0x94] ss:$8 sps:$4 sm:$0xff]   ;;  %v1483_v16 = vld [vmem:[%s2716_s0 + $0x10] ss:$8 sps:$4 sm:$0xff]  }
  0x21   :  { %v1484_v17 = vld [vmem:[%s2716_s0 + $0x90] ss:$8 sps:$4 sm:$0xff]   ;;  %v1485_v18 = vld [vmem:[%s2716_s0 + $0x24] ss:$8 sps:$4 sm:$0xff]   ;;  %v1489_v20 = vld [vmem:[%s2716_s0 + $0x20] ss:$8 sps:$4 sm:$0xff]  }
  0x22   :  { %356 = vmatpush2.bf16.msra.mxu0 %v1472_v11  ;;  %1461 = vmatpush2.bf16.msra.mxu1 %v1472_v11  ;;  %v1487_v19 = vld [vmem:[%s2716_s0 + $0xa4] ss:$8 sps:$4 sm:$0xff]   ;;  %v1490_v21 = vld [vmem:[%s2716_s0 + $0xa0] ss:$8 sps:$4 sm:$0xff]   ;;  %v1491_v22 = vld [vmem:[%s2716_s0 + $0x34] ss:$8 sps:$4 sm:$0xff]  }
  0x23   :  { %v1493_v23 = vld [vmem:[%s2716_s0 + $0xb4] ss:$8 sps:$4 sm:$0xff]   ;;  %v1495_v24 = vld [vmem:[%s2716_s0 + $0x30] ss:$8 sps:$4 sm:$0xff]   ;;  %v1497_v26 = vld [vmem:[%s2716_s0 + $0x44] ss:$8 sps:$4 sm:$0xff]  }
  0x24   :  { %v1496_v25 = vld [vmem:[%s2716_s0 + $0xb0] ss:$8 sps:$4 sm:$0xff]   ;;  %v1499_v27 = vld [vmem:[%s2716_s0 + $0xc4] ss:$8 sps:$4 sm:$0xff]   ;;  %v1501_v28 = vld [vmem:[%s2716_s0 + $0x40] ss:$8 sps:$4 sm:$0xff]  }
  0x25   :  { %358 = vmatmul.mubr.bf16.vlgmr.msra.gmra.mxu0 %v1473_v12  ;;  %422 = vmatmul.mubr.bf16.vlgmr.msra.gmra.mxu1 %v1476_v13  ;;  %v1502_v29 = vld [vmem:[%s2716_s0 + $0xc0] ss:$8 sps:$4 sm:$0xff]   ;;  %v1503_v30 = vld [vmem:[%s2716_s0 + $0x54] ss:$8 sps:$4 sm:$0xff]   ;;  %v1507_v32 = vld [vmem:[%s2716_s0 + $0x50] ss:$8 sps:$4 sm:$0xff]  }
  0x26   :  { %1348 = vmatprep.mubr.msk.bf16.mxu0 %vm276_vm0, %v1479_v14  ;;  %1356 = vmatprep.mubr.msk.bf16.mxu1 %vm276_vm0, %v1481_v15  ;;  %v1505_v31 = vld [vmem:[%s2716_s0 + $0xd4] ss:$8 sps:$4 sm:$0xff]   ;;  %v1508_v33 = vld [vmem:[%s2716_s0 + $0xd0] ss:$8 sps:$4 sm:$0xff]   ;;  %v1509_v34 = vld [vmem:[%s2716_s0 + $0x64] ss:$8 sps:$4 sm:$0xff]  }
  0x27   :  { %v1511_v35 = vld [vmem:[%s2716_s0 + $0xe4] ss:$8 sps:$4 sm:$0xff]   ;;  %v1513_v36 = vld [vmem:[%s2716_s0 + $0x60] ss:$8 sps:$4 sm:$0xff]   ;;  %v1515_v38 = vld [vmem:[%s2716_s0 + $0x74] ss:$8 sps:$4 sm:$0xff]  }
  0x28   :  { %v1514_v37 = vld [vmem:[%s2716_s0 + $0xe0] ss:$8 sps:$4 sm:$0xff]   ;;  %v1517_v39 = vld [vmem:[%s2716_s0 + $0xf4] ss:$8 sps:$4 sm:$0xff]   ;;  %v1519_v40 = vld [vmem:[%s2716_s0 + $0x70] ss:$8 sps:$4 sm:$0xff]  }
  0x29   :  { %v1520_v41 = vld [vmem:[%s2716_s0 + $0xf0] ss:$8 sps:$4 sm:$0xff]   ;;  %v1845_v42 = vld [vmem:[%s2718_s2] ss:$0 sm:$0xff]  ;;  %vm1197_vm1 = vcmask 257024   ;;  %vm550_vm2 = vcmask 261120  }
  0x2d   :  { %366 = vmatmul.mubr.bf16.gmra.mxu0 %v1483_v16  ;;  %430 = vmatmul.mubr.bf16.gmra.mxu1 %v1484_v17 }
  0x2e   :  { %1349 = vmatprep.mubr.msk.bf16.mxu0 %vm276_vm0, %v1485_v18  ;;  %1357 = vmatprep.mubr.msk.bf16.mxu1 %vm276_vm0, %v1487_v19 }
  0x35   :  { %374 = vmatmul.mubr.bf16.gmra.mxu0 %v1489_v20  ;;  %438 = vmatmul.mubr.bf16.gmra.mxu1 %v1490_v21 }
  0x36   :  { %1350 = vmatprep.mubr.msk.bf16.mxu0 %vm276_vm0, %v1491_v22  ;;  %1358 = vmatprep.mubr.msk.bf16.mxu1 %vm276_vm0, %v1493_v23 }
  0x3d   :  { %382 = vmatmul.mubr.bf16.gmra.mxu0 %v1495_v24  ;;  %446 = vmatmul.mubr.bf16.gmra.mxu1 %v1496_v25 }
  0x3e   :  { %1351 = vmatprep.mubr.msk.bf16.mxu0 %vm276_vm0, %v1497_v26  ;;  %1359 = vmatprep.mubr.msk.bf16.mxu1 %vm276_vm0, %v1499_v27 }
  0x45   :  { %390 = vmatmul.mubr.bf16.gmra.mxu0 %v1501_v28  ;;  %454 = vmatmul.mubr.bf16.gmra.mxu1 %v1502_v29 }
  0x46   :  { %1352 = vmatprep.mubr.msk.bf16.mxu0 %vm276_vm0, %v1503_v30  ;;  %1360 = vmatprep.mubr.msk.bf16.mxu1 %vm276_vm0, %v1505_v31 }
  0x4d   :  { %398 = vmatmul.mubr.bf16.gmra.mxu0 %v1507_v32  ;;  %462 = vmatmul.mubr.bf16.gmra.mxu1 %v1508_v33 }
  0x4e   :  { %1353 = vmatprep.mubr.msk.bf16.mxu0 %vm276_vm0, %v1509_v34  ;;  %1361 = vmatprep.mubr.msk.bf16.mxu1 %vm276_vm0, %v1511_v35 }
  0x55   :  { %406 = vmatmul.mubr.bf16.gmra.mxu0 %v1513_v36  ;;  %470 = vmatmul.mubr.bf16.gmra.mxu1 %v1514_v37 }
  0x56   :  { %1354 = vmatprep.mubr.msk.bf16.mxu0 %vm276_vm0, %v1515_v38  ;;  %1362 = vmatprep.mubr.msk.bf16.mxu1 %vm276_vm0, %v1517_v39 }
  0x5d   :  { %414 = vmatmul.mubr.bf16.gmra.mxu0 %v1519_v40  ;;  %478 = vmatmul.mubr.bf16.gmra.mxu1 %v1520_v41 }
  0xe5   :  { %v359_v43 = vpop.f32.mrf.mxu0  ;;  %v423_v44 = vpop.f32.mrf.mxu1 }
  0xe6   :  { %v360_v45 = vadd.f32 %v1845_v42, %v359_v43  ;;  %v424_v46 = vadd.f32 %v1845_v42, %v423_v44 }
  0xe7   :  { %v361_v47 = vpop.f32.mrf.mxu0  ;;  %v425_v48 = vpop.f32.mrf.mxu1 }
  0xe8   :  { %v1849_v49 = vmax.f32 %v360_v45, 0.0  ;;  %v1851_v50 = vmax.f32 %v424_v46, 0.0 }
  0xe9   :  { %v362_v51 = vpop.f32.mrf.mxu0  ;;  %v426_v52 = vpop.f32.mrf.mxu1 }
  0xea   :  { %v1412_v53 = vpack.c.bf16 %v1849_v49, %v1849_v49  ;;  %v1428_v54 = vpack.c.bf16 %v1851_v50, %v1851_v50  ;;  %v363_v55 = vadd.f32 %v1845_v42, %v362_v51  ;;  %v427_v56 = vadd.f32 %v1845_v42, %v426_v52 }
  0xeb   :  { %v364_v57 = vpop.f32.mrf.mxu0  ;;  %v428_v58 = vpop.f32.mrf.mxu1  ;;  %v534_v59 = vmul.f32 %v1851_v50, %v1851_v50  ;;  %v518_v60 = vmul.f32 %v1849_v49, %v1849_v49 }
  0xec   :  { %1198 = vst.msk [vmem:[%s2720_s4] sm:$0xf] %vm1197_vm1, %v1412_v53  ;;  %1396 = vst.msk [vmem:[%s2720_s4 + $0x40] sm:$0xf] %vm1197_vm1, %v1428_v54  ;;  %v1871_v61 = vmax.f32 %v363_v55, 0.0  ;;  %v1873_v62 = vmax.f32 %v427_v56, 0.0 }
  0xed   :  { %v431_v63 = vpop.f32.mrf.mxu1  ;;  %v599_v0 = vsel %vm550_vm2, %v534_v59, 0.0  ;;  %v367_v1 = vpop.f32.mrf.mxu0  ;;  %v551_v2 = vsel %vm550_vm2, %v518_v60, 0.0 }
  0xee   :  { %v1413_v3 = vpack.c.bf16 %v1871_v61, %v1871_v61  ;;  %v1429_v4 = vpack.c.bf16 %v1873_v62, %v1873_v62  ;;  %v432_v5 = vadd.f32 %v1845_v42, %v431_v63  ;;  %600 = vadd.xlane.f32.xlu1 %v599_v0  ;;  %v368_v6 = vadd.f32 %v1845_v42, %v367_v1 }
  0xef   :  { %552 = vadd.xlane.f32.xlu0 %v551_v2  ;;  %v369_v7 = vpop.f32.mrf.mxu0  ;;  %v433_v8 = vpop.f32.mrf.mxu1  ;;  %v535_v9 = vmul.f32 %v1873_v62, %v1873_v62  ;;  %v519_v10 = vmul.f32 %v1871_v61, %v1871_v61 }
  0xf0   :  { %1199 = vst.msk [vmem:[%s2720_s4 + $0x4] sm:$0xf] %vm1197_vm1, %v1413_v3  ;;  %1397 = vst.msk [vmem:[%s2720_s4 + $0x44] sm:$0xf] %vm1197_vm1, %v1429_v4  ;;  %v1895_v11 = vmax.f32 %v432_v5, 0.0  ;;  %v1897_v12 = vmax.f32 %v368_v6, 0.0 }
  0xf1   :  { %v434_v13 = vpop.f32.mrf.mxu1  ;;  %v602_v14 = vsel %vm550_vm2, %v535_v9, 0.0  ;;  %v370_v15 = vpop.f32.mrf.mxu0  ;;  %v554_v16 = vsel %vm550_vm2, %v519_v10, 0.0 }
  0xf2   :  { %v1430_v17 = vpack.c.bf16 %v1895_v11, %v1895_v11  ;;  %v1414_v18 = vpack.c.bf16 %v1897_v12, %v1897_v12  ;;  %v435_v19 = vadd.f32 %v1845_v42, %v434_v13  ;;  %603 = vadd.xlane.f32.xlu1 %v602_v14  ;;  %v371_v20 = vadd.f32 %v1845_v42, %v370_v15 }
  0xf3   :  { %555 = vadd.xlane.f32.xlu0 %v554_v16  ;;  %v372_v21 = vpop.f32.mrf.mxu0  ;;  %v436_v22 = vpop.f32.mrf.mxu1  ;;  %v536_v23 = vmul.f32 %v1895_v11, %v1895_v11  ;;  %v520_v24 = vmul.f32 %v1897_v12, %v1897_v12 }
  0xf4   :  { %1398 = vst.msk [vmem:[%s2720_s4 + $0x48] sm:$0xf] %vm1197_vm1, %v1430_v17  ;;  %1200 = vst.msk [vmem:[%s2720_s4 + $0x8] sm:$0xf] %vm1197_vm1, %v1414_v18  ;;  %v1919_v25 = vmax.f32 %v435_v19, 0.0  ;;  %v1921_v26 = vmax.f32 %v371_v20, 0.0 }
  0xf5   :  { %v439_v27 = vpop.f32.mrf.mxu1  ;;  %v605_v28 = vsel %vm550_vm2, %v536_v23, 0.0  ;;  %v375_v29 = vpop.f32.mrf.mxu0  ;;  %v557_v30 = vsel %vm550_vm2, %v520_v24, 0.0 }
  0xf6   :  { %v1431_v31 = vpack.c.bf16 %v1919_v25, %v1919_v25  ;;  %v1415_v32 = vpack.c.bf16 %v1921_v26, %v1921_v26  ;;  %v440_v33 = vadd.f32 %v1845_v42, %v439_v27  ;;  %606 = vadd.xlane.f32.xlu1 %v605_v28  ;;  %v376_v34 = vadd.f32 %v1845_v42, %v375_v29 }
  0xf7   :  { %558 = vadd.xlane.f32.xlu0 %v557_v30  ;;  %v377_v35 = vpop.f32.mrf.mxu0  ;;  %v441_v36 = vpop.f32.mrf.mxu1  ;;  %v537_v37 = vmul.f32 %v1919_v25, %v1919_v25  ;;  %v521_v38 = vmul.f32 %v1921_v26, %v1921_v26 }
  0xf8   :  { %1399 = vst.msk [vmem:[%s2720_s4 + $0x4c] sm:$0xf] %vm1197_vm1, %v1431_v31  ;;  %1201 = vst.msk [vmem:[%s2720_s4 + $0xc] sm:$0xf] %vm1197_vm1, %v1415_v32  ;;  %v1943_v39 = vmax.f32 %v440_v33, 0.0  ;;  %v1945_v40 = vmax.f32 %v376_v34, 0.0 }
  0xf9   :  { %v442_v41 = vpop.f32.mrf.mxu1  ;;  %v608_v43 = vsel %vm550_vm2, %v537_v37, 0.0  ;;  %v378_v44 = vpop.f32.mrf.mxu0  ;;  %v560_v45 = vsel %vm550_vm2, %v521_v38, 0.0 }
  0xfa   :  { %v1432_v46 = vpack.c.bf16 %v1943_v39, %v1943_v39  ;;  %v1416_v47 = vpack.c.bf16 %v1945_v40, %v1945_v40  ;;  %v443_v48 = vadd.f32 %v1845_v42, %v442_v41  ;;  %609 = vadd.xlane.f32.xlu1 %v608_v43  ;;  %v379_v51 = vadd.f32 %v1845_v42, %v378_v44 }
  0xfb   :  { %561 = vadd.xlane.f32.xlu0 %v560_v45  ;;  %v380_v52 = vpop.f32.mrf.mxu0  ;;  %v444_v53 = vpop.f32.mrf.mxu1  ;;  %v538_v54 = vmul.f32 %v1943_v39, %v1943_v39  ;;  %v522_v55 = vmul.f32 %v1945_v40, %v1945_v40 }
  0xfc   :  { %1400 = vst.msk [vmem:[%s2720_s4 + $0x50] sm:$0xf] %vm1197_vm1, %v1432_v46  ;;  %1202 = vst.msk [vmem:[%s2720_s4 + $0x10] sm:$0xf] %vm1197_vm1, %v1416_v47  ;;  %v1967_v56 = vmax.f32 %v443_v48, 0.0  ;;  %v1969_v57 = vmax.f32 %v379_v51, 0.0 }
  0xfd   :  { %v447_v58 = vpop.f32.mrf.mxu1  ;;  %v611_v59 = vsel %vm550_vm2, %v538_v54, 0.0  ;;  %v383_v60 = vpop.f32.mrf.mxu0  ;;  %v563_v63 = vsel %vm550_vm2, %v522_v55, 0.0 }
  0xfe   :  { %v1433_v0 = vpack.c.bf16 %v1967_v56, %v1967_v56  ;;  %v1417_v1 = vpack.c.bf16 %v1969_v57, %v1969_v57  ;;  %v448_v2 = vadd.f32 %v1845_v42, %v447_v58  ;;  %612 = vadd.xlane.f32.xlu1 %v611_v59  ;;  %v384_v3 = vadd.f32 %v1845_v42, %v383_v60 }
  0xff   :  { %564 = vadd.xlane.f32.xlu0 %v563_v63  ;;  %v385_v4 = vpop.f32.mrf.mxu0  ;;  %v449_v5 = vpop.f32.mrf.mxu1  ;;  %v539_v6 = vmul.f32 %v1967_v56, %v1967_v56  ;;  %v523_v7 = vmul.f32 %v1969_v57, %v1969_v57 }
 0x100   :  { %1401 = vst.msk [vmem:[%s2720_s4 + $0x54] sm:$0xf] %vm1197_vm1, %v1433_v0  ;;  %1203 = vst.msk [vmem:[%s2720_s4 + $0x14] sm:$0xf] %vm1197_vm1, %v1417_v1  ;;  %v1991_v8 = vmax.f32 %v448_v2, 0.0  ;;  %v1993_v9 = vmax.f32 %v384_v3, 0.0 }
 0x101   :  { %v450_v10 = vpop.f32.mrf.mxu1  ;;  %v614_v13 = vsel %vm550_vm2, %v539_v6, 0.0  ;;  %v386_v14 = vpop.f32.mrf.mxu0  ;;  %v566_v15 = vsel %vm550_vm2, %v523_v7, 0.0 }
 0x102   :  { %v1434_v16 = vpack.c.bf16 %v1991_v8, %v1991_v8  ;;  %v1418_v17 = vpack.c.bf16 %v1993_v9, %v1993_v9  ;;  %v451_v18 = vadd.f32 %v1845_v42, %v450_v10  ;;  %615 = vadd.xlane.f32.xlu1 %v614_v13  ;;  %v387_v19 = vadd.f32 %v1845_v42, %v386_v14 }
 0x103   :  { %567 = vadd.xlane.f32.xlu0 %v566_v15  ;;  %v388_v20 = vpop.f32.mrf.mxu0  ;;  %v452_v21 = vpop.f32.mrf.mxu1  ;;  %v540_v22 = vmul.f32 %v1991_v8, %v1991_v8  ;;  %v524_v23 = vmul.f32 %v1993_v9, %v1993_v9 }
 0x104   :  { %1402 = vst.msk [vmem:[%s2720_s4 + $0x58] sm:$0xf] %vm1197_vm1, %v1434_v16  ;;  %1204 = vst.msk [vmem:[%s2720_s4 + $0x18] sm:$0xf] %vm1197_vm1, %v1418_v17  ;;  %v2015_v24 = vmax.f32 %v451_v18, 0.0  ;;  %v2017_v27 = vmax.f32 %v387_v19, 0.0 }
 0x105   :  { %v455_v28 = vpop.f32.mrf.mxu1  ;;  %v617_v29 = vsel %vm550_vm2, %v540_v22, 0.0  ;;  %v391_v30 = vpop.f32.mrf.mxu0  ;;  %v569_v31 = vsel %vm550_vm2, %v524_v23, 0.0 }
 0x106   :  { %v1435_v32 = vpack.c.bf16 %v2015_v24, %v2015_v24  ;;  %v1419_v33 = vpack.c.bf16 %v2017_v27, %v2017_v27  ;;  %v456_v34 = vadd.f32 %v1845_v42, %v455_v28  ;;  %618 = vadd.xlane.f32.xlu1 %v617_v29  ;;  %v392_v35 = vadd.f32 %v1845_v42, %v391_v30 }
 0x107   :  { %570 = vadd.xlane.f32.xlu0 %v569_v31  ;;  %v393_v36 = vpop.f32.mrf.mxu0  ;;  %v457_v37 = vpop.f32.mrf.mxu1  ;;  %v541_v38 = vmul.f32 %v2015_v24, %v2015_v24  ;;  %v525_v41 = vmul.f32 %v2017_v27, %v2017_v27 }
 0x108   :  { %1403 = vst.msk [vmem:[%s2720_s4 + $0x5c] sm:$0xf] %vm1197_vm1, %v1435_v32  ;;  %1205 = vst.msk [vmem:[%s2720_s4 + $0x1c] sm:$0xf] %vm1197_vm1, %v1419_v33  ;;  %v2039_v43 = vmax.f32 %v456_v34, 0.0  ;;  %v2041_v44 = vmax.f32 %v392_v35, 0.0 }
 0x109   :  { %v458_v45 = vpop.f32.mrf.mxu1  ;;  %v620_v46 = vsel %vm550_vm2, %v541_v38, 0.0  ;;  %v394_v47 = vpop.f32.mrf.mxu0  ;;  %v572_v48 = vsel %vm550_vm2, %v525_v41, 0.0 }
 0x10a   :  { %v1436_v51 = vpack.c.bf16 %v2039_v43, %v2039_v43  ;;  %v1420_v52 = vpack.c.bf16 %v2041_v44, %v2041_v44  ;;  %v459_v53 = vadd.f32 %v1845_v42, %v458_v45  ;;  %621 = vadd.xlane.f32.xlu1 %v620_v46  ;;  %v395_v54 = vadd.f32 %v1845_v42, %v394_v47 }
 0x10b   :  { %573 = vadd.xlane.f32.xlu0 %v572_v48  ;;  %v396_v55 = vpop.f32.mrf.mxu0  ;;  %v460_v58 = vpop.f32.mrf.mxu1  ;;  %v542_v59 = vmul.f32 %v2039_v43, %v2039_v43  ;;  %v526_v60 = vmul.f32 %v2041_v44, %v2041_v44 }
 0x10c   :  { %1404 = vst.msk [vmem:[%s2720_s4 + $0x60] sm:$0xf] %vm1197_vm1, %v1436_v51  ;;  %1206 = vst.msk [vmem:[%s2720_s4 + $0x20] sm:$0xf] %vm1197_vm1, %v1420_v52  ;;  %v2063_v63 = vmax.f32 %v459_v53, 0.0  ;;  %v2065_v0 = vmax.f32 %v395_v54, 0.0 }
 0x10d   :  { %v463_v1 = vpop.f32.mrf.mxu1  ;;  %v623_v2 = vsel %vm550_vm2, %v542_v59, 0.0  ;;  %v399_v3 = vpop.f32.mrf.mxu0  ;;  %v575_v4 = vsel %vm550_vm2, %v526_v60, 0.0 }
 0x10e   :  { %v1437_v5 = vpack.c.bf16 %v2063_v63, %v2063_v63  ;;  %v1421_v6 = vpack.c.bf16 %v2065_v0, %v2065_v0  ;;  %v464_v7 = vadd.f32 %v1845_v42, %v463_v1  ;;  %624 = vadd.xlane.f32.xlu1 %v623_v2  ;;  %v400_v10 = vadd.f32 %v1845_v42, %v399_v3 }
 0x10f   :  { %576 = vadd.xlane.f32.xlu0 %v575_v4  ;;  %v401_v13 = vpop.f32.mrf.mxu0  ;;  %v465_v14 = vpop.f32.mrf.mxu1  ;;  %v543_v15 = vmul.f32 %v2063_v63, %v2063_v63  ;;  %v527_v16 = vmul.f32 %v2065_v0, %v2065_v0 }
 0x110   :  { %1405 = vst.msk [vmem:[%s2720_s4 + $0x64] sm:$0xf] %vm1197_vm1, %v1437_v5  ;;  %1207 = vst.msk [vmem:[%s2720_s4 + $0x24] sm:$0xf] %vm1197_vm1, %v1421_v6  ;;  %v2087_v17 = vmax.f32 %v464_v7, 0.0  ;;  %v2089_v18 = vmax.f32 %v400_v10, 0.0 }
 0x111   :  { %v466_v19 = vpop.f32.mrf.mxu1  ;;  %v626_v20 = vsel %vm550_vm2, %v543_v15, 0.0  ;;  %v402_v21 = vpop.f32.mrf.mxu0  ;;  %v578_v22 = vsel %vm550_vm2, %v527_v16, 0.0 }
 0x112   :  { %v1438_v23 = vpack.c.bf16 %v2087_v17, %v2087_v17  ;;  %v1422_v28 = vpack.c.bf16 %v2089_v18, %v2089_v18  ;;  %v467_v29 = vadd.f32 %v1845_v42, %v466_v19  ;;  %627 = vadd.xlane.f32.xlu1 %v626_v20  ;;  %v403_v30 = vadd.f32 %v1845_v42, %v402_v21 }
 0x113   :  { %579 = vadd.xlane.f32.xlu0 %v578_v22  ;;  %v404_v31 = vpop.f32.mrf.mxu0  ;;  %v468_v32 = vpop.f32.mrf.mxu1  ;;  %v544_v33 = vmul.f32 %v2087_v17, %v2087_v17  ;;  %v528_v34 = vmul.f32 %v2089_v18, %v2089_v18 }
 0x114   :  { %1406 = vst.msk [vmem:[%s2720_s4 + $0x68] sm:$0xf] %vm1197_vm1, %v1438_v23  ;;  %1208 = vst.msk [vmem:[%s2720_s4 + $0x28] sm:$0xf] %vm1197_vm1, %v1422_v28  ;;  %v2111_v35 = vmax.f32 %v467_v29, 0.0  ;;  %v2113_v36 = vmax.f32 %v403_v30, 0.0 }
 0x115   :  { %v471_v37 = vpop.f32.mrf.mxu1  ;;  %v629_v38 = vsel %vm550_vm2, %v544_v33, 0.0  ;;  %v407_v41 = vpop.f32.mrf.mxu0  ;;  %v581_v45 = vsel %vm550_vm2, %v528_v34, 0.0 }
 0x116   :  { %v1439_v46 = vpack.c.bf16 %v2111_v35, %v2111_v35  ;;  %v1423_v47 = vpack.c.bf16 %v2113_v36, %v2113_v36  ;;  %v472_v48 = vadd.f32 %v1845_v42, %v471_v37  ;;  %630 = vadd.xlane.f32.xlu1 %v629_v38  ;;  %v408_v51 = vadd.f32 %v1845_v42, %v407_v41 }
 0x117   :  { %582 = vadd.xlane.f32.xlu0 %v581_v45  ;;  %v409_v52 = vpop.f32.mrf.mxu0  ;;  %v473_v53 = vpop.f32.mrf.mxu1  ;;  %v545_v54 = vmul.f32 %v2111_v35, %v2111_v35  ;;  %v529_v55 = vmul.f32 %v2113_v36, %v2113_v36 }
 0x118   :  { %1407 = vst.msk [vmem:[%s2720_s4 + $0x6c] sm:$0xf] %vm1197_vm1, %v1439_v46  ;;  %1209 = vst.msk [vmem:[%s2720_s4 + $0x2c] sm:$0xf] %vm1197_vm1, %v1423_v47  ;;  %v2135_v58 = vmax.f32 %v472_v48, 0.0  ;;  %v2137_v59 = vmax.f32 %v408_v51, 0.0 }
 0x119   :  { %v474_v60 = vpop.f32.mrf.mxu1  ;;  %v632_v1 = vsel %vm550_vm2, %v545_v54, 0.0  ;;  %v410_v2 = vpop.f32.mrf.mxu0  ;;  %v584_v3 = vsel %vm550_vm2, %v529_v55, 0.0 }
 0x11a   :  { %v1440_v4 = vpack.c.bf16 %v2135_v58, %v2135_v58  ;;  %v1424_v5 = vpack.c.bf16 %v2137_v59, %v2137_v59  ;;  %v475_v6 = vadd.f32 %v1845_v42, %v474_v60  ;;  %633 = vadd.xlane.f32.xlu1 %v632_v1  ;;  %v411_v7 = vadd.f32 %v1845_v42, %v410_v2 }
 0x11b   :  { %585 = vadd.xlane.f32.xlu0 %v584_v3  ;;  %v412_v10 = vpop.f32.mrf.mxu0  ;;  %v476_v13 = vpop.f32.mrf.mxu1  ;;  %v546_v14 = vmul.f32 %v2135_v58, %v2135_v58  ;;  %v530_v15 = vmul.f32 %v2137_v59, %v2137_v59 }
 0x11c   :  { %1408 = vst.msk [vmem:[%s2720_s4 + $0x70] sm:$0xf] %vm1197_vm1, %v1440_v4  ;;  %1210 = vst.msk [vmem:[%s2720_s4 + $0x30] sm:$0xf] %vm1197_vm1, %v1424_v5  ;;  %v2159_v16 = vmax.f32 %v475_v6, 0.0  ;;  %v2161_v19 = vmax.f32 %v411_v7, 0.0 }
 0x11d   :  { %v479_v20 = vpop.f32.mrf.mxu1  ;;  %v635_v21 = vsel %vm550_vm2, %v546_v14, 0.0  ;;  %v415_v22 = vpop.f32.mrf.mxu0  ;;  %v587_v23 = vsel %vm550_vm2, %v530_v15, 0.0 }
 0x11e   :  { %v1441_v28 = vpack.c.bf16 %v2159_v16, %v2159_v16  ;;  %v1425_v29 = vpack.c.bf16 %v2161_v19, %v2161_v19  ;;  %v480_v30 = vadd.f32 %v1845_v42, %v479_v20  ;;  %636 = vadd.xlane.f32.xlu1 %v635_v21  ;;  %v416_v31 = vadd.f32 %v1845_v42, %v415_v22 }
 0x11f   :  { %588 = vadd.xlane.f32.xlu0 %v587_v23  ;;  %v417_v32 = vpop.f32.mrf.mxu0  ;;  %v481_v33 = vpop.f32.mrf.mxu1  ;;  %v547_v34 = vmul.f32 %v2159_v16, %v2159_v16  ;;  %v531_v37 = vmul.f32 %v2161_v19, %v2161_v19 }
 0x120   :  { %1409 = vst.msk [vmem:[%s2720_s4 + $0x74] sm:$0xf] %vm1197_vm1, %v1441_v28  ;;  %1211 = vst.msk [vmem:[%s2720_s4 + $0x34] sm:$0xf] %vm1197_vm1, %v1425_v29  ;;  %v2183_v38 = vmax.f32 %v480_v30, 0.0  ;;  %v2185_v41 = vmax.f32 %v416_v31, 0.0 }
 0x121   :  { %v482_v45 = vpop.f32.mrf.mxu1  ;;  %v638_v46 = vsel %vm550_vm2, %v547_v34, 0.0  ;;  %v418_v47 = vpop.f32.mrf.mxu0  ;;  %v590_v48 = vsel %vm550_vm2, %v531_v37, 0.0 }
 0x122   :  { %2725 = vst [vmem:[#allocation5_spill] sm:$0xff] %v2185_v41  ;;  %v1442_v51 = vpack.c.bf16 %v2183_v38, %v2183_v38  ;;  %v1426_v52 = vpack.c.bf16 %v2185_v41, %v2185_v41  ;;  %v483_v53 = vadd.f32 %v1845_v42, %v482_v45  ;;  %639 = vadd.xlane.f32.xlu1 %v638_v46 }
 0x123   :  { %v419_v54 = vadd.f32 %v1845_v42, %v418_v47  ;;  %591 = vadd.xlane.f32.xlu0 %v590_v48  ;;  %v420_v55 = vpop.f32.mrf.mxu0  ;;  %v484_v60 = vpop.f32.mrf.mxu1  ;;  %v548_v1 = vmul.f32 %v2183_v38, %v2183_v38  ;;  %v532_v2 = vmul.f32 %v2185_v41, %v2185_v41 }
 0x124   :  { %1410 = vst.msk [vmem:[%s2720_s4 + $0x78] sm:$0xf] %vm1197_vm1, %v1442_v51  ;;  %1212 = vst.msk [vmem:[%s2720_s4 + $0x38] sm:$0xf] %vm1197_vm1, %v1426_v52  ;;  %v2207_v42 = vmax.f32 %v483_v53, 0.0 }
 0x125   :  { %v2209_v3 = vmax.f32 %v419_v54, 0.0  ;;  %v641_v4 = vsel %vm550_vm2, %v548_v1, 0.0  ;;  %v593_v5 = vsel %vm550_vm2, %v532_v2, 0.0 }
 0x126   :  { %2726 = vst [vmem:[#allocation6_spill] sm:$0xff] %v2207_v42  ;;  %v1443_v6 = vpack.c.bf16 %v2207_v42, %v2207_v42  ;;  %642 = vadd.xlane.f32.xlu1 %v641_v4  ;;  %v549_v10 = vmul.f32 %v2207_v42, %v2207_v42 }
 0x127   :  { %2727 = vst [vmem:[#allocation7_spill] sm:$0xff] %v2209_v3  ;;  %v1427_v7 = vpack.c.bf16 %v2209_v3, %v2209_v3  ;;  %v533_v13 = vmul.f32 %v2209_v3, %v2209_v3  ;;  %594 = vadd.xlane.f32.xlu0 %v593_v5 }
 0x128   :  { %1411 = vst.msk [vmem:[%s2720_s4 + $0x7c] sm:$0xf] %vm1197_vm1, %v1443_v6  ;;  %v644_v14 = vsel %vm550_vm2, %v549_v10, 0.0 }
 0x129   :  { %1213 = vst.msk [vmem:[%s2720_s4 + $0x3c] sm:$0xf] %vm1197_vm1, %v1427_v7  ;;  %v596_v15 = vsel %vm550_vm2, %v533_v13, 0.0 }
 0x12a   :  { %645 = vadd.xlane.f32.xlu1 %v644_v14 }
 0x12b   :  { %597 = vadd.xlane.f32.xlu0 %v596_v15 }
 0x177   :  { %v601_v20 = vpop.xlane.xlu1 %600 }
 0x178   :  { %1521 = vrsqrt.f32 %v601_v20  ;;  %v553_v21 = vpop.xlane.xlu0 %552  ;;  %vm761_vm3 = vcmp.eq.f32.partialorder %v601_v20, inf  ;;  %vm763_vm4 = vcmp.eq.f32.partialorder %v601_v20, 0.0  ;;  %v764_v37 = vand.u32 2147483648, %v601_v20 }
 0x179   :  { %1523 = vrsqrt.f32 %v553_v21  ;;  %vm649_vm5 = vcmp.eq.f32.partialorder %v553_v21, inf  ;;  %vm651_vm6 = vcmp.eq.f32.partialorder %v553_v21, 0.0  ;;  %v652_v47 = vand.u32 2147483648, %v553_v21 }
 0x17b   :  { %v604_v22 = vpop.xlane.xlu1 %603 }
 0x17c   :  { %1525 = vrsqrt.f32 %v604_v22  ;;  %v2231_v23 = vpop.xlane.xlu0 %555  ;;  %vm768_vm7 = vcmp.eq.f32.partialorder %v604_v22, inf  ;;  %vm770_vm8 = vcmp.eq.f32.partialorder %v604_v22, 0.0  ;;  %v771_v53 = vand.u32 2147483648, %v604_v22 }
 0x17d   :  { %1527 = vrsqrt.f32 %v2231_v23  ;;  %vm656_vm9 = vcmp.eq.f32.partialorder %v2231_v23, inf  ;;  %vm658_vm10 = vcmp.eq.f32.partialorder %v2231_v23, 0.0  ;;  %v659_v1 = vand.u32 2147483648, %v2231_v23 }
 0x17f   :  { %v2234_v28 = vpop.xlane.xlu1 %606 }
 0x180   :  { %1529 = vrsqrt.f32 %v2234_v28  ;;  %v2237_v29 = vpop.xlane.xlu0 %558  ;;  %vm775_vm11 = vcmp.eq.f32.partialorder %v2234_v28, inf  ;;  %vm777_vm12 = vcmp.eq.f32.partialorder %v2234_v28, 0.0  ;;  %v778_v4 = vand.u32 2147483648, %v2234_v28 }
 0x181   :  { %1531 = vrsqrt.f32 %v2237_v29  ;;  %vm663_vm13 = vcmp.eq.f32.partialorder %v2237_v29, inf  ;;  %vm665_vm14 = vcmp.eq.f32.partialorder %v2237_v29, 0.0  ;;  %v666_v15 = vand.u32 2147483648, %v2237_v29 }
 0x183   :  { %v2240_v30 = vpop.xlane.xlu1 %609 }
 0x184   :  { %1533 = vrsqrt.f32 %v2240_v30  ;;  %v2243_v31 = vpop.xlane.xlu0 %561  ;;  %vm782_vm15 = vcmp.eq.f32.partialorder %v2240_v30, inf  ;;  %vm784_vm0 = vcmp.eq.f32.partialorder %v2240_v30, 0.0 }
 0x185   :  { %v1522_v32 = vpop.eup %1521  ;;  %1535 = vrsqrt.f32 %v2243_v31  ;;  %vm670_vm1 = vcmp.eq.f32.partialorder %v2243_v31, inf }
 0x186   :  { %v1524_v33 = vpop.eup %1523  ;;  %v760_v34 = vmul.f32 %v1522_v32, %v601_v20 }
 0x187   :  { %v648_v45 = vmul.f32 %v1524_v33, %v553_v21  ;;  %v2246_v46 = vpop.xlane.xlu1 %612 }
 0x188   :  { %1537 = vrsqrt.f32 %v2246_v46  ;;  %v2249_v48 = vpop.xlane.xlu0 %564  ;;  %v762_v52 = vsel %vm761_vm3, %v601_v20, %v760_v34  ;;  %vm672_vm3 = vcmp.eq.f32.partialorder %v2243_v31, 0.0 }
 0x189   :  { %v1526_v51 = vpop.eup %1525  ;;  %1539 = vrsqrt.f32 %v2249_v48  ;;  %v650_v55 = vsel %vm649_vm5, %v553_v21, %v648_v45  ;;  %v765_v6 = vsel %vm763_vm4, %v764_v37, %v762_v52  ;;  %v785_v45 = vand.u32 2147483648, %v2240_v30 }
 0x18a   :  { %v1528_v54 = vpop.eup %1527  ;;  %v767_v60 = vmul.f32 %v1526_v51, %v604_v22  ;;  %v653_v14 = vsel %vm651_vm6, %v652_v47, %v650_v55  ;;  %v887_v37 = vadd.f32 1e-10, %v765_v6  ;;  %vm789_vm4 = vcmp.eq.f32.partialorder %v2246_v46, inf }
 0x18b   :  { %v655_v2 = vmul.f32 %v1528_v54, %v2231_v23  ;;  %v2259_v5 = vpop.xlane.xlu1 %615  ;;  %v871_v51 = vadd.f32 1e-10, %v653_v14  ;;  %vm791_vm5 = vcmp.eq.f32.partialorder %v2246_v46, 0.0  ;;  %vm677_vm6 = vcmp.eq.f32.partialorder %v2249_v48, inf }
 0x18c   :  { %v769_v7 = vsel %vm768_vm7, %v604_v22, %v767_v60  ;;  %v2265_v10 = vpop.xlane.xlu0 %567  ;;  %1541 = vrsqrt.f32 %v2259_v5  ;;  %v673_v60 = vand.u32 2147483648, %v2243_v31  ;;  %vm679_vm7 = vcmp.eq.f32.partialorder %v2249_v48, 0.0 }
 0x18d   :  { %v1530_v13 = vpop.eup %1529  ;;  %v772_v20 = vsel %vm770_vm8, %v771_v53, %v769_v7  ;;  %v657_v33 = vsel %vm656_vm9, %v2231_v23, %v655_v2  ;;  %1543 = vrsqrt.f32 %v2265_v10  ;;  %vm796_vm8 = vcmp.eq.f32.partialorder %v2259_v5, inf }
 0x18e   :  { %v1532_v32 = vpop.eup %1531  ;;  %v774_v34 = vmul.f32 %v1530_v13, %v2234_v28  ;;  %v888_v54 = vadd.f32 1e-10, %v772_v20  ;;  %v660_v55 = vsel %vm658_vm10, %v659_v1, %v657_v33  ;;  %v792_v1 = vand.u32 2147483648, %v2246_v46 }
 0x18f   :  { %v662_v21 = vmul.f32 %v1532_v32, %v2237_v29  ;;  %v2280_v47 = vpop.xlane.xlu1 %618  ;;  %vm798_vm9 = vcmp.eq.f32.partialorder %v2259_v5, 0.0  ;;  %vm684_vm10 = vcmp.eq.f32.partialorder %v2265_v10, inf }
 0x190   :  { %v776_v22 = vsel %vm775_vm11, %v2234_v28, %v774_v34  ;;  %v2287_v52 = vpop.xlane.xlu0 %570  ;;  %1545 = vrsqrt.f32 %v2280_v47  ;;  %v872_v28 = vadd.f32 1e-10, %v660_v55  ;;  %vm686_vm11 = vcmp.eq.f32.partialorder %v2265_v10, 0.0 }
 0x191   :  { %v1534_v53 = vpop.eup %1533  ;;  %v779_v6 = vsel %vm777_vm12, %v778_v4, %v776_v22  ;;  %v664_v7 = vsel %vm663_vm13, %v2237_v29, %v662_v21  ;;  %1547 = vrcp.f32 %v887_v37  ;;  %v680_v37 = vand.u32 2147483648, %v2249_v48 }
 0x192   :  { %v1536_v2 = vpop.eup %1535  ;;  %v781_v13 = vmul.f32 %v1534_v53, %v2240_v30  ;;  %1549 = vrcp.f32 %v871_v51  ;;  %v889_v33 = vadd.f32 1e-10, %v779_v6  ;;  %v667_v34 = vsel %vm665_vm14, %v666_v15, %v664_v7 }
 0x193   :  { %v669_v23 = vmul.f32 %v1536_v2, %v2243_v31  ;;  %v2304_v14 = vpop.xlane.xlu1 %621  ;;  %1551 = vrcp.f32 %v888_v54  ;;  %vm803_vm12 = vcmp.eq.f32.partialorder %v2280_v47, inf  ;;  %vm805_vm13 = vcmp.eq.f32.partialorder %v2280_v47, 0.0 }
 0x194   :  { %v783_v4 = vsel %vm782_vm15, %v2240_v30, %v781_v13  ;;  %v2310_v32 = vpop.xlane.xlu0 %573  ;;  %1553 = vrsqrt.f32 %v2287_v52  ;;  %v873_v30 = vadd.f32 1e-10, %v667_v34  ;;  %v687_v13 = vand.u32 2147483648, %v2265_v10 }
 0x195   :  { %v1538_v20 = vpop.eup %1537  ;;  %v786_v51 = vsel %vm784_vm0, %v785_v45, %v783_v4  ;;  %v671_v22 = vsel %vm670_vm1, %v2243_v31, %v669_v23  ;;  %1555 = vrsqrt.f32 %v2304_v14  ;;  %v799_v45 = vand.u32 2147483648, %v2259_v5 }
 0x196   :  { %v1540_v21 = vpop.eup %1539  ;;  %v788_v53 = vmul.f32 %v1538_v20, %v2246_v46  ;;  %1557 = vrcp.f32 %v872_v28  ;;  %v890_v2 = vadd.f32 1e-10, %v786_v51  ;;  %v674_v6 = vsel %vm672_vm3, %v673_v60, %v671_v22 }
 0x197   :  { %v676_v54 = vmul.f32 %v1540_v21, %v2249_v48  ;;  %v2326_v29 = vpop.xlane.xlu1 %624  ;;  %1559 = vrcp.f32 %v889_v33  ;;  %v874_v4 = vadd.f32 1e-10, %v674_v6  ;;  %vm691_vm14 = vcmp.eq.f32.partialorder %v2287_v52, inf }
 0x198   :  { %v790_v15 = vsel %vm789_vm4, %v2246_v46, %v788_v53  ;;  %v2332_v55 = vpop.xlane.xlu0 %576  ;;  %1561 = vrsqrt.f32 %v2310_v32  ;;  %vm693_vm15 = vcmp.eq.f32.partialorder %v2287_v52, 0.0  ;;  %v694_v53 = vand.u32 2147483648, %v2287_v52 }
 0x199   :  { %v678_v7 = vsel %vm677_vm6, %v2249_v48, %v676_v54  ;;  %v1542_v23 = vpop.eup %1541  ;;  %v793_v28 = vsel %vm791_vm5, %v792_v1, %v790_v15  ;;  %1563 = vrsqrt.f32 %v2326_v29  ;;  %v806_v1 = vand.u32 2147483648, %v2280_v47 }
 0x19a   :  { %v1544_v60 = vpop.eup %1543  ;;  %1565 = vrcp.f32 %v873_v30  ;;  %v681_v20 = vsel %vm679_vm7, %v680_v37, %v678_v7  ;;  %v795_v33 = vmul.f32 %v1542_v23, %v2259_v5  ;;  %v891_v21 = vadd.f32 1e-10, %v793_v28 }
 0x19b   :  { %v2348_v31 = vpop.xlane.xlu1 %627  ;;  %1567 = vrcp.f32 %v890_v2  ;;  %v683_v46 = vmul.f32 %v1544_v60, %v2265_v10  ;;  %v875_v37 = vadd.f32 1e-10, %v681_v20  ;;  %vm810_vm0 = vcmp.eq.f32.partialorder %v2304_v14, inf }
 0x19c   :  { %v2353_v34 = vpop.xlane.xlu0 %579  ;;  %v797_v51 = vsel %vm796_vm8, %v2259_v5, %v795_v33  ;;  %1569 = vrsqrt.f32 %v2332_v55  ;;  %vm812_vm1 = vcmp.eq.f32.partialorder %v2304_v14, 0.0  ;;  %vm698_vm3 = vcmp.eq.f32.partialorder %v2310_v32, inf }
 0x19d   :  { %v1546_v48 = vpop.eup %1545  ;;  %v800_v22 = vsel %vm798_vm9, %v799_v45, %v797_v51  ;;  %1571 = vrsqrt.f32 %v2348_v31  ;;  %v685_v15 = vsel %vm684_vm10, %v2265_v10, %v683_v46  ;;  %v813_v45 = vand.u32 2147483648, %v2304_v14 }
 0x19e   :  { %v1548_v30 = vpop.eup %1547  ;;  %1573 = vrcp.f32 %v874_v4  ;;  %v802_v2 = vmul.f32 %v1546_v48, %v2280_v47  ;;  %v892_v23 = vadd.f32 1e-10, %v800_v22  ;;  %vm700_vm4 = vcmp.eq.f32.partialorder %v2310_v32, 0.0 }
 0x19f   :  { %v2367_v54 = vpop.xlane.xlu1 %630  ;;  %v1550_v5 = vpop.eup %1549  ;;  %1575 = vrsqrt.f32 %v2353_v34  ;;  %v701_v60 = vand.u32 2147483648, %v2310_v32  ;;  %v688_v20 = vsel %vm686_vm11, %v687_v13, %v685_v15  ;;  %vm817_vm5 = vcmp.eq.f32.partialorder %v2326_v29, inf }
 0x1a0   :  { %v2374_v6 = vpop.xlane.xlu0 %582  ;;  %v2380_v7 = vpop.eup %1551  ;;  %1577 = vrcp.f32 %v891_v21  ;;  %v804_v28 = vsel %vm803_vm12, %v2280_v47, %v802_v2  ;;  %vm819_vm6 = vcmp.eq.f32.partialorder %v2326_v29, 0.0  ;;  %v820_v51 = vand.u32 2147483648, %v2326_v29 }
 0x1a1   :  { %v1554_v4 = vpop.eup %1553  ;;  %1579 = vrcp.f32 %v875_v37  ;;  %v807_v46 = vsel %vm805_vm13, %v806_v1, %v804_v28  ;;  %vm705_vm7 = vcmp.eq.f32.partialorder %v2332_v55, inf  ;;  %v708_v13 = vand.u32 2147483648, %v2332_v55 }
 0x1a2   :  { %v1556_v33 = vpop.eup %1555  ;;  %v690_v21 = vmul.f32 %v1554_v4, %v2287_v52  ;;  %1581 = vrsqrt.f32 %v2367_v54  ;;  %v876_v1 = vadd.f32 1e-10, %v688_v20  ;;  %vm707_vm8 = vcmp.eq.f32.partialorder %v2332_v55, 0.0 }
 0x1a3   :  { %v2396_v48 = vpop.xlane.xlu1 %633  ;;  %v2398_v37 = vpop.eup %1557  ;;  %v809_v10 = vmul.f32 %v1556_v33, %v2304_v14  ;;  %1583 = vrsqrt.f32 %v2374_v6  ;;  %vm824_vm9 = vcmp.eq.f32.partialorder %v2348_v31, inf  ;;  %v827_v15 = vand.u32 2147483648, %v2348_v31 }
 0x1a4   :  { %v2404_v47 = vpop.eup %1559  ;;  %1585 = vrcp.f32 %v892_v23  ;;  %v692_v22 = vsel %vm691_vm14, %v2287_v52, %v690_v21  ;;  %v2412_v2 = vpop.xlane.xlu0 %585  ;;  %v893_v4 = vadd.f32 1e-10, %v807_v46  ;;  %vm826_vm10 = vcmp.eq.f32.partialorder %v2348_v31, 0.0 }
 0x1a5   :  { %v1562_v28 = vpop.eup %1561  ;;  %v695_v33 = vsel %vm693_vm15, %v694_v53, %v692_v22  ;;  %v811_v23 = vsel %vm810_vm0, %v2304_v14, %v809_v10  ;;  %1587 = vrsqrt.f32 %v2396_v48  ;;  %vm712_vm11 = vcmp.eq.f32.partialorder %v2353_v34, inf }
 0x1a6   :  { %v1564_v20 = vpop.eup %1563  ;;  %v877_v21 = vadd.f32 1e-10, %v695_v33  ;;  %v814_v3 = vsel %vm812_vm1, %v813_v45, %v811_v23  ;;  %v697_v42 = vmul.f32 %v1562_v28, %v2310_v32  ;;  %v967_v52 = vmul.f32 %v1550_v5, %v1849_v49  ;;  %v2442_v28 = vld [vmem:[%s2719_s3] ss:$0 sm:$0xff]  ;;  %s1672_s3 = smov [#allocation2]  }
 0x1a7   :  { %v2426_v53 = vpop.eup %1565  ;;  %v816_v46 = vmul.f32 %v1564_v20, %v2326_v29  ;;  %vm714_vm12 = vcmp.eq.f32.partialorder %v2353_v34, 0.0  ;;  %v715_v10 = vand.u32 2147483648, %v2353_v34  ;;  %v983_v22 = vmul.f32 %v1548_v30, %v1851_v50  ;;  %v2444_v33 = vpop.xlane.xlu1 %636  ;;  %s1295_s6 = sshll.u32 %s1672_s3, 4  ;;  %s1296_s6 = int_to_ptr.vmem [resolvable:$true] %s1295_s6 }
 0x1a8   :  { %1589 = vrsqrt.f32 %v2412_v2  ;;  %v2433_v14 = vpop.eup %1567  ;;  %v894_v45 = vadd.f32 1e-10, %v814_v3  ;;  %v699_v49 = vsel %vm698_vm3, %v2310_v32, %v697_v42  ;;  %v834_v5 = vand.u32 2147483648, %v2367_v54  ;;  %s1649_s7 = scalar_lea.vmem %s1296_s6, 16  ;;  %s1653_s8 = scalar_lea.vmem %s1296_s6, 32 }
 0x1a9   :  { %1591 = vrcp.f32 %v876_v1  ;;  %v1570_v50 = vpop.eup %1569  ;;  %v702_v30 = vsel %vm700_vm4, %v701_v60, %v699_v49  ;;  %v818_v3 = vsel %vm817_vm5, %v2326_v29, %v816_v46  ;;  %vm831_vm13 = vcmp.eq.f32.partialorder %v2367_v54, inf  ;;  %p1650_p0 = scmp.ne.s32.totalorder %s1296_s6, %s1649_s7  ;;  %p1654_p1 = scmp.lt.s32.totalorder %s1296_s6, %s1296_s6 }
 0x1aa   :  { %1593 = vrcp.f32 %v893_v4  ;;  %v999_v42 = vsub.f32 %v967_v52, %v983_v22  ;;  %v1572_v1 = vpop.eup %1571  ;;  %v878_v23 = vadd.f32 1e-10, %v702_v30  ;;  %v821_v20 = vsel %vm819_vm6, %v820_v51, %v818_v3  ;;  %p1655_p2 = scmp.lt.s32.totalorder %s1653_s8, %s1649_s7 }
 0x1ab   :  { %1595 = vrcp.f32 %v877_v21  ;;  %v704_v41 = vmul.f32 %v1570_v50, %v2332_v55  ;;  %vm833_vm14 = vcmp.eq.f32.partialorder %v2367_v54, 0.0  ;;  %vm719_vm15 = vcmp.eq.f32.partialorder %v2374_v6, inf  ;;  %v2457_v32 = vpop.eup %1573  ;;  %v2476_v50 = vpop.xlane.xlu0 %588 }
 0x1ac   :  { %v823_v60 = vmul.f32 %v1572_v1, %v2348_v31  ;;  %vm721_vm0 = vcmp.eq.f32.partialorder %v2374_v6, 0.0  ;;  %v1022_v4 = vmul.f32 %v2442_v28, %v999_v42  ;;  %1597 = vrsqrt.f32 %v2444_v33  ;;  %v1576_v21 = vpop.eup %1575  ;;  %p1656_p3 = por %p1655_p2, %p1654_p1 }
 0x1ad   :  { %1599 = vrcp.f32 %v894_v45  ;;  %v706_v29 = vsel %vm705_vm7, %v2332_v55, %v704_v41  ;;  %v722_v51 = vand.u32 2147483648, %v2374_v6  ;;  %vm838_vm1 = vcmp.eq.f32.partialorder %v2396_v48, inf  ;;  %v2468_v52 = vpop.eup %1577 }
 0x1ae   :  { %v895_v46 = vadd.f32 1e-10, %v821_v20  ;;  %v709_v22 = vsel %vm707_vm8, %v708_v13, %v706_v29  ;;  %v825_v49 = vsel %vm824_vm9, %v2348_v31, %v823_v60  ;;  %v711_v45 = vmul.f32 %v1576_v21, %v2353_v34  ;;  %v2478_v30 = vpop.eup %1579  ;;  %p1657_p4 = pnand %p1656_p3, %p1650_p0 }
 0x1af   :  { %1601 = vrcp.f32 %v878_v23  ;;  %v828_v41 = vsel %vm826_vm10, %v827_v15, %v825_v49  ;;  %vm840_vm3 = vcmp.eq.f32.partialorder %v2396_v48, 0.0  ;;  %v1038_v3 = vmul.f32 %v1022_v4, %v999_v42  ;;  %v1582_v1 = vpop.eup %1581 }
 0x1b0   :  { %v879_v55 = vadd.f32 1e-10, %v709_v22  ;;  %v713_v13 = vsel %vm712_vm11, %v2353_v34, %v711_v45  ;;  %v968_v20 = vmul.f32 %v2398_v37, %v1871_v61  ;;  %v984_v60 = vmul.f32 %v2380_v7, %v1873_v62  ;;  %v1584_v21 = vpop.eup %1583  ;;  %v2498_v37 = vpop.xlane.xlu1 %639 }
 0x1b1   :  { %v896_v23 = vadd.f32 1e-10, %v828_v41  ;;  %v716_v31 = vsel %vm714_vm12, %v715_v10, %v713_v13  ;;  %v830_v15 = vmul.f32 %v1582_v1, %v2367_v54  ;;  %v1054_v42 = vsel %vm550_vm2, %v1038_v3, 0.0  ;;  %v2494_v4 = vpop.eup %1585  ;;  %v2511_v45 = vpop.xlane.xlu0 %591 }
 0x1b2   :  { %1603 = vrcp.f32 %v895_v46  ;;  %v718_v29 = vmul.f32 %v1584_v21, %v2374_v6  ;;  %v841_v22 = vand.u32 2147483648, %v2396_v48  ;;  %1055 = vadd.xlane.f32.xlu0 %v1054_v42  ;;  %v1000_v61 = vsub.f32 %v968_v20, %v984_v60  ;;  %v1588_v62 = vpop.eup %1587 }
 0x1b3   :  { %v880_v7 = vadd.f32 1e-10, %v716_v31  ;;  %v832_v34 = vsel %vm831_vm13, %v2367_v54, %v830_v15  ;;  %vm726_vm4 = vcmp.eq.f32.partialorder %v2412_v2, inf  ;;  %1605 = vrsqrt.f32 %v2476_v50 }
 0x1b4   :  { %1607 = vrcp.f32 %v879_v55  ;;  %v835_v10 = vsel %vm833_vm14, %v834_v5, %v832_v34  ;;  %v720_v46 = vsel %vm719_vm15, %v2374_v6, %v718_v29  ;;  %v837_v49 = vmul.f32 %v1588_v62, %v2396_v48  ;;  %v2534_v42 = vpop.xlane.xlu1 %642 }
 0x1b5   :  { %v1590_v41 = vpop.eup %1589  ;;  %1609 = vrcp.f32 %v896_v23  ;;  %v897_v3 = vadd.f32 1e-10, %v835_v10  ;;  %v723_v1 = vsel %vm721_vm0, %v722_v51, %v720_v46  ;;  %v1023_v13 = vmul.f32 %v2442_v28, %v1000_v61  ;;  %v2544_v10 = vpop.xlane.xlu0 %594 }
 0x1b6   :  { %v2516_v55 = vpop.eup %1591  ;;  %v881_v54 = vadd.f32 1e-10, %v723_v1  ;;  %v839_v5 = vsel %vm838_vm1, %v2396_v48, %v837_v49  ;;  %v725_v20 = vmul.f32 %v1590_v41, %v2412_v2  ;;  %1611 = vrsqrt.f32 %v2498_v37 }
 0x1b7   :  { %v2523_v60 = vpop.eup %1593  ;;  %1613 = vrcp.f32 %v880_v7  ;;  %v842_v6 = vsel %vm840_vm3, %v841_v22, %v839_v5  ;;  %v729_v51 = vand.u32 2147483648, %v2412_v2  ;;  %v1039_v21 = vmul.f32 %v1023_v13, %v1000_v61 }
 0x1b8   :  { %v2528_v23 = vpop.eup %1595  ;;  %1615 = vrcp.f32 %v897_v3  ;;  %v898_v31 = vadd.f32 1e-10, %v842_v6  ;;  %v727_v15 = vsel %vm726_vm4, %v2412_v2, %v725_v20  ;;  %vm728_vm5 = vcmp.eq.f32.partialorder %v2412_v2, 0.0  ;;  %v2561_v13 = vpop.xlane.xlu1 %645 }
 0x1b9   :  { %v1598_v29 = vpop.eup %1597  ;;  %1617 = vrcp.f32 %v881_v54  ;;  %v730_v62 = vsel %vm728_vm5, %v729_v51, %v727_v15  ;;  %v1057_v48 = vsel %vm550_vm2, %v1039_v21, 0.0  ;;  %v969_v22 = vmul.f32 %v2426_v53, %v1897_v12  ;;  %v2570_v6 = vpop.xlane.xlu0 %597 }
 0x1ba   :  { %v2539_v61 = vpop.eup %1599  ;;  %1619 = vrcp.f32 %v898_v31  ;;  %v882_v7 = vadd.f32 1e-10, %v730_v62  ;;  %v844_v34 = vmul.f32 %v1598_v29, %v2444_v33  ;;  %1058 = vadd.xlane.f32.xlu1 %v1057_v48  ;;  %v985_v2 = vmul.f32 %v2404_v47, %v1895_v11 }
 0x1bb   :  { %vm845_vm6 = vcmp.eq.f32.partialorder %v2444_v33, inf  ;;  %v848_v46 = vand.u32 2147483648, %v2444_v33  ;;  %1621 = vrsqrt.f32 %v2511_v45  ;;  %vm847_vm7 = vcmp.eq.f32.partialorder %v2444_v33, 0.0 }
 0x1bc   :  { %v2549_v49 = vpop.eup %1601  ;;  %1623 = vrcp.f32 %v882_v7  ;;  %v846_v12 = vsel %vm845_vm6, %v2444_v33, %v844_v34  ;;  %v1001_v53 = vsub.f32 %v969_v22, %v985_v2  ;;  %vm733_vm8 = vcmp.eq.f32.partialorder %v2476_v50, inf }
 0x1bd   :  { %v849_v41 = vsel %vm847_vm7, %v848_v46, %v846_v12  ;;  %vm735_vm9 = vcmp.eq.f32.partialorder %v2476_v50, 0.0  ;;  %1625 = vrsqrt.f32 %v2534_v42  ;;  %v970_v3 = vmul.f32 %v2457_v32, %v1921_v26 }
 0x1be   :  { %v899_v11 = vadd.f32 1e-10, %v849_v41  ;;  %v1024_v47 = vmul.f32 %v2442_v28, %v1001_v53  ;;  %v986_v1 = vmul.f32 %v2433_v14, %v1919_v25  ;;  %v736_v54 = vand.u32 2147483648, %v2476_v50 }
 0x1bf   :  { %v2563_v33 = vpop.eup %1603  ;;  %vm852_vm10 = vcmp.eq.f32.partialorder %v2498_v37, inf  ;;  %vm854_vm11 = vcmp.eq.f32.partialorder %v2498_v37, 0.0  ;;  %1627 = vrsqrt.f32 %v2544_v10  ;;  %v855_v20 = vand.u32 2147483648, %v2498_v37 }
 0x1c0   :  { %v1606_v5 = vpop.eup %1605  ;;  %1629 = vrcp.f32 %v899_v11  ;;  %v1040_v26 = vmul.f32 %v1024_v47, %v1001_v53  ;;  %v1002_v32 = vsub.f32 %v970_v3, %v986_v1  ;;  %v743_v51 = vand.u32 2147483648, %v2511_v45 }
 0x1c1   :  { %v1608_v25 = vpop.eup %1607  ;;  %v732_v14 = vmul.f32 %v1606_v5, %v2476_v50  ;;  %v862_v21 = vand.u32 2147483648, %v2534_v42  ;;  %1631 = vrsqrt.f32 %v2561_v13  ;;  %vm740_vm12 = vcmp.eq.f32.partialorder %v2511_v45, inf }
 0x1c2   :  { %v2576_v31 = vpop.eup %1609  ;;  %v1060_v15 = vsel %vm550_vm2, %v1040_v26, 0.0  ;;  %v1025_v29 = vmul.f32 %v2442_v28, %v1002_v32  ;;  %v971_v62 = vmul.f32 %v2478_v30, %v1945_v40  ;;  %v987_v48 = vmul.f32 %v2468_v52, %v1943_v39 }
 0x1c3   :  { %v1612_v22 = vpop.eup %1611  ;;  %v734_v7 = vsel %vm733_vm8, %v2476_v50, %v732_v14  ;;  %1061 = vadd.xlane.f32.xlu0 %v1060_v15  ;;  %vm742_vm13 = vcmp.eq.f32.partialorder %v2511_v45, 0.0  ;;  %v750_v34 = vand.u32 2147483648, %v2544_v10  ;;  %v869_v2 = vand.u32 2147483648, %v2561_v13 }
 0x1c4   :  { %1633 = vrsqrt.f32 %v2570_v6  ;;  %v1614_v46 = vpop.eup %1613  ;;  %v737_v40 = vsel %vm735_vm9, %v736_v54, %v734_v7  ;;  %v851_v39 = vmul.f32 %v1612_v22, %v2498_v37  ;;  %vm859_vm14 = vcmp.eq.f32.partialorder %v2534_v42, inf }
 0x1c5   :  { %v1041_v52 = vmul.f32 %v1025_v29, %v1002_v32  ;;  %v1003_v30 = vsub.f32 %v971_v62, %v987_v48  ;;  %v2596_v12 = vpop.eup %1615  ;;  %v883_v53 = vadd.f32 1e-10, %v737_v40  ;;  %vm861_vm15 = vcmp.eq.f32.partialorder %v2534_v42, 0.0 }
 0x1c6   :  { %v757_v41 = vand.u32 2147483648, %v2570_v6  ;;  %v972_v11 = vmul.f32 %v2516_v55, %v1969_v57  ;;  %v988_v50 = vmul.f32 %v2494_v4, %v1967_v56  ;;  %v2604_v47 = vpop.eup %1617  ;;  %v853_v3 = vsel %vm852_vm10, %v2498_v37, %v851_v39 }
 0x1c7   :  { %v1063_v1 = vsel %vm550_vm2, %v1041_v52, 0.0  ;;  %vm747_vm0 = vcmp.eq.f32.partialorder %v2544_v10, inf  ;;  %v1026_v54 = vmul.f32 %v2442_v28, %v1003_v30  ;;  %v973_v5 = vmul.f32 %v2528_v23, %v1993_v9  ;;  %v2614_v26 = vpop.eup %1619 }
 0x1c8   :  { %1635 = vrcp.f32 %v883_v53  ;;  %v856_v56 = vsel %vm854_vm11, %v855_v20, %v853_v3  ;;  %1064 = vadd.xlane.f32.xlu1 %v1063_v1  ;;  %vm749_vm1 = vcmp.eq.f32.partialorder %v2544_v10, 0.0  ;;  %v1004_v57 = vsub.f32 %v972_v11, %v988_v50  ;;  %v1622_v55 = vpop.eup %1621 }
 0x1c9   :  { %v989_v4 = vmul.f32 %v2523_v60, %v1991_v8  ;;  %v900_v32 = vadd.f32 1e-10, %v856_v56  ;;  %vm866_vm3 = vcmp.eq.f32.partialorder %v2561_v13, inf  ;;  %v1042_v14 = vmul.f32 %v1026_v54, %v1003_v30  ;;  %v1624_v37 = vpop.eup %1623 }
 0x1ca   :  { %v974_v9 = vmul.f32 %v2549_v49, %v2017_v27  ;;  %v990_v23 = vmul.f32 %v2539_v61, %v2015_v24  ;;  %v739_v20 = vmul.f32 %v1622_v55, %v2511_v45  ;;  %vm868_vm4 = vcmp.eq.f32.partialorder %v2561_v13, 0.0  ;;  %v1626_v60 = vpop.eup %1625 }
 0x1cb   :  { %v1027_v15 = vmul.f32 %v2442_v28, %v1004_v57  ;;  %v1005_v29 = vsub.f32 %v973_v5, %v989_v4  ;;  %v975_v8 = vmul.f32 %v1608_v25, %v2041_v44  ;;  %1637 = vrcp.f32 %v900_v32 }
 0x1cc   :  { %v1066_v62 = vsel %vm550_vm2, %v1042_v14, 0.0  ;;  %vm754_vm5 = vcmp.eq.f32.partialorder %v2570_v6, inf  ;;  %v1006_v27 = vsub.f32 %v974_v9, %v990_v23  ;;  %v991_v24 = vmul.f32 %v2563_v33, %v2039_v43  ;;  %v1628_v48 = vpop.eup %1627 }
 0x1cd   :  { %v741_v61 = vsel %vm740_vm12, %v2511_v45, %v739_v20  ;;  %v858_v49 = vmul.f32 %v1626_v60, %v2534_v42  ;;  %1067 = vadd.xlane.f32.xlu0 %v1066_v62  ;;  %vm756_vm6 = vcmp.eq.f32.partialorder %v2570_v6, 0.0  ;;  %v1043_v44 = vmul.f32 %v1027_v15, %v1004_v57  ;;  %v1630_v40 = vpop.eup %1629 }
 0x1ce   :  { %v1028_v25 = vmul.f32 %v2442_v28, %v1005_v29  ;;  %v744_v22 = vsel %vm742_vm13, %v743_v51, %v741_v61  ;;  %v1029_v43 = vmul.f32 %v2442_v28, %v1006_v27  ;;  %v1007_v33 = vsub.f32 %v975_v8, %v991_v24  ;;  %v1632_v11 = vpop.eup %1631 }
 0x1cf   :  { %v976_v7 = vmul.f32 %v1614_v46, %v2065_v0  ;;  %v884_v39 = vadd.f32 1e-10, %v744_v22  ;;  %v860_v52 = vsel %vm859_vm14, %v2534_v42, %v858_v49  ;;  %v746_v30 = vmul.f32 %v1628_v48, %v2544_v10 }
 0x1d0   :  { %v1069_v53 = vsel %vm550_vm2, %v1043_v44, 0.0  ;;  %v863_v45 = vsel %vm861_vm15, %v862_v21, %v860_v52  ;;  %v1044_v51 = vmul.f32 %v1028_v25, %v1005_v29  ;;  %v1045_v50 = vmul.f32 %v1029_v43, %v1006_v27 }
 0x1d1   :  { %1070 = vadd.xlane.f32.xlu1 %v1069_v53  ;;  %v1030_v0 = vmul.f32 %v2442_v28, %v1007_v33  ;;  %1639 = vrcp.f32 %v884_v39  ;;  %v901_v46 = vadd.f32 1e-10, %v863_v45  ;;  %v748_v3 = vsel %vm747_vm0, %v2544_v10, %v746_v30  ;;  %v1634_v54 = vpop.eup %1633  ;;  %v2729_v53 = vld [vmem:[#allocation6_spill] sm:$0xff] }
 0x1d2   :  { %v865_v1 = vmul.f32 %v1632_v11, %v2561_v13  ;;  %v751_v42 = vsel %vm749_vm1, %v750_v34, %v748_v3  ;;  %v1072_v21 = vsel %vm550_vm2, %v1044_v51, 0.0  ;;  %v1075_v5 = vsel %vm550_vm2, %v1045_v50, 0.0  ;;  %v2730_v50 = vld [vmem:[#allocation7_spill] sm:$0xff] }
 0x1d3   :  { %v1046_v56 = vmul.f32 %v1030_v0, %v1007_v33  ;;  %1641 = vrcp.f32 %v901_v46  ;;  %v885_v57 = vadd.f32 1e-10, %v751_v42  ;;  %v753_v55 = vmul.f32 %v1634_v54, %v2570_v6  ;;  %1073 = vadd.xlane.f32.xlu0 %v1072_v21 }
 0x1d4   :  { %v867_v4 = vsel %vm866_vm3, %v2561_v13, %v865_v1  ;;  %v992_v32 = vmul.f32 %v2576_v31, %v2063_v63  ;;  %v977_v14 = vmul.f32 %v2604_v47, %v2089_v18  ;;  %v993_v20 = vmul.f32 %v2596_v12, %v2087_v17 }
 0x1d5   :  { %v870_v10 = vsel %vm868_vm4, %v869_v2, %v867_v4  ;;  %1076 = vadd.xlane.f32.xlu1 %v1075_v5  ;;  %v1078_v34 = vsel %vm550_vm2, %v1046_v56, 0.0  ;;  %1643 = vrcp.f32 %v885_v57  ;;  %v755_v23 = vsel %vm754_vm5, %v2570_v6, %v753_v55  ;;  %v1636_v13 = vpop.eup %1635 }
 0x1d6   :  { %v902_v9 = vadd.f32 1e-10, %v870_v10  ;;  %v758_v2 = vsel %vm756_vm6, %v757_v41, %v755_v23  ;;  %v1008_v15 = vsub.f32 %v976_v7, %v992_v32  ;;  %v978_v63 = vmul.f32 %v1624_v37, %v2113_v36 }
 0x1d7   :  { %v994_v18 = vmul.f32 %v2614_v26, %v2111_v35  ;;  %v886_v31 = vadd.f32 1e-10, %v758_v2  ;;  %1079 = vadd.xlane.f32.xlu0 %v1078_v34  ;;  %v1009_v47 = vsub.f32 %v977_v14, %v993_v20  ;;  %v979_v29 = vmul.f32 %v1636_v13, %v2137_v59 }
 0x1d8   :  { %1645 = vrcp.f32 %v902_v9  ;;  %v1031_v17 = vmul.f32 %v2442_v28, %v1008_v15  ;;  %v995_v8 = vmul.f32 %v1630_v40, %v2135_v58  ;;  %v1638_v60 = vpop.eup %1637  ;;  %v2728_v40 = vld [vmem:[#allocation5_spill] sm:$0xff] }
 0x1d9   :  { %v1010_v12 = vsub.f32 %v978_v63, %v994_v18  ;;  %1647 = vrcp.f32 %v886_v31  ;;  %v1032_v6 = vmul.f32 %v2442_v28, %v1009_v47  ;;  %v996_v24 = vmul.f32 %v1638_v60, %v2159_v16 }
 0x1da   :  { %v1047_v41 = vmul.f32 %v1031_v17, %v1008_v15  ;;  %v1011_v37 = vsub.f32 %v979_v29, %v995_v8 }
 0x1db   :  { %v1033_v36 = vmul.f32 %v2442_v28, %v1010_v12  ;;  %v1048_v35 = vmul.f32 %v1032_v6, %v1009_v47 }
 0x1dc   :  { %v1081_v26 = vsel %vm550_vm2, %v1047_v41, 0.0  ;;  %v1034_v27 = vmul.f32 %v2442_v28, %v1011_v37 }
 0x1dd   :  { %v1049_v62 = vmul.f32 %v1033_v36, %v1010_v12  ;;  %1082 = vadd.xlane.f32.xlu1 %v1081_v26  ;;  %v1084_v59 = vsel %vm550_vm2, %v1048_v35, 0.0 }
 0x1de   :  { %v1640_v58 = vpop.eup %1639  ;;  %1085 = vadd.xlane.f32.xlu0 %v1084_v59  ;;  %v1050_v49 = vmul.f32 %v1034_v27, %v1011_v37 }
 0x1df   :  { %v1087_v61 = vsel %vm550_vm2, %v1049_v62, 0.0  ;;  %v980_v44 = vmul.f32 %v1640_v58, %v2161_v19 }
 0x1e0   :  { %v1642_v25 = vpop.eup %1641  ;;  %v1090_v48 = vsel %vm550_vm2, %v1050_v49, 0.0 }
 0x1e1   :  { %1088 = vadd.xlane.f32.xlu1 %v1087_v61  ;;  %v1012_v22 = vsub.f32 %v980_v44, %v996_v24  ;;  %v997_v43 = vmul.f32 %v1642_v25, %v2183_v38 }
 0x1e2   :  { %v1644_v33 = vpop.eup %1643  ;;  %1091 = vadd.xlane.f32.xlu0 %v1090_v48 }
 0x1e3   :  { %v1035_v7 = vmul.f32 %v2442_v28, %v1012_v22  ;;  %v981_v16 = vmul.f32 %v1644_v33, %v2728_v40 }
 0x1e5   :  { %v1646_v39 = vpop.eup %1645  ;;  %v1051_v52 = vmul.f32 %v1035_v7, %v1012_v22  ;;  %v1013_v30 = vsub.f32 %v981_v16, %v997_v43 }
 0x1e6   :  { %v998_v11 = vmul.f32 %v1646_v39, %v2729_v53  ;;  %v1648_v45 = vpop.eup %1647 }
 0x1e7   :  { %v1093_v19 = vsel %vm550_vm2, %v1051_v52, 0.0  ;;  %v1036_v51 = vmul.f32 %v2442_v28, %v1013_v30  ;;  %v982_v0 = vmul.f32 %v1648_v45, %v2730_v50 }
 0x1e8   :  { %1094 = vadd.xlane.f32.xlu1 %v1093_v19 }
 0x1e9   :  { %v1052_v38 = vmul.f32 %v1036_v51, %v1013_v30  ;;  %v1014_v46 = vsub.f32 %v982_v0, %v998_v11 }
 0x1eb   :  { %v1096_v3 = vsel %vm550_vm2, %v1052_v38, 0.0  ;;  %v1037_v1 = vmul.f32 %v2442_v28, %v1014_v46 }
 0x1ec   :  { %1097 = vadd.xlane.f32.xlu0 %v1096_v3 }
 0x1ed   :  { %v1053_v54 = vmul.f32 %v1037_v1, %v1014_v46 }
 0x1ef   :  { %v1099_v42 = vsel %vm550_vm2, %v1053_v54, 0.0  ;;  %vm1123_vm2 = vcmask 0  }
 0x1f0   :  { %1100 = vadd.xlane.f32.xlu1 %v1099_v42 }
 0x23b   :  { %v1056_v21 = vpop.xlane.xlu0 %1055 }
 0x243   :  { %v1059_v5 = vpop.xlane.xlu1 %1058 }
 0x244   :  { %v1102_v57 = vadd.f32 %v1059_v5, %v1056_v21 }
 0x24c   :  { %v1062_v56 = vpop.xlane.xlu0 %1061 }
 0x24d   :  { %v1103_v55 = vadd.f32 %v1102_v57, %v1062_v56 }
 0x251   :  { %v1065_v4 = vpop.xlane.xlu1 %1064 }
 0x252   :  { %v1104_v34 = vadd.f32 %v1103_v55, %v1065_v4 }
 0x256   :  { %v1068_v10 = vpop.xlane.xlu0 %1067 }
 0x257   :  { %v1105_v14 = vadd.f32 %v1104_v34, %v1068_v10 }
 0x25a   :  { %v1071_v32 = vpop.xlane.xlu1 %1070 }
 0x25b   :  { %v1106_v23 = vadd.f32 %v1105_v14, %v1071_v32 }
 0x25c   :  { %v1074_v9 = vpop.xlane.xlu0 %1073 }
 0x25d   :  { %v1107_v13 = vadd.f32 %v1106_v23, %v1074_v9 }
 0x25e   :  { %v1077_v20 = vpop.xlane.xlu1 %1076 }
 0x25f   :  { %v1108_v2 = vadd.f32 %v1107_v13, %v1077_v20 }
 0x260   :  { %v1080_v28 = vpop.xlane.xlu0 %1079 }
 0x261   :  { %v1109_v63 = vadd.f32 %v1108_v2, %v1080_v28 }
 0x266   :  { %v1083_v15 = vpop.xlane.xlu1 %1082 }
 0x267   :  { %v1086_v18 = vpop.xlane.xlu0 %1085  ;;  %v1110_v31 = vadd.f32 %v1109_v63, %v1083_v15 }
 0x269   :  { %v1111_v29 = vadd.f32 %v1110_v31, %v1086_v18 }
 0x26a   :  { %v1089_v47 = vpop.xlane.xlu1 %1088 }
 0x26b   :  { %v1092_v17 = vpop.xlane.xlu0 %1091  ;;  %v1112_v12 = vadd.f32 %v1111_v29, %v1089_v47 }
 0x26d   :  { %v1113_v60 = vadd.f32 %v1112_v12, %v1092_v17 }
 0x271   :  { %v1095_v8 = vpop.xlane.xlu1 %1094 }
 0x272   :  { %v1114_v41 = vadd.f32 %v1113_v60, %v1095_v8 }
 0x275   :  { %v1098_v6 = vpop.xlane.xlu0 %1097 }
 0x276   :  { %v1115_v36 = vadd.f32 %v1114_v41, %v1098_v6 }
 0x279   :  { %v1101_v37 = vpop.xlane.xlu1 %1100 }
 0x27a   :  { %v1116_v35 = vadd.f32 %v1115_v36, %v1101_v37 }
 0x27c   :  { %v1117_v26 = vrot.slane %v1116_v35, 4 }
 0x27e   :  { %v1118_v62 = vadd.f32 %v1117_v26, %v1116_v35 }
 0x280   :  { %v1119_v27 = vrot.slane %v1118_v62, 2 }
 0x282   :  { %v1120_v59 = vadd.f32 %v1119_v27, %v1118_v62 }
 0x284   :  { %v1121_v24 = vrot.slane %v1120_v59, 1 }
 0x286   :  { %v1122_v58 = vadd.f32 %v1121_v24, %v1120_v59 }
 0x288   :  { %1124 = vst.msk [vmem:[#allocation2] sm:$0x1] %vm1123_vm2, %v1122_v58 }
 0x289   :  { %1660 = shalt.err (!%p1657_p4)
}
 0x28a   :  { %1298 = dma.vmem_to_hbm [thread:$0]  %s1296_s6, 16, %s2721_s5, [#allocation3]  }
 0x28b   :  { %1669 = dma.done.wait [#allocation3], 16  }
 0x28c   :  { %1670 = vsyncadd [#allocation3], 4294967280 }
 0x28d   :  { %1304 = vsyncpa [#allocation3], 1 }

// kernel: lpips_loss.3
= control target key start
LH: loop header
LB: loop body
LE: loop exit
PB: predicated region body
PF: predicated region fallthrough
CT: control target
= control target key end

     0   :  { %vm492_vm0 = vcmask 261120   ;;  %s9925_s0 = inlined_call_operand.vmem [shape: bf16[2,512,32], index: 0, kind: input, shape index: {}]   ;;  %s9926_s1 = inlined_call_operand.vmem [shape: bf16[32,16], index: 1, kind: input, shape index: {}]   ;;  %s9927_s2 = inlined_call_operand.vmem [shape: f32[1,16], index: 2, kind: input, shape index: {}]   ;;  %s9928_s3 = inlined_call_operand.vmem [shape: f32[1,16], index: 3, kind: input, shape index: {}]   ;;  %s9929_s4 = inlined_call_operand.vmem [shape: bf16[2,512,16], index: 4, kind: output, shape index: {0}]   ;;  %s9930_s5 = inlined_call_operand.hbm [shape: f32[1,1,1], index: 5, kind: output, shape index: {1}]  }
   0x1   :  { %v5056_v0 = vld [vmem:[%s9926_s1 + $0x8] sm:$0xff]   ;;  %v5057_v1 = vld [vmem:[%s9926_s1] sm:$0xff]   ;;  %v5062_v6 = vld [vmem:[%s9925_s0 + $0x10] sm:$0xff]  }
   0x2   :  { %4919 = vmatprep.subr.bf16.mxu0 %v5056_v0  ;;  %5051 = vmatprep.subr.bf16.mxu1 %v5056_v0  ;;  %v5058_v2 = vld [vmem:[%s9925_s0] sm:$0xff]   ;;  %v5060_v4 = vld [vmem:[%s9925_s0 + $0x8] sm:$0xff]   ;;  %v5064_v7 = vld [vmem:[%s9925_s0 + $0x110] sm:$0xff]  }
   0x3   :  { %4920 = vmatpush3.bf16.msra.mxu0 %v5056_v0  ;;  %5053 = vmatpush3.bf16.msra.mxu1 %v5056_v0  ;;  %v5059_v3 = vld [vmem:[%s9925_s0 + $0x100] sm:$0xff]   ;;  %v5061_v5 = vld [vmem:[%s9925_s0 + $0x108] sm:$0xff]   ;;  %v5063_v8 = vld [vmem:[%s9925_s0 + $0x18] sm:$0xff]  }
   0x4   :  { %4921 = vmatprep.subr.bf16.mxu0 %v5057_v1  ;;  %5052 = vmatprep.subr.bf16.mxu1 %v5057_v1  ;;  %v5065_v9 = vld [vmem:[%s9925_s0 + $0x118] sm:$0xff]   ;;  %v5066_v10 = vld [vmem:[%s9925_s0 + $0x20] sm:$0xff]   ;;  %v5067_v12 = vld [vmem:[%s9925_s0 + $0x28] sm:$0xff]  }
   0x5   :  { %4923 = vmatprep.mubr.msk.bf16.mxu0 %vm492_vm0, %v5058_v2  ;;  %4987 = vmatprep.mubr.msk.bf16.mxu1 %vm492_vm0, %v5059_v3  ;;  %v5068_v11 = vld [vmem:[%s9925_s0 + $0x120] sm:$0xff]   ;;  %v5069_v13 = vld [vmem:[%s9925_s0 + $0x128] sm:$0xff]   ;;  %v5070_v14 = vld [vmem:[%s9925_s0 + $0x30] sm:$0xff]  }
   0x6   :  { %v5072_v15 = vld [vmem:[%s9925_s0 + $0x130] sm:$0xff]   ;;  %v5071_v16 = vld [vmem:[%s9925_s0 + $0x38] sm:$0xff]   ;;  %v5074_v18 = vld [vmem:[%s9925_s0 + $0x40] sm:$0xff]  }
   0x7   :  { %4922 = vmatpush3.bf16.msra.mxu0 %v5057_v1  ;;  %5054 = vmatpush3.bf16.msra.mxu1 %v5057_v1  ;;  %v5073_v17 = vld [vmem:[%s9925_s0 + $0x138] sm:$0xff]   ;;  %v5076_v19 = vld [vmem:[%s9925_s0 + $0x140] sm:$0xff]   ;;  %v5075_v20 = vld [vmem:[%s9925_s0 + $0x48] sm:$0xff]  }
   0x8   :  { %v5077_v21 = vld [vmem:[%s9925_s0 + $0x148] sm:$0xff]   ;;  %v5078_v22 = vld [vmem:[%s9925_s0 + $0x50] sm:$0xff]   ;;  %v5079_v24 = vld [vmem:[%s9925_s0 + $0x58] sm:$0xff]  }
   0x9   :  { %v5080_v23 = vld [vmem:[%s9925_s0 + $0x150] sm:$0xff]   ;;  %v5081_v25 = vld [vmem:[%s9925_s0 + $0x158] sm:$0xff]   ;;  %v5082_v26 = vld [vmem:[%s9925_s0 + $0x60] sm:$0xff]  }
   0xa   :  { %4924 = vmatmul.mubr.msk.bf16.vlgmr.msra.gmra.mxu0 %vm492_vm0, %v5060_v4  ;;  %4988 = vmatmul.mubr.msk.bf16.vlgmr.msra.gmra.mxu1 %vm492_vm0, %v5061_v5  ;;  %v5084_v27 = vld [vmem:[%s9925_s0 + $0x160] sm:$0xff]   ;;  %v5083_v28 = vld [vmem:[%s9925_s0 + $0x68] sm:$0xff]   ;;  %v5086_v30 = vld [vmem:[%s9925_s0 + $0x70] sm:$0xff]  }
   0xb   :  { %4927 = vmatprep.mubr.msk.bf16.mxu0 %vm492_vm0, %v5062_v6  ;;  %4991 = vmatprep.mubr.msk.bf16.mxu1 %vm492_vm0, %v5064_v7  ;;  %v5085_v29 = vld [vmem:[%s9925_s0 + $0x168] sm:$0xff]   ;;  %v5088_v31 = vld [vmem:[%s9925_s0 + $0x170] sm:$0xff]  }
  0x12   :  { %4928 = vmatmul.mubr.msk.bf16.gmra.mxu0 %vm492_vm0, %v5063_v8  ;;  %4992 = vmatmul.mubr.msk.bf16.gmra.mxu1 %vm492_vm0, %v5065_v9 }
  0x13   :  { %4931 = vmatprep.mubr.msk.bf16.mxu0 %vm492_vm0, %v5066_v10  ;;  %4995 = vmatprep.mubr.msk.bf16.mxu1 %vm492_vm0, %v5068_v11 }
  0x1a   :  { %4932 = vmatmul.mubr.msk.bf16.gmra.mxu0 %vm492_vm0, %v5067_v12  ;;  %4996 = vmatmul.mubr.msk.bf16.gmra.mxu1 %vm492_vm0, %v5069_v13 }
  0x1b   :  { %4935 = vmatprep.mubr.msk.bf16.mxu0 %vm492_vm0, %v5070_v14  ;;  %4999 = vmatprep.mubr.msk.bf16.mxu1 %vm492_vm0, %v5072_v15 }
  0x22   :  { %4936 = vmatmul.mubr.msk.bf16.gmra.mxu0 %vm492_vm0, %v5071_v16  ;;  %5000 = vmatmul.mubr.msk.bf16.gmra.mxu1 %vm492_vm0, %v5073_v17 }
  0x23   :  { %4939 = vmatprep.mubr.msk.bf16.mxu0 %vm492_vm0, %v5074_v18  ;;  %5003 = vmatprep.mubr.msk.bf16.mxu1 %vm492_vm0, %v5076_v19 }
  0x2a   :  { %4940 = vmatmul.mubr.msk.bf16.gmra.mxu0 %vm492_vm0, %v5075_v20  ;;  %5004 = vmatmul.mubr.msk.bf16.gmra.mxu1 %vm492_vm0, %v5077_v21 }
  0x2b   :  { %4943 = vmatprep.mubr.msk.bf16.mxu0 %vm492_vm0, %v5078_v22  ;;  %5007 = vmatprep.mubr.msk.bf16.mxu1 %vm492_vm0, %v5080_v23 }
  0x32   :  { %4944 = vmatmul.mubr.msk.bf16.gmra.mxu0 %vm492_vm0, %v5079_v24  ;;  %5008 = vmatmul.mubr.msk.bf16.gmra.mxu1 %vm492_vm0, %v5081_v25 }
  0x33   :  { %4947 = vmatprep.mubr.msk.bf16.mxu0 %vm492_vm0, %v5082_v26  ;;  %5011 = vmatprep.mubr.msk.bf16.mxu1 %vm492_vm0, %v5084_v27 }
  0x3a   :  { %4948 = vmatmul.mubr.msk.bf16.gmra.mxu0 %vm492_vm0, %v5083_v28  ;;  %5012 = vmatmul.mubr.msk.bf16.gmra.mxu1 %vm492_vm0, %v5085_v29 }
  0x3b   :  { %4951 = vmatprep.mubr.msk.bf16.mxu0 %vm492_vm0, %v5086_v30  ;;  %5015 = vmatprep.mubr.msk.bf16.mxu1 %vm492_vm0, %v5088_v31 }
  0x3c   :  { %11 = vsyncpa [#allocation3], 0  ;;  %v5087_v32 = vld [vmem:[%s9925_s0 + $0x78] sm:$0xff]   ;;  %v5090_v34 = vld [vmem:[%s9925_s0 + $0x80] sm:$0xff]   ;;  %vm4029_vm1 = vcmask 125952   ;;  %vm1486_vm2 = vcmask 130048  }
  0x3d   :  { %v5089_v33 = vld [vmem:[%s9925_s0 + $0x178] sm:$0xff]   ;;  %v5092_v35 = vld [vmem:[%s9925_s0 + $0x180] sm:$0xff]   ;;  %v5091_v36 = vld [vmem:[%s9925_s0 + $0x88] sm:$0xff]  }
  0x3e   :  { %v5093_v37 = vld [vmem:[%s9925_s0 + $0x188] sm:$0xff]   ;;  %v5094_v38 = vld [vmem:[%s9925_s0 + $0x90] sm:$0xff]   ;;  %v5095_v40 = vld [vmem:[%s9925_s0 + $0x98] sm:$0xff]  }
  0x3f   :  { %v5096_v39 = vld [vmem:[%s9925_s0 + $0x190] sm:$0xff]   ;;  %v5097_v41 = vld [vmem:[%s9925_s0 + $0x198] sm:$0xff]   ;;  %v5098_v42 = vld [vmem:[%s9925_s0 + $0xa0] sm:$0xff]  }
  0x40   :  { %v5100_v43 = vld [vmem:[%s9925_s0 + $0x1a0] sm:$0xff]   ;;  %v5099_v44 = vld [vmem:[%s9925_s0 + $0xa8] sm:$0xff]   ;;  %v5102_v46 = vld [vmem:[%s9925_s0 + $0xb0] sm:$0xff]  }
  0x41   :  { %v5101_v45 = vld [vmem:[%s9925_s0 + $0x1a8] sm:$0xff]   ;;  %v5104_v47 = vld [vmem:[%s9925_s0 + $0x1b0] sm:$0xff]   ;;  %v5103_v48 = vld [vmem:[%s9925_s0 + $0xb8] sm:$0xff]  }
  0x42   :  { %4952 = vmatmul.mubr.msk.bf16.gmra.mxu0 %vm492_vm0, %v5087_v32  ;;  %5016 = vmatmul.mubr.msk.bf16.gmra.mxu1 %vm492_vm0, %v5089_v33  ;;  %v5105_v49 = vld [vmem:[%s9925_s0 + $0x1b8] sm:$0xff]   ;;  %v5106_v50 = vld [vmem:[%s9925_s0 + $0xc0] sm:$0xff]   ;;  %v5107_v52 = vld [vmem:[%s9925_s0 + $0xc8] sm:$0xff]  }
  0x43   :  { %4955 = vmatprep.mubr.msk.bf16.mxu0 %vm492_vm0, %v5090_v34  ;;  %5019 = vmatprep.mubr.msk.bf16.mxu1 %vm492_vm0, %v5092_v35  ;;  %v5108_v51 = vld [vmem:[%s9925_s0 + $0x1c0] sm:$0xff]   ;;  %v5109_v53 = vld [vmem:[%s9925_s0 + $0x1c8] sm:$0xff]   ;;  %v5110_v54 = vld [vmem:[%s9925_s0 + $0xd0] sm:$0xff]  }
  0x44   :  { %v5112_v55 = vld [vmem:[%s9925_s0 + $0x1d0] sm:$0xff]   ;;  %v5111_v56 = vld [vmem:[%s9925_s0 + $0xd8] sm:$0xff]   ;;  %v5114_v58 = vld [vmem:[%s9925_s0 + $0xe0] sm:$0xff]  }
  0x45   :  { %v5113_v57 = vld [vmem:[%s9925_s0 + $0x1d8] sm:$0xff]   ;;  %v5116_v59 = vld [vmem:[%s9925_s0 + $0x1e0] sm:$0xff]   ;;  %v5115_v60 = vld [vmem:[%s9925_s0 + $0xe8] sm:$0xff]  }
  0x46   :  { %v5117_v61 = vld [vmem:[%s9925_s0 + $0x1e8] sm:$0xff]   ;;  %v5118_v62 = vld [vmem:[%s9925_s0 + $0xf0] sm:$0xff]   ;;  %v5119_v0 = vld [vmem:[%s9925_s0 + $0xf8] sm:$0xff]  }
  0x47   :  { %v5120_v63 = vld [vmem:[%s9925_s0 + $0x1f0] sm:$0xff]   ;;  %v5121_v1 = vld [vmem:[%s9925_s0 + $0x1f8] sm:$0xff]   ;;  %v5956_v2 = vld [vmem:[%s9927_s2] ss:$0 sm:$0xff] }
  0x4a   :  { %4956 = vmatmul.mubr.msk.bf16.gmra.mxu0 %vm492_vm0, %v5091_v36  ;;  %5020 = vmatmul.mubr.msk.bf16.gmra.mxu1 %vm492_vm0, %v5093_v37 }
  0x4b   :  { %4959 = vmatprep.mubr.msk.bf16.mxu0 %vm492_vm0, %v5094_v38  ;;  %5023 = vmatprep.mubr.msk.bf16.mxu1 %vm492_vm0, %v5096_v39 }
  0x52   :  { %4960 = vmatmul.mubr.msk.bf16.gmra.mxu0 %vm492_vm0, %v5095_v40  ;;  %5024 = vmatmul.mubr.msk.bf16.gmra.mxu1 %vm492_vm0, %v5097_v41 }
  0x53   :  { %4963 = vmatprep.mubr.msk.bf16.mxu0 %vm492_vm0, %v5098_v42  ;;  %5027 = vmatprep.mubr.msk.bf16.mxu1 %vm492_vm0, %v5100_v43 }
  0x5a   :  { %4964 = vmatmul.mubr.msk.bf16.gmra.mxu0 %vm492_vm0, %v5099_v44  ;;  %5028 = vmatmul.mubr.msk.bf16.gmra.mxu1 %vm492_vm0, %v5101_v45 }
  0x5b   :  { %4967 = vmatprep.mubr.msk.bf16.mxu0 %vm492_vm0, %v5102_v46  ;;  %5031 = vmatprep.mubr.msk.bf16.mxu1 %vm492_vm0, %v5104_v47 }
  0x62   :  { %4968 = vmatmul.mubr.msk.bf16.gmra.mxu0 %vm492_vm0, %v5103_v48  ;;  %5032 = vmatmul.mubr.msk.bf16.gmra.mxu1 %vm492_vm0, %v5105_v49 }
  0x63   :  { %4971 = vmatprep.mubr.msk.bf16.mxu0 %vm492_vm0, %v5106_v50  ;;  %5035 = vmatprep.mubr.msk.bf16.mxu1 %vm492_vm0, %v5108_v51 }
  0x6a   :  { %4972 = vmatmul.mubr.msk.bf16.gmra.mxu0 %vm492_vm0, %v5107_v52  ;;  %5036 = vmatmul.mubr.msk.bf16.gmra.mxu1 %vm492_vm0, %v5109_v53 }
  0x6b   :  { %4975 = vmatprep.mubr.msk.bf16.mxu0 %vm492_vm0, %v5110_v54  ;;  %5039 = vmatprep.mubr.msk.bf16.mxu1 %vm492_vm0, %v5112_v55 }
  0x72   :  { %4976 = vmatmul.mubr.msk.bf16.gmra.mxu0 %vm492_vm0, %v5111_v56  ;;  %5040 = vmatmul.mubr.msk.bf16.gmra.mxu1 %vm492_vm0, %v5113_v57 }
  0x73   :  { %4979 = vmatprep.mubr.msk.bf16.mxu0 %vm492_vm0, %v5114_v58  ;;  %5043 = vmatprep.mubr.msk.bf16.mxu1 %vm492_vm0, %v5116_v59 }
  0x7a   :  { %4980 = vmatmul.mubr.msk.bf16.gmra.mxu0 %vm492_vm0, %v5115_v60  ;;  %5044 = vmatmul.mubr.msk.bf16.gmra.mxu1 %vm492_vm0, %v5117_v61 }
  0x7b   :  { %4983 = vmatprep.mubr.msk.bf16.mxu0 %vm492_vm0, %v5118_v62  ;;  %5047 = vmatprep.mubr.msk.bf16.mxu1 %vm492_vm0, %v5120_v63 }
  0x82   :  { %4984 = vmatmul.mubr.msk.bf16.gmra.mxu0 %vm492_vm0, %v5119_v0  ;;  %5048 = vmatmul.mubr.msk.bf16.gmra.mxu1 %vm492_vm0, %v5121_v1 }
  0xca   :  { %v4925_v3 = vpop.f32.mrf.mxu0  ;;  %v4989_v4 = vpop.f32.mrf.mxu1 }
  0xcb   :  { %v728_v5 = vadd.f32 %v4925_v3, %v5956_v2  ;;  %v984_v6 = vadd.f32 %v4989_v4, %v5956_v2 }
  0xcc   :  { %v719_v7 = vpop.f32.mrf.mxu0  ;;  %v975_v8 = vpop.f32.mrf.mxu1 }
  0xcd   :  { %v5960_v9 = vmax.f32 %v728_v5, 0.0  ;;  %v5962_v10 = vmax.f32 %v984_v6, 0.0  ;;  %v720_v11 = vadd.f32 %v5956_v2, %v719_v7  ;;  %v976_v12 = vadd.f32 %v5956_v2, %v975_v8 }
  0xce   :  { %v4926_v13 = vpop.f32.mrf.mxu0  ;;  %v4990_v14 = vpop.f32.mrf.mxu1 }
  0xcf   :  { %10067 = vst [vmem:[#allocation5_spill] sm:$0xff] %v5960_v9  ;;  %10068 = vst [vmem:[#allocation6_spill] sm:$0xff] %v5962_v10  ;;  %v4727_v15 = vpack.c.bf16 %v5960_v9, %v5960_v9  ;;  %v4791_v16 = vpack.c.bf16 %v5962_v10, %v5962_v10  ;;  %v5970_v17 = vmax.f32 %v720_v11, 0.0  ;;  %v5972_v18 = vmax.f32 %v976_v12, 0.0 }
  0xd0   :  { %v731_v19 = vadd.f32 %v4926_v13, %v5956_v2  ;;  %v987_v20 = vadd.f32 %v4990_v14, %v5956_v2  ;;  %v722_v21 = vpop.f32.mrf.mxu0  ;;  %v978_v22 = vpop.f32.mrf.mxu1  ;;  %v1360_v23 = vmul.f32 %v5960_v9, %v5960_v9  ;;  %v1424_v24 = vmul.f32 %v5962_v10, %v5962_v10 }
  0xd1   :  { %10069 = vst [vmem:[#allocation7_spill] sm:$0xff] %v5970_v17  ;;  %10070 = vst [vmem:[#allocation8_spill] sm:$0xff] %v5972_v18  ;;  %v4725_v25 = vpack.c.bf16 %v5970_v17, %v5970_v17  ;;  %v4789_v26 = vpack.c.bf16 %v5972_v18, %v5972_v18  ;;  %v723_v27 = vadd.f32 %v5956_v2, %v722_v21 }
  0xd2   :  { %4032 = vst.msk [vmem:[%s9929_s4 + $0x8] sm:$0xf] %vm4029_vm1, %v4727_v15  ;;  %4663 = vst.msk [vmem:[%s9929_s4 + $0x108] sm:$0xf] %vm4029_vm1, %v4791_v16  ;;  %v979_v28 = vadd.f32 %v5956_v2, %v978_v22  ;;  %v5994_v29 = vmax.f32 %v731_v19, 0.0  ;;  %v5996_v30 = vmax.f32 %v987_v20, 0.0  ;;  %v1358_v32 = vmul.f32 %v5970_v17, %v5970_v17  ;;  %v4929_v33 = vpop.f32.mrf.mxu0  ;;  %v4993_v34 = vpop.f32.mrf.mxu1 }
  0xd3   :  { %v1493_v31 = vsel %vm1486_vm2, %v1360_v23, 0.0  ;;  %4030 = vst.msk [vmem:[%s9929_s4] sm:$0xf] %vm4029_vm1, %v4725_v25  ;;  %4661 = vst.msk [vmem:[%s9929_s4 + $0x100] sm:$0xf] %vm4029_vm1, %v4789_v26  ;;  %v6009_v35 = vmax.f32 %v723_v27, 0.0  ;;  %v744_v37 = vadd.f32 %v4929_v33, %v5956_v2  ;;  %v1000_v49 = vadd.f32 %v4993_v34, %v5956_v2 }
  0xd4   :  { %10071 = vst [vmem:[#allocation9_spill] sm:$0xff] %v5994_v29  ;;  %10072 = vst [vmem:[#allocation10_spill] sm:$0xff] %v5996_v30  ;;  %v6011_v36 = vmax.f32 %v979_v28, 0.0  ;;  %1494 = vadd.xlane.f32.xlu1 %v1493_v31  ;;  %v4728_v38 = vpack.c.bf16 %v5994_v29, %v5994_v29  ;;  %v4792_v39 = vpack.c.bf16 %v5996_v30, %v5996_v30  ;;  %v1487_v40 = vsel %vm1486_vm2, %v1358_v32, 0.0  ;;  %v735_v41 = vpop.f32.mrf.mxu0  ;;  %v991_v43 = vpop.f32.mrf.mxu1 }
  0xd5   :  { %10073 = vst [vmem:[#allocation11_spill] sm:$0xff] %v6009_v35  ;;  %v1425_v42 = vmul.f32 %v5996_v30, %v5996_v30  ;;  %v4726_v44 = vpack.c.bf16 %v6009_v35, %v6009_v35  ;;  %1488 = vadd.xlane.f32.xlu0 %v1487_v40  ;;  %v6025_v46 = vmax.f32 %v744_v37, 0.0  ;;  %v736_v47 = vadd.f32 %v5956_v2, %v735_v41 }
  0xd6   :  { %10074 = vst [vmem:[#allocation12_spill] sm:$0xff] %v6011_v36  ;;  %v4790_v45 = vpack.c.bf16 %v6011_v36, %v6011_v36  ;;  %4033 = vst.msk [vmem:[%s9929_s4 + $0xc] sm:$0xf] %vm4029_vm1, %v4728_v38  ;;  %v1685_v48 = vsel %vm1486_vm2, %v1424_v24, 0.0  ;;  %v1422_v50 = vmul.f32 %v5972_v18, %v5972_v18  ;;  %v4930_v51 = vpop.f32.mrf.mxu0  ;;  %v992_v52 = vadd.f32 %v5956_v2, %v991_v43  ;;  %v4994_v53 = vpop.f32.mrf.mxu1 }
  0xd7   :  { %10075 = vst [vmem:[#allocation13_spill] sm:$0xff] %v6025_v46  ;;  %4664 = vst.msk [vmem:[%s9929_s4 + $0x10c] sm:$0xf] %vm4029_vm1, %v4792_v39  ;;  %v4731_v54 = vpack.c.bf16 %v6025_v46, %v6025_v46  ;;  %v6051_v55 = vmax.f32 %v736_v47, 0.0  ;;  %v1688_v56 = vsel %vm1486_vm2, %v1425_v42, 0.0  ;;  %v747_v57 = vadd.f32 %v4930_v51, %v5956_v2 }
  0xd8   :  { %4031 = vst.msk [vmem:[%s9929_s4 + $0x4] sm:$0xf] %vm4029_vm1, %v4726_v44  ;;  %4662 = vst.msk [vmem:[%s9929_s4 + $0x104] sm:$0xf] %vm4029_vm1, %v4790_v45  ;;  %1686 = vadd.xlane.f32.xlu1 %v1685_v48  ;;  %v6055_v58 = vmax.f32 %v1000_v49, 0.0  ;;  %v738_v59 = vpop.f32.mrf.mxu0  ;;  %v6057_v60 = vmax.f32 %v992_v52, 0.0  ;;  %v1359_v61 = vmul.f32 %v6009_v35, %v6009_v35  ;;  %v1003_v62 = vadd.f32 %v4994_v53, %v5956_v2  ;;  %v994_v63 = vpop.f32.mrf.mxu1 }
  0xd9   :  { %10076 = vst [vmem:[#allocation14_spill] sm:$0xff] %v6051_v55  ;;  %4036 = vst.msk [vmem:[%s9929_s4 + $0x18] sm:$0xf] %vm4029_vm1, %v4731_v54  ;;  %v4729_v0 = vpack.c.bf16 %v6051_v55, %v6051_v55  ;;  %1689 = vadd.xlane.f32.xlu0 %v1688_v56  ;;  %v1679_v1 = vsel %vm1486_vm2, %v1422_v50, 0.0  ;;  %v6069_v3 = vmax.f32 %v747_v57, 0.0  ;;  %v739_v4 = vadd.f32 %v5956_v2, %v738_v59 }
  0xda   :  { %10077 = vst [vmem:[#allocation15_spill] sm:$0xff] %v6055_v58  ;;  %10078 = vst [vmem:[#allocation16_spill] sm:$0xff] %v6057_v60  ;;  %v4795_v5 = vpack.c.bf16 %v6055_v58, %v6055_v58  ;;  %v4793_v6 = vpack.c.bf16 %v6057_v60, %v6057_v60  ;;  %v6076_v7 = vmax.f32 %v1003_v62, 0.0  ;;  %v1361_v8 = vmul.f32 %v5994_v29, %v5994_v29  ;;  %v4933_v11 = vpop.f32.mrf.mxu0  ;;  %v4997_v12 = vpop.f32.mrf.mxu1 }
  0xdb   :  { %10079 = vst [vmem:[#allocation17_spill] sm:$0xff] %v6069_v3  ;;  %4034 = vst.msk [vmem:[%s9929_s4 + $0x10] sm:$0xf] %vm4029_vm1, %v4729_v0  ;;  %v4732_v13 = vpack.c.bf16 %v6069_v3, %v6069_v3  ;;  %v6086_v14 = vmax.f32 %v739_v4, 0.0  ;;  %v995_v15 = vadd.f32 %v5956_v2, %v994_v63  ;;  %v1423_v16 = vmul.f32 %v6011_v36, %v6011_v36 }
  0xdc   :  { %10080 = vst [vmem:[#allocation18_spill] sm:$0xff] %v6076_v7  ;;  %1680 = vadd.xlane.f32.xlu1 %v1679_v1  ;;  %4667 = vst.msk [vmem:[%s9929_s4 + $0x118] sm:$0xf] %vm4029_vm1, %v4795_v5  ;;  %v1490_v19 = vsel %vm1486_vm2, %v1359_v61, 0.0  ;;  %v4796_v20 = vpack.c.bf16 %v6076_v7, %v6076_v7  ;;  %v1428_v21 = vmul.f32 %v6055_v58, %v6055_v58  ;;  %v751_v22 = vpop.f32.mrf.mxu0  ;;  %v1007_v23 = vpop.f32.mrf.mxu1  ;;  %v1496_v26 = vsel %vm1486_vm2, %v1361_v8, 0.0 }
  0xdd   :  { %10081 = vst [vmem:[#allocation19_spill] sm:$0xff] %v6086_v14  ;;  %4665 = vst.msk [vmem:[%s9929_s4 + $0x110] sm:$0xf] %vm4029_vm1, %v4793_v6  ;;  %v4730_v24 = vpack.c.bf16 %v6086_v14, %v6086_v14  ;;  %1491 = vadd.xlane.f32.xlu0 %v1490_v19  ;;  %v6110_v25 = vmax.f32 %v995_v15, 0.0  ;;  %v1364_v27 = vmul.f32 %v6025_v46, %v6025_v46  ;;  %v1682_v37 = vsel %vm1486_vm2, %v1423_v16, 0.0 }
  0xde   :  { %4037 = vst.msk [vmem:[%s9929_s4 + $0x1c] sm:$0xf] %vm4029_vm1, %v4732_v13  ;;  %4668 = vst.msk [vmem:[%s9929_s4 + $0x11c] sm:$0xf] %vm4029_vm1, %v4796_v20  ;;  %v760_v28 = vadd.f32 %v4933_v11, %v5956_v2  ;;  %v752_v31 = vadd.f32 %v5956_v2, %v751_v22  ;;  %v4934_v32 = vpop.f32.mrf.mxu0  ;;  %v4998_v33 = vpop.f32.mrf.mxu1  ;;  %v1426_v38 = vmul.f32 %v6057_v60, %v6057_v60  ;;  %v1697_v40 = vsel %vm1486_vm2, %v1428_v21, 0.0 }
  0xdf   :  { %10082 = vst [vmem:[#allocation20_spill] sm:$0xff] %v6110_v25  ;;  %4035 = vst.msk [vmem:[%s9929_s4 + $0x14] sm:$0xf] %vm4029_vm1, %v4730_v24  ;;  %v4794_v34 = vpack.c.bf16 %v6110_v25, %v6110_v25  ;;  %v1016_v39 = vadd.f32 %v4997_v12, %v5956_v2  ;;  %v763_v43 = vadd.f32 %v4934_v32, %v5956_v2  ;;  %v1505_v50 = vsel %vm1486_vm2, %v1364_v27, 0.0 }
  0xe0   :  { %1497 = vadd.xlane.f32.xlu1 %v1496_v26  ;;  %v6132_v41 = vmax.f32 %v760_v28, 0.0  ;;  %v6134_v42 = vmax.f32 %v752_v31, 0.0  ;;  %v754_v44 = vpop.f32.mrf.mxu0  ;;  %v1010_v45 = vpop.f32.mrf.mxu1  ;;  %v1008_v49 = vadd.f32 %v5956_v2, %v1007_v23  ;;  %v1691_v57 = vsel %vm1486_vm2, %v1426_v38, 0.0 }
  0xe1   :  { %4666 = vst.msk [vmem:[%s9929_s4 + $0x114] sm:$0xf] %vm4029_vm1, %v4794_v34  ;;  %1683 = vadd.xlane.f32.xlu0 %v1682_v37  ;;  %v6141_v47 = vmax.f32 %v1016_v39, 0.0  ;;  %v755_v48 = vadd.f32 %v5956_v2, %v754_v44  ;;  %v6150_v53 = vmax.f32 %v763_v43, 0.0  ;;  %v1362_v63 = vmul.f32 %v6051_v55, %v6051_v55 }
  0xe2   :  { %10083 = vst [vmem:[#allocation21_spill] sm:$0xff] %v6132_v41  ;;  %10084 = vst [vmem:[#allocation22_spill] sm:$0xff] %v6134_v42  ;;  %v4735_v51 = vpack.c.bf16 %v6132_v41, %v6132_v41  ;;  %v4733_v52 = vpack.c.bf16 %v6134_v42, %v6134_v42  ;;  %v4937_v54 = vpop.f32.mrf.mxu0  ;;  %v5001_v56 = vpop.f32.mrf.mxu1  ;;  %v6157_v62 = vmax.f32 %v1008_v49, 0.0  ;;  %v1019_v1 = vadd.f32 %v4998_v33, %v5956_v2 }
  0xe3   :  { %10085 = vst [vmem:[#allocation23_spill] sm:$0xff] %v6141_v47  ;;  %10086 = vst [vmem:[#allocation24_spill] sm:$0xff] %v6150_v53  ;;  %v4799_v59 = vpack.c.bf16 %v6141_v47, %v6141_v47  ;;  %v6155_v61 = vmax.f32 %v755_v48, 0.0  ;;  %v4736_v0 = vpack.c.bf16 %v6150_v53, %v6150_v53  ;;  %v1011_v4 = vadd.f32 %v5956_v2, %v1010_v45 }
  0xe4   :  { %1698 = vadd.xlane.f32.xlu1 %v1697_v40  ;;  %10088 = vst [vmem:[#allocation26_spill] sm:$0xff] %v6157_v62  ;;  %4040 = vst.msk [vmem:[%s9929_s4 + $0x28] sm:$0xf] %vm4029_vm1, %v4735_v51  ;;  %v767_v5 = vpop.f32.mrf.mxu0  ;;  %v1023_v6 = vpop.f32.mrf.mxu1  ;;  %v1365_v8 = vmul.f32 %v6069_v3, %v6069_v3  ;;  %v4797_v12 = vpack.c.bf16 %v6157_v62, %v6157_v62  ;;  %v1429_v13 = vmul.f32 %v6076_v7, %v6076_v7 }
  0xe5   :  { %10087 = vst [vmem:[#allocation25_spill] sm:$0xff] %v6155_v61  ;;  %4038 = vst.msk [vmem:[%s9929_s4 + $0x20] sm:$0xf] %vm4029_vm1, %v4733_v52  ;;  %1506 = vadd.xlane.f32.xlu0 %v1505_v50  ;;  %v4734_v11 = vpack.c.bf16 %v6155_v61, %v6155_v61  ;;  %v6189_v15 = vmax.f32 %v1019_v1, 0.0  ;;  %v6191_v16 = vmax.f32 %v1011_v4, 0.0  ;;  %v776_v21 = vadd.f32 %v4937_v54, %v5956_v2 }
  0xe6   :  { %4671 = vst.msk [vmem:[%s9929_s4 + $0x128] sm:$0xf] %vm4029_vm1, %v4799_v59  ;;  %4041 = vst.msk [vmem:[%s9929_s4 + $0x2c] sm:$0xf] %vm4029_vm1, %v4736_v0  ;;  %v4938_v19 = vpop.f32.mrf.mxu0  ;;  %v5002_v20 = vpop.f32.mrf.mxu1  ;;  %v1499_v22 = vsel %vm1486_vm2, %v1362_v63, 0.0  ;;  %v768_v26 = vadd.f32 %v5956_v2, %v767_v5  ;;  %v1508_v31 = vsel %vm1486_vm2, %v1365_v8, 0.0  ;;  %v1363_v32 = vmul.f32 %v6086_v14, %v6086_v14 }
  0xe7   :  { %10089 = vst [vmem:[#allocation27_spill] sm:$0xff] %v6189_v15  ;;  %10090 = vst [vmem:[#allocation28_spill] sm:$0xff] %v6191_v16  ;;  %v4800_v23 = vpack.c.bf16 %v6189_v15, %v6189_v15  ;;  %v4798_v24 = vpack.c.bf16 %v6191_v16, %v6191_v16  ;;  %v6211_v33 = vmax.f32 %v776_v21, 0.0  ;;  %v1700_v34 = vsel %vm1486_vm2, %v1429_v13, 0.0 }
  0xe8   :  { %1692 = vadd.xlane.f32.xlu1 %v1691_v57  ;;  %4039 = vst.msk [vmem:[%s9929_s4 + $0x24] sm:$0xf] %vm4029_vm1, %v4734_v11  ;;  %4669 = vst.msk [vmem:[%s9929_s4 + $0x120] sm:$0xf] %vm4029_vm1, %v4797_v12  ;;  %v770_v27 = vpop.f32.mrf.mxu0  ;;  %v1026_v28 = vpop.f32.mrf.mxu1  ;;  %v6222_v37 = vmax.f32 %v768_v26, 0.0  ;;  %v779_v38 = vadd.f32 %v4938_v19, %v5956_v2  ;;  %v1032_v39 = vadd.f32 %v5001_v56, %v5956_v2  ;;  %v1502_v59 = vsel %vm1486_vm2, %v1363_v32, 0.0 }
  0xe9   :  { %1500 = vadd.xlane.f32.xlu0 %v1499_v22  ;;  %10091 = vst [vmem:[#allocation29_spill] sm:$0xff] %v6211_v33  ;;  %4672 = vst.msk [vmem:[%s9929_s4 + $0x12c] sm:$0xf] %vm4029_vm1, %v4800_v23  ;;  %v1427_v44 = vmul.f32 %v6110_v25, %v6110_v25  ;;  %v4739_v45 = vpack.c.bf16 %v6211_v33, %v6211_v33  ;;  %v771_v48 = vadd.f32 %v5956_v2, %v770_v27 }
  0xea   :  { %4670 = vst.msk [vmem:[%s9929_s4 + $0x124] sm:$0xf] %vm4029_vm1, %v4798_v24  ;;  %10092 = vst [vmem:[#allocation30_spill] sm:$0xff] %v6222_v37  ;;  %v4941_v40 = vpop.f32.mrf.mxu0  ;;  %v5005_v43 = vpop.f32.mrf.mxu1  ;;  %v1024_v49 = vadd.f32 %v5956_v2, %v1023_v6  ;;  %v1432_v50 = vmul.f32 %v6141_v47, %v6141_v47  ;;  %v4737_v51 = vpack.c.bf16 %v6222_v37, %v6222_v37  ;;  %v6236_v52 = vmax.f32 %v779_v38, 0.0 }
  0xeb   :  { %v6238_v54 = vmax.f32 %v1032_v39, 0.0  ;;  %4044 = vst.msk [vmem:[%s9929_s4 + $0x38] sm:$0xf] %vm4029_vm1, %v4739_v45  ;;  %v6245_v63 = vmax.f32 %v771_v48, 0.0  ;;  %v1035_v1 = vadd.f32 %v5002_v20, %v5956_v2  ;;  %v1368_v4 = vmul.f32 %v6132_v41, %v6132_v41 }
  0xec   :  { %1509 = vadd.xlane.f32.xlu1 %v1508_v31  ;;  %10093 = vst [vmem:[#allocation31_spill] sm:$0xff] %v6236_v52  ;;  %v783_v56 = vpop.f32.mrf.mxu0  ;;  %v1039_v57 = vpop.f32.mrf.mxu1  ;;  %v6247_v0 = vmax.f32 %v1024_v49, 0.0  ;;  %4042 = vst.msk [vmem:[%s9929_s4 + $0x30] sm:$0xf] %vm4029_vm1, %v4737_v51  ;;  %v4740_v5 = vpack.c.bf16 %v6236_v52, %v6236_v52  ;;  %v1027_v8 = vadd.f32 %v5956_v2, %v1026_v28  ;;  %v1694_v21 = vsel %vm1486_vm2, %v1427_v44, 0.0 }
  0xed   :  { %10094 = vst [vmem:[#allocation32_spill] sm:$0xff] %v6238_v54  ;;  %1701 = vadd.xlane.f32.xlu0 %v1700_v34  ;;  %10095 = vst [vmem:[#allocation33_spill] sm:$0xff] %v6245_v63  ;;  %v4803_v6 = vpack.c.bf16 %v6238_v54, %v6238_v54  ;;  %v4738_v13 = vpack.c.bf16 %v6245_v63, %v6245_v63  ;;  %v6265_v20 = vmax.f32 %v1035_v1, 0.0  ;;  %v1709_v22 = vsel %vm1486_vm2, %v1432_v50, 0.0 }
  0xee   :  { %10096 = vst [vmem:[#allocation34_spill] sm:$0xff] %v6247_v0  ;;  %v4942_v11 = vpop.f32.mrf.mxu0  ;;  %v5006_v12 = vpop.f32.mrf.mxu1  ;;  %v4801_v19 = vpack.c.bf16 %v6247_v0, %v6247_v0  ;;  %v1430_v23 = vmul.f32 %v6157_v62, %v6157_v62  ;;  %4045 = vst.msk [vmem:[%s9929_s4 + $0x3c] sm:$0xf] %vm4029_vm1, %v4740_v5  ;;  %v6279_v24 = vmax.f32 %v1027_v8, 0.0  ;;  %v792_v31 = vadd.f32 %v4941_v40, %v5956_v2 }
  0xef   :  { %10097 = vst [vmem:[#allocation35_spill] sm:$0xff] %v6265_v20  ;;  %4675 = vst.msk [vmem:[%s9929_s4 + $0x138] sm:$0xf] %vm4029_vm1, %v4803_v6  ;;  %v4804_v28 = vpack.c.bf16 %v6265_v20, %v6265_v20  ;;  %v1517_v32 = vsel %vm1486_vm2, %v1368_v4, 0.0  ;;  %v784_v38 = vadd.f32 %v5956_v2, %v783_v56  ;;  %v1366_v45 = vmul.f32 %v6134_v42, %v6134_v42 }
  0xf0   :  { %1503 = vadd.xlane.f32.xlu1 %v1502_v59  ;;  %10098 = vst [vmem:[#allocation36_spill] sm:$0xff] %v6279_v24  ;;  %v786_v26 = vpop.f32.mrf.mxu0  ;;  %v1042_v27 = vpop.f32.mrf.mxu1  ;;  %4043 = vst.msk [vmem:[%s9929_s4 + $0x34] sm:$0xf] %vm4029_vm1, %v4738_v13  ;;  %v4802_v34 = vpack.c.bf16 %v6279_v24, %v6279_v24  ;;  %v6304_v40 = vmax.f32 %v792_v31, 0.0  ;;  %v1703_v48 = vsel %vm1486_vm2, %v1430_v23, 0.0  ;;  %v795_v50 = vadd.f32 %v4942_v11, %v5956_v2 }
  0xf1   :  { %1695 = vadd.xlane.f32.xlu0 %v1694_v21  ;;  %4673 = vst.msk [vmem:[%s9929_s4 + $0x130] sm:$0xf] %vm4029_vm1, %v4801_v19  ;;  %4676 = vst.msk [vmem:[%s9929_s4 + $0x13c] sm:$0xf] %vm4029_vm1, %v4804_v28  ;;  %v6311_v49 = vmax.f32 %v784_v38, 0.0  ;;  %v1048_v51 = vadd.f32 %v5005_v43, %v5956_v2  ;;  %v787_v4 = vadd.f32 %v5956_v2, %v786_v26  ;;  %v1511_v21 = vsel %vm1486_vm2, %v1366_v45, 0.0 }
  0xf2   :  { %v4945_v39 = vpop.f32.mrf.mxu0  ;;  %v6296_v44 = vpop.f32.mrf.mxu1  ;;  %10099 = vst [vmem:[#allocation37_spill] sm:$0xff] %v6304_v40  ;;  %4674 = vst.msk [vmem:[%s9929_s4 + $0x134] sm:$0xf] %vm4029_vm1, %v4802_v34  ;;  %v4743_v1 = vpack.c.bf16 %v6304_v40, %v6304_v40  ;;  %v1040_v5 = vadd.f32 %v5956_v2, %v1039_v57  ;;  %v1369_v6 = vmul.f32 %v6150_v53, %v6150_v53  ;;  %v6323_v13 = vmax.f32 %v795_v50, 0.0 }
  0xf3   :  { %10100 = vst [vmem:[#allocation38_spill] sm:$0xff] %v6311_v49  ;;  %v4741_v8 = vpack.c.bf16 %v6311_v49, %v6311_v49  ;;  %v6325_v11 = vmax.f32 %v1048_v51, 0.0  ;;  %v6334_v57 = vmax.f32 %v787_v4, 0.0  ;;  %v1051_v23 = vadd.f32 %v5006_v12, %v5956_v2 }
  0xf4   :  { %1710 = vadd.xlane.f32.xlu1 %v1709_v22  ;;  %v799_v56 = vpop.f32.mrf.mxu0  ;;  %v1055_v59 = vpop.f32.mrf.mxu1  ;;  %10101 = vst [vmem:[#allocation39_spill] sm:$0xff] %v6323_v13  ;;  %4048 = vst.msk [vmem:[%s9929_s4 + $0x48] sm:$0xf] %vm4029_vm1, %v4743_v1  ;;  %v6336_v22 = vmax.f32 %v1040_v5, 0.0  ;;  %v1433_v26 = vmul.f32 %v6189_v15, %v6189_v15  ;;  %v4744_v28 = vpack.c.bf16 %v6323_v13, %v6323_v13  ;;  %v1520_v51 = vsel %vm1486_vm2, %v1369_v6, 0.0 }
  0xf5   :  { %1518 = vadd.xlane.f32.xlu0 %v1517_v32  ;;  %10102 = vst [vmem:[#allocation40_spill] sm:$0xff] %v6325_v11  ;;  %10103 = vst [vmem:[#allocation41_spill] sm:$0xff] %v6334_v57  ;;  %v4807_v31 = vpack.c.bf16 %v6325_v11, %v6325_v11  ;;  %v1043_v32 = vadd.f32 %v5956_v2, %v1042_v27  ;;  %v1367_v12 = vmul.f32 %v6155_v61, %v6155_v61 }
  0xf6   :  { %v4946_v43 = vpop.f32.mrf.mxu0  ;;  %v6327_v19 = vpop.f32.mrf.mxu1  ;;  %10104 = vst [vmem:[#allocation42_spill] sm:$0xff] %v6336_v22  ;;  %4046 = vst.msk [vmem:[%s9929_s4 + $0x40] sm:$0xf] %vm4029_vm1, %v4741_v8  ;;  %v4742_v45 = vpack.c.bf16 %v6334_v57, %v6334_v57  ;;  %v6356_v50 = vmax.f32 %v1051_v23, 0.0  ;;  %v1431_v5 = vmul.f32 %v6191_v16, %v6191_v16  ;;  %v808_v8 = vadd.f32 %v4945_v39, %v5956_v2 }
  0xf7   :  { %4049 = vst.msk [vmem:[%s9929_s4 + $0x4c] sm:$0xf] %vm4029_vm1, %v4744_v28  ;;  %4679 = vst.msk [vmem:[%s9929_s4 + $0x148] sm:$0xf] %vm4029_vm1, %v4807_v31  ;;  %v6367_v27 = vmax.f32 %v1043_v32, 0.0  ;;  %v1436_v23 = vmul.f32 %v6238_v54, %v6238_v54  ;;  %v800_v31 = vadd.f32 %v5956_v2, %v799_v56  ;;  %v1376_v62 = vmul.f32 %v6304_v40, %v6304_v40 }
  0xf8   :  { %1704 = vadd.xlane.f32.xlu1 %v1703_v48  ;;  %v802_v34 = vpop.f32.mrf.mxu0  ;;  %v1058_v38 = vpop.f32.mrf.mxu1  ;;  %v4805_v48 = vpack.c.bf16 %v6336_v22, %v6336_v22  ;;  %10105 = vst [vmem:[#allocation43_spill] sm:$0xff] %v6356_v50  ;;  %4047 = vst.msk [vmem:[%s9929_s4 + $0x44] sm:$0xf] %vm4029_vm1, %v4742_v45  ;;  %v4808_v6 = vpack.c.bf16 %v6356_v50, %v6356_v50  ;;  %v6401_v39 = vmax.f32 %v808_v8, 0.0 }
  0xf9   :  { %1512 = vadd.xlane.f32.xlu0 %v1511_v21  ;;  %10106 = vst [vmem:[#allocation44_spill] sm:$0xff] %v6367_v27  ;;  %v1712_v21 = vsel %vm1486_vm2, %v1433_v26, 0.0  ;;  %v4806_v28 = vpack.c.bf16 %v6367_v27, %v6367_v27  ;;  %v1434_v26 = vmul.f32 %v6247_v0, %v6247_v0  ;;  %v6409_v56 = vmax.f32 %v800_v31, 0.0 }
  0xfa   :  { %v6369_v1 = vpop.f32.mrf.mxu0  ;;  %v6371_v4 = vpop.f32.mrf.mxu1  ;;  %4677 = vst.msk [vmem:[%s9929_s4 + $0x140] sm:$0xf] %vm4029_vm1, %v4805_v48  ;;  %v1514_v48 = vsel %vm1486_vm2, %v1367_v12, 0.0  ;;  %4680 = vst.msk [vmem:[%s9929_s4 + $0x14c] sm:$0xf] %vm4029_vm1, %v4808_v6  ;;  %v811_v12 = vadd.f32 %v4946_v43, %v5956_v2  ;;  %v1706_v6 = vsel %vm1486_vm2, %v1431_v5, 0.0  ;;  %v4747_v8 = vpack.c.bf16 %v6401_v39, %v6401_v39 }
  0xfb   :  { %10107 = vst [vmem:[#allocation45_spill] sm:$0xff] %v6401_v39  ;;  %4678 = vst.msk [vmem:[%s9929_s4 + $0x144] sm:$0xf] %vm4029_vm1, %v4806_v28  ;;  %v1056_v0 = vadd.f32 %v5956_v2, %v1055_v59  ;;  %v1721_v28 = vsel %vm1486_vm2, %v1436_v23, 0.0  ;;  %v4745_v43 = vpack.c.bf16 %v6409_v56, %v6409_v56  ;;  %v1067_v5 = vadd.f32 %v6327_v19, %v5956_v2 }
  0xfc   :  { %1521 = vadd.xlane.f32.xlu1 %v1520_v51  ;;  %v815_v32 = vpop.f32.mrf.mxu0  ;;  %v6392_v45 = vpop.f32.mrf.mxu1  ;;  %v1372_v51 = vmul.f32 %v6211_v33, %v6211_v33  ;;  %10108 = vst [vmem:[#allocation46_spill] sm:$0xff] %v6409_v56  ;;  %v803_v33 = vadd.f32 %v5956_v2, %v802_v34  ;;  %v6424_v31 = vmax.f32 %v811_v12, 0.0  ;;  %4052 = vst.msk [vmem:[%s9929_s4 + $0x58] sm:$0xf] %vm4029_vm1, %v4747_v8  ;;  %v1715_v41 = vsel %vm1486_vm2, %v1434_v26, 0.0 }
  0xfd   :  { %1713 = vadd.xlane.f32.xlu0 %v1712_v21  ;;  %v1064_v21 = vadd.f32 %v6296_v44, %v5956_v2  ;;  %v6434_v59 = vmax.f32 %v1056_v0, 0.0  ;;  %4050 = vst.msk [vmem:[%s9929_s4 + $0x50] sm:$0xf] %vm4029_vm1, %v4745_v43  ;;  %v1370_v19 = vmul.f32 %v6222_v37, %v6222_v37  ;;  %v6456_v8 = vmax.f32 %v1067_v5, 0.0 }
  0xfe   :  { %v4950_v54 = vpop.f32.mrf.mxu0  ;;  %v6419_v47 = vpop.f32.mrf.mxu1  ;;  %10109 = vst [vmem:[#allocation47_spill] sm:$0xff] %v6424_v31  ;;  %v6432_v34 = vmax.f32 %v803_v33, 0.0  ;;  %v1529_v23 = vsel %vm1486_vm2, %v1372_v51, 0.0  ;;  %v4748_v12 = vpack.c.bf16 %v6424_v31, %v6424_v31  ;;  %v1059_v33 = vadd.f32 %v5956_v2, %v1058_v38 }
  0xff   :  { %v6426_v44 = vmax.f32 %v1064_v21, 0.0  ;;  %10112 = vst [vmem:[#allocation50_spill] sm:$0xff] %v6434_v59  ;;  %10113 = vst [vmem:[#allocation51_spill] sm:$0xff] %v6456_v8  ;;  %v1373_v38 = vmul.f32 %v6236_v52, %v6236_v52  ;;  %v4812_v26 = vpack.c.bf16 %v6456_v8, %v6456_v8  ;;  %v1445_v14 = vmul.f32 %v6456_v8, %v6456_v8 }
 0x100   :  { %1515 = vadd.xlane.f32.xlu1 %v1514_v48  ;;  %v818_v48 = vpop.f32.mrf.mxu0  ;;  %10111 = vst [vmem:[#allocation49_spill] sm:$0xff] %v6432_v34  ;;  %v4746_v51 = vpack.c.bf16 %v6432_v34, %v6432_v34  ;;  %v1074_v43 = vpop.f32.mrf.mxu1  ;;  %4053 = vst.msk [vmem:[%s9929_s4 + $0x5c] sm:$0xf] %vm4029_vm1, %v4748_v12  ;;  %v824_v12 = vadd.f32 %v6369_v1, %v5956_v2 }
 0x101   :  { %10110 = vst [vmem:[#allocation48_spill] sm:$0xff] %v6426_v44  ;;  %1707 = vadd.xlane.f32.xlu0 %v1706_v6  ;;  %v4811_v21 = vpack.c.bf16 %v6426_v44, %v6426_v44  ;;  %v4809_v6 = vpack.c.bf16 %v6434_v59, %v6434_v59  ;;  %4684 = vst.msk [vmem:[%s9929_s4 + $0x15c] sm:$0xf] %vm4029_vm1, %v4812_v26  ;;  %v1371_v26 = vmul.f32 %v6245_v63, %v6245_v63 }
 0x102   :  { %v6448_v0 = vpop.f32.mrf.mxu0  ;;  %4051 = vst.msk [vmem:[%s9929_s4 + $0x54] sm:$0xf] %vm4029_vm1, %v4746_v51  ;;  %v816_v51 = vadd.f32 %v5956_v2, %v815_v32  ;;  %v6499_v1 = vmax.f32 %v824_v12, 0.0  ;;  %v819_v12 = vadd.f32 %v5956_v2, %v818_v48  ;;  %v1435_v63 = vmul.f32 %v6279_v24, %v6279_v24 }
 0x103   :  { %4683 = vst.msk [vmem:[%s9929_s4 + $0x158] sm:$0xf] %vm4029_vm1, %v4811_v21  ;;  %4681 = vst.msk [vmem:[%s9929_s4 + $0x150] sm:$0xf] %vm4029_vm1, %v4809_v6  ;;  %v6485_v21 = vpop.f32.mrf.mxu1  ;;  %v1523_v6 = vsel %vm1486_vm2, %v1370_v19, 0.0  ;;  %v1080_v19 = vadd.f32 %v6371_v4, %v5956_v2 }
 0x104   :  { %1722 = vadd.xlane.f32.xlu1 %v1721_v28  ;;  %v6469_v28 = vmax.f32 %v1059_v33, 0.0  ;;  %v6471_v5 = vpop.f32.mrf.mxu0  ;;  %10115 = vst [vmem:[#allocation53_spill] sm:$0xff] %v6499_v1  ;;  %v6508_v32 = vmax.f32 %v816_v51, 0.0 }
 0x105   :  { %1530 = vadd.xlane.f32.xlu0 %v1529_v23  ;;  %v1437_v23 = vmul.f32 %v6265_v20, %v6265_v20  ;;  %v6501_v37 = vpop.f32.mrf.mxu1  ;;  %v1532_v20 = vsel %vm1486_vm2, %v1373_v38, 0.0  ;;  %v4751_v38 = vpack.c.bf16 %v6499_v1, %v6499_v1  ;;  %v6525_v4 = vmax.f32 %v1080_v19, 0.0 }
 0x106   :  { %10114 = vst [vmem:[#allocation52_spill] sm:$0xff] %v6469_v28  ;;  %v4810_v33 = vpack.c.bf16 %v6469_v28, %v6469_v28  ;;  %v6492_v52 = vpop.f32.mrf.mxu0  ;;  %10116 = vst [vmem:[#allocation54_spill] sm:$0xff] %v6508_v32  ;;  %v1440_v19 = vmul.f32 %v6325_v11, %v6325_v11  ;;  %v1382_v18 = vmul.f32 %v6508_v32, %v6508_v32 }
 0x107   :  { %v1724_v51 = vsel %vm1486_vm2, %v1437_v23, 0.0  ;;  %10118 = vst [vmem:[#allocation56_spill] sm:$0xff] %v6525_v4  ;;  %4056 = vst.msk [vmem:[%s9929_s4 + $0x68] sm:$0xf] %vm4029_vm1, %v4751_v38  ;;  %v1083_v23 = vadd.f32 %v6419_v47, %v5956_v2  ;;  %v4815_v38 = vpack.c.bf16 %v6525_v4, %v6525_v4 }
 0x108   :  { %1716 = vadd.xlane.f32.xlu1 %v1715_v41  ;;  %4682 = vst.msk [vmem:[%s9929_s4 + $0x154] sm:$0xf] %vm4029_vm1, %v4810_v33  ;;  %v827_v41 = vadd.f32 %v4950_v54, %v5956_v2  ;;  %v834_v15 = vpop.f32.mrf.mxu0  ;;  %v1072_v33 = vadd.f32 %v5956_v2, %v6392_v45  ;;  %v4749_v54 = vpack.c.bf16 %v6508_v32, %v6508_v32  ;;  %v6535_v45 = vmax.f32 %v819_v12, 0.0 }
 0x109   :  { %1524 = vadd.xlane.f32.xlu0 %v1523_v6  ;;  %v1075_v12 = vadd.f32 %v5956_v2, %v1074_v43  ;;  %v6558_v24 = vmax.f32 %v1083_v23, 0.0  ;;  %4687 = vst.msk [vmem:[%s9929_s4 + $0x168] sm:$0xf] %vm4029_vm1, %v4815_v38 }
 0x10a   :  { %v6523_v53 = vmax.f32 %v827_v41, 0.0  ;;  %v6527_v6 = vpop.f32.mrf.mxu0  ;;  %10119 = vst [vmem:[#allocation57_spill] sm:$0xff] %v6535_v45  ;;  %v6537_v48 = vmax.f32 %v1072_v33, 0.0  ;;  %v5018_v41 = vpop.f32.mrf.mxu1  ;;  %4054 = vst.msk [vmem:[%s9929_s4 + $0x60] sm:$0xf] %vm4029_vm1, %v4749_v54  ;;  %v4750_v47 = vpack.c.bf16 %v6535_v45, %v6535_v45  ;;  %v1526_v54 = vsel %vm1486_vm2, %v1371_v26, 0.0 }
 0x10b   :  { %10121 = vst [vmem:[#allocation59_spill] sm:$0xff] %v6558_v24  ;;  %v6571_v43 = vmax.f32 %v1075_v12, 0.0  ;;  %v1438_v26 = vmul.f32 %v6336_v22, %v6336_v22  ;;  %v4816_v23 = vpack.c.bf16 %v6558_v24, %v6558_v24  ;;  %v1718_v12 = vsel %vm1486_vm2, %v1435_v63, 0.0 }
 0x10c   :  { %10117 = vst [vmem:[#allocation55_spill] sm:$0xff] %v6523_v53  ;;  %1533 = vadd.xlane.f32.xlu1 %v1532_v20  ;;  %10120 = vst [vmem:[#allocation58_spill] sm:$0xff] %v6537_v48  ;;  %v4752_v20 = vpack.c.bf16 %v6523_v53, %v6523_v53  ;;  %v6552_v33 = vpop.f32.mrf.mxu0  ;;  %v4813_v11 = vpack.c.bf16 %v6537_v48, %v6537_v48  ;;  %v1090_v38 = vpop.f32.mrf.mxu1  ;;  %v1541_v63 = vsel %vm1486_vm2, %v1376_v62, 0.0 }
 0x10d   :  { %1725 = vadd.xlane.f32.xlu0 %v1724_v51  ;;  %10122 = vst [vmem:[#allocation60_spill] sm:$0xff] %v6571_v43  ;;  %4055 = vst.msk [vmem:[%s9929_s4 + $0x64] sm:$0xf] %vm4029_vm1, %v4750_v47  ;;  %v4814_v40 = vpack.c.bf16 %v6571_v43, %v6571_v43  ;;  %v832_v47 = vadd.f32 %v5956_v2, %v6471_v5  ;;  %v843_v5 = vadd.f32 %v6492_v52, %v5956_v2 }
 0x10e   :  { %4057 = vst.msk [vmem:[%s9929_s4 + $0x6c] sm:$0xf] %vm4029_vm1, %v4752_v20  ;;  %v6573_v51 = vpop.f32.mrf.mxu0  ;;  %4685 = vst.msk [vmem:[%s9929_s4 + $0x160] sm:$0xf] %vm4029_vm1, %v4813_v11  ;;  %v840_v20 = vadd.f32 %v6448_v0, %v5956_v2  ;;  %v5021_v0 = vpop.f32.mrf.mxu1 }
 0x10f   :  { %4688 = vst.msk [vmem:[%s9929_s4 + $0x16c] sm:$0xf] %vm4029_vm1, %v4816_v23  ;;  %4686 = vst.msk [vmem:[%s9929_s4 + $0x164] sm:$0xf] %vm4029_vm1, %v4814_v40  ;;  %v1727_v23 = vsel %vm1486_vm2, %v1438_v26, 0.0  ;;  %v1374_v40 = vmul.f32 %v6311_v49, %v6311_v49  ;;  %v1088_v26 = vadd.f32 %v5956_v2, %v6501_v37  ;;  %v1441_v37 = vmul.f32 %v6356_v50, %v6356_v50 }
 0x110   :  { %1527 = vadd.xlane.f32.xlu1 %v1526_v54  ;;  %v1733_v54 = vsel %vm1486_vm2, %v1440_v19, 0.0  ;;  %v6595_v22 = vpop.f32.mrf.mxu0  ;;  %v6601_v11 = vmax.f32 %v840_v20, 0.0  ;;  %v6608_v19 = vmax.f32 %v832_v47, 0.0  ;;  %v835_v20 = vadd.f32 %v5956_v2, %v834_v15  ;;  %v6620_v16 = vpop.f32.mrf.mxu1 }
 0x111   :  { %1719 = vadd.xlane.f32.xlu0 %v1718_v12  ;;  %v1096_v12 = vadd.f32 %v6485_v21, %v5956_v2  ;;  %v6626_v47 = vmax.f32 %v843_v5, 0.0  ;;  %v1377_v5 = vmul.f32 %v6323_v13, %v6323_v13  ;;  %v6659_v61 = vmax.f32 %v1088_v26, 0.0 }
 0x112   :  { %10123 = vst [vmem:[#allocation61_spill] sm:$0xff] %v6601_v11  ;;  %10124 = vst [vmem:[#allocation62_spill] sm:$0xff] %v6608_v19  ;;  %v6614_v42 = vpop.f32.mrf.mxu0  ;;  %v4755_v62 = vpack.c.bf16 %v6601_v11, %v6601_v11  ;;  %v4753_v52 = vpack.c.bf16 %v6608_v19, %v6608_v19  ;;  %v6636_v15 = vmax.f32 %v835_v20, 0.0  ;;  %v6640_v49 = vpop.f32.mrf.mxu1  ;;  %v1535_v7 = vsel %vm1486_vm2, %v1374_v40, 0.0 }
 0x113   :  { %10125 = vst [vmem:[#allocation63_spill] sm:$0xff] %v6626_v47  ;;  %v6628_v21 = vmax.f32 %v1096_v12, 0.0  ;;  %10128 = vst [vmem:[#allocation66_spill] sm:$0xff] %v6659_v61  ;;  %v4817_v40 = vpack.c.bf16 %v6659_v61, %v6659_v61  ;;  %v848_v50 = vadd.f32 %v5956_v2, %v6552_v33  ;;  %v1444_v33 = vmul.f32 %v6426_v44, %v6426_v44 }
 0x114   :  { %1734 = vadd.xlane.f32.xlu1 %v1733_v54  ;;  %v6630_v54 = vpop.f32.mrf.mxu0  ;;  %4060 = vst.msk [vmem:[%s9929_s4 + $0x78] sm:$0xf] %vm4029_vm1, %v4755_v62  ;;  %10127 = vst [vmem:[#allocation65_spill] sm:$0xff] %v6636_v15  ;;  %v1099_v62 = vadd.f32 %v5018_v41, %v5956_v2  ;;  %v4754_v13 = vpack.c.bf16 %v6636_v15, %v6636_v15  ;;  %v1388_v36 = vmul.f32 %v6601_v11, %v6601_v11 }
 0x115   :  { %10126 = vst [vmem:[#allocation64_spill] sm:$0xff] %v6628_v21  ;;  %1542 = vadd.xlane.f32.xlu0 %v1541_v63  ;;  %4058 = vst.msk [vmem:[%s9929_s4 + $0x70] sm:$0xf] %vm4029_vm1, %v4753_v52  ;;  %v4756_v63 = vpack.c.bf16 %v6626_v47, %v6626_v47  ;;  %v4819_v12 = vpack.c.bf16 %v6628_v21, %v6628_v21  ;;  %v1091_v52 = vadd.f32 %v5956_v2, %v1090_v38 }
 0x116   :  { %v6653_v20 = vpop.f32.mrf.mxu0  ;;  %v6671_v41 = vmax.f32 %v1099_v62, 0.0  ;;  %v1375_v38 = vmul.f32 %v6334_v57, %v6334_v57  ;;  %4059 = vst.msk [vmem:[%s9929_s4 + $0x74] sm:$0xf] %vm4029_vm1, %v4754_v13  ;;  %v1544_v62 = vsel %vm1486_vm2, %v1377_v5, 0.0  ;;  %v1736_v13 = vsel %vm1486_vm2, %v1441_v37, 0.0 }
 0x117   :  { %4061 = vst.msk [vmem:[%s9929_s4 + $0x7c] sm:$0xf] %vm4029_vm1, %v4756_v63  ;;  %4691 = vst.msk [vmem:[%s9929_s4 + $0x178] sm:$0xf] %vm4029_vm1, %v4819_v12  ;;  %v6683_v26 = vmax.f32 %v1091_v52, 0.0  ;;  %v856_v63 = vadd.f32 %v6527_v6, %v5956_v2  ;;  %v1106_v12 = vpop.f32.mrf.mxu1  ;;  %v1439_v52 = vmul.f32 %v6367_v27, %v6367_v27  ;;  %v6711_v37 = vmax.f32 %v848_v50, 0.0 }
 0x118   :  { %1728 = vadd.xlane.f32.xlu1 %v1727_v23  ;;  %10129 = vst [vmem:[#allocation67_spill] sm:$0xff] %v6671_v41  ;;  %v6673_v23 = vpop.f32.mrf.mxu0  ;;  %4689 = vst.msk [vmem:[%s9929_s4 + $0x170] sm:$0xf] %vm4029_vm1, %v4817_v40  ;;  %v1112_v40 = vadd.f32 %v5021_v0, %v5956_v2  ;;  %v851_v50 = vadd.f32 %v5956_v2, %v6595_v22  ;;  %v1442_v22 = vmul.f32 %v6434_v59, %v6434_v59 }
 0x119   :  { %1536 = vadd.xlane.f32.xlu0 %v1535_v7  ;;  %10130 = vst [vmem:[#allocation68_spill] sm:$0xff] %v6683_v26  ;;  %v4820_v7 = vpack.c.bf16 %v6671_v41, %v6671_v41  ;;  %v4818_v6 = vpack.c.bf16 %v6683_v26, %v6683_v26  ;;  %v6703_v5 = vmax.f32 %v856_v63, 0.0  ;;  %v5025_v3 = vpop.f32.mrf.mxu1  ;;  %10132 = vst [vmem:[#allocation70_spill] sm:$0xff] %v6711_v37  ;;  %v1538_v63 = vsel %vm1486_vm2, %v1375_v38, 0.0 }
 0x11a   :  { %v6692_v57 = vpop.f32.mrf.mxu0  ;;  %v4757_v0 = vpack.c.bf16 %v6711_v37, %v6711_v37  ;;  %v1745_v55 = vsel %vm1486_vm2, %v1444_v33, 0.0 }
 0x11b   :  { %10131 = vst [vmem:[#allocation69_spill] sm:$0xff] %v6703_v5  ;;  %4692 = vst.msk [vmem:[%s9929_s4 + $0x17c] sm:$0xf] %vm4029_vm1, %v4820_v7  ;;  %v4759_v7 = vpack.c.bf16 %v6703_v5, %v6703_v5  ;;  %v6727_v44 = vpop.f32.mrf.mxu1 }
 0x11c   :  { %1545 = vadd.xlane.f32.xlu1 %v1544_v62  ;;  %v859_v62 = vadd.f32 %v6573_v51, %v5956_v2  ;;  %v6716_v27 = vpop.f32.mrf.mxu0  ;;  %4690 = vst.msk [vmem:[%s9929_s4 + $0x174] sm:$0xf] %vm4029_vm1, %v4818_v6  ;;  %v1380_v51 = vmul.f32 %v6401_v39, %v6401_v39  ;;  %v1730_v6 = vsel %vm1486_vm2, %v1439_v52, 0.0  ;;  %v6746_v39 = vmax.f32 %v851_v50, 0.0  ;;  %4062 = vst.msk [vmem:[%s9929_s4 + $0x80] sm:$0xf] %vm4029_vm1, %v4757_v0 }
 0x11d   :  { %1737 = vadd.xlane.f32.xlu0 %v1736_v13  ;;  %v6735_v13 = vmax.f32 %v1112_v40, 0.0  ;;  %4064 = vst.msk [vmem:[%s9929_s4 + $0x88] sm:$0xf] %vm4029_vm1, %v4759_v7  ;;  %v5026_v40 = vpop.f32.mrf.mxu1  ;;  %v1115_v7 = vadd.f32 %v6640_v49, %v5956_v2  ;;  %v1107_v0 = vadd.f32 %v5956_v2, %v1106_v12  ;;  %v1378_v12 = vmul.f32 %v6409_v56, %v6409_v56 }
 0x11e   :  { %v6733_v38 = vmax.f32 %v859_v62, 0.0  ;;  %v6737_v60 = vpop.f32.mrf.mxu0  ;;  %10135 = vst [vmem:[#allocation73_spill] sm:$0xff] %v6746_v39  ;;  %v1104_v62 = vadd.f32 %v5956_v2, %v6620_v16  ;;  %v4758_v16 = vpack.c.bf16 %v6746_v39, %v6746_v39  ;;  %v1553_v59 = vsel %vm1486_vm2, %v1380_v51, 0.0 }
 0x11f   :  { %10134 = vst [vmem:[#allocation72_spill] sm:$0xff] %v6735_v13  ;;  %v6776_v49 = vmax.f32 %v1115_v7, 0.0  ;;  %v6794_v7 = vmax.f32 %v1107_v0, 0.0  ;;  %v1381_v0 = vmul.f32 %v6424_v31, %v6424_v31 }
 0x120   :  { %10133 = vst [vmem:[#allocation71_spill] sm:$0xff] %v6733_v38  ;;  %1539 = vadd.xlane.f32.xlu1 %v1538_v63  ;;  %v4760_v52 = vpack.c.bf16 %v6733_v38, %v6733_v38  ;;  %v4823_v63 = vpack.c.bf16 %v6735_v13, %v6735_v13  ;;  %v6761_v50 = vpop.f32.mrf.mxu0  ;;  %v6765_v33 = vmax.f32 %v1104_v62, 0.0  ;;  %v1739_v62 = vsel %vm1486_vm2, %v1442_v22, 0.0  ;;  %4063 = vst.msk [vmem:[%s9929_s4 + $0x84] sm:$0xf] %vm4029_vm1, %v4758_v16 }
 0x121   :  { %1731 = vadd.xlane.f32.xlu0 %v1730_v6  ;;  %10137 = vst [vmem:[#allocation75_spill] sm:$0xff] %v6776_v49  ;;  %10138 = vst [vmem:[#allocation76_spill] sm:$0xff] %v6794_v7  ;;  %v864_v22 = vadd.f32 %v5956_v2, %v6630_v54  ;;  %v875_v16 = vadd.f32 %v6653_v20, %v5956_v2  ;;  %v1556_v58 = vsel %vm1486_vm2, %v1381_v0, 0.0 }
 0x122   :  { %10136 = vst [vmem:[#allocation74_spill] sm:$0xff] %v6765_v33  ;;  %4065 = vst.msk [vmem:[%s9929_s4 + $0x8c] sm:$0xf] %vm4029_vm1, %v4760_v52  ;;  %v6779_v6 = vpop.f32.mrf.mxu0  ;;  %v4821_v51 = vpack.c.bf16 %v6765_v33, %v6765_v33  ;;  %v872_v52 = vadd.f32 %v6614_v42, %v5956_v2  ;;  %v1454_v30 = vmul.f32 %v6765_v33, %v6765_v33 }
 0x123   :  { %4695 = vst.msk [vmem:[%s9929_s4 + $0x188] sm:$0xf] %vm4029_vm1, %v4823_v63  ;;  %v1122_v63 = vpop.f32.mrf.mxu1  ;;  %v6816_v54 = vmax.f32 %v864_v22, 0.0  ;;  %v1547_v22 = vsel %vm1486_vm2, %v1378_v12, 0.0  ;;  %v1455_v33 = vmul.f32 %v6794_v7, %v6794_v7 }
 0x124   :  { %1746 = vadd.xlane.f32.xlu1 %v1745_v55  ;;  %v4824_v55 = vpack.c.bf16 %v6776_v49, %v6776_v49  ;;  %v6798_v25 = vpop.f32.mrf.mxu0  ;;  %4693 = vst.msk [vmem:[%s9929_s4 + $0x180] sm:$0xf] %vm4029_vm1, %v4821_v51  ;;  %v6804_v42 = vmax.f32 %v872_v52, 0.0  ;;  %v6821_v51 = vld [vmem:[%s9927_s2] ss:$0 sm:$0xff]  ;;  %v6826_v52 = vmax.f32 %v875_v16, 0.0 }
 0x125   :  { %1554 = vadd.xlane.f32.xlu0 %v1553_v59  ;;  %v5029_v56 = vpop.f32.mrf.mxu1  ;;  %v4822_v59 = vpack.c.bf16 %v6794_v7, %v6794_v7  ;;  %10140 = vst [vmem:[#allocation78_spill] sm:$0xff] %v6816_v54  ;;  %v1128_v2 = vadd.f32 %v6821_v51, %v5025_v3  ;;  %v4761_v3 = vpack.c.bf16 %v6816_v54, %v6816_v54 }
 0x126   :  { %10139 = vst [vmem:[#allocation77_spill] sm:$0xff] %v6804_v42  ;;  %4696 = vst.msk [vmem:[%s9929_s4 + $0x18c] sm:$0xf] %vm4029_vm1, %v4824_v55  ;;  %v4763_v20 = vpack.c.bf16 %v6804_v42, %v6804_v42  ;;  %v867_v55 = vadd.f32 %v6821_v51, %v6673_v23  ;;  %v6843_v16 = vpop.f32.mrf.mxu0  ;;  %v1379_v23 = vmul.f32 %v6432_v34, %v6432_v34 }
 0x127   :  { %10141 = vst [vmem:[#allocation79_spill] sm:$0xff] %v6826_v52  ;;  %v6830_v31 = vpop.f32.mrf.mxu1  ;;  %4694 = vst.msk [vmem:[%s9929_s4 + $0x184] sm:$0xf] %vm4029_vm1, %v4822_v59  ;;  %v4764_v12 = vpack.c.bf16 %v6826_v52, %v6826_v52  ;;  %v1448_v34 = vmul.f32 %v6525_v4, %v6525_v4 }
 0x128   :  { %1740 = vadd.xlane.f32.xlu1 %v1739_v62  ;;  %v6841_v62 = vmax.f32 %v1128_v2, 0.0  ;;  %4068 = vst.msk [vmem:[%s9929_s4 + $0x98] sm:$0xf] %vm4029_vm1, %v4763_v20  ;;  %v6853_v59 = vmax.f32 %v867_v55, 0.0  ;;  %v1120_v2 = vadd.f32 %v6821_v51, %v6727_v44  ;;  %4066 = vst.msk [vmem:[%s9929_s4 + $0x90] sm:$0xf] %vm4029_vm1, %v4761_v3  ;;  %v1131_v20 = vadd.f32 %v6821_v51, %v5026_v40 }
 0x129   :  { %1548 = vadd.xlane.f32.xlu0 %v1547_v22  ;;  %v5030_v8 = vpop.f32.mrf.mxu1  ;;  %v1443_v55 = vmul.f32 %v6469_v28, %v6469_v28  ;;  %4069 = vst.msk [vmem:[%s9929_s4 + $0x9c] sm:$0xf] %vm4029_vm1, %v4764_v12  ;;  %v1748_v3 = vsel %vm1486_vm2, %v1445_v14, 0.0  ;;  %v1123_v40 = vadd.f32 %v6821_v51, %v1122_v63  ;;  %v6885_v12 = vpop.f32.mrf.mxu0  ;;  %v1384_v63 = vmul.f32 %v6499_v1, %v6499_v1 }
 0x12a   :  { %10142 = vst [vmem:[#allocation80_spill] sm:$0xff] %v6841_v62  ;;  %10143 = vst [vmem:[#allocation81_spill] sm:$0xff] %v6853_v59  ;;  %v4827_v22 = vpack.c.bf16 %v6841_v62, %v6841_v62  ;;  %v4762_v44 = vpack.c.bf16 %v6853_v59, %v6853_v59  ;;  %v6873_v0 = vmax.f32 %v1120_v2, 0.0  ;;  %v1550_v2 = vsel %vm1486_vm2, %v1379_v23, 0.0 }
 0x12b   :  { %v6900_v4 = vmax.f32 %v1123_v40, 0.0  ;;  %v880_v23 = vadd.f32 %v6821_v51, %v6716_v27  ;;  %v6904_v28 = vpop.f32.mrf.mxu0  ;;  %v891_v40 = vadd.f32 %v6821_v51, %v6737_v60  ;;  %v1757_v27 = vsel %vm1486_vm2, %v1448_v34, 0.0 }
 0x12c   :  { %1557 = vadd.xlane.f32.xlu1 %v1556_v58  ;;  %10144 = vst [vmem:[#allocation82_spill] sm:$0xff] %v6873_v0  ;;  %4699 = vst.msk [vmem:[%s9929_s4 + $0x198] sm:$0xf] %vm4029_vm1, %v4827_v22  ;;  %v6882_v58 = vmax.f32 %v1131_v20, 0.0  ;;  %v4825_v14 = vpack.c.bf16 %v6873_v0, %v6873_v0  ;;  %v888_v22 = vadd.f32 %v6821_v51, %v6692_v57  ;;  %v1138_v20 = vpop.f32.mrf.mxu1 }
 0x12d   :  { %1749 = vadd.xlane.f32.xlu0 %v1748_v3  ;;  %4067 = vst.msk [vmem:[%s9929_s4 + $0x94] sm:$0xf] %vm4029_vm1, %v4762_v44  ;;  %10146 = vst [vmem:[#allocation84_spill] sm:$0xff] %v6900_v4  ;;  %v1742_v44 = vsel %vm1486_vm2, %v1443_v55, 0.0  ;;  %v1446_v57 = vmul.f32 %v6537_v48, %v6537_v48  ;;  %v4826_v55 = vpack.c.bf16 %v6900_v4, %v6900_v4  ;;  %v6929_v60 = vmax.f32 %v891_v40, 0.0 }
 0x12e   :  { %10145 = vst [vmem:[#allocation83_spill] sm:$0xff] %v6882_v58  ;;  %v4828_v3 = vpack.c.bf16 %v6882_v58, %v6882_v58  ;;  %4697 = vst.msk [vmem:[%s9929_s4 + $0x190] sm:$0xf] %vm4029_vm1, %v4825_v14  ;;  %v6913_v1 = vmax.f32 %v888_v22, 0.0  ;;  %v5033_v46 = vpop.f32.mrf.mxu1  ;;  %v1144_v14 = vadd.f32 %v6821_v51, %v5029_v56  ;;  %v883_v34 = vadd.f32 %v6821_v51, %v6761_v50 }
 0x12f   :  { %10149 = vst [vmem:[#allocation87_spill] sm:$0xff] %v6929_v60  ;;  %4698 = vst.msk [vmem:[%s9929_s4 + $0x194] sm:$0xf] %vm4029_vm1, %v4826_v55  ;;  %v4768_v50 = vpack.c.bf16 %v6929_v60, %v6929_v60  ;;  %v1136_v40 = vadd.f32 %v6821_v51, %v6830_v31  ;;  %v1385_v31 = vmul.f32 %v6523_v53, %v6523_v53 }
 0x130   :  { %1551 = vadd.xlane.f32.xlu1 %v1550_v2  ;;  %10147 = vst [vmem:[#allocation85_spill] sm:$0xff] %v6913_v1  ;;  %4700 = vst.msk [vmem:[%s9929_s4 + $0x19c] sm:$0xf] %vm4029_vm1, %v4828_v3  ;;  %v6924_v2 = vmax.f32 %v880_v23, 0.0  ;;  %v4767_v22 = vpack.c.bf16 %v6913_v1, %v6913_v1  ;;  %v6933_v48 = vpop.f32.mrf.mxu1  ;;  %v1565_v3 = vsel %vm1486_vm2, %v1384_v63, 0.0  ;;  %v6942_v23 = vmax.f32 %v1144_v14, 0.0 }
 0x131   :  { %1743 = vadd.xlane.f32.xlu0 %v1742_v44  ;;  %v6944_v44 = vpop.f32.mrf.mxu0  ;;  %v6952_v63 = vmax.f32 %v883_v34, 0.0  ;;  %v1751_v14 = vsel %vm1486_vm2, %v1446_v57, 0.0  ;;  %4073 = vst.msk [vmem:[%s9929_s4 + $0xac] sm:$0xf] %vm4029_vm1, %v4768_v50  ;;  %v6974_v34 = vmax.f32 %v1136_v40, 0.0  ;;  %v1449_v50 = vmul.f32 %v6558_v24, %v6558_v24 }
 0x132   :  { %10148 = vst [vmem:[#allocation86_spill] sm:$0xff] %v6924_v2  ;;  %v4765_v56 = vpack.c.bf16 %v6924_v2, %v6924_v2  ;;  %10150 = vst [vmem:[#allocation88_spill] sm:$0xff] %v6942_v23  ;;  %v5034_v55 = vpop.f32.mrf.mxu1  ;;  %v896_v24 = vadd.f32 %v6821_v51, %v6798_v25  ;;  %v899_v17 = vadd.f32 %v6821_v51, %v6885_v12 }
 0x133   :  { %4072 = vst.msk [vmem:[%s9929_s4 + $0xa8] sm:$0xf] %vm4029_vm1, %v4767_v22  ;;  %10151 = vst [vmem:[#allocation89_spill] sm:$0xff] %v6952_v63  ;;  %v1147_v22 = vadd.f32 %v6821_v51, %v5030_v8  ;;  %v4766_v57 = vpack.c.bf16 %v6952_v63, %v6952_v63  ;;  %v4829_v40 = vpack.c.bf16 %v6974_v34, %v6974_v34 }
 0x134   :  { %1758 = vadd.xlane.f32.xlu1 %v1757_v27  ;;  %4070 = vst.msk [vmem:[%s9929_s4 + $0xa0] sm:$0xf] %vm4029_vm1, %v4765_v56  ;;  %v4831_v27 = vpack.c.bf16 %v6942_v23, %v6942_v23  ;;  %10152 = vst [vmem:[#allocation90_spill] sm:$0xff] %v6974_v34  ;;  %v6983_v56 = vpop.f32.mrf.mxu0 }
 0x135   :  { %1566 = vadd.xlane.f32.xlu0 %v1565_v3  ;;  %v6980_v8 = vmax.f32 %v1147_v22, 0.0  ;;  %v1139_v3 = vadd.f32 %v6821_v51, %v1138_v20  ;;  %4071 = vst.msk [vmem:[%s9929_s4 + $0xa4] sm:$0xf] %vm4029_vm1, %v4766_v57  ;;  %v1154_v22 = vpop.f32.mrf.mxu1  ;;  %v1559_v20 = vsel %vm1486_vm2, %v1382_v18, 0.0  ;;  %v1568_v57 = vsel %vm1486_vm2, %v1385_v31, 0.0 }
 0x136   :  { %4703 = vst.msk [vmem:[%s9929_s4 + $0x1a8] sm:$0xf] %vm4029_vm1, %v4831_v27  ;;  %v904_v27 = vadd.f32 %v6821_v51, %v6779_v6  ;;  %4701 = vst.msk [vmem:[%s9929_s4 + $0x1a0] sm:$0xf] %vm4029_vm1, %v4829_v40  ;;  %v907_v18 = vadd.f32 %v6821_v51, %v6843_v16  ;;  %v7019_v31 = vmax.f32 %v896_v24, 0.0  ;;  %v1160_v40 = vadd.f32 %v6821_v51, %v5033_v46 }
 0x137   :  { %10153 = vst [vmem:[#allocation91_spill] sm:$0xff] %v6980_v8  ;;  %v6998_v53 = vmax.f32 %v1139_v3, 0.0  ;;  %v5037_v32 = vpop.f32.mrf.mxu1  ;;  %v1383_v3 = vmul.f32 %v6535_v45, %v6535_v45  ;;  %v1760_v16 = vsel %vm1486_vm2, %v1449_v50, 0.0  ;;  %v1447_v24 = vmul.f32 %v6571_v43, %v6571_v43 }
 0x138   :  { %1752 = vadd.xlane.f32.xlu1 %v1751_v14  ;;  %v4832_v14 = vpack.c.bf16 %v6980_v8, %v6980_v8  ;;  %v7007_v6 = vmax.f32 %v904_v27, 0.0  ;;  %10156 = vst [vmem:[#allocation94_spill] sm:$0xff] %v7019_v31  ;;  %v914_v27 = vpop.f32.mrf.mxu0  ;;  %v7025_v45 = vmax.f32 %v907_v18, 0.0  ;;  %v1452_v46 = vmul.f32 %v6628_v21, %v6628_v21 }
 0x139   :  { %10154 = vst [vmem:[#allocation92_spill] sm:$0xff] %v6998_v53  ;;  %1560 = vadd.xlane.f32.xlu0 %v1559_v20  ;;  %v4830_v25 = vpack.c.bf16 %v6998_v53, %v6998_v53  ;;  %v4769_v50 = vpack.c.bf16 %v7019_v31, %v7019_v31  ;;  %v7051_v21 = vmax.f32 %v899_v17, 0.0  ;;  %v1163_v17 = vadd.f32 %v6821_v51, %v5034_v55 }
 0x13a   :  { %10155 = vst [vmem:[#allocation93_spill] sm:$0xff] %v7007_v6  ;;  %4704 = vst.msk [vmem:[%s9929_s4 + $0x1ac] sm:$0xf] %vm4029_vm1, %v4832_v14  ;;  %v4771_v20 = vpack.c.bf16 %v7007_v6, %v7007_v6  ;;  %v7029_v14 = vpop.f32.mrf.mxu1  ;;  %v7043_v18 = vpop.f32.mrf.mxu0  ;;  %v4772_v12 = vpack.c.bf16 %v7025_v45, %v7025_v45  ;;  %v1769_v11 = vsel %vm1486_vm2, %v1452_v46, 0.0  ;;  %v920_v46 = vadd.f32 %v6821_v51, %v6904_v28 }
 0x13b   :  { %10157 = vst [vmem:[#allocation95_spill] sm:$0xff] %v7025_v45  ;;  %4702 = vst.msk [vmem:[%s9929_s4 + $0x1a4] sm:$0xf] %vm4029_vm1, %v4830_v25  ;;  %v1152_v25 = vadd.f32 %v6821_v51, %v6933_v48  ;;  %v1450_v48 = vmul.f32 %v6659_v61, %v6659_v61  ;;  %v7081_v55 = vmax.f32 %v1163_v17, 0.0  ;;  %v912_v17 = vadd.f32 %v6821_v51, %v6944_v44 }
 0x13c   :  { %1569 = vadd.xlane.f32.xlu1 %v1568_v57  ;;  %v7041_v57 = vmax.f32 %v1160_v40, 0.0  ;;  %4076 = vst.msk [vmem:[%s9929_s4 + $0xb8] sm:$0xf] %vm4029_vm1, %v4771_v20  ;;  %10159 = vst [vmem:[#allocation97_spill] sm:$0xff] %v7051_v21  ;;  %v5038_v43 = vpop.f32.mrf.mxu1  ;;  %v1562_v40 = vsel %vm1486_vm2, %v1383_v3, 0.0  ;;  %v4770_v3 = vpack.c.bf16 %v7051_v21, %v7051_v21  ;;  %v7084_v61 = vpop.f32.mrf.mxu0  ;;  %v923_v28 = vadd.f32 %v6821_v51, %v6983_v56 }
 0x13d   :  { %1761 = vadd.xlane.f32.xlu0 %v1760_v16  ;;  %4074 = vst.msk [vmem:[%s9929_s4 + $0xb0] sm:$0xf] %vm4029_vm1, %v4769_v50  ;;  %4077 = vst.msk [vmem:[%s9929_s4 + $0xbc] sm:$0xf] %vm4029_vm1, %v4772_v12  ;;  %v7073_v20 = vmax.f32 %v1152_v25, 0.0  ;;  %v1754_v50 = vsel %vm1486_vm2, %v1447_v24, 0.0  ;;  %v1453_v44 = vmul.f32 %v6671_v41, %v6671_v41  ;;  %v915_v41 = vadd.f32 %v6821_v51, %v914_v27 }
 0x13e   :  { %10158 = vst [vmem:[#allocation96_spill] sm:$0xff] %v7041_v57  ;;  %v4835_v16 = vpack.c.bf16 %v7041_v57, %v7041_v57  ;;  %10161 = vst [vmem:[#allocation99_spill] sm:$0xff] %v7081_v55  ;;  %v1170_v12 = vpop.f32.mrf.mxu1  ;;  %v1577_v25 = vsel %vm1486_vm2, %v1388_v36, 0.0  ;;  %v7108_v36 = vmax.f32 %v920_v46, 0.0  ;;  %v4978_v46 = vpop.f32.mrf.mxu0 }
 0x13f   :  { %10160 = vst [vmem:[#allocation98_spill] sm:$0xff] %v7073_v20  ;;  %4075 = vst.msk [vmem:[%s9929_s4 + $0xb4] sm:$0xf] %vm4029_vm1, %v4770_v3  ;;  %v4833_v24 = vpack.c.bf16 %v7073_v20, %v7073_v20  ;;  %v1763_v3 = vsel %vm1486_vm2, %v1450_v48, 0.0  ;;  %v7120_v48 = vmax.f32 %v912_v17, 0.0  ;;  %v7146_v17 = vmax.f32 %v915_v41, 0.0 }
 0x140   :  { %1563 = vadd.xlane.f32.xlu1 %v1562_v40  ;;  %4707 = vst.msk [vmem:[%s9929_s4 + $0x1b8] sm:$0xf] %vm4029_vm1, %v4835_v16  ;;  %v1155_v40 = vadd.f32 %v6821_v51, %v1154_v22  ;;  %v4836_v22 = vpack.c.bf16 %v7081_v55, %v7081_v55  ;;  %10163 = vst [vmem:[#allocation101_spill] sm:$0xff] %v7108_v36  ;;  %v4775_v56 = vpack.c.bf16 %v7108_v36, %v7108_v36  ;;  %v930_v41 = vpop.f32.mrf.mxu0 }
 0x141   :  { %1755 = vadd.xlane.f32.xlu0 %v1754_v50  ;;  %v1386_v50 = vmul.f32 %v6608_v19, %v6608_v19  ;;  %4705 = vst.msk [vmem:[%s9929_s4 + $0x1b0] sm:$0xf] %vm4029_vm1, %v4833_v24  ;;  %10164 = vst [vmem:[#allocation102_spill] sm:$0xff] %v7120_v48  ;;  %v1176_v24 = vadd.f32 %v6821_v51, %v5037_v32  ;;  %v7125_v19 = vmax.f32 %v923_v28, 0.0 }
 0x142   :  { %v7097_v16 = vmax.f32 %v1155_v40, 0.0  ;;  %v5041_v40 = vpop.f32.mrf.mxu1  ;;  %4708 = vst.msk [vmem:[%s9929_s4 + $0x1bc] sm:$0xf] %vm4029_vm1, %v4836_v22  ;;  %v4773_v22 = vpack.c.bf16 %v7120_v48, %v7120_v48  ;;  %4080 = vst.msk [vmem:[%s9929_s4 + $0xc8] sm:$0xf] %vm4029_vm1, %v4775_v56  ;;  %v1168_v28 = vadd.f32 %v6821_v51, %v7029_v14  ;;  %v1387_v14 = vmul.f32 %v6636_v15, %v6636_v15 }
 0x143   :  { %10165 = vst [vmem:[#allocation103_spill] sm:$0xff] %v7125_v19  ;;  %v7136_v32 = vmax.f32 %v1176_v24, 0.0  ;;  %v4776_v27 = vpack.c.bf16 %v7125_v19, %v7125_v19  ;;  %10167 = vst [vmem:[#allocation105_spill] sm:$0xff] %v7146_v17  ;;  %v1571_v24 = vsel %vm1486_vm2, %v1386_v50, 0.0  ;;  %v4774_v50 = vpack.c.bf16 %v7146_v17, %v7146_v17 }
 0x144   :  { %10162 = vst [vmem:[#allocation100_spill] sm:$0xff] %v7097_v16  ;;  %1770 = vadd.xlane.f32.xlu1 %v1769_v11  ;;  %v4834_v11 = vpack.c.bf16 %v7097_v16, %v7097_v16  ;;  %v7128_v35 = vpop.f32.mrf.mxu1  ;;  %4078 = vst.msk [vmem:[%s9929_s4 + $0xc0] sm:$0xf] %vm4029_vm1, %v4773_v22  ;;  %v1171_v22 = vadd.f32 %v6821_v51, %v1170_v12  ;;  %v1456_v12 = vmul.f32 %v6735_v13, %v6735_v13 }
 0x145   :  { %1578 = vadd.xlane.f32.xlu0 %v1577_v25  ;;  %10166 = vst [vmem:[#allocation104_spill] sm:$0xff] %v7136_v32  ;;  %v1389_v25 = vmul.f32 %v6626_v47, %v6626_v47  ;;  %v4839_v56 = vpack.c.bf16 %v7136_v32, %v7136_v32  ;;  %v1179_v47 = vadd.f32 %v6821_v51, %v5038_v43  ;;  %4081 = vst.msk [vmem:[%s9929_s4 + $0xcc] sm:$0xf] %vm4029_vm1, %v4776_v27 }
 0x146   :  { %4706 = vst.msk [vmem:[%s9929_s4 + $0x1b4] sm:$0xf] %vm4029_vm1, %v4834_v11  ;;  %v5042_v11 = vpop.f32.mrf.mxu1  ;;  %v1451_v27 = vmul.f32 %v6683_v26, %v6683_v26  ;;  %4079 = vst.msk [vmem:[%s9929_s4 + $0xc4] sm:$0xf] %vm4029_vm1, %v4774_v50  ;;  %v928_v26 = vadd.f32 %v6821_v51, %v7084_v61  ;;  %v1574_v50 = vsel %vm1486_vm2, %v1387_v14, 0.0  ;;  %v939_v13 = vadd.f32 %v6821_v51, %v4978_v46 }
 0x147   :  { %4711 = vst.msk [vmem:[%s9929_s4 + $0x1c8] sm:$0xf] %vm4029_vm1, %v4839_v56  ;;  %v7173_v43 = vmax.f32 %v1179_v47, 0.0  ;;  %v1580_v15 = vsel %vm1486_vm2, %v1389_v25, 0.0  ;;  %v936_v47 = vadd.f32 %v6821_v51, %v7043_v18  ;;  %v1192_v14 = vadd.f32 %v6821_v51, %v5041_v40 }
 0x148   :  { %1764 = vadd.xlane.f32.xlu1 %v1763_v3  ;;  %v1772_v3 = vsel %vm1486_vm2, %v1453_v44, 0.0  ;;  %v7167_v44 = vmax.f32 %v1168_v28, 0.0  ;;  %v1186_v56 = vpop.f32.mrf.mxu1  ;;  %v1766_v46 = vsel %vm1486_vm2, %v1451_v27, 0.0  ;;  %v931_v9 = vadd.f32 %v6821_v51, %v930_v41 }
 0x149   :  { %1572 = vadd.xlane.f32.xlu0 %v1571_v24  ;;  %10169 = vst [vmem:[#allocation107_spill] sm:$0xff] %v7173_v43  ;;  %v4981_v24 = vpop.f32.mrf.mxu0  ;;  %v4840_v25 = vpack.c.bf16 %v7173_v43, %v7173_v43  ;;  %v7200_v18 = vmax.f32 %v936_v47, 0.0  ;;  %v7229_v40 = vmax.f32 %v1192_v14, 0.0  ;;  %v1457_v14 = vmul.f32 %v6776_v49, %v6776_v49 }
 0x14a   :  { %10168 = vst [vmem:[#allocation106_spill] sm:$0xff] %v7167_v44  ;;  %v4837_v28 = vpack.c.bf16 %v7167_v44, %v7167_v44  ;;  %v5045_v10 = vpop.f32.mrf.mxu1  ;;  %v7239_v27 = vmax.f32 %v931_v9, 0.0  ;;  %v1195_v9 = vadd.f32 %v6821_v51, %v5042_v11  ;;  %v1775_v49 = vsel %vm1486_vm2, %v1454_v30, 0.0 }
 0x14b   :  { %10171 = vst [vmem:[#allocation109_spill] sm:$0xff] %v7200_v18  ;;  %4712 = vst.msk [vmem:[%s9929_s4 + $0x1cc] sm:$0xf] %vm4029_vm1, %v4840_v25  ;;  %v4779_v47 = vpack.c.bf16 %v7200_v18, %v7200_v18  ;;  %v1781_v25 = vsel %vm1486_vm2, %v1456_v12, 0.0  ;;  %v1184_v12 = vadd.f32 %v6821_v51, %v7128_v35 }
 0x14c   :  { %1773 = vadd.xlane.f32.xlu1 %v1772_v3  ;;  %v7191_v3 = vmax.f32 %v1171_v22, 0.0  ;;  %4709 = vst.msk [vmem:[%s9929_s4 + $0x1c0] sm:$0xf] %vm4029_vm1, %v4837_v28  ;;  %v1392_v22 = vmul.f32 %v6703_v5, %v6703_v5  ;;  %v943_v28 = vpop.f32.mrf.mxu0  ;;  %v7217_v5 = vmax.f32 %v939_v13, 0.0  ;;  %10174 = vst [vmem:[#allocation112_spill] sm:$0xff] %v7229_v40  ;;  %v1390_v13 = vmul.f32 %v6711_v37, %v6711_v37 }
 0x14d   :  { %1581 = vadd.xlane.f32.xlu0 %v1580_v15  ;;  %v7211_v15 = vmax.f32 %v928_v26, 0.0  ;;  %4084 = vst.msk [vmem:[%s9929_s4 + $0xd8] sm:$0xf] %vm4029_vm1, %v4779_v47  ;;  %10175 = vst [vmem:[#allocation113_spill] sm:$0xff] %v7239_v27  ;;  %v4778_v35 = vpack.c.bf16 %v7239_v27, %v7239_v27  ;;  %v7266_v11 = vmax.f32 %v1195_v9, 0.0 }
 0x14e   :  { %10170 = vst [vmem:[#allocation108_spill] sm:$0xff] %v7191_v3  ;;  %v4838_v61 = vpack.c.bf16 %v7191_v3, %v7191_v3  ;;  %10173 = vst [vmem:[#allocation111_spill] sm:$0xff] %v7217_v5  ;;  %v4780_v41 = vpack.c.bf16 %v7217_v5, %v7217_v5  ;;  %v4982_v47 = vpop.f32.mrf.mxu0 }
 0x14f   :  { %10172 = vst [vmem:[#allocation110_spill] sm:$0xff] %v7211_v15  ;;  %v4777_v26 = vpack.c.bf16 %v7211_v15, %v7211_v15  ;;  %10177 = vst [vmem:[#allocation115_spill] sm:$0xff] %v7266_v11  ;;  %v4844_v9 = vpack.c.bf16 %v7266_v11, %v7266_v11 }
 0x150   :  { %1575 = vadd.xlane.f32.xlu1 %v1574_v50  ;;  %4710 = vst.msk [vmem:[%s9929_s4 + $0x1c4] sm:$0xf] %vm4029_vm1, %v4838_v61  ;;  %v1199_v50 = vpop.f32.mrf.mxu1  ;;  %v1589_v61 = vsel %vm1486_vm2, %v1392_v22, 0.0  ;;  %4085 = vst.msk [vmem:[%s9929_s4 + $0xdc] sm:$0xf] %vm4029_vm1, %v4780_v41  ;;  %v7259_v22 = vmax.f32 %v1184_v12, 0.0  ;;  %v952_v41 = vadd.f32 %v6821_v51, %v4981_v24 }
 0x151   :  { %1767 = vadd.xlane.f32.xlu0 %v1766_v46  ;;  %4082 = vst.msk [vmem:[%s9929_s4 + $0xd0] sm:$0xf] %vm4029_vm1, %v4777_v26  ;;  %v4843_v46 = vpack.c.bf16 %v7229_v40, %v7229_v40  ;;  %v1583_v26 = vsel %vm1486_vm2, %v1390_v13, 0.0  ;;  %4083 = vst.msk [vmem:[%s9929_s4 + $0xd4] sm:$0xf] %vm4029_vm1, %v4778_v35  ;;  %v944_v13 = vadd.f32 %v6821_v51, %v943_v28 }
 0x152   :  { %10176 = vst [vmem:[#allocation114_spill] sm:$0xff] %v7259_v22  ;;  %v4841_v30 = vpack.c.bf16 %v7259_v22, %v7259_v22  ;;  %v5046_v12 = vpop.f32.mrf.mxu1  ;;  %v1393_v35 = vmul.f32 %v6733_v38, %v6733_v38  ;;  %v7291_v24 = vmax.f32 %v952_v41, 0.0  ;;  %v1391_v28 = vmul.f32 %v6746_v39, %v6746_v39  ;;  %4716 = vst.msk [vmem:[%s9929_s4 + $0x1dc] sm:$0xf] %vm4029_vm1, %v4844_v9 }
 0x153   :  { %4715 = vst.msk [vmem:[%s9929_s4 + $0x1d8] sm:$0xf] %vm4029_vm1, %v4843_v46  ;;  %v1784_v46 = vsel %vm1486_vm2, %v1457_v14, 0.0  ;;  %v955_v14 = vadd.f32 %v6821_v51, %v4982_v47  ;;  %v1208_v38 = vadd.f32 %v6821_v51, %v5045_v10  ;;  %v1200_v9 = vadd.f32 %v6821_v51, %v1199_v50 }
 0x154   :  { %1782 = vadd.xlane.f32.xlu1 %v1781_v25  ;;  %v1187_v25 = vadd.f32 %v6821_v51, %v1186_v56  ;;  %4713 = vst.msk [vmem:[%s9929_s4 + $0x1d0] sm:$0xf] %vm4029_vm1, %v4841_v30  ;;  %10179 = vst [vmem:[#allocation117_spill] sm:$0xff] %v7291_v24  ;;  %v1460_v30 = vmul.f32 %v6841_v62, %v6841_v62  ;;  %v4783_v47 = vpack.c.bf16 %v7291_v24, %v7291_v24  ;;  %v1202_v39 = vpop.f32.mrf.mxu1 }
 0x155   :  { %1590 = vadd.xlane.f32.xlu0 %v1589_v61  ;;  %v946_v61 = vpop.f32.mrf.mxu0  ;;  %v7309_v41 = vmax.f32 %v955_v14, 0.0 }
 0x156   :  { %v7280_v56 = vmax.f32 %v1187_v25, 0.0  ;;  %v7302_v25 = vmax.f32 %v944_v13, 0.0  ;;  %v947_v7 = vadd.f32 %v6821_v51, %v946_v61  ;;  %v1592_v13 = vsel %vm1486_vm2, %v1393_v35, 0.0  ;;  %4088 = vst.msk [vmem:[%s9929_s4 + $0xe8] sm:$0xf] %vm4029_vm1, %v4783_v47 }
 0x157   :  { %10181 = vst [vmem:[#allocation119_spill] sm:$0xff] %v7309_v41  ;;  %v4784_v61 = vpack.c.bf16 %v7309_v41, %v7309_v41  ;;  %v1203_v35 = vadd.f32 %v6821_v51, %v1202_v39  ;;  %v1458_v47 = vmul.f32 %v6873_v0, %v6873_v0  ;;  %v1394_v39 = vmul.f32 %v6816_v54, %v6816_v54 }
 0x158   :  { %10178 = vst [vmem:[#allocation116_spill] sm:$0xff] %v7280_v56  ;;  %1776 = vadd.xlane.f32.xlu1 %v1775_v49  ;;  %v4842_v49 = vpack.c.bf16 %v7280_v56, %v7280_v56  ;;  %10180 = vst [vmem:[#allocation118_spill] sm:$0xff] %v7302_v25  ;;  %v4781_v10 = vpack.c.bf16 %v7302_v25, %v7302_v25  ;;  %v7328_v14 = vmax.f32 %v947_v7, 0.0  ;;  %v1586_v7 = vsel %vm1486_vm2, %v1391_v28, 0.0 }
 0x159   :  { %1584 = vadd.xlane.f32.xlu0 %v1583_v26  ;;  %v7318_v26 = vmax.f32 %v1208_v38, 0.0  ;;  %v1778_v38 = vsel %vm1486_vm2, %v1455_v33, 0.0  ;;  %v1396_v33 = vmul.f32 %v6804_v42, %v6804_v42  ;;  %4089 = vst.msk [vmem:[%s9929_s4 + $0xec] sm:$0xf] %vm4029_vm1, %v4784_v61  ;;  %v1397_v61 = vmul.f32 %v6826_v52, %v6826_v52  ;;  %v4985_v52 = vpop.f32.mrf.mxu0 }
 0x15a   :  { %4714 = vst.msk [vmem:[%s9929_s4 + $0x1d4] sm:$0xf] %vm4029_vm1, %v4842_v49  ;;  %10183 = vst [vmem:[#allocation121_spill] sm:$0xff] %v7328_v14  ;;  %v1211_v49 = vadd.f32 %v6821_v51, %v5046_v12  ;;  %v1793_v12 = vsel %vm1486_vm2, %v1460_v30, 0.0  ;;  %v4782_v28 = vpack.c.bf16 %v7328_v14, %v7328_v14  ;;  %v1459_v42 = vmul.f32 %v6900_v4, %v6900_v4 }
 0x15b   :  { %10182 = vst [vmem:[#allocation120_spill] sm:$0xff] %v7318_v26  ;;  %4086 = vst.msk [vmem:[%s9929_s4 + $0xe0] sm:$0xf] %vm4029_vm1, %v4781_v10  ;;  %v4847_v50 = vpack.c.bf16 %v7318_v26, %v7318_v26  ;;  %v1464_v54 = vmul.f32 %v6942_v23, %v6942_v23  ;;  %v1462_v23 = vmul.f32 %v6974_v34, %v6974_v34 }
 0x15c   :  { %1785 = vadd.xlane.f32.xlu1 %v1784_v46  ;;  %v7340_v46 = vmax.f32 %v1200_v9, 0.0  ;;  %v7365_v9 = vmax.f32 %v1211_v49, 0.0  ;;  %v1400_v49 = vmul.f32 %v6913_v1, %v6913_v1  ;;  %4087 = vst.msk [vmem:[%s9929_s4 + $0xe4] sm:$0xf] %vm4029_vm1, %v4782_v28  ;;  %v1398_v1 = vmul.f32 %v6924_v2, %v6924_v2 }
 0x15d   :  { %v7331_v62 = vpop.xlane.xlu1 %1494  ;;  %1593 = vadd.xlane.f32.xlu0 %v1592_v13  ;;  %4719 = vst.msk [vmem:[%s9929_s4 + $0x1e8] sm:$0xf] %vm4029_vm1, %v4847_v50  ;;  %v1461_v13 = vmul.f32 %v6882_v58, %v6882_v58  ;;  %v1395_v50 = vmul.f32 %v6853_v59, %v6853_v59  ;;  %v7391_v58 = vmax.f32 %v1203_v35, 0.0  ;;  %v1465_v28 = vmul.f32 %v6980_v8, %v6980_v8 }
 0x15e   :  { %10184 = vst [vmem:[#allocation122_spill] sm:$0xff] %v7340_v46  ;;  %v7353_v10 = vpop.xlane.xlu0 %1488  ;;  %v4845_v30 = vpack.c.bf16 %v7340_v46, %v7340_v46  ;;  %10185 = vst [vmem:[#allocation123_spill] sm:$0xff] %v7365_v9  ;;  %v1787_v59 = vsel %vm1486_vm2, %v1458_v47, 0.0  ;;  %v1401_v35 = vmul.f32 %v6929_v60, %v6929_v60  ;;  %v1595_v8 = vsel %vm1486_vm2, %v1394_v39, 0.0 }
 0x15f   :  { %10186 = vst [vmem:[#allocation124_spill] sm:$0xff] %v7391_v58  ;;  %v1796_v34 = vsel %vm1486_vm2, %v1461_v13, 0.0  ;;  %v7415_v47 = vsel %vm1486_vm2, %v1459_v42, 0.0  ;;  %v7420_v60 = vsel %vm1486_vm2, %v1395_v50, 0.0  ;;  %v7426_v37 = vsel %vm1486_vm2, %v1400_v49, 0.0  ;;  %v5049_v50 = vpop.f32.mrf.mxu1 }
 0x160   :  { %1779 = vadd.xlane.f32.xlu1 %v1778_v38  ;;  %4717 = vst.msk [vmem:[%s9929_s4 + $0x1e0] sm:$0xf] %vm4029_vm1, %v4845_v30  ;;  %v4848_v38 = vpack.c.bf16 %v7365_v9, %v7365_v9  ;;  %v1601_v30 = vsel %vm1486_vm2, %v1396_v33, 0.0  ;;  %v1604_v33 = vsel %vm1486_vm2, %v1397_v61, 0.0  ;;  %v7434_v42 = vsel %vm1486_vm2, %v1462_v23, 0.0  ;;  %v959_v61 = vpop.f32.mrf.mxu0 }
 0x161   :  { %v7375_v0 = vpop.xlane.xlu1 %1686  ;;  %1587 = vadd.xlane.f32.xlu0 %v1586_v7  ;;  %v4846_v7 = vpack.c.bf16 %v7391_v58, %v7391_v58  ;;  %v7437_v39 = vsel %vm1486_vm2, %v1398_v1, 0.0  ;;  %v1463_v13 = vmul.f32 %v6998_v53, %v6998_v53  ;;  %v960_v23 = vadd.f32 %v6821_v51, %v959_v61 }
 0x162   :  { %v7399_v4 = vpop.xlane.xlu0 %1689  ;;  %4720 = vst.msk [vmem:[%s9929_s4 + $0x1ec] sm:$0xf] %vm4029_vm1, %v4848_v38  ;;  %v7423_v38 = vsel %vm1486_vm2, %v1464_v54, 0.0  ;;  %v7440_v54 = vsel %vm1486_vm2, %v1465_v28, 0.0  ;;  %v1224_v1 = vadd.f32 %v6821_v51, %v5049_v50  ;;  %v1399_v28 = vmul.f32 %v6952_v63, %v6952_v63 }
 0x163   :  { %4718 = vst.msk [vmem:[%s9929_s4 + $0x1e4] sm:$0xf] %vm4029_vm1, %v4846_v7  ;;  %v7447_v7 = vsel %vm1486_vm2, %v1401_v35, 0.0  ;;  %v1404_v53 = vmul.f32 %v7007_v6, %v7007_v6  ;;  %v1466_v35 = vmul.f32 %v7073_v20, %v7073_v20  ;;  %v7467_v61 = vmax.f32 %v960_v23, 0.0 }
 0x164   :  { %1794 = vadd.xlane.f32.xlu1 %v1793_v12  ;;  %v968_v12 = vadd.f32 %v6821_v51, %v4985_v52  ;;  %v7469_v50 = vmax.f32 %v1224_v1, 0.0  ;;  %5122 = vrsqrt.f32 %v7331_v62  ;;  %v1405_v6 = vmul.f32 %v7025_v45, %v7025_v45 }
 0x165   :  { %v7417_v2 = vpop.xlane.xlu1 %1680  ;;  %1602 = vadd.xlane.f32.xlu0 %v1601_v30  ;;  %v1468_v30 = vmul.f32 %v7041_v57, %v7041_v57  ;;  %10188 = vst [vmem:[#allocation126_spill] sm:$0xff] %v7467_v61  ;;  %v1469_v57 = vmul.f32 %v7081_v55, %v7081_v55  ;;  %v1467_v20 = vmul.f32 %v7097_v16, %v7097_v16  ;;  %5124 = vrsqrt.f32 %v7353_v10 }
 0x166   :  { %v7444_v49 = vpop.xlane.xlu0 %1491  ;;  %v7449_v52 = vmax.f32 %v968_v12, 0.0  ;;  %v1402_v12 = vmul.f32 %v7019_v31, %v7019_v31  ;;  %10189 = vst [vmem:[#allocation127_spill] sm:$0xff] %v7469_v50  ;;  %v4986_v31 = vpop.f32.mrf.mxu0  ;;  %v4851_v23 = vpack.c.bf16 %v7469_v50, %v7469_v50  ;;  %v7491_v55 = vsel %vm1486_vm2, %v1463_v13, 0.0 }
 0x167   :  { %v971_v1 = vadd.f32 %v6821_v51, %v4986_v31  ;;  %v7494_v45 = vsel %vm1486_vm2, %v1399_v28, 0.0  ;;  %v7497_v16 = vsel %vm1486_vm2, %v1468_v30, 0.0  ;;  %5126 = vrsqrt.f32 %v7375_v0 }
 0x168   :  { %10187 = vst [vmem:[#allocation125_spill] sm:$0xff] %v7449_v52  ;;  %1788 = vadd.xlane.f32.xlu1 %v1787_v59  ;;  %v4787_v59 = vpack.c.bf16 %v7449_v52, %v7449_v52  ;;  %v7505_v52 = vsel %vm1486_vm2, %v1404_v53, 0.0  ;;  %v7508_v51 = vsel %vm1486_vm2, %v1466_v35, 0.0  ;;  %4723 = vst.msk [vmem:[%s9929_s4 + $0x1f8] sm:$0xf] %vm4029_vm1, %v4851_v23  ;;  %5128 = vrsqrt.f32 %v7399_v4 }
 0x169   :  { %v7461_v29 = vpop.xlane.xlu1 %1497  ;;  %1596 = vadd.xlane.f32.xlu0 %v1595_v8  ;;  %v4785_v8 = vpack.c.bf16 %v7467_v61, %v7467_v61  ;;  %v7522_v53 = vsel %vm1486_vm2, %v1402_v12, 0.0  ;;  %v7525_v31 = vsel %vm1486_vm2, %v1469_v57, 0.0  ;;  %v1472_v13 = vmul.f32 %v7136_v32, %v7136_v32 }
 0x16a   :  { %v7479_v63 = vpop.xlane.xlu0 %1683  ;;  %4092 = vst.msk [vmem:[%s9929_s4 + $0xf8] sm:$0xf] %vm4029_vm1, %v4787_v59  ;;  %v1403_v59 = vmul.f32 %v7051_v21, %v7051_v21  ;;  %v7532_v30 = vsel %vm1486_vm2, %v1405_v6, 0.0  ;;  %v7535_v35 = vsel %vm1486_vm2, %v1467_v20, 0.0  ;;  %v1406_v6 = vmul.f32 %v7120_v48, %v7120_v48 }
 0x16b   :  { %4090 = vst.msk [vmem:[%s9929_s4 + $0xf0] sm:$0xf] %vm4029_vm1, %v4785_v8  ;;  %v1470_v8 = vmul.f32 %v7167_v44, %v7167_v44  ;;  %v1473_v20 = vmul.f32 %v7173_v43, %v7173_v43  ;;  %5130 = vrsqrt.f32 %v7417_v2  ;;  %v7567_v43 = vsel %vm1486_vm2, %v1472_v13, 0.0 }
 0x16c   :  { %1797 = vadd.xlane.f32.xlu1 %v1796_v34  ;;  %v7518_v34 = vmax.f32 %v971_v1, 0.0  ;;  %v7543_v57 = vsel %vm1486_vm2, %v1403_v59, 0.0  ;;  %v1409_v1 = vmul.f32 %v7125_v19, %v7125_v19  ;;  %v1407_v59 = vmul.f32 %v7146_v17, %v7146_v17 }
 0x16d   :  { %v7502_v61 = vpop.xlane.xlu1 %1698  ;;  %1605 = vadd.xlane.f32.xlu0 %v1604_v33  ;;  %v1408_v33 = vmul.f32 %v7108_v36, %v7108_v36  ;;  %5132 = vrsqrt.f32 %v7444_v49  ;;  %v1476_v19 = vmul.f32 %v7229_v40, %v7229_v40  ;;  %v1477_v13 = vmul.f32 %v7266_v11, %v7266_v11 }
 0x16e   :  { %10190 = vst [vmem:[#allocation128_spill] sm:$0xff] %v7518_v34  ;;  %v7529_v28 = vpop.xlane.xlu0 %1506  ;;  %v4788_v12 = vpack.c.bf16 %v7518_v34, %v7518_v34  ;;  %v7586_v40 = vsel %vm1486_vm2, %v1470_v8, 0.0  ;;  %5134 = vrsqrt.f32 %v7461_v29  ;;  %v7600_v11 = vsel %vm1486_vm2, %v1409_v1, 0.0 }
 0x16f   :  { %v7576_v17 = vsel %vm1486_vm2, %v1408_v33, 0.0  ;;  %v7592_v33 = vsel %vm1486_vm2, %v1473_v20, 0.0  ;;  %v7606_v8 = vsel %vm1486_vm2, %v1407_v59, 0.0  ;;  %5136 = vrsqrt.f32 %v7479_v63 }
 0x170   :  { %1791 = vadd.xlane.f32.xlu1 %v7415_v47  ;;  %v1471_v47 = vmul.f32 %v7191_v3, %v7191_v3  ;;  %4093 = vst.msk [vmem:[%s9929_s4 + $0xfc] sm:$0xf] %vm4029_vm1, %v4788_v12  ;;  %v1412_v3 = vmul.f32 %v7200_v18, %v7200_v18  ;;  %v1474_v12 = vmul.f32 %v7259_v22, %v7259_v22  ;;  %v7589_v18 = vsel %vm1486_vm2, %v1406_v6, 0.0 }
 0x171   :  { %v7552_v23 = vpop.xlane.xlu1 %1692  ;;  %1599 = vadd.xlane.f32.xlu0 %v7420_v60  ;;  %v1410_v60 = vmul.f32 %v7211_v15, %v7211_v15  ;;  %v1413_v22 = vmul.f32 %v7217_v5, %v7217_v5  ;;  %v7611_v6 = vsel %vm1486_vm2, %v1476_v19, 0.0  ;;  %v1475_v1 = vmul.f32 %v7280_v56, %v7280_v56  ;;  %v5123_v5 = vpop.eup %5122 }
 0x172   :  { %v7573_v32 = vpop.xlane.xlu0 %1500  ;;  %v7614_v20 = vsel %vm1486_vm2, %v1412_v3, 0.0  ;;  %vm1887_vm3 = vcmp.eq.f32.partialorder %v7331_v62, inf  ;;  %v7622_v59 = vsel %vm1486_vm2, %v1474_v12, 0.0  ;;  %v7628_v19 = vsel %vm1486_vm2, %v1477_v13, 0.0 }
 0x173   :  { %v7625_v36 = vsel %vm1486_vm2, %v1410_v60, 0.0  ;;  %vm1889_vm4 = vcmp.eq.f32.partialorder %v7331_v62, 0.0  ;;  %v1890_v3 = vand.u32 2147483648, %v7331_v62  ;;  %v7634_v56 = vsel %vm1486_vm2, %v1413_v22, 0.0 }
 0x174   :  { %1806 = vadd.xlane.f32.xlu1 %v7423_v38  ;;  %v7603_v38 = vsel %vm1486_vm2, %v1471_v47, 0.0  ;;  %v1411_v12 = vmul.f32 %v7239_v27, %v7239_v27  ;;  %vm1873_vm5 = vcmp.eq.f32.partialorder %v7353_v10, inf  ;;  %vm1875_vm6 = vcmp.eq.f32.partialorder %v7353_v10, 0.0 }
 0x175   :  { %v7597_v15 = vpop.xlane.xlu1 %1509  ;;  %1614 = vadd.xlane.f32.xlu0 %v7426_v37  ;;  %v5125_v37 = vpop.eup %5124  ;;  %v1876_v60 = vand.u32 2147483648, %v7353_v10  ;;  %5138 = vrsqrt.f32 %v7502_v61  ;;  %v1886_v48 = vmul.f32 %v5123_v5, %v7331_v62  ;;  %v7648_v22 = vsel %vm1486_vm2, %v1475_v1, 0.0 }
 0x176   :  { %v7619_v47 = vpop.xlane.xlu0 %1701  ;;  %v5127_v44 = vpop.eup %5126  ;;  %5140 = vrsqrt.f32 %v7529_v28  ;;  %v1872_v21 = vmul.f32 %v5125_v37, %v7353_v10  ;;  %vm2335_vm7 = vcmp.eq.f32.partialorder %v7375_v0, inf  ;;  %vm2337_vm8 = vcmp.eq.f32.partialorder %v7375_v0, 0.0 }
 0x177   :  { %v5129_v27 = vpop.eup %5128  ;;  %v1416_v5 = vmul.f32 %v7291_v24, %v7291_v24  ;;  %vm2342_vm9 = vcmp.eq.f32.partialorder %v7399_v4, inf  ;;  %v7663_v1 = vsel %vm1486_vm2, %v1411_v12, 0.0  ;;  %v1478_v37 = vmul.f32 %v7340_v46, %v7340_v46 }
 0x178   :  { %1800 = vadd.xlane.f32.xlu1 %v7434_v42  ;;  %v1480_v42 = vmul.f32 %v7318_v26, %v7318_v26  ;;  %10191 = vst [vmem:[#allocation129_spill] sm:$0xff] %v7663_v1  ;;  %v2334_v26 = vmul.f32 %v5127_v44, %v7375_v0  ;;  %vm2344_vm10 = vcmp.eq.f32.partialorder %v7399_v4, 0.0  ;;  %v2345_v50 = vand.u32 2147483648, %v7399_v4  ;;  %v5131_v14 = vpop.eup %5130 }
 0x179   :  { %v7642_v13 = vpop.xlane.xlu1 %1503  ;;  %1608 = vadd.xlane.f32.xlu0 %v7437_v39  ;;  %v2338_v39 = vand.u32 2147483648, %v7375_v0  ;;  %5142 = vrsqrt.f32 %v7552_v23  ;;  %v2341_v12 = vmul.f32 %v5129_v27, %v7399_v4  ;;  %v1874_v58 = vsel %vm1873_vm5, %v7353_v10, %v1872_v21  ;;  %v1215_v10 = vpop.f32.mrf.mxu1 }
 0x17a   :  { %v7655_v34 = vpop.xlane.xlu0 %1695  ;;  %5144 = vrsqrt.f32 %v7573_v32  ;;  %v7680_v44 = vsel %vm1486_vm2, %v1480_v42, 0.0  ;;  %v5133_v46 = vpop.eup %5132  ;;  %vm2321_vm11 = vcmp.eq.f32.partialorder %v7417_v2, inf  ;;  %v1414_v27 = vmul.f32 %v7302_v25, %v7302_v25 }
 0x17b   :  { %10192 = vst [vmem:[#allocation130_spill] sm:$0xff] %v7680_v44  ;;  %vm2323_vm12 = vcmp.eq.f32.partialorder %v7417_v2, 0.0  ;;  %vm1880_vm13 = vcmp.eq.f32.partialorder %v7444_v49, inf  ;;  %vm1882_vm14 = vcmp.eq.f32.partialorder %v7444_v49, 0.0  ;;  %v7699_v21 = vsel %vm1486_vm2, %v1478_v37, 0.0  ;;  %v5135_v1 = vpop.eup %5134 }
 0x17c   :  { %1809 = vadd.xlane.f32.xlu1 %v7440_v54  ;;  %v1888_v54 = vsel %vm1887_vm3, %v7331_v62, %v1886_v48  ;;  %v7689_v48 = vsel %vm1486_vm2, %v1416_v5, 0.0  ;;  %v2336_v5 = vsel %vm2335_vm7, %v7375_v0, %v2334_v26  ;;  %v2320_v25 = vmul.f32 %v5131_v14, %v7417_v2  ;;  %v5137_v26 = vpop.eup %5136 }
 0x17d   :  { %v7671_v24 = vpop.xlane.xlu1 %1710  ;;  %1617 = vadd.xlane.f32.xlu0 %v7447_v7  ;;  %10193 = vst [vmem:[#allocation131_spill] sm:$0xff] %v7689_v48  ;;  %v2324_v7 = vand.u32 2147483648, %v7417_v2  ;;  %v1891_v42 = vsel %vm1889_vm4, %v1890_v3, %v1888_v54  ;;  %v1883_v48 = vand.u32 2147483648, %v7444_v49  ;;  %v2343_v37 = vsel %vm2342_vm9, %v7399_v4, %v2341_v12  ;;  %v7735_v54 = vld [vmem:[%s9927_s2] ss:$0 sm:$0xff] }
 0x17e   :  { %v7686_v9 = vpop.xlane.xlu0 %1518  ;;  %v1879_v62 = vmul.f32 %v5133_v46, %v7444_v49  ;;  %5146 = vrsqrt.f32 %v7597_v15  ;;  %vm1894_vm15 = vcmp.eq.f32.partialorder %v7461_v29, inf  ;;  %v1897_v14 = vand.u32 2147483648, %v7461_v29  ;;  %10194 = vst [vmem:[#allocation132_spill] sm:$0xff] %v7735_v54 }
 0x17f   :  { %vm2328_vm0 = vcmp.eq.f32.partialorder %v7479_v63, inf  ;;  %v2339_v46 = vsel %vm2337_vm8, %v2338_v39, %v2336_v5  ;;  %vm1896_vm3 = vcmp.eq.f32.partialorder %v7461_v29, 0.0  ;;  %vm2330_vm4 = vcmp.eq.f32.partialorder %v7479_v63, 0.0 }
 0x180   :  { %1803 = vadd.xlane.f32.xlu1 %v7491_v55  ;;  %v1877_v55 = vsel %vm1875_vm6, %v1876_v60, %v1874_v58  ;;  %v7724_v58 = vsel %vm1486_vm2, %v1414_v27, 0.0  ;;  %v2769_v60 = vadd.f32 1e-10, %v1891_v42  ;;  %v7738_v12 = vadd.f32 %v7735_v54, %v1215_v10 }
 0x181   :  { %v7708_v44 = vpop.xlane.xlu1 %1704  ;;  %1611 = vadd.xlane.f32.xlu0 %v7494_v45  ;;  %v2331_v45 = vand.u32 2147483648, %v7479_v63  ;;  %v2767_v27 = vadd.f32 1e-10, %v1877_v55  ;;  %v2346_v0 = vsel %vm2344_vm10, %v2345_v50, %v2343_v37  ;;  %v2322_v39 = vsel %vm2321_vm11, %v7417_v2, %v2320_v25 }
 0x182   :  { %v7721_v3 = vpop.xlane.xlu0 %1512  ;;  %5148 = vrsqrt.f32 %v7619_v47  ;;  %v1881_v5 = vsel %vm1880_vm13, %v7444_v49, %v1879_v62  ;;  %v1893_v10 = vmul.f32 %v5135_v1, %v7461_v29  ;;  %v2327_v55 = vmul.f32 %v5137_v26, %v7479_v63 }
 0x183   :  { %5150 = vrsqrt.f32 %v7642_v13  ;;  %v2833_v50 = vadd.f32 1e-10, %v2339_v46  ;;  %vm2363_vm5 = vcmp.eq.f32.partialorder %v7502_v61, inf  ;;  %vm2365_vm6 = vcmp.eq.f32.partialorder %v7502_v61, 0.0 }
 0x184   :  { %1818 = vadd.xlane.f32.xlu1 %v7497_v16  ;;  %v5139_v16 = vpop.eup %5138  ;;  %v7761_v37 = vmul.f32 %v7309_v41, %v7309_v41  ;;  %5152 = vrcp.f32 %v2769_v60  ;;  %v2834_v1 = vadd.f32 1e-10, %v2346_v0  ;;  %v2366_v62 = vand.u32 2147483648, %v7502_v61 }
 0x185   :  { %v7746_v42 = vpop.xlane.xlu1 %1521  ;;  %1626 = vadd.xlane.f32.xlu0 %v7505_v52  ;;  %v5141_v4 = vpop.eup %5140  ;;  %vm1915_vm7 = vcmp.eq.f32.partialorder %v7529_v28, inf  ;;  %5154 = vrcp.f32 %v2767_v27  ;;  %v2325_v52 = vsel %vm2323_vm12, %v2324_v7, %v2322_v39  ;;  %v1884_v26 = vsel %vm1882_vm14, %v1883_v48, %v1881_v5 }
 0x186   :  { %v7757_v25 = vpop.xlane.xlu0 %1713  ;;  %v2362_v46 = vmul.f32 %v5139_v16, %v7502_v61  ;;  %v5143_v41 = vpop.eup %5142  ;;  %v1895_v60 = vsel %vm1894_vm15, %v7461_v29, %v1893_v10  ;;  %v1914_v27 = vmul.f32 %v5141_v4, %v7529_v28  ;;  %5156 = vrsqrt.f32 %v7655_v34 }
 0x187   :  { %v5145_v2 = vpop.eup %5144  ;;  %5158 = vrcp.f32 %v2833_v50  ;;  %vm1917_vm8 = vcmp.eq.f32.partialorder %v7529_v28, 0.0  ;;  %v1918_v49 = vand.u32 2147483648, %v7529_v28  ;;  %vm2349_vm9 = vcmp.eq.f32.partialorder %v7552_v23, inf }
 0x188   :  { %1812 = vadd.xlane.f32.xlu1 %v7508_v51  ;;  %v2329_v51 = vsel %vm2328_vm0, %v7479_v63, %v2327_v55  ;;  %5160 = vrcp.f32 %v2834_v1  ;;  %v2831_v7 = vadd.f32 1e-10, %v2325_v52  ;;  %v2768_v0 = vadd.f32 1e-10, %v1884_v26 }
 0x189   :  { %v7771_v54 = vpop.xlane.xlu1 %1515  ;;  %1620 = vadd.xlane.f32.xlu0 %v7522_v53  ;;  %vm2351_vm10 = vcmp.eq.f32.partialorder %v7552_v23, 0.0  ;;  %v1898_v53 = vsel %vm1896_vm3, %v1897_v14, %v1895_v60  ;;  %v2332_v39 = vsel %vm2330_vm4, %v2331_v45, %v2329_v51  ;;  %v2364_v16 = vsel %vm2363_vm5, %v7502_v61, %v2362_v46 }
 0x18a   :  { %v7785_v48 = vpop.xlane.xlu0 %1707  ;;  %5162 = vrsqrt.f32 %v7671_v24  ;;  %v1916_v10 = vsel %vm1915_vm7, %v7529_v28, %v1914_v27  ;;  %v1900_v29 = vmul.f32 %v5145_v2, %v7573_v32  ;;  %v2352_v14 = vand.u32 2147483648, %v7552_v23 }
 0x18b   :  { %5164 = vrsqrt.f32 %v7686_v9  ;;  %v5147_v63 = vpop.eup %5146  ;;  %vm1901_vm11 = vcmp.eq.f32.partialorder %v7573_v32, inf  ;;  %vm1903_vm12 = vcmp.eq.f32.partialorder %v7573_v32, 0.0  ;;  %v2770_v55 = vadd.f32 1e-10, %v1898_v53 }
 0x18c   :  { %1821 = vadd.xlane.f32.xlu1 %v7525_v31  ;;  %v2348_v31 = vmul.f32 %v5143_v41, %v7552_v23  ;;  %5166 = vrsqrt.f32 %v7708_v44  ;;  %v2367_v41 = vsel %vm2365_vm6, %v2366_v62, %v2364_v16  ;;  %v1904_v4 = vand.u32 2147483648, %v7573_v32 }
 0x18d   :  { %v7797_v5 = vpop.xlane.xlu1 %1722  ;;  %1629 = vadd.xlane.f32.xlu0 %v7532_v30  ;;  %5168 = vrcp.f32 %v2831_v7  ;;  %v2832_v30 = vadd.f32 1e-10, %v2332_v39  ;;  %v1919_v50 = vsel %vm1917_vm8, %v1918_v49, %v1916_v10  ;;  %vm1922_vm13 = vcmp.eq.f32.partialorder %v7597_v15, inf }
 0x18e   :  { %v7810_v45 = vpop.xlane.xlu0 %1530  ;;  %5170 = vrcp.f32 %v2768_v0  ;;  %v2350_v26 = vsel %vm2349_vm9, %v7552_v23, %v2348_v31  ;;  %v1902_v61 = vsel %vm1901_vm11, %v7573_v32, %v1900_v29  ;;  %v2837_v62 = vadd.f32 1e-10, %v2367_v41 }
 0x18f   :  { %v5149_v52 = vpop.eup %5148  ;;  %5172 = vrsqrt.f32 %v7721_v3  ;;  %vm1924_vm14 = vcmp.eq.f32.partialorder %v7597_v15, 0.0  ;;  %v1925_v46 = vand.u32 2147483648, %v7597_v15  ;;  %v2773_v51 = vadd.f32 1e-10, %v1919_v50 }
 0x190   :  { %1815 = vadd.xlane.f32.xlu1 %v7535_v35  ;;  %v1921_v35 = vmul.f32 %v5147_v63, %v7597_v15  ;;  %v5151_v28 = vpop.eup %5150  ;;  %5174 = vrsqrt.f32 %v7746_v42  ;;  %vm2370_vm15 = vcmp.eq.f32.partialorder %v7619_v47, inf  ;;  %vm2372_vm0 = vcmp.eq.f32.partialorder %v7619_v47, 0.0 }
 0x191   :  { %v7819_v1 = vpop.xlane.xlu1 %1716  ;;  %1623 = vadd.xlane.f32.xlu0 %v7543_v57  ;;  %5176 = vrcp.f32 %v2770_v55  ;;  %v7838_v27 = vpop.eup %5152  ;;  %v2353_v57 = vsel %vm2351_vm10, %v2352_v14, %v2350_v26  ;;  %v1905_v2 = vsel %vm1903_vm12, %v1904_v4, %v1902_v61  ;;  %v2373_v49 = vand.u32 2147483648, %v7619_v47 }
 0x192   :  { %v7833_v60 = vpop.xlane.xlu0 %1524  ;;  %5178 = vrcp.f32 %v2832_v30  ;;  %v7847_v0 = vpop.eup %5154  ;;  %v1923_v53 = vsel %vm1922_vm13, %v7597_v15, %v1921_v35  ;;  %v1907_v39 = vmul.f32 %v5151_v28, %v7642_v13  ;;  %vm1908_vm3 = vcmp.eq.f32.partialorder %v7642_v13, inf }
 0x193   :  { %5180 = vrsqrt.f32 %v7757_v25  ;;  %v5157_v32 = vpop.eup %5156  ;;  %vm1910_vm4 = vcmp.eq.f32.partialorder %v7642_v13, 0.0  ;;  %v1911_v23 = vand.u32 2147483648, %v7642_v13  ;;  %v2835_v31 = vadd.f32 1e-10, %v2353_v57 }
 0x194   :  { %1830 = vadd.xlane.f32.xlu1 %v7567_v43  ;;  %v2369_v43 = vmul.f32 %v5149_v52, %v7619_v47  ;;  %5182 = vrcp.f32 %v2837_v62  ;;  %v7861_v10 = vpop.eup %5158  ;;  %vm2356_vm5 = vcmp.eq.f32.partialorder %v7655_v34, inf  ;;  %vm2358_vm6 = vcmp.eq.f32.partialorder %v7655_v34, 0.0 }
 0x195   :  { %v7845_v7 = vpop.xlane.xlu1 %1533  ;;  %1638 = vadd.xlane.f32.xlu0 %v7576_v17  ;;  %5184 = vrcp.f32 %v2773_v51  ;;  %v7866_v17 = vpop.eup %5160  ;;  %v2771_v29 = vadd.f32 1e-10, %v1905_v2  ;;  %v1926_v63 = vsel %vm1924_vm14, %v1925_v46, %v1923_v53  ;;  %v2359_v14 = vand.u32 2147483648, %v7655_v34 }
 0x196   :  { %v7859_v16 = vpop.xlane.xlu0 %1725  ;;  %5186 = vrsqrt.f32 %v7771_v54  ;;  %v2371_v4 = vsel %vm2370_vm15, %v7619_v47, %v2369_v43  ;;  %v2355_v30 = vmul.f32 %v5157_v32, %v7655_v34  ;;  %vm2391_vm7 = vcmp.eq.f32.partialorder %v7671_v24, inf }
 0x197   :  { %v5163_v41 = vpop.eup %5162  ;;  %5188 = vrsqrt.f32 %v7785_v48  ;;  %v2394_v50 = vand.u32 2147483648, %v7671_v24  ;;  %vm1943_vm8 = vcmp.eq.f32.partialorder %v7686_v9, inf  ;;  %v2774_v61 = vadd.f32 1e-10, %v1926_v63 }
 0x198   :  { %1824 = vadd.xlane.f32.xlu1 %v7586_v40  ;;  %v1909_v40 = vsel %vm1908_vm3, %v7642_v13, %v1907_v39  ;;  %v5165_v15 = vpop.eup %5164  ;;  %5190 = vrsqrt.f32 %v7797_v5  ;;  %vm2393_vm9 = vcmp.eq.f32.partialorder %v7671_v24, 0.0  ;;  %vm1945_vm10 = vcmp.eq.f32.partialorder %v7686_v9, 0.0 }
 0x199   :  { %v7872_v55 = vpop.xlane.xlu1 %1527  ;;  %1632 = vadd.xlane.f32.xlu0 %v7589_v18  ;;  %v5167_v26 = vpop.eup %5166  ;;  %5192 = vrcp.f32 %v2835_v31  ;;  %v1946_v18 = vand.u32 2147483648, %v7686_v9  ;;  %vm2377_vm11 = vcmp.eq.f32.partialorder %v7708_v44, inf  ;;  %v2374_v28 = vsel %vm2372_vm0, %v2373_v49, %v2371_v4 }
 0x19a   :  { %v7887_v52 = vpop.xlane.xlu0 %1719  ;;  %v7894_v35 = vpop.eup %5168  ;;  %5194 = vrcp.f32 %v2771_v29  ;;  %v1912_v62 = vsel %vm1910_vm4, %v1911_v23, %v1909_v40  ;;  %vm2379_vm12 = vcmp.eq.f32.partialorder %v7708_v44, 0.0  ;;  %v2357_v51 = vsel %vm2356_vm5, %v7655_v34, %v2355_v30 }
 0x19b   :  { %v7901_v46 = vpop.eup %5170  ;;  %v2390_v57 = vmul.f32 %v5163_v41, %v7671_v24  ;;  %5196 = vrsqrt.f32 %v7810_v45  ;;  %v2376_v13 = vmul.f32 %v5167_v26, %v7708_v44  ;;  %v2380_v2 = vand.u32 2147483648, %v7708_v44 }
 0x19c   :  { %1833 = vadd.xlane.f32.xlu1 %v7592_v33  ;;  %v1942_v33 = vmul.f32 %v5165_v15, %v7686_v9  ;;  %v5173_v47 = vpop.eup %5172  ;;  %vm1929_vm13 = vcmp.eq.f32.partialorder %v7721_v3, inf  ;;  %5198 = vrsqrt.f32 %v7819_v1  ;;  %vm1931_vm14 = vcmp.eq.f32.partialorder %v7721_v3, 0.0 }
 0x19d   :  { %1641 = vadd.xlane.f32.xlu0 %v7600_v11  ;;  %v7914_v49 = vpop.xlane.xlu1 %1734  ;;  %v5175_v53 = vpop.eup %5174  ;;  %5200 = vrcp.f32 %v2774_v61  ;;  %v1932_v43 = vand.u32 2147483648, %v7721_v3  ;;  %vm1950_vm15 = vcmp.eq.f32.partialorder %v7746_v42, inf  ;;  %v2838_v32 = vadd.f32 1e-10, %v2374_v28 }
 0x19e   :  { %v7919_v11 = vpop.xlane.xlu0 %1542  ;;  %v7922_v39 = vpop.eup %5176  ;;  %v2772_v23 = vadd.f32 1e-10, %v1912_v62  ;;  %v2360_v31 = vsel %vm2358_vm6, %v2359_v14, %v2357_v51  ;;  %vm1952_vm0 = vcmp.eq.f32.partialorder %v7746_v42, 0.0  ;;  %v1953_v29 = vand.u32 2147483648, %v7746_v42 }
 0x19f   :  { %v7928_v63 = vpop.eup %5178  ;;  %v2392_v41 = vsel %vm2391_vm7, %v7671_v24, %v2390_v57  ;;  %v1928_v4 = vmul.f32 %v5173_v47, %v7721_v3  ;;  %5202 = vrsqrt.f32 %v7833_v60  ;;  %v2378_v14 = vsel %vm2377_vm11, %v7708_v44, %v2376_v13 }
 0x1a0   :  { %1827 = vadd.xlane.f32.xlu1 %v7603_v38  ;;  %v1944_v38 = vsel %vm1943_vm8, %v7686_v9, %v1942_v33  ;;  %v5181_v34 = vpop.eup %5180  ;;  %v1949_v40 = vmul.f32 %v5175_v53, %v7746_v42  ;;  %vm2398_vm3 = vcmp.eq.f32.partialorder %v7757_v25, inf  ;;  %5204 = vrsqrt.f32 %v7845_v7 }
 0x1a1   :  { %1635 = vadd.xlane.f32.xlu0 %v7606_v8  ;;  %v7945_v30 = vpop.eup %5182  ;;  %v2836_v15 = vadd.f32 1e-10, %v2360_v31  ;;  %vm2400_vm4 = vcmp.eq.f32.partialorder %v7757_v25, 0.0  ;;  %v2401_v26 = vand.u32 2147483648, %v7757_v25  ;;  %vm1936_vm5 = vcmp.eq.f32.partialorder %v7771_v54, inf  ;;  %v7958_v51 = vpop.xlane.xlu1 %1728 }
 0x1a2   :  { %v7951_v8 = vpop.eup %5184  ;;  %5206 = vrcp.f32 %v2838_v32  ;;  %v2395_v61 = vsel %vm2393_vm9, %v2394_v50, %v2392_v41  ;;  %v1947_v28 = vsel %vm1945_vm10, %v1946_v18, %v1944_v38  ;;  %v1939_v62 = vand.u32 2147483648, %v7771_v54  ;;  %v7966_v24 = vpop.xlane.xlu0 %1536 }
 0x1a3   :  { %v5187_v57 = vpop.eup %5186  ;;  %5208 = vrcp.f32 %v2772_v23  ;;  %v2381_v33 = vsel %vm2379_vm12, %v2380_v2, %v2378_v14  ;;  %v2397_v47 = vmul.f32 %v5181_v34, %v7757_v25  ;;  %v1951_v50 = vsel %vm1950_vm15, %v7746_v42, %v1949_v40 }
 0x1a4   :  { %1842 = vadd.xlane.f32.xlu1 %v7611_v6  ;;  %v1930_v6 = vsel %vm1929_vm13, %v7721_v3, %v1928_v4  ;;  %v5189_v9 = vpop.eup %5188  ;;  %vm1938_vm6 = vcmp.eq.f32.partialorder %v7771_v54, 0.0  ;;  %vm2384_vm7 = vcmp.eq.f32.partialorder %v7785_v48, inf  ;;  %v2387_v44 = vand.u32 2147483648, %v7785_v48 }
 0x1a5   :  { %1650 = vadd.xlane.f32.xlu0 %v7614_v20  ;;  %5210 = vrsqrt.f32 %v7859_v16  ;;  %v5191_v18 = vpop.eup %5190  ;;  %v2841_v13 = vadd.f32 1e-10, %v2395_v61  ;;  %v2777_v2 = vadd.f32 1e-10, %v1947_v28  ;;  %vm2386_vm8 = vcmp.eq.f32.partialorder %v7785_v48, 0.0  ;;  %v8000_v42 = vpop.xlane.xlu1 %1545 }
 0x1a6   :  { %5212 = vrcp.f32 %v2836_v15  ;;  %vm2419_vm9 = vcmp.eq.f32.partialorder %v7797_v5, inf  ;;  %v7979_v20 = vpop.eup %5192  ;;  %v2839_v53 = vadd.f32 1e-10, %v2381_v33  ;;  %v1933_v32 = vsel %vm1931_vm14, %v1932_v43, %v1930_v6 }
 0x1a7   :  { %v1935_v23 = vmul.f32 %v5187_v57, %v7771_v54  ;;  %vm2421_vm10 = vcmp.eq.f32.partialorder %v7797_v5, 0.0  ;;  %5214 = vrsqrt.f32 %v7872_v55  ;;  %v7986_v31 = vpop.eup %5194  ;;  %v1954_v41 = vsel %vm1952_vm0, %v1953_v29, %v1951_v50 }
 0x1a8   :  { %1836 = vadd.xlane.f32.xlu1 %v7622_v59  ;;  %v2399_v59 = vsel %vm2398_vm3, %v7757_v25, %v2397_v47  ;;  %v2383_v38 = vmul.f32 %v5189_v9, %v7785_v48  ;;  %5216 = vrsqrt.f32 %v7887_v52  ;;  %v5197_v3 = vpop.eup %5196  ;;  %v2418_v43 = vmul.f32 %v5191_v18, %v7797_v5 }
 0x1a9   :  { %1644 = vadd.xlane.f32.xlu0 %v7625_v36  ;;  %v2422_v4 = vand.u32 2147483648, %v7797_v5  ;;  %vm1971_vm11 = vcmp.eq.f32.partialorder %v7810_v45, inf  ;;  %5218 = vrsqrt.f32 %v7914_v49  ;;  %v5199_v29 = vpop.eup %5198  ;;  %v2775_v34 = vadd.f32 1e-10, %v1933_v32  ;;  %v8005_v36 = vpop.xlane.xlu0 %1737 }
 0x1aa   :  { %5220 = vrcp.f32 %v2841_v13  ;;  %vm1973_vm12 = vcmp.eq.f32.partialorder %v7810_v45, 0.0  ;;  %v1974_v14 = vand.u32 2147483648, %v7810_v45  ;;  %vm2405_vm13 = vcmp.eq.f32.partialorder %v7819_v1, inf  ;;  %v8008_v40 = vpop.eup %5200  ;;  %v8038_v13 = vpop.xlane.xlu1 %1539 }
 0x1ab   :  { %5222 = vrcp.f32 %v2777_v2  ;;  %v2778_v15 = vadd.f32 1e-10, %v1954_v41  ;;  %v2402_v61 = vsel %vm2400_vm4, %v2401_v26, %v2399_v59  ;;  %v1937_v28 = vsel %vm1936_vm5, %v7771_v54, %v1935_v23 }
 0x1ac   :  { %1845 = vadd.xlane.f32.xlu1 %v7628_v19  ;;  %5224 = vrcp.f32 %v2839_v53  ;;  %v2385_v57 = vsel %vm2384_vm7, %v7785_v48, %v2383_v38  ;;  %v1970_v33 = vmul.f32 %v5197_v3, %v7810_v45  ;;  %vm2407_vm14 = vcmp.eq.f32.partialorder %v7819_v1, 0.0  ;;  %v5203_v19 = vpop.eup %5202  ;;  %v10196_v3 = vld [vmem:[#allocation130_spill] sm:$0xff] }
 0x1ad   :  { %1653 = vadd.xlane.f32.xlu0 %v7634_v56  ;;  %v2420_v25 = vsel %vm2419_vm9, %v7797_v5, %v2418_v43  ;;  %v2404_v26 = vmul.f32 %v5199_v29, %v7819_v1  ;;  %v2408_v6 = vand.u32 2147483648, %v7819_v1  ;;  %5226 = vrsqrt.f32 %v7919_v11  ;;  %v5205_v47 = vpop.eup %5204  ;;  %v8049_v48 = vpop.xlane.xlu0 %1731 }
 0x1ae   :  { %5228 = vrcp.f32 %v2775_v34  ;;  %v2842_v9 = vadd.f32 1e-10, %v2402_v61  ;;  %v1940_v50 = vsel %vm1938_vm6, %v1939_v62, %v1937_v28  ;;  %vm1957_vm15 = vcmp.eq.f32.partialorder %v7833_v60, inf  ;;  %v10195_v62 = vld [vmem:[#allocation129_spill] sm:$0xff]  ;;  %v10197_v28 = vld [vmem:[#allocation131_spill] sm:$0xff] }
 0x1af   :  { %5230 = vrcp.f32 %v2778_v15  ;;  %v2388_v56 = vsel %vm2386_vm8, %v2387_v44, %v2385_v57  ;;  %vm1959_vm0 = vcmp.eq.f32.partialorder %v7833_v60, 0.0  ;;  %v1960_v18 = vand.u32 2147483648, %v7833_v60  ;;  %v8040_v2 = vpop.eup %5206 }
 0x1b0   :  { %1839 = vadd.xlane.f32.xlu1 %v7648_v22  ;;  %vm1978_vm3 = vcmp.eq.f32.partialorder %v7845_v7, inf  ;;  %v2423_v54 = vsel %vm2421_vm10, %v2422_v4, %v2420_v25  ;;  %v1972_v22 = vsel %vm1971_vm11, %v7810_v45, %v1970_v33  ;;  %vm1980_vm4 = vcmp.eq.f32.partialorder %v7845_v7, 0.0  ;;  %v8052_v44 = vpop.eup %5208  ;;  %v8081_v33 = vpop.xlane.xlu1 %1746 }
 0x1b1   :  { %5232 = vrsqrt.f32 %v7958_v51  ;;  %1647 = vadd.xlane.f32.xlu0 %v10195_v62  ;;  %v2776_v53 = vadd.f32 1e-10, %v1940_v50  ;;  %v2406_v5 = vsel %vm2405_vm13, %v7819_v1, %v2404_v26  ;;  %v1956_v32 = vmul.f32 %v5203_v19, %v7833_v60 }
 0x1b2   :  { %v1977_v23 = vmul.f32 %v5205_v47, %v7845_v7  ;;  %v5211_v41 = vpop.eup %5210  ;;  %5234 = vrcp.f32 %v2842_v9  ;;  %v2840_v59 = vadd.f32 1e-10, %v2388_v56  ;;  %v1981_v38 = vand.u32 2147483648, %v7845_v7 }
 0x1b3   :  { %vm2426_vm5 = vcmp.eq.f32.partialorder %v7859_v16, inf  ;;  %v8062_v43 = vpop.eup %5212  ;;  %v2845_v4 = vadd.f32 1e-10, %v2423_v54  ;;  %v1975_v29 = vsel %vm1973_vm12, %v1974_v14, %v1972_v22  ;;  %vm2428_vm6 = vcmp.eq.f32.partialorder %v7859_v16, 0.0 }
 0x1b4   :  { %1854 = vadd.xlane.f32.xlu1 %v10196_v3  ;;  %5236 = vrsqrt.f32 %v7966_v24  ;;  %v5215_v34 = vpop.eup %5214  ;;  %v2409_v15 = vsel %vm2407_vm14, %v2408_v6, %v2406_v5  ;;  %v2429_v61 = vand.u32 2147483648, %v7859_v16  ;;  %vm1964_vm7 = vcmp.eq.f32.partialorder %v7872_v55, inf  ;;  %v8085_v6 = vpop.xlane.xlu0 %1554 }
 0x1b5   :  { %5238 = vrsqrt.f32 %v8000_v42  ;;  %1662 = vadd.xlane.f32.xlu0 %v10197_v28  ;;  %v5217_v57 = vpop.eup %5216  ;;  %v1958_v45 = vsel %vm1957_vm15, %v7833_v60, %v1956_v32  ;;  %v1979_v14 = vsel %vm1978_vm3, %v7845_v7, %v1977_v23  ;;  %v2425_v1 = vmul.f32 %v5211_v41, %v7859_v16  ;;  %v8119_v23 = vpop.xlane.xlu1 %1740 }
 0x1b6   :  { %5240 = vrcp.f32 %v2776_v53  ;;  %v5219_v19 = vpop.eup %5218  ;;  %v2781_v25 = vadd.f32 1e-10, %v1975_v29  ;;  %vm1966_vm8 = vcmp.eq.f32.partialorder %v7872_v55, 0.0  ;;  %v1967_v26 = vand.u32 2147483648, %v7872_v55 }
 0x1b7   :  { %5242 = vrcp.f32 %v2840_v59  ;;  %v8088_v47 = vpop.eup %5220  ;;  %v2843_v9 = vadd.f32 1e-10, %v2409_v15  ;;  %v1963_v50 = vmul.f32 %v5215_v34, %v7872_v55  ;;  %vm2412_vm9 = vcmp.eq.f32.partialorder %v7887_v52, inf }
 0x1b8   :  { %1848 = vadd.xlane.f32.xlu1 %v7699_v21  ;;  %5244 = vrcp.f32 %v2845_v4  ;;  %v8092_v56 = vpop.eup %5222  ;;  %v1961_v54 = vsel %vm1959_vm0, %v1960_v18, %v1958_v45  ;;  %v1982_v22 = vsel %vm1980_vm4, %v1981_v38, %v1979_v14  ;;  %vm2414_vm10 = vcmp.eq.f32.partialorder %v7887_v52, 0.0  ;;  %v8126_v4 = vpop.xlane.xlu0 %1548 }
 0x1b9   :  { %5246 = vrsqrt.f32 %v8005_v36  ;;  %1656 = vadd.xlane.f32.xlu0 %v7724_v58  ;;  %v8101_v21 = vpop.eup %5224  ;;  %v2427_v62 = vsel %vm2426_vm5, %v7859_v16, %v2425_v1  ;;  %v2411_v53 = vmul.f32 %v5217_v57, %v7887_v52  ;;  %v2446_v60 = vmul.f32 %v5219_v19, %v7914_v49 }
 0x1ba   :  { %5248 = vrsqrt.f32 %v8038_v13  ;;  %v5227_v7 = vpop.eup %5226  ;;  %v2415_v18 = vand.u32 2147483648, %v7887_v52  ;;  %vm2447_vm11 = vcmp.eq.f32.partialorder %v7914_v49, inf  ;;  %vm2449_vm12 = vcmp.eq.f32.partialorder %v7914_v49, 0.0 }
 0x1bb   :  { %5250 = vrcp.f32 %v2781_v25  ;;  %v8112_v58 = vpop.eup %5228  ;;  %v1965_v5 = vsel %vm1964_vm7, %v7872_v55, %v1963_v50  ;;  %v2450_v32 = vand.u32 2147483648, %v7914_v49  ;;  %vm1999_vm13 = vcmp.eq.f32.partialorder %v7919_v11, inf }
 0x1bc   :  { %5252 = vrcp.f32 %v2843_v9  ;;  %v8121_v41 = vpop.eup %5230  ;;  %v2779_v59 = vadd.f32 1e-10, %v1961_v54  ;;  %v2782_v38 = vadd.f32 1e-10, %v1982_v22  ;;  %v2430_v3 = vsel %vm2428_vm6, %v2429_v61, %v2427_v62  ;;  %v8155_v54 = vpop.xlane.xlu1 %1557 }
 0x1bd   :  { %5254 = vrsqrt.f32 %v8049_v48  ;;  %v2413_v34 = vsel %vm2412_vm9, %v7887_v52, %v2411_v53  ;;  %v2448_v15 = vsel %vm2447_vm11, %v7914_v49, %v2446_v60  ;;  %v1998_v28 = vmul.f32 %v5227_v7, %v7919_v11  ;;  %v8163_v49 = vpop.xlane.xlu0 %1749 }
 0x1be   :  { %v5233_v29 = vpop.eup %5232  ;;  %5256 = vrsqrt.f32 %v8081_v33  ;;  %v1968_v16 = vsel %vm1966_vm8, %v1967_v26, %v1965_v5  ;;  %vm2001_vm14 = vcmp.eq.f32.partialorder %v7919_v11, 0.0  ;;  %v2002_v61 = vand.u32 2147483648, %v7919_v11 }
 0x1bf   :  { %5258 = vrsqrt.f32 %v8085_v6  ;;  %v8141_v57 = vpop.eup %5234  ;;  %v2846_v45 = vadd.f32 1e-10, %v2430_v3  ;;  %vm2433_vm15 = vcmp.eq.f32.partialorder %v7958_v51, inf  ;;  %vm2435_vm0 = vcmp.eq.f32.partialorder %v7958_v51, 0.0 }
 0x1c0   :  { %v2436_v14 = vand.u32 2147483648, %v7958_v51  ;;  %5260 = vrcp.f32 %v2779_v59  ;;  %v2416_v55 = vsel %vm2414_vm10, %v2415_v18, %v2413_v34  ;;  %v2451_v19 = vsel %vm2449_vm12, %v2450_v32, %v2448_v15 }
 0x1c1   :  { %v5237_v1 = vpop.eup %5236  ;;  %v2432_v25 = vmul.f32 %v5233_v29, %v7958_v51  ;;  %5262 = vrcp.f32 %v2782_v38  ;;  %v2780_v9 = vadd.f32 1e-10, %v1968_v16  ;;  %v2000_v50 = vsel %vm1999_vm13, %v7919_v11, %v1998_v28 }
 0x1c2   :  { %v5239_v26 = vpop.eup %5238  ;;  %vm1985_vm3 = vcmp.eq.f32.partialorder %v7966_v24, inf  ;;  %vm1987_vm4 = vcmp.eq.f32.partialorder %v7966_v24, 0.0  ;;  %v1988_v52 = vand.u32 2147483648, %v7966_v24  ;;  %vm2006_vm5 = vcmp.eq.f32.partialorder %v8000_v42, inf }
 0x1c3   :  { %v8157_v22 = vpop.eup %5240  ;;  %5264 = vrsqrt.f32 %v8119_v23  ;;  %v2844_v53 = vadd.f32 1e-10, %v2416_v55  ;;  %v2849_v60 = vadd.f32 1e-10, %v2451_v19  ;;  %vm2008_vm6 = vcmp.eq.f32.partialorder %v8000_v42, 0.0 }
 0x1c4   :  { %v8165_v62 = vpop.eup %5242  ;;  %5266 = vrcp.f32 %v2846_v45  ;;  %v2003_v18 = vsel %vm2001_vm14, %v2002_v61, %v2000_v50  ;;  %v2434_v5 = vsel %vm2433_vm15, %v7958_v51, %v2432_v25  ;;  %v1984_v32 = vmul.f32 %v5237_v1, %v7966_v24  ;;  %v8190_v1 = vpop.xlane.xlu1 %1551 }
 0x1c5   :  { %v8168_v7 = vpop.eup %5244  ;;  %v2005_v59 = vmul.f32 %v5239_v26, %v8000_v42  ;;  %5268 = vrcp.f32 %v2780_v9  ;;  %v2009_v3 = vand.u32 2147483648, %v8000_v42  ;;  %vm2454_vm7 = vcmp.eq.f32.partialorder %v8005_v36, inf  ;;  %v5050_v26 = vpop.f32.mrf.mxu1 }
 0x1c6   :  { %10198 = vst [vmem:[#allocation129_spill] sm:$0xff] %v8168_v7  ;;  %v5247_v38 = vpop.eup %5246  ;;  %vm1992_vm8 = vcmp.eq.f32.partialorder %v8038_v13, inf  ;;  %5270 = vrsqrt.f32 %v8126_v4  ;;  %v2785_v16 = vadd.f32 1e-10, %v2003_v18  ;;  %v2437_v61 = vsel %vm2435_vm0, %v2436_v14, %v2434_v5  ;;  %v8203_v14 = vpop.xlane.xlu0 %1743 }
 0x1c7   :  { %v5249_v34 = vpop.eup %5248  ;;  %5272 = vrcp.f32 %v2844_v53  ;;  %vm2456_vm9 = vcmp.eq.f32.partialorder %v8005_v36, 0.0  ;;  %v1986_v19 = vsel %vm1985_vm3, %v7966_v24, %v1984_v32  ;;  %v2007_v25 = vsel %vm2006_vm5, %v8000_v42, %v2005_v59  ;;  %v962_v18 = vpop.f32.mrf.mxu0  ;;  %v10202_v42 = vld [vmem:[#allocation123_spill] sm:$0xff] }
 0x1c8   :  { %v8184_v28 = vpop.eup %5250  ;;  %5274 = vrcp.f32 %v2849_v60  ;;  %v2453_v51 = vmul.f32 %v5247_v38, %v8005_v36  ;;  %vm1994_vm10 = vcmp.eq.f32.partialorder %v8038_v13, 0.0  ;;  %vm2440_vm11 = vcmp.eq.f32.partialorder %v8049_v48, inf }
 0x1c9   :  { %10199 = vst [vmem:[#allocation130_spill] sm:$0xff] %v8184_v28  ;;  %v8192_v55 = vpop.eup %5252  ;;  %v1991_v50 = vmul.f32 %v5249_v34, %v8038_v13  ;;  %vm2475_vm12 = vcmp.eq.f32.partialorder %v8081_v33, inf  ;;  %vm2027_vm13 = vcmp.eq.f32.partialorder %v8085_v6, inf  ;;  %5276 = vrsqrt.f32 %v8155_v54 }
 0x1ca   :  { %v5255_v9 = vpop.eup %5254  ;;  %v8211_v60 = vmax.f32 %v7738_v12, 0.0  ;;  %v2847_v32 = vadd.f32 1e-10, %v2437_v61  ;;  %5278 = vrsqrt.f32 %v8163_v49  ;;  %v1664_v38 = vsel %vm1486_vm2, %v7761_v37, 0.0  ;;  %v10201_v37 = vld [vmem:[#allocation132_spill] sm:$0xff]  ;;  %v8256_v15 = vpop.xlane.xlu0 %1566 }
 0x1cb   :  { %v5257_v5 = vpop.eup %5256  ;;  %5280 = vrcp.f32 %v2785_v16  ;;  %v1989_v53 = vsel %vm1987_vm4, %v1988_v52, %v1986_v19  ;;  %v2010_v45 = vsel %vm2008_vm6, %v2009_v3, %v2007_v25  ;;  %vm2442_vm14 = vcmp.eq.f32.partialorder %v8049_v48, 0.0  ;;  %1665 = vadd.xlane.f32.xlu1 %v1664_v38  ;;  %v1218_v16 = vpop.f32.mrf.mxu1 }
 0x1cc   :  { %10200 = vst [vmem:[#allocation131_spill] sm:$0xff] %v8211_v60  ;;  %v5259_v34 = vpop.eup %5258  ;;  %v4849_v12 = vpack.c.bf16 %v8211_v60, %v8211_v60  ;;  %v2455_v61 = vsel %vm2454_vm7, %v8005_v36, %v2453_v51  ;;  %vm2477_vm15 = vcmp.eq.f32.partialorder %v8081_v33, 0.0  ;;  %vm2029_vm0 = vcmp.eq.f32.partialorder %v8085_v6, 0.0 }
 0x1cd   :  { %v963_v24 = vadd.f32 %v10201_v37, %v962_v18  ;;  %v1227_v52 = vadd.f32 %v10201_v37, %v5050_v26  ;;  %v1481_v3 = vmul.f32 %v10202_v42, %v10202_v42  ;;  %v8233_v19 = vpop.eup %5260  ;;  %v1993_v25 = vsel %vm1992_vm8, %v8038_v13, %v1991_v50  ;;  %v8246_v26 = vpop.xlane.xlu1 %1758  ;;  %v10204_v42 = vld [vmem:[#allocation124_spill] sm:$0xff] }
 0x1ce   :  { %v2439_v51 = vmul.f32 %v5255_v9, %v8049_v48  ;;  %v2474_v38 = vmul.f32 %v5257_v5, %v8081_v33  ;;  %vm2461_vm3 = vcmp.eq.f32.partialorder %v8119_v23, inf  ;;  %5282 = vrsqrt.f32 %v8190_v1  ;;  %4721 = vst.msk [vmem:[%s9929_s4 + $0x1f0] sm:$0xf] %vm4029_vm1, %v4849_v12  ;;  %v8248_v18 = vpop.eup %5262 }
 0x1cf   :  { %v2026_v59 = vmul.f32 %v5259_v34, %v8085_v6  ;;  %v8251_v50 = vmax.f32 %v963_v24, 0.0  ;;  %v8253_v9 = vmax.f32 %v1227_v52, 0.0  ;;  %v1856_v5 = vsel %vm1486_vm2, %v1481_v3, 0.0 }
 0x1d0   :  { %v5265_v11 = vpop.eup %5264  ;;  %5284 = vrcp.f32 %v2847_v32  ;;  %v2783_v29 = vadd.f32 1e-10, %v1989_v53  ;;  %1857 = vadd.xlane.f32.xlu0 %v1856_v5  ;;  %v1219_v12 = vadd.f32 %v10201_v37, %v1218_v16  ;;  %v1479_v7 = vmul.f32 %v10204_v42, %v10204_v42 }
 0x1d1   :  { %10203 = vst [vmem:[#allocation132_spill] sm:$0xff] %v8251_v50  ;;  %v8261_v28 = vpop.eup %5266  ;;  %v2786_v34 = vadd.f32 1e-10, %v2010_v45  ;;  %v10205_v24 = vand.u32 2147483648, %v8005_v36  ;;  %vm2463_vm4 = vcmp.eq.f32.partialorder %v8119_v23, 0.0  ;;  %v4786_v32 = vpack.c.bf16 %v8251_v50, %v8251_v50 }
 0x1d2   :  { %v4852_v53 = vpack.c.bf16 %v8253_v9, %v8253_v9  ;;  %v10206_v37 = vand.u32 2147483648, %v8038_v13  ;;  %v2441_v45 = vsel %vm2440_vm11, %v8049_v48, %v2439_v51  ;;  %v8279_v16 = vmax.f32 %v1219_v12, 0.0 }
 0x1d3   :  { %v2458_v52 = vsel %vm2456_vm9, %v10205_v24, %v2455_v61  ;;  %v1850_v36 = vsel %vm1486_vm2, %v1479_v7, 0.0  ;;  %v8282_v61 = vpop.eup %5268  ;;  %v2476_v5 = vsel %vm2475_vm12, %v8081_v33, %v2474_v38  ;;  %v2028_v24 = vsel %vm2027_vm13, %v8085_v6, %v2026_v59  ;;  %4091 = vst.msk [vmem:[%s9929_s4 + $0xf4] sm:$0xf] %vm4029_vm1, %v4786_v32  ;;  %v8303_v59 = vpop.xlane.xlu1 %1752 }
 0x1d4   :  { %v1996_v3 = vsel %vm1994_vm10, %v10206_v37, %v1993_v25  ;;  %10207 = vst [vmem:[#allocation133_spill] sm:$0xff] %v8279_v16  ;;  %v2460_v13 = vmul.f32 %v5265_v11, %v8119_v23  ;;  %5286 = vrsqrt.f32 %v8203_v14  ;;  %4724 = vst.msk [vmem:[%s9929_s4 + $0x1fc] sm:$0xf] %vm4029_vm1, %v4852_v53  ;;  %1851 = vadd.xlane.f32.xlu1 %v1850_v36  ;;  %v5271_v7 = vpop.eup %5270  ;;  %v2850_v25 = vadd.f32 1e-10, %v2458_v52  ;;  %v8315_v53 = vpop.xlane.xlu0 %1560 }
 0x1d5   :  { %5288 = vrcp.f32 %v2783_v29  ;;  %vm2013_vm5 = vcmp.eq.f32.partialorder %v8126_v4, inf  ;;  %v4850_v11 = vpack.c.bf16 %v8279_v16, %v8279_v16  ;;  %v8305_v51 = vpop.eup %5272  ;;  %v2784_v38 = vadd.f32 1e-10, %v1996_v3  ;;  %v10209_v29 = vld [vmem:[#allocation121_spill] sm:$0xff] }
 0x1d6   :  { %v10208_v12 = vand.u32 2147483648, %v8049_v48  ;;  %vm2015_vm6 = vcmp.eq.f32.partialorder %v8126_v4, 0.0  ;;  %5290 = vrsqrt.f32 %v8246_v26  ;;  %v1415_v52 = vmul.f32 %v10209_v29, %v10209_v29  ;;  %v8317_v37 = vpop.eup %5274 }
 0x1d7   :  { %10210 = vst [vmem:[#allocation134_spill] sm:$0xff] %v8317_v37  ;;  %5292 = vrcp.f32 %v2786_v34  ;;  %v10211_v36 = vand.u32 2147483648, %v8081_v33  ;;  %v10212_v48 = vand.u32 2147483648, %v8085_v6  ;;  %4722 = vst.msk [vmem:[%s9929_s4 + $0x1f4] sm:$0xf] %vm4029_vm1, %v4850_v11  ;;  %v5277_v42 = vpop.eup %5276  ;;  %v2462_v34 = vsel %vm2461_vm3, %v8119_v23, %v2460_v13  ;;  %v10213_v11 = vld [vmem:[#allocation127_spill] sm:$0xff]  ;;  %v8352_v37 = vpop.xlane.xlu1 %1569 }
 0x1d8   :  { %v2444_v32 = vsel %vm2442_vm14, %v10208_v12, %v2441_v45  ;;  %v2016_v12 = vand.u32 2147483648, %v8126_v4  ;;  %v2012_v33 = vmul.f32 %v5271_v7, %v8126_v4  ;;  %vm2034_vm7 = vcmp.eq.f32.partialorder %v8155_v54, inf  ;;  %v5279_v6 = vpop.eup %5278 }
 0x1d9   :  { %v2479_v3 = vsel %vm2477_vm15, %v10211_v36, %v2476_v5  ;;  %v2031_v45 = vsel %vm2029_vm0, %v10212_v48, %v2028_v24  ;;  %v1658_v5 = vsel %vm1486_vm2, %v1415_v52, 0.0  ;;  %5294 = vrcp.f32 %v2850_v25  ;;  %v8342_v29 = vpop.eup %5280 }
 0x1da   :  { %v2848_v24 = vadd.f32 1e-10, %v2444_v32  ;;  %vm2036_vm8 = vcmp.eq.f32.partialorder %v8155_v54, 0.0  ;;  %v2037_v36 = vand.u32 2147483648, %v8155_v54  ;;  %1659 = vadd.xlane.f32.xlu0 %v1658_v5  ;;  %v1484_v48 = vmul.f32 %v10213_v11, %v10213_v11  ;;  %10214 = vst [vmem:[#allocation135_spill] sm:$0xff] %v8342_v29 }
 0x1db   :  { %5296 = vrcp.f32 %v2784_v38  ;;  %v2853_v13 = vadd.f32 1e-10, %v2479_v3  ;;  %v2789_v7 = vadd.f32 1e-10, %v2031_v45  ;;  %vm2482_vm1 = vcmp.eq.f32.partialorder %v8163_v49, inf  ;;  %v5283_v11 = vpop.eup %5282 }
 0x1dc   :  { %v10215_v52 = vand.u32 2147483648, %v8119_v23  ;;  %v2033_v32 = vmul.f32 %v5277_v42, %v8155_v54  ;;  %5298 = vrsqrt.f32 %v8256_v15  ;;  %v1865_v5 = vsel %vm1486_vm2, %v1484_v48, 0.0  ;;  %v10216_v23 = vld [vmem:[#allocation125_spill] sm:$0xff]  ;;  %v8361_v42 = vpop.xlane.xlu0 %1761 }
 0x1dd   :  { %v2014_v38 = vsel %vm2013_vm5, %v8126_v4, %v2012_v33  ;;  %v2481_v3 = vmul.f32 %v5279_v6, %v8163_v49  ;;  %5300 = vrsqrt.f32 %v8303_v59  ;;  %1866 = vadd.xlane.f32.xlu1 %v1865_v5  ;;  %v1420_v45 = vmul.f32 %v10216_v23, %v10216_v23  ;;  %v8366_v48 = vpop.eup %5284 }
 0x1de   :  { %v2465_v25 = vsel %vm2463_vm4, %v10215_v52, %v2462_v34  ;;  %5302 = vrcp.f32 %v2848_v24  ;;  %vm2484_vm9 = vcmp.eq.f32.partialorder %v8163_v49, 0.0  ;;  %v2485_v34 = vand.u32 2147483648, %v8163_v49  ;;  %10217 = vst [vmem:[#allocation136_spill] sm:$0xff] %v8366_v48  ;;  %v10229_v48 = vld [vmem:[#allocation11_spill] sm:$0xff] }
 0x1df   :  { %vm2020_vm10 = vcmp.eq.f32.partialorder %v8190_v1, inf  ;;  %5304 = vrcp.f32 %v2853_v13  ;;  %v2851_v33 = vadd.f32 1e-10, %v2465_v25  ;;  %v1673_v6 = vsel %vm1486_vm2, %v1420_v45, 0.0 }
 0x1e0   :  { %v1482_v52 = vmul.f32 %v8211_v60, %v8211_v60  ;;  %5306 = vrcp.f32 %v2789_v7  ;;  %v2017_v5 = vsel %vm2015_vm6, %v2016_v12, %v2014_v38  ;;  %v2035_v24 = vsel %vm2034_vm7, %v8155_v54, %v2033_v32  ;;  %1674 = vadd.xlane.f32.xlu0 %v1673_v6  ;;  %v8386_v12 = vpop.xlane.xlu1 %1563 }
 0x1e1   :  { %v2019_v23 = vmul.f32 %v5283_v11, %v8190_v1  ;;  %v2483_v13 = vsel %vm2482_vm1, %v8163_v49, %v2481_v3  ;;  %vm2022_vm11 = vcmp.eq.f32.partialorder %v8190_v1, 0.0  ;;  %5308 = vrsqrt.f32 %v8315_v53  ;;  %v5287_v25 = vpop.eup %5286  ;;  %v10218_v11 = vld [vmem:[#allocation126_spill] sm:$0xff] }
 0x1e2   :  { %v1859_v7 = vsel %vm1486_vm2, %v1482_v52, 0.0  ;;  %v2023_v4 = vand.u32 2147483648, %v8190_v1  ;;  %vm2468_vm12 = vcmp.eq.f32.partialorder %v8203_v14, inf  ;;  %5310 = vrsqrt.f32 %v8352_v37  ;;  %v8390_v38 = vpop.eup %5288  ;;  %v8396_v52 = vpop.xlane.xlu0 %1755 }
 0x1e3   :  { %1860 = vadd.xlane.f32.xlu1 %v1859_v7  ;;  %v1418_v32 = vmul.f32 %v10218_v11, %v10218_v11  ;;  %10219 = vst [vmem:[#allocation137_spill] sm:$0xff] %v8390_v38  ;;  %5312 = vrcp.f32 %v2851_v33  ;;  %v2787_v3 = vadd.f32 1e-10, %v2017_v5  ;;  %v2038_v45 = vsel %vm2036_vm8, %v2037_v36, %v2035_v24  ;;  %v5291_v60 = vpop.eup %5290 }
 0x1e4   :  { %vm2470_vm13 = vcmp.eq.f32.partialorder %v8203_v14, 0.0  ;;  %v2471_v6 = vand.u32 2147483648, %v8203_v14  ;;  %v2486_v7 = vsel %vm2484_vm9, %v2485_v34, %v2483_v13  ;;  %v2021_v11 = vsel %vm2020_vm10, %v8190_v1, %v2019_v23  ;;  %v8406_v36 = vpop.eup %5292 }
 0x1e5   :  { %v1667_v33 = vsel %vm1486_vm2, %v1418_v32, 0.0  ;;  %v1419_v54 = vmul.f32 %v8251_v50, %v8251_v50  ;;  %10220 = vst [vmem:[#allocation138_spill] sm:$0xff] %v8406_v36  ;;  %v2467_v5 = vmul.f32 %v5287_v25, %v8203_v14  ;;  %vm2503_vm14 = vcmp.eq.f32.partialorder %v8246_v26, inf }
 0x1e6   :  { %vm2505_vm15 = vcmp.eq.f32.partialorder %v8246_v26, 0.0  ;;  %5314 = vrsqrt.f32 %v8361_v42  ;;  %1668 = vadd.xlane.f32.xlu0 %v1667_v33  ;;  %v2790_v49 = vadd.f32 1e-10, %v2038_v45  ;;  %v2506_v34 = vand.u32 2147483648, %v8246_v26  ;;  %v8416_v13 = vpop.eup %5294  ;;  %v8425_v33 = vpop.xlane.xlu1 %1770 }
 0x1e7   :  { %v1670_v23 = vsel %vm1486_vm2, %v1419_v54, 0.0  ;;  %v1483_v24 = vmul.f32 %v8279_v16, %v8279_v16  ;;  %10221 = vst [vmem:[#allocation139_spill] sm:$0xff] %v8416_v13  ;;  %5316 = vrcp.f32 %v2787_v3  ;;  %v2854_v32 = vadd.f32 1e-10, %v2486_v7  ;;  %v10222_v16 = vld [vmem:[#allocation9_spill] sm:$0xff]  ;;  %v10223_v7 = vld [vmem:[#allocation10_spill] sm:$0xff] }
 0x1e8   :  { %v2024_v25 = vsel %vm2022_vm11, %v2023_v4, %v2021_v11  ;;  %v2502_v50 = vmul.f32 %v5291_v60, %v8246_v26  ;;  %vm2055_vm0 = vcmp.eq.f32.partialorder %v8256_v15, inf  ;;  %1671 = vadd.xlane.f32.xlu1 %v1670_v23  ;;  %v8422_v45 = vpop.eup %5296  ;;  %5318 = vrsqrt.f32 %v8386_v12  ;;  %v8438_v23 = vpop.xlane.xlu0 %1578 }
 0x1e9   :  { %v1862_v54 = vsel %vm1486_vm2, %v1483_v24, 0.0  ;;  %v3154_v3 = vmul.f32 %v7922_v39, %v10222_v16  ;;  %v3218_v1 = vmul.f32 %v7866_v17, %v10223_v7  ;;  %v5299_v4 = vpop.eup %5298  ;;  %v2469_v60 = vsel %vm2468_vm12, %v8203_v14, %v2467_v5  ;;  %v10224_v17 = vld [vmem:[#allocation5_spill] sm:$0xff]  ;;  %v10225_v7 = vld [vmem:[#allocation6_spill] sm:$0xff] }
 0x1ea   :  { %v2058_v11 = vand.u32 2147483648, %v8256_v15  ;;  %vm2489_vm3 = vcmp.eq.f32.partialorder %v8303_v59, inf  ;;  %5320 = vrsqrt.f32 %v8396_v52  ;;  %1863 = vadd.xlane.f32.xlu0 %v1862_v54  ;;  %v5301_v24 = vpop.eup %5300  ;;  %vm2057_vm4 = vcmp.eq.f32.partialorder %v8256_v15, 0.0 }
 0x1eb   :  { %5322 = vrcp.f32 %v2790_v49  ;;  %v3282_v39 = vsub.f32 %v3154_v3, %v3218_v1  ;;  %v3153_v16 = vmul.f32 %v7838_v27, %v10224_v17  ;;  %v3217_v5 = vmul.f32 %v7861_v10, %v10225_v7  ;;  %v8445_v29 = vpop.eup %5302  ;;  %v8454_v49 = vld [vmem:[%s9928_s3] ss:$0 sm:$0xff] }
 0x1ec   :  { %5324 = vrcp.f32 %v2854_v32  ;;  %v2788_v13 = vadd.f32 1e-10, %v2024_v25  ;;  %v2504_v54 = vsel %vm2503_vm14, %v8246_v26, %v2502_v50  ;;  %vm2491_vm5 = vcmp.eq.f32.partialorder %v8303_v59, 0.0  ;;  %v8456_v3 = vpop.eup %5304 }
 0x1ed   :  { %10226 = vst [vmem:[#allocation9_spill] sm:$0xff] %v8456_v3  ;;  %v2472_v27 = vsel %vm2470_vm13, %v2471_v6, %v2469_v60  ;;  %v2054_v10 = vmul.f32 %v5299_v4, %v8256_v15  ;;  %v3353_v32 = vmul.f32 %v8454_v49, %v3282_v39  ;;  %v3281_v25 = vsub.f32 %v3153_v16, %v3217_v5  ;;  %v8462_v1 = vpop.eup %5306  ;;  %v8471_v60 = vpop.xlane.xlu1 %1764 }
 0x1ee   :  { %10227 = vst [vmem:[#allocation10_spill] sm:$0xff] %v8462_v1  ;;  %v2488_v50 = vmul.f32 %v5301_v24, %v8303_v59  ;;  %v2492_v17 = vand.u32 2147483648, %v8303_v59  ;;  %vm2041_vm6 = vcmp.eq.f32.partialorder %v8315_v53, inf  ;;  %5326 = vrsqrt.f32 %v8425_v33  ;;  %v5309_v7 = vpop.eup %5308  ;;  %v8477_v1 = vpop.xlane.xlu0 %1572 }
 0x1ef   :  { %v2507_v14 = vsel %vm2505_vm15, %v2506_v34, %v2504_v54  ;;  %v2044_v6 = vand.u32 2147483648, %v8315_v53  ;;  %v3417_v4 = vmul.f32 %v3353_v32, %v3282_v39  ;;  %v3352_v16 = vmul.f32 %v8454_v49, %v3281_v25  ;;  %v5311_v5 = vpop.eup %5310 }
 0x1f0   :  { %5328 = vrcp.f32 %v2788_v13  ;;  %v2852_v24 = vadd.f32 1e-10, %v2472_v27  ;;  %vm2043_vm7 = vcmp.eq.f32.partialorder %v8315_v53, 0.0  ;;  %vm2062_vm8 = vcmp.eq.f32.partialorder %v8352_v37, inf  ;;  %v8479_v26 = vpop.eup %5312 }
 0x1f1   :  { %v2065_v3 = vand.u32 2147483648, %v8352_v37  ;;  %10228 = vst [vmem:[#allocation5_spill] sm:$0xff] %v8479_v26  ;;  %v2056_v34 = vsel %vm2055_vm0, %v8256_v15, %v2054_v10  ;;  %vm2064_vm1 = vcmp.eq.f32.partialorder %v8352_v37, 0.0  ;;  %5330 = vrsqrt.f32 %v8438_v23 }
 0x1f2   :  { %v3487_v13 = vsel %vm1486_vm2, %v3417_v4, 0.0  ;;  %v3416_v39 = vmul.f32 %v3352_v16, %v3281_v25  ;;  %v2857_v54 = vadd.f32 1e-10, %v2507_v14  ;;  %v2490_v27 = vsel %vm2489_vm3, %v8303_v59, %v2488_v50  ;;  %v10230_v4 = vld [vmem:[#allocation12_spill] sm:$0xff] }
 0x1f3   :  { %v2040_v32 = vmul.f32 %v5309_v7, %v8315_v53  ;;  %3488 = vadd.xlane.f32.xlu1 %v3487_v13  ;;  %5332 = vrsqrt.f32 %v8471_v60  ;;  %v5315_v26 = vpop.eup %5314  ;;  %v2061_v10 = vmul.f32 %v5311_v5, %v8352_v37  ;;  %v3152_v38 = vmul.f32 %v7901_v46, %v10229_v48 }
 0x1f4   :  { %v3484_v36 = vsel %vm1486_vm2, %v3416_v39, 0.0  ;;  %v3216_v25 = vmul.f32 %v7928_v63, %v10230_v4  ;;  %5334 = vrcp.f32 %v2852_v24  ;;  %v2059_v50 = vsel %vm2057_vm4, %v2058_v11, %v2056_v34  ;;  %v8502_v7 = vpop.eup %5316  ;;  %v8513_v11 = vpop.xlane.xlu0 %1581  ;;  %v10232_v39 = vld [vmem:[#allocation8_spill] sm:$0xff] }
 0x1f5   :  { %vm2510_vm9 = vcmp.eq.f32.partialorder %v8361_v42, inf  ;;  %vm2512_vm10 = vcmp.eq.f32.partialorder %v8361_v42, 0.0  ;;  %3485 = vadd.xlane.f32.xlu0 %v3484_v36  ;;  %v2493_v14 = vsel %vm2491_vm5, %v2492_v17, %v2490_v27  ;;  %v2513_v16 = vand.u32 2147483648, %v8361_v42  ;;  %v5319_v63 = vpop.eup %5318 }
 0x1f6   :  { %vm2048_vm11 = vcmp.eq.f32.partialorder %v8386_v12, inf  ;;  %v3280_v46 = vsub.f32 %v3152_v38, %v3216_v25  ;;  %5336 = vrcp.f32 %v2857_v54  ;;  %v2042_v15 = vsel %vm2041_vm6, %v8315_v53, %v2040_v32 }
 0x1f7   :  { %v2509_v48 = vmul.f32 %v5315_v26, %v8361_v42  ;;  %v2051_v36 = vand.u32 2147483648, %v8386_v12  ;;  %v5321_v5 = vpop.eup %5320  ;;  %v2793_v59 = vadd.f32 1e-10, %v2059_v50  ;;  %v2063_v17 = vsel %vm2062_vm8, %v8352_v37, %v2061_v10  ;;  %v10231_v26 = vld [vmem:[#allocation7_spill] sm:$0xff] }
 0x1f8   :  { %5338 = vrsqrt.f32 %v8477_v1  ;;  %v3351_v38 = vmul.f32 %v8454_v49, %v3280_v46  ;;  %v8520_v24 = vpop.eup %5322  ;;  %v2855_v34 = vadd.f32 1e-10, %v2493_v14  ;;  %vm2050_vm12 = vcmp.eq.f32.partialorder %v8386_v12, 0.0 }
 0x1f9   :  { %vm2496_vm13 = vcmp.eq.f32.partialorder %v8396_v52, inf  ;;  %v3151_v13 = vmul.f32 %v7847_v0, %v10231_v26  ;;  %v3215_v54 = vmul.f32 %v7894_v35, %v10232_v39  ;;  %v8528_v27 = vpop.eup %5324  ;;  %v2045_v32 = vsel %vm2043_vm7, %v2044_v6, %v2042_v15  ;;  %v8540_v35 = vpop.xlane.xlu1 %1773 }
 0x1fa   :  { %v2047_v10 = vmul.f32 %v5319_v63, %v8386_v12  ;;  %vm2498_vm14 = vcmp.eq.f32.partialorder %v8396_v52, 0.0  ;;  %v3415_v4 = vmul.f32 %v3351_v38, %v3280_v46  ;;  %v2066_v25 = vsel %vm2064_vm1, %v2065_v3, %v2063_v17  ;;  %v8548_v63 = vpop.xlane.xlu0 %1767  ;;  %v10233_v17 = vld [vmem:[#allocation128_spill] sm:$0xff] }
 0x1fb   :  { %v2511_v0 = vsel %vm2510_vm9, %v8361_v42, %v2509_v48  ;;  %v2495_v50 = vmul.f32 %v5321_v5, %v8396_v52  ;;  %v3279_v14 = vsub.f32 %v3151_v13, %v3215_v54  ;;  %v5327_v26 = vpop.eup %5326  ;;  %5340 = vrcp.f32 %v2793_v59 }
 0x1fc   :  { %v2499_v53 = vand.u32 2147483648, %v8396_v52  ;;  %vm2531_vm15 = vcmp.eq.f32.partialorder %v8425_v33, inf  ;;  %v3481_v6 = vsel %vm1486_vm2, %v3415_v4, 0.0  ;;  %5342 = vrcp.f32 %v2855_v34  ;;  %v10235_v4 = vld [vmem:[#allocation15_spill] sm:$0xff] }
 0x1fd   :  { %v2791_v37 = vadd.f32 1e-10, %v2045_v32  ;;  %vm2533_vm0 = vcmp.eq.f32.partialorder %v8425_v33, 0.0  ;;  %v2534_v3 = vand.u32 2147483648, %v8425_v33  ;;  %3482 = vadd.xlane.f32.xlu1 %v3481_v6  ;;  %v3350_v46 = vmul.f32 %v8454_v49, %v3279_v14  ;;  %v8550_v15 = vpop.eup %5328  ;;  %v10234_v32 = vld [vmem:[#allocation13_spill] sm:$0xff] }
 0x1fe   :  { %v2794_v48 = vadd.f32 1e-10, %v2066_v25  ;;  %v2514_v5 = vsel %vm2512_vm10, %v2513_v16, %v2511_v0  ;;  %v2049_v59 = vsel %vm2048_vm11, %v8386_v12, %v2047_v10  ;;  %vm2083_vm3 = vcmp.eq.f32.partialorder %v8438_v23, inf  ;;  %v5331_v34 = vpop.eup %5330  ;;  %v10237_v12 = vld [vmem:[#allocation20_spill] sm:$0xff] }
 0x1ff   :  { %v1421_v38 = vmul.f32 %v10233_v17, %v10233_v17  ;;  %v2497_v13 = vsel %vm2496_vm13, %v8396_v52, %v2495_v50  ;;  %v2530_v39 = vmul.f32 %v5327_v26, %v8425_v33  ;;  %5344 = vrsqrt.f32 %v8540_v35  ;;  %v8592_v52 = vpop.xlane.xlu0 %1590 }
 0x200   :  { %v3414_v42 = vmul.f32 %v3350_v46, %v3279_v14  ;;  %v5333_v16 = vpop.eup %5332  ;;  %5346 = vrsqrt.f32 %v8513_v11  ;;  %v3157_v10 = vmul.f32 %v7951_v8, %v10234_v32  ;;  %v3221_v25 = vmul.f32 %v7945_v30, %v10235_v4  ;;  %v8574_v14 = vpop.xlane.xlu1 %1575  ;;  %v10238_v32 = vld [vmem:[#allocation14_spill] sm:$0xff] }
 0x201   :  { %v1676_v54 = vsel %vm1486_vm2, %v1421_v38, 0.0  ;;  %v2858_v0 = vadd.f32 1e-10, %v2514_v5  ;;  %v2086_v6 = vand.u32 2147483648, %v8438_v23  ;;  %vm2517_vm4 = vcmp.eq.f32.partialorder %v8471_v60, inf  ;;  %v8576_v26 = vpop.eup %5334 }
 0x202   :  { %v3478_v50 = vsel %vm1486_vm2, %v3414_v42, 0.0  ;;  %1677 = vadd.xlane.f32.xlu1 %v1676_v54  ;;  %5348 = vrcp.f32 %v2791_v37  ;;  %v2052_v46 = vsel %vm2050_vm12, %v2051_v36, %v2049_v59  ;;  %v2500_v8 = vsel %vm2498_vm14, %v2499_v53, %v2497_v13  ;;  %v10236_v42 = vld [vmem:[#allocation19_spill] sm:$0xff] }
 0x203   :  { %vm2085_vm5 = vcmp.eq.f32.partialorder %v8438_v23, 0.0  ;;  %3479 = vadd.xlane.f32.xlu0 %v3478_v50  ;;  %v3285_v30 = vsub.f32 %v3157_v10, %v3221_v25  ;;  %v2532_v5 = vsel %vm2531_vm15, %v8425_v33, %v2530_v39  ;;  %v2082_v38 = vmul.f32 %v5331_v34, %v8438_v23  ;;  %v8594_v53 = vpop.eup %5336  ;;  %v10239_v10 = vld [vmem:[#allocation16_spill] sm:$0xff] }
 0x204   :  { %vm2519_vm6 = vcmp.eq.f32.partialorder %v8471_v60, 0.0  ;;  %v3156_v37 = vmul.f32 %v8052_v44, %v10236_v42  ;;  %v3220_v36 = vmul.f32 %v8062_v43, %v10237_v12  ;;  %5350 = vrcp.f32 %v2794_v48  ;;  %v8610_v42 = vpop.xlane.xlu1 %1782 }
 0x205   :  { %v2516_v59 = vmul.f32 %v5333_v16, %v8471_v60  ;;  %v2520_v13 = vand.u32 2147483648, %v8471_v60  ;;  %v3356_v39 = vmul.f32 %v8454_v49, %v3285_v30  ;;  %v5339_v34 = vpop.eup %5338  ;;  %5352 = vrcp.f32 %v2858_v0 }
 0x206   :  { %v3284_v54 = vsub.f32 %v3156_v37, %v3220_v36  ;;  %v3155_v44 = vmul.f32 %v7986_v31, %v10238_v32  ;;  %v3219_v43 = vmul.f32 %v7979_v20, %v10239_v10  ;;  %v2792_v4 = vadd.f32 1e-10, %v2052_v46  ;;  %v10241_v37 = vld [vmem:[#allocation18_spill] sm:$0xff]  ;;  %v8625_v36 = vpop.xlane.xlu0 %1584 }
 0x207   :  { %v2856_v25 = vadd.f32 1e-10, %v2500_v8  ;;  %v2535_v48 = vsel %vm2533_vm0, %v2534_v3, %v2532_v5  ;;  %v3420_v50 = vmul.f32 %v3356_v39, %v3285_v30  ;;  %v2084_v16 = vsel %vm2083_vm3, %v8438_v23, %v2082_v38  ;;  %v10240_v5 = vld [vmem:[#allocation17_spill] sm:$0xff] }
 0x208   :  { %5354 = vrsqrt.f32 %v8574_v14  ;;  %v3355_v0 = vmul.f32 %v8454_v49, %v3284_v54  ;;  %v3283_v31 = vsub.f32 %v3155_v44, %v3219_v43  ;;  %v2518_v20 = vsel %vm2517_vm4, %v8471_v60, %v2516_v59  ;;  %v8618_v3 = vpop.eup %5340 }
 0x209   :  { %v2068_v46 = vmul.f32 %v5339_v34, %v8477_v1  ;;  %v3496_v33 = vsel %vm1486_vm2, %v3420_v50, 0.0  ;;  %5356 = vrsqrt.f32 %v8548_v63  ;;  %v3158_v38 = vmul.f32 %v8008_v40, %v10240_v5  ;;  %v8627_v59 = vpop.eup %5342 }
 0x20a   :  { %3497 = vadd.xlane.f32.xlu0 %v3496_v33  ;;  %v3419_v8 = vmul.f32 %v3355_v0, %v3284_v54  ;;  %v3354_v30 = vmul.f32 %v8454_v49, %v3283_v31  ;;  %v3222_v12 = vmul.f32 %v8040_v2, %v10241_v37  ;;  %5358 = vrcp.f32 %v2792_v4  ;;  %v10242_v0 = vld [vmem:[#allocation25_spill] sm:$0xff]  ;;  %v8654_v33 = vpop.xlane.xlu0 %1593 }
 0x20b   :  { %v2861_v39 = vadd.f32 1e-10, %v2535_v48  ;;  %vm2069_vm7 = vcmp.eq.f32.partialorder %v8477_v1, inf  ;;  %vm2071_vm8 = vcmp.eq.f32.partialorder %v8477_v1, 0.0  ;;  %v2087_v34 = vsel %vm2085_vm5, %v2086_v6, %v2084_v16  ;;  %v8641_v48 = vpop.xlane.xlu1 %1776 }
 0x20c   :  { %v3493_v54 = vsel %vm1486_vm2, %v3419_v8, 0.0  ;;  %v3418_v32 = vmul.f32 %v3354_v30, %v3283_v31  ;;  %v3286_v40 = vsub.f32 %v3158_v38, %v3222_v12  ;;  %v5345_v44 = vpop.eup %5344  ;;  %5360 = vrcp.f32 %v2856_v25 }
 0x20d   :  { %v2521_v2 = vsel %vm2519_vm6, %v2520_v13, %v2518_v20  ;;  %v2070_v10 = vsel %vm2069_vm7, %v8477_v1, %v2068_v46  ;;  %v2072_v43 = vand.u32 2147483648, %v8477_v1  ;;  %3494 = vadd.xlane.f32.xlu1 %v3493_v54  ;;  %v5347_v4 = vpop.eup %5346  ;;  %5362 = vrsqrt.f32 %v8610_v42  ;;  %v10243_v20 = vld [vmem:[#allocation28_spill] sm:$0xff]  ;;  %v10244_v1 = vld [vmem:[#allocation22_spill] sm:$0xff] }
 0x20e   :  { %v3490_v23 = vsel %vm1486_vm2, %v3418_v32, 0.0  ;;  %v3357_v6 = vmul.f32 %v8454_v49, %v3286_v40  ;;  %v1485_v25 = vmul.f32 %v8253_v9, %v8253_v9  ;;  %5364 = vrcp.f32 %v2861_v39  ;;  %v10245_v54 = vld [vmem:[#allocation26_spill] sm:$0xff] }
 0x20f   :  { %v2797_v60 = vadd.f32 1e-10, %v2087_v34  ;;  %vm2538_vm1 = vcmp.eq.f32.partialorder %v8540_v35, inf  ;;  %vm2540_vm9 = vcmp.eq.f32.partialorder %v8540_v35, 0.0  ;;  %3491 = vadd.xlane.f32.xlu0 %v3490_v23  ;;  %v8647_v13 = vpop.eup %5348  ;;  %v2537_v50 = vmul.f32 %v5345_v44, %v8540_v35 }
 0x210   :  { %v3421_v16 = vmul.f32 %v3357_v6, %v3286_v40  ;;  %v3160_v31 = vmul.f32 %v8157_v22, %v10242_v0  ;;  %v3224_v46 = vmul.f32 %v8165_v62, %v10243_v20  ;;  %v2859_v8 = vadd.f32 1e-10, %v2521_v2  ;;  %v8678_v2 = vpop.xlane.xlu1 %1785 }
 0x211   :  { %v2073_v30 = vsel %vm2071_vm8, %v2072_v43, %v2070_v10  ;;  %v2089_v5 = vmul.f32 %v5347_v4, %v8513_v11  ;;  %5366 = vrsqrt.f32 %v8592_v52  ;;  %v8660_v38 = vpop.eup %5350  ;;  %v1868_v22 = vsel %vm1486_vm2, %v1485_v25, 0.0  ;;  %v8684_v25 = vpop.xlane.xlu0 %1587 }
 0x212   :  { %v3499_v37 = vsel %vm1486_vm2, %v3421_v16, 0.0  ;;  %5368 = vrsqrt.f32 %v8641_v48  ;;  %v3288_v12 = vsub.f32 %v3160_v31, %v3224_v46  ;;  %v8665_v62 = vpop.eup %5352  ;;  %v2541_v39 = vand.u32 2147483648, %v8540_v35 }
 0x213   :  { %5370 = vrcp.f32 %v2797_v60  ;;  %3500 = vadd.xlane.f32.xlu1 %v3499_v37  ;;  %1869 = vadd.xlane.f32.xlu0 %v1868_v22  ;;  %v3159_v34 = vmul.f32 %v8112_v58, %v10244_v1  ;;  %v3223_v32 = vmul.f32 %v8101_v21, %v10245_v54  ;;  %v2539_v40 = vsel %vm2538_vm1, %v8540_v35, %v2537_v50  ;;  %v10247_v22 = vld [vmem:[#allocation27_spill] sm:$0xff] }
 0x214   :  { %vm2090_vm10 = vcmp.eq.f32.partialorder %v8513_v11, inf  ;;  %vm2092_vm11 = vcmp.eq.f32.partialorder %v8513_v11, 0.0  ;;  %v3359_v44 = vmul.f32 %v8454_v49, %v3288_v12  ;;  %5372 = vrcp.f32 %v2859_v8 }
 0x215   :  { %v5355_v10 = vpop.eup %5354  ;;  %v2795_v43 = vadd.f32 1e-10, %v2073_v30  ;;  %v2091_v58 = vsel %vm2090_vm10, %v8513_v11, %v2089_v5  ;;  %v3287_v4 = vsub.f32 %v3159_v34, %v3223_v32  ;;  %v2093_v21 = vand.u32 2147483648, %v8513_v11  ;;  %v10246_v11 = vld [vmem:[#allocation24_spill] sm:$0xff] }
 0x216   :  { %v5357_v23 = vpop.eup %5356  ;;  %vm2076_vm12 = vcmp.eq.f32.partialorder %v8574_v14, inf  ;;  %5374 = vrsqrt.f32 %v8625_v36  ;;  %v3423_v6 = vmul.f32 %v3359_v44, %v3288_v12  ;;  %v2542_v60 = vsel %vm2540_vm9, %v2541_v39, %v2539_v40  ;;  %v8718_v44 = vpop.xlane.xlu1 %1779 }
 0x217   :  { %vm2078_vm13 = vcmp.eq.f32.partialorder %v8574_v14, 0.0  ;;  %5376 = vrsqrt.f32 %v8678_v2  ;;  %v3358_v50 = vmul.f32 %v8454_v49, %v3287_v4  ;;  %v8691_v16 = vpop.eup %5358  ;;  %v2094_v0 = vsel %vm2092_vm11, %v2093_v21, %v2091_v58  ;;  %v10248_v58 = vld [vmem:[#allocation21_spill] sm:$0xff] }
 0x218   :  { %v2075_v31 = vmul.f32 %v5355_v10, %v8574_v14  ;;  %v2079_v20 = vand.u32 2147483648, %v8574_v14  ;;  %v3505_v46 = vsel %vm1486_vm2, %v3423_v6, 0.0  ;;  %5378 = vrcp.f32 %v2795_v43  ;;  %v8720_v10 = vpop.xlane.xlu0 %1602 }
 0x219   :  { %v2523_v35 = vmul.f32 %v5357_v23, %v8548_v63  ;;  %vm2524_vm14 = vcmp.eq.f32.partialorder %v8548_v63, inf  ;;  %3506 = vadd.xlane.f32.xlu1 %v3505_v46  ;;  %v3422_v8 = vmul.f32 %v3358_v50, %v3287_v4  ;;  %v8700_v30 = vpop.eup %5360  ;;  %v2862_v5 = vadd.f32 1e-10, %v2542_v60  ;;  %v10249_v23 = vld [vmem:[#allocation23_spill] sm:$0xff] }
 0x21a   :  { %vm2526_vm15 = vcmp.eq.f32.partialorder %v8548_v63, 0.0  ;;  %v3162_v37 = vmul.f32 %v8121_v41, %v10246_v11  ;;  %v3226_v12 = vmul.f32 %v8141_v57, %v10247_v22  ;;  %v5363_v39 = vpop.eup %5362  ;;  %v2798_v1 = vadd.f32 1e-10, %v2094_v0 }
 0x21b   :  { %v2527_v34 = vand.u32 2147483648, %v8548_v63  ;;  %vm2559_vm0 = vcmp.eq.f32.partialorder %v8610_v42, inf  ;;  %v3502_v54 = vsel %vm1486_vm2, %v3422_v8, 0.0  ;;  %v8710_v32 = vpop.eup %5364  ;;  %v2077_v40 = vsel %vm2076_vm12, %v8574_v14, %v2075_v31 }
 0x21c   :  { %vm2561_vm3 = vcmp.eq.f32.partialorder %v8610_v42, 0.0  ;;  %v2562_v41 = vand.u32 2147483648, %v8610_v42  ;;  %vm2111_vm4 = vcmp.eq.f32.partialorder %v8592_v52, inf  ;;  %3503 = vadd.xlane.f32.xlu0 %v3502_v54  ;;  %v3290_v57 = vsub.f32 %v3162_v37, %v3226_v12  ;;  %v10250_v12 = vld [vmem:[#allocation33_spill] sm:$0xff] }
 0x21d   :  { %v2525_v43 = vsel %vm2524_vm14, %v8548_v63, %v2523_v35  ;;  %5380 = vrsqrt.f32 %v8654_v33  ;;  %v3161_v4 = vmul.f32 %v8092_v56, %v10248_v58  ;;  %v3225_v21 = vmul.f32 %v8088_v47, %v10249_v23 }
 0x21e   :  { %v5367_v6 = vpop.eup %5366  ;;  %5382 = vrcp.f32 %v2862_v5  ;;  %v2558_v60 = vmul.f32 %v5363_v39, %v8610_v42  ;;  %v2114_v50 = vand.u32 2147483648, %v8592_v52  ;;  %v3361_v0 = vmul.f32 %v8454_v49, %v3290_v57 }
 0x21f   :  { %v5369_v31 = vpop.eup %5368  ;;  %5384 = vrcp.f32 %v2798_v1  ;;  %vm2113_vm5 = vcmp.eq.f32.partialorder %v8592_v52, 0.0  ;;  %vm2545_vm6 = vcmp.eq.f32.partialorder %v8641_v48, inf  ;;  %v2548_v46 = vand.u32 2147483648, %v8641_v48  ;;  %v10251_v1 = vld [vmem:[#allocation36_spill] sm:$0xff] }
 0x220   :  { %v3289_v56 = vsub.f32 %v3161_v4, %v3225_v21  ;;  %v8736_v35 = vpop.eup %5370  ;;  %v2080_v47 = vsel %vm2078_vm13, %v2079_v20, %v2077_v40  ;;  %v2528_v8 = vsel %vm2526_vm15, %v2527_v34, %v2525_v43  ;;  %vm2547_vm7 = vcmp.eq.f32.partialorder %v8641_v48, 0.0  ;;  %v8759_v40 = vpop.xlane.xlu1 %1794 }
 0x221   :  { %v2100_v5 = vand.u32 2147483648, %v8625_v36  ;;  %v3425_v11 = vmul.f32 %v3361_v0, %v3290_v57  ;;  %v2110_v37 = vmul.f32 %v5367_v6, %v8592_v52  ;;  %vm2097_vm8 = vcmp.eq.f32.partialorder %v8625_v36, inf  ;;  %v8751_v20 = vpop.eup %5372  ;;  %v8761_v57 = vpop.xlane.xlu0 %1596  ;;  %v10252_v6 = vld [vmem:[#allocation30_spill] sm:$0xff] }
 0x222   :  { %v3360_v22 = vmul.f32 %v8454_v49, %v3289_v56  ;;  %v3164_v39 = vmul.f32 %v8282_v61, %v10250_v12  ;;  %v3228_v14 = vmul.f32 %v8305_v51, %v10251_v1  ;;  %v2560_v63 = vsel %vm2559_vm0, %v8610_v42, %v2558_v60  ;;  %v10253_v0 = vld [vmem:[#allocation34_spill] sm:$0xff]  ;;  %v10254_v12 = vld [vmem:[#allocation31_spill] sm:$0xff] }
 0x223   :  { %v2544_v34 = vmul.f32 %v5369_v31, %v8641_v48  ;;  %v3511_v54 = vsel %vm1486_vm2, %v3425_v11, 0.0  ;;  %5386 = vrsqrt.f32 %v8718_v44  ;;  %v5375_v61 = vpop.eup %5374  ;;  %v2796_v43 = vadd.f32 1e-10, %v2080_v47  ;;  %v10255_v1 = vld [vmem:[#allocation35_spill] sm:$0xff] }
 0x224   :  { %vm2566_vm1 = vcmp.eq.f32.partialorder %v8678_v2, inf  ;;  %3512 = vadd.xlane.f32.xlu1 %v3511_v54  ;;  %v3424_v51 = vmul.f32 %v3360_v22, %v3289_v56  ;;  %v3292_v58 = vsub.f32 %v3164_v39, %v3228_v14  ;;  %v5377_v4 = vpop.eup %5376  ;;  %v2860_v23 = vadd.f32 1e-10, %v2528_v8 }
 0x225   :  { %vm2099_vm9 = vcmp.eq.f32.partialorder %v8625_v36, 0.0  ;;  %v2569_v21 = vand.u32 2147483648, %v8678_v2  ;;  %v3163_v60 = vmul.f32 %v8233_v19, %v10252_v6  ;;  %v3227_v31 = vmul.f32 %v8192_v55, %v10253_v0  ;;  %v8778_v22 = vpop.eup %5378  ;;  %v10256_v6 = vld [vmem:[#allocation29_spill] sm:$0xff] }
 0x226   :  { %v2563_v47 = vsel %vm2561_vm3, %v2562_v41, %v2560_v63  ;;  %v2112_v56 = vsel %vm2111_vm4, %v8592_v52, %v2110_v37  ;;  %vm2568_vm10 = vcmp.eq.f32.partialorder %v8678_v2, 0.0  ;;  %v3508_v8 = vsel %vm1486_vm2, %v3424_v51, 0.0  ;;  %v8795_v51 = vpop.xlane.xlu0 %1605 }
 0x227   :  { %v3363_v11 = vmul.f32 %v8454_v49, %v3292_v58  ;;  %v2546_v19 = vsel %vm2545_vm6, %v8641_v48, %v2544_v34  ;;  %v2096_v55 = vmul.f32 %v5375_v61, %v8625_v36  ;;  %3509 = vadd.xlane.f32.xlu0 %v3508_v8  ;;  %5388 = vrsqrt.f32 %v8684_v25  ;;  %v8793_v61 = vpop.xlane.xlu1 %1788  ;;  %v10258_v8 = vld [vmem:[#allocation32_spill] sm:$0xff] }
 0x228   :  { %v3291_v42 = vsub.f32 %v3163_v60, %v3227_v31  ;;  %v2565_v41 = vmul.f32 %v5377_v4, %v8678_v2  ;;  %v3166_v39 = vmul.f32 %v8248_v18, %v10254_v12  ;;  %v3230_v14 = vmul.f32 %v8261_v28, %v10255_v1 }
 0x229   :  { %v3427_v37 = vmul.f32 %v3363_v11, %v3292_v58  ;;  %5390 = vrcp.f32 %v2796_v43  ;;  %v2865_v63 = vadd.f32 1e-10, %v2563_v47  ;;  %v2115_v34 = vsel %vm2113_vm5, %v2114_v50, %v2112_v56  ;;  %v10259_v11 = vld [vmem:[#allocation129_spill] sm:$0xff] }
 0x22a   :  { %v3362_v54 = vmul.f32 %v8454_v49, %v3291_v42  ;;  %v2549_v58 = vsel %vm2547_vm7, %v2548_v46, %v2546_v19  ;;  %5392 = vrsqrt.f32 %v8759_v40  ;;  %v3294_v18 = vsub.f32 %v3166_v39, %v3230_v14  ;;  %v5381_v28 = vpop.eup %5380  ;;  %v8831_v14 = vpop.xlane.xlu0 %1599 }
 0x22b   :  { %v3517_v4 = vsel %vm1486_vm2, %v3427_v37, 0.0  ;;  %5394 = vrcp.f32 %v2860_v23  ;;  %v2098_v52 = vsel %vm2097_vm8, %v8625_v36, %v2096_v55  ;;  %vm2118_vm11 = vcmp.eq.f32.partialorder %v8654_v33, inf  ;;  %v8805_v43 = vpop.eup %5382  ;;  %v10257_v23 = vld [vmem:[#allocation130_spill] sm:$0xff]  ;;  %v8829_v1 = vpop.xlane.xlu1 %1797 }
 0x22c   :  { %3518 = vadd.xlane.f32.xlu1 %v3517_v4  ;;  %v3426_v50 = vmul.f32 %v3362_v54, %v3291_v42  ;;  %v2567_v48 = vsel %vm2566_vm1, %v8678_v2, %v2565_v41  ;;  %5396 = vrsqrt.f32 %v8720_v10  ;;  %v3365_v46 = vmul.f32 %v8454_v49, %v3294_v18  ;;  %v8814_v0 = vpop.eup %5384 }
 0x22d   :  { %v3165_v60 = vmul.f32 %v10257_v23, %v10256_v6  ;;  %v2801_v31 = vadd.f32 1e-10, %v2115_v34  ;;  %v2863_v47 = vadd.f32 1e-10, %v2549_v58  ;;  %vm2120_vm12 = vcmp.eq.f32.partialorder %v8654_v33, 0.0  ;;  %v10261_v58 = vld [vmem:[#allocation44_spill] sm:$0xff] }
 0x22e   :  { %v3514_v56 = vsel %vm1486_vm2, %v3426_v50, 0.0  ;;  %v3229_v19 = vmul.f32 %v10259_v11, %v10258_v8  ;;  %v2101_v55 = vsel %vm2099_vm9, %v2100_v5, %v2098_v52  ;;  %v2117_v42 = vmul.f32 %v5381_v28, %v8654_v33  ;;  %v10260_v5 = vld [vmem:[#allocation41_spill] sm:$0xff]  ;;  %v10262_v50 = vld [vmem:[#allocation38_spill] sm:$0xff]  ;;  %v10265_v6 = vld [vmem:[#allocation136_spill] sm:$0xff] }
 0x22f   :  { %3515 = vadd.xlane.f32.xlu0 %v3514_v56  ;;  %v3429_v41 = vmul.f32 %v3365_v46, %v3294_v18  ;;  %5398 = vrsqrt.f32 %v8793_v61  ;;  %v2570_v37 = vsel %vm2568_vm10, %v2569_v21, %v2567_v48  ;;  %v2121_v12 = vand.u32 2147483648, %v8654_v33  ;;  %v10263_v48 = vld [vmem:[#allocation137_spill] sm:$0xff]  ;;  %v10264_v46 = vld [vmem:[#allocation42_spill] sm:$0xff] }
 0x230   :  { %5400 = vrcp.f32 %v2865_v63  ;;  %v3293_v39 = vsub.f32 %v3165_v60, %v3229_v19  ;;  %v5387_v34 = vpop.eup %5386  ;;  %vm2552_vm13 = vcmp.eq.f32.partialorder %v8718_v44, inf  ;;  %v3168_v54 = vmul.f32 %v8422_v45, %v10260_v5  ;;  %v8855_v19 = vpop.xlane.xlu1 %1791 }
 0x231   :  { %v3523_v36 = vsel %vm1486_vm2, %v3429_v41, 0.0  ;;  %v3232_v63 = vmul.f32 %v8445_v29, %v10261_v58  ;;  %5402 = vrcp.f32 %v2801_v31  ;;  %v2799_v2 = vadd.f32 1e-10, %v2101_v55  ;;  %v8857_v55 = vpop.xlane.xlu0 %1614  ;;  %v10266_v58 = vld [vmem:[#allocation39_spill] sm:$0xff] }
 0x232   :  { %vm2554_vm14 = vcmp.eq.f32.partialorder %v8718_v44, 0.0  ;;  %3524 = vadd.xlane.f32.xlu1 %v3523_v36  ;;  %v3364_v21 = vmul.f32 %v8454_v49, %v3293_v39  ;;  %5404 = vrcp.f32 %v2863_v47  ;;  %v2866_v4 = vadd.f32 1e-10, %v2570_v37 }
 0x233   :  { %v2119_v18 = vsel %vm2118_vm11, %v8654_v33, %v2117_v42  ;;  %v3296_v28 = vsub.f32 %v3168_v54, %v3232_v63  ;;  %v2551_v52 = vmul.f32 %v5387_v34, %v8718_v44  ;;  %v3167_v29 = vmul.f32 %v10263_v48, %v10262_v50  ;;  %v10267_v63 = vld [vmem:[#allocation138_spill] sm:$0xff] }
 0x234   :  { %v3428_v45 = vmul.f32 %v3364_v21, %v3293_v39  ;;  %v3231_v23 = vmul.f32 %v10265_v6, %v10264_v46  ;;  %v5389_v60 = vpop.eup %5388  ;;  %v2555_v31 = vand.u32 2147483648, %v8718_v44  ;;  %vm2104_vm15 = vcmp.eq.f32.partialorder %v8684_v25, inf  ;;  %v10268_v21 = vld [vmem:[#allocation43_spill] sm:$0xff] }
 0x235   :  { %5406 = vrsqrt.f32 %v8761_v57  ;;  %v3367_v47 = vmul.f32 %v8454_v49, %v3296_v28  ;;  %v2107_v56 = vand.u32 2147483648, %v8684_v25  ;;  %v2122_v41 = vsel %vm2120_vm12, %v2121_v12, %v2119_v18 }
 0x236   :  { %5408 = vrcp.f32 %v2799_v2  ;;  %v3520_v8 = vsel %vm1486_vm2, %v3428_v45, 0.0  ;;  %v3295_v11 = vsub.f32 %v3167_v29, %v3231_v23  ;;  %v8859_v42 = vpop.eup %5390  ;;  %vm2106_vm0 = vcmp.eq.f32.partialorder %v8684_v25, 0.0 }
 0x237   :  { %vm2587_vm3 = vcmp.eq.f32.partialorder %v8759_v40, inf  ;;  %v2590_v37 = vand.u32 2147483648, %v8759_v40  ;;  %3521 = vadd.xlane.f32.xlu0 %v3520_v8  ;;  %v3431_v39 = vmul.f32 %v3367_v47, %v3296_v28  ;;  %v5393_v34 = vpop.eup %5392  ;;  %5410 = vrcp.f32 %v2866_v4  ;;  %v10269_v4 = vld [vmem:[#allocation139_spill] sm:$0xff]  ;;  %v8892_v47 = vpop.xlane.xlu1 %1806 }
 0x238   :  { %v2553_v36 = vsel %vm2552_vm13, %v8718_v44, %v2551_v52  ;;  %v2103_v5 = vmul.f32 %v5389_v60, %v8684_v25  ;;  %v3366_v54 = vmul.f32 %v8454_v49, %v3295_v11  ;;  %v8871_v33 = vpop.eup %5394  ;;  %vm2589_vm4 = vcmp.eq.f32.partialorder %v8759_v40, 0.0  ;;  %v8894_v44 = vpop.xlane.xlu0 %1608 }
 0x239   :  { %v3529_v12 = vsel %vm1486_vm2, %v3431_v39, 0.0  ;;  %5412 = vrsqrt.f32 %v8829_v1  ;;  %v3170_v2 = vmul.f32 %v10267_v63, %v10266_v58  ;;  %v3234_v18 = vmul.f32 %v10269_v4, %v10268_v21  ;;  %v5397_v28 = vpop.eup %5396  ;;  %v10271_v39 = vld [vmem:[#allocation135_spill] sm:$0xff] }
 0x23a   :  { %v2802_v52 = vadd.f32 1e-10, %v2122_v41  ;;  %vm2139_vm5 = vcmp.eq.f32.partialorder %v8720_v10, inf  ;;  %3530 = vadd.xlane.f32.xlu1 %v3529_v12  ;;  %v3430_v45 = vmul.f32 %v3366_v54, %v3295_v11  ;;  %5414 = vrsqrt.f32 %v8795_v51  ;;  %v10270_v41 = vld [vmem:[#allocation37_spill] sm:$0xff] }
 0x23b   :  { %v2556_v50 = vsel %vm2554_vm14, %v2555_v31, %v2553_v36  ;;  %v2586_v48 = vmul.f32 %v5393_v34, %v8759_v40  ;;  %vm2141_vm6 = vcmp.eq.f32.partialorder %v8720_v10, 0.0  ;;  %v3298_v29 = vsub.f32 %v3170_v2, %v3234_v18  ;;  %v10272_v36 = vld [vmem:[#allocation40_spill] sm:$0xff] }
 0x23c   :  { %v5399_v46 = vpop.eup %5398  ;;  %v2105_v6 = vsel %vm2104_vm15, %v8684_v25, %v2103_v5  ;;  %v2142_v23 = vand.u32 2147483648, %v8720_v10  ;;  %vm2573_vm7 = vcmp.eq.f32.partialorder %v8793_v61, inf  ;;  %v3526_v60 = vsel %vm1486_vm2, %v3430_v45, 0.0  ;;  %v10273_v5 = vld [vmem:[#allocation134_spill] sm:$0xff]  ;;  %v10274_v45 = vld [vmem:[#allocation49_spill] sm:$0xff] }
 0x23d   :  { %v8896_v31 = vpop.eup %5400  ;;  %v2138_v8 = vmul.f32 %v5397_v28, %v8720_v10  ;;  %3527 = vadd.xlane.f32.xlu0 %v3526_v60  ;;  %v3369_v11 = vmul.f32 %v8454_v49, %v3298_v29  ;;  %v3169_v34 = vmul.f32 %v10271_v39, %v10270_v41  ;;  %v3233_v54 = vmul.f32 %v10273_v5, %v10272_v36  ;;  %v10275_v60 = vld [vmem:[#allocation52_spill] sm:$0xff]  ;;  %v10276_v5 = vld [vmem:[#allocation46_spill] sm:$0xff] }
 0x23e   :  { %5416 = vrcp.f32 %v2802_v52  ;;  %v2864_v12 = vadd.f32 1e-10, %v2556_v50  ;;  %vm2575_vm8 = vcmp.eq.f32.partialorder %v8793_v61, 0.0  ;;  %v2576_v58 = vand.u32 2147483648, %v8793_v61  ;;  %v8906_v63 = vpop.eup %5402 }
 0x23f   :  { %v2588_v2 = vsel %vm2587_vm3, %v8759_v40, %v2586_v48  ;;  %v2572_v21 = vmul.f32 %v5399_v46, %v8793_v61  ;;  %v3433_v4 = vmul.f32 %v3369_v11, %v3298_v29  ;;  %v3297_v18 = vsub.f32 %v3169_v34, %v3233_v54  ;;  %v8912_v28 = vpop.eup %5404 }
 0x240   :  { %v2108_v52 = vsel %vm2106_vm0, %v2107_v56, %v2105_v6  ;;  %5418 = vrsqrt.f32 %v8855_v19  ;;  %v3172_v50 = vmul.f32 %v8550_v15, %v10274_v45  ;;  %v3236_v41 = vmul.f32 %v8576_v26, %v10275_v60  ;;  %v8930_v26 = vpop.xlane.xlu1 %1800  ;;  %v8932_v6 = vpop.xlane.xlu0 %1617 }
 0x241   :  { %v2140_v48 = vsel %vm2139_vm5, %v8720_v10, %v2138_v8  ;;  %v3535_v29 = vsel %vm1486_vm2, %v3433_v4, 0.0  ;;  %v3368_v46 = vmul.f32 %v8454_v49, %v3297_v18  ;;  %5420 = vrsqrt.f32 %v8831_v14 }
 0x242   :  { %v5407_v25 = vpop.eup %5406  ;;  %5422 = vrcp.f32 %v2864_v12  ;;  %v2591_v56 = vsel %vm2589_vm4, %v2590_v37, %v2588_v2  ;;  %vm2125_vm1 = vcmp.eq.f32.partialorder %v8761_v57, inf  ;;  %3536 = vadd.xlane.f32.xlu1 %v3535_v29  ;;  %v3300_v15 = vsub.f32 %v3172_v50, %v3236_v41  ;;  %v10277_v12 = vld [vmem:[#allocation50_spill] sm:$0xff]  ;;  %v10278_v2 = vld [vmem:[#allocation5_spill] sm:$0xff] }
 0x243   :  { %v8934_v8 = vpop.eup %5408  ;;  %v2800_v11 = vadd.f32 1e-10, %v2108_v52  ;;  %v2574_v39 = vsel %vm2573_vm7, %v8793_v61, %v2572_v21  ;;  %vm2127_vm9 = vcmp.eq.f32.partialorder %v8761_v57, 0.0  ;;  %v2128_v40 = vand.u32 2147483648, %v8761_v57  ;;  %v10279_v61 = vld [vmem:[#allocation47_spill] sm:$0xff] }
 0x244   :  { %v3432_v37 = vmul.f32 %v3368_v46, %v3297_v18  ;;  %v2143_v34 = vsel %vm2141_vm6, %v2142_v23, %v2140_v48  ;;  %v3371_v36 = vmul.f32 %v8454_v49, %v3300_v15  ;;  %v3171_v54 = vmul.f32 %v8502_v7, %v10276_v5  ;;  %v8948_v52 = vpop.eup %5410 }
 0x245   :  { %v3235_v4 = vmul.f32 %v10278_v2, %v10277_v12  ;;  %v2869_v45 = vadd.f32 1e-10, %v2591_v56  ;;  %v2124_v21 = vmul.f32 %v5407_v25, %v8761_v57  ;;  %5424 = vrsqrt.f32 %v8892_v47  ;;  %v10280_v25 = vld [vmem:[#allocation51_spill] sm:$0xff]  ;;  %v10281_v12 = vld [vmem:[#allocation45_spill] sm:$0xff]  ;;  %v10282_v2 = vld [vmem:[#allocation10_spill] sm:$0xff] }
 0x246   :  { %v3532_v50 = vsel %vm1486_vm2, %v3432_v37, 0.0  ;;  %v5413_v18 = vpop.eup %5412  ;;  %v2577_v10 = vsel %vm2575_vm8, %v2576_v58, %v2574_v39  ;;  %vm2594_vm10 = vcmp.eq.f32.partialorder %v8829_v1, inf  ;;  %v3435_v7 = vmul.f32 %v3371_v36, %v3300_v15  ;;  %v8965_v15 = vpop.xlane.xlu1 %1809 }
 0x247   :  { %3533 = vadd.xlane.f32.xlu0 %v3532_v50  ;;  %v3299_v23 = vsub.f32 %v3171_v54, %v3235_v4  ;;  %v5415_v60 = vpop.eup %5414  ;;  %5426 = vrcp.f32 %v2800_v11  ;;  %v2805_v41 = vadd.f32 1e-10, %v2143_v34  ;;  %v2597_v48 = vand.u32 2147483648, %v8829_v1  ;;  %v8967_v11 = vpop.xlane.xlu0 %1611  ;;  %v10284_v50 = vld [vmem:[#allocation9_spill] sm:$0xff] }
 0x248   :  { %vm2146_vm11 = vcmp.eq.f32.partialorder %v8795_v51, inf  ;;  %vm2596_vm12 = vcmp.eq.f32.partialorder %v8829_v1, 0.0  ;;  %v3541_v29 = vsel %vm1486_vm2, %v3435_v7, 0.0  ;;  %v3174_v58 = vmul.f32 %v8520_v24, %v10279_v61 }
 0x249   :  { %v3370_v46 = vmul.f32 %v8454_v49, %v3299_v23  ;;  %v3238_v56 = vmul.f32 %v8528_v27, %v10280_v25  ;;  %5428 = vrcp.f32 %v2869_v45  ;;  %v2867_v39 = vadd.f32 1e-10, %v2577_v10  ;;  %3542 = vadd.xlane.f32.xlu1 %v3541_v29  ;;  %v10283_v45 = vld [vmem:[#allocation48_spill] sm:$0xff] }
 0x24a   :  { %v2126_v37 = vsel %vm2125_vm1, %v8761_v57, %v2124_v21  ;;  %vm2148_vm13 = vcmp.eq.f32.partialorder %v8795_v51, 0.0  ;;  %v2593_v34 = vmul.f32 %v5413_v18, %v8829_v1  ;;  %v2145_v24 = vmul.f32 %v5415_v60, %v8795_v51 }
 0x24b   :  { %v3434_v36 = vmul.f32 %v3370_v46, %v3299_v23  ;;  %v3302_v5 = vsub.f32 %v3174_v58, %v3238_v56  ;;  %v8975_v27 = vpop.eup %5416  ;;  %5430 = vrcp.f32 %v2805_v41  ;;  %v2149_v54 = vand.u32 2147483648, %v8795_v51  ;;  %v8997_v46 = vpop.xlane.xlu1 %1803  ;;  %v9007_v56 = vld [vmem:[%s9928_s3] ss:$0 sm:$0xff] }
 0x24c   :  { %v3173_v4 = vmul.f32 %v10282_v2, %v10281_v12  ;;  %v3237_v21 = vmul.f32 %v10284_v50, %v10283_v45  ;;  %v2129_v10 = vsel %vm2127_vm9, %v2128_v40, %v2126_v37  ;;  %5432 = vrsqrt.f32 %v8857_v55  ;;  %v8999_v61 = vpop.xlane.xlu0 %1626 }
 0x24d   :  { %v3538_v18 = vsel %vm1486_vm2, %v3434_v36, 0.0  ;;  %v3373_v7 = vmul.f32 %v8454_v49, %v3302_v5  ;;  %v5419_v23 = vpop.eup %5418  ;;  %5434 = vrcp.f32 %v2867_v39  ;;  %vm2580_vm14 = vcmp.eq.f32.partialorder %v8855_v19, inf }
 0x24e   :  { %v2583_v60 = vand.u32 2147483648, %v8855_v19  ;;  %3539 = vadd.xlane.f32.xlu0 %v3538_v18  ;;  %v3301_v41 = vsub.f32 %v3173_v4, %v3237_v21  ;;  %v5421_v29 = vpop.eup %5420  ;;  %v2595_v57 = vsel %vm2594_vm10, %v8829_v1, %v2593_v34  ;;  %v2147_v40 = vsel %vm2146_vm11, %v8795_v51, %v2145_v24  ;;  %v10285_v24 = vld [vmem:[#allocation57_spill] sm:$0xff]  ;;  %v10288_v51 = vld [vmem:[#allocation58_spill] sm:$0xff] }
 0x24f   :  { %vm2582_vm15 = vcmp.eq.f32.partialorder %v8855_v19, 0.0  ;;  %v3437_v49 = vmul.f32 %v3373_v7, %v3302_v5  ;;  %5436 = vrsqrt.f32 %v8930_v26  ;;  %v9001_v58 = vpop.eup %5422  ;;  %v2803_v25 = vadd.f32 1e-10, %v2129_v10  ;;  %v10286_v5 = vld [vmem:[#allocation60_spill] sm:$0xff] }
 0x250   :  { %vm2132_vm0 = vcmp.eq.f32.partialorder %v8831_v14, inf  ;;  %v3372_v39 = vmul.f32 %v9007_v56, %v3301_v41  ;;  %5438 = vrsqrt.f32 %v8894_v44  ;;  %v2579_v37 = vmul.f32 %v5419_v23, %v8855_v19 }
 0x251   :  { %v3547_v34 = vsel %vm1486_vm2, %v3437_v49, 0.0  ;;  %v3176_v36 = vmul.f32 %v8691_v16, %v10285_v24  ;;  %v3240_v12 = vmul.f32 %v8700_v30, %v10286_v5  ;;  %v2598_v2 = vsel %vm2596_vm12, %v2597_v48, %v2595_v57  ;;  %v10287_v16 = vld [vmem:[#allocation54_spill] sm:$0xff]  ;;  %v9038_v57 = vpop.xlane.xlu0 %1620  ;;  %v10290_v24 = vld [vmem:[#allocation59_spill] sm:$0xff] }
 0x252   :  { %v2150_v4 = vsel %vm2148_vm13, %v2149_v54, %v2147_v40  ;;  %v2131_v45 = vmul.f32 %v5421_v29, %v8831_v14  ;;  %3548 = vadd.xlane.f32.xlu1 %v3547_v34  ;;  %v3436_v50 = vmul.f32 %v3372_v39, %v3301_v41  ;;  %v5425_v21 = vpop.eup %5424  ;;  %vm2134_vm3 = vcmp.eq.f32.partialorder %v8831_v14, 0.0 }
 0x253   :  { %v2135_v10 = vand.u32 2147483648, %v8831_v14  ;;  %v3304_v18 = vsub.f32 %v3176_v36, %v3240_v12  ;;  %v3175_v7 = vmul.f32 %v8647_v13, %v10287_v16  ;;  %5440 = vrcp.f32 %v2803_v25  ;;  %v9036_v13 = vpop.xlane.xlu1 %1818 }
 0x254   :  { %vm2615_vm4 = vcmp.eq.f32.partialorder %v8892_v47, inf  ;;  %v3544_v30 = vsel %vm1486_vm2, %v3436_v50, 0.0  ;;  %v3239_v1 = vmul.f32 %v8627_v59, %v10288_v51  ;;  %v9030_v48 = vpop.eup %5426  ;;  %v2870_v54 = vadd.f32 1e-10, %v2598_v2  ;;  %v10292_v51 = vld [vmem:[#allocation56_spill] sm:$0xff] }
 0x255   :  { %v2806_v23 = vadd.f32 1e-10, %v2150_v4  ;;  %v2581_v41 = vsel %vm2580_vm14, %v8855_v19, %v2579_v37  ;;  %3545 = vadd.xlane.f32.xlu0 %v3544_v30  ;;  %v3375_v29 = vmul.f32 %v9007_v56, %v3304_v18  ;;  %v2133_v40 = vsel %vm2132_vm0, %v8831_v14, %v2131_v45  ;;  %v10289_v37 = vld [vmem:[#allocation55_spill] sm:$0xff]  ;;  %v9075_v14 = vpop.xlane.xlu0 %1629 }
 0x256   :  { %v2614_v59 = vmul.f32 %v5425_v21, %v8892_v47  ;;  %5442 = vrsqrt.f32 %v8965_v15  ;;  %v3303_v49 = vsub.f32 %v3175_v7, %v3239_v1  ;;  %v9045_v25 = vpop.eup %5428  ;;  %v3178_v34 = vmul.f32 %v8660_v38, %v10289_v37 }
 0x257   :  { %v3439_v39 = vmul.f32 %v3375_v29, %v3304_v18  ;;  %5444 = vrsqrt.f32 %v8932_v6  ;;  %v3242_v36 = vmul.f32 %v8665_v62, %v10290_v24  ;;  %v2584_v5 = vsel %vm2582_vm15, %v2583_v60, %v2581_v41  ;;  %v10291_v60 = vld [vmem:[#allocation53_spill] sm:$0xff] }
 0x258   :  { %vm2617_vm5 = vcmp.eq.f32.partialorder %v8892_v47, 0.0  ;;  %v2618_v12 = vand.u32 2147483648, %v8892_v47  ;;  %v3374_v2 = vmul.f32 %v9007_v56, %v3303_v49  ;;  %v9057_v4 = vpop.eup %5430  ;;  %5446 = vrcp.f32 %v2870_v54  ;;  %v9073_v54 = vpop.xlane.xlu1 %1812 }
 0x259   :  { %vm2167_vm6 = vcmp.eq.f32.partialorder %v8857_v55, inf  ;;  %v3553_v45 = vsel %vm1486_vm2, %v3439_v39, 0.0  ;;  %v3306_v38 = vsub.f32 %v3178_v34, %v3242_v36  ;;  %v5433_v50 = vpop.eup %5432  ;;  %5448 = vrcp.f32 %v2806_v23 }
 0x25a   :  { %v2136_v62 = vsel %vm2134_vm3, %v2135_v10, %v2133_v40  ;;  %3554 = vadd.xlane.f32.xlu1 %v3553_v45  ;;  %v3438_v19 = vmul.f32 %v3374_v2, %v3303_v49  ;;  %v3177_v21 = vmul.f32 %v8618_v3, %v10291_v60  ;;  %v9065_v18 = vpop.eup %5434  ;;  %v2868_v16 = vadd.f32 1e-10, %v2584_v5  ;;  %v10294_v2 = vld [vmem:[#allocation68_spill] sm:$0xff]  ;;  %v9106_v60 = vpop.xlane.xlu0 %1623 }
 0x25b   :  { %v2616_v7 = vsel %vm2615_vm4, %v8892_v47, %v2614_v59  ;;  %v3377_v30 = vmul.f32 %v9007_v56, %v3306_v38  ;;  %v3241_v1 = vmul.f32 %v8594_v53, %v10292_v51  ;;  %vm2169_vm7 = vcmp.eq.f32.partialorder %v8857_v55, 0.0  ;;  %v10293_v47 = vld [vmem:[#allocation65_spill] sm:$0xff] }
 0x25c   :  { %v5437_v10 = vpop.eup %5436  ;;  %v2170_v3 = vand.u32 2147483648, %v8857_v55  ;;  %vm2601_vm8 = vcmp.eq.f32.partialorder %v8930_v26, inf  ;;  %v3550_v23 = vsel %vm1486_vm2, %v3438_v19, 0.0  ;;  %5450 = vrsqrt.f32 %v8997_v46  ;;  %v9104_v19 = vpop.xlane.xlu1 %1821 }
 0x25d   :  { %v5439_v41 = vpop.eup %5438  ;;  %v2804_v29 = vadd.f32 1e-10, %v2136_v62  ;;  %v2166_v40 = vmul.f32 %v5433_v50, %v8857_v55  ;;  %vm2603_vm1 = vcmp.eq.f32.partialorder %v8930_v26, 0.0  ;;  %3551 = vadd.xlane.f32.xlu0 %v3550_v23  ;;  %v3441_v53 = vmul.f32 %v3377_v30, %v3306_v38 }
 0x25e   :  { %v3305_v59 = vsub.f32 %v3177_v21, %v3241_v1  ;;  %v2619_v49 = vsel %vm2617_vm5, %v2618_v12, %v2616_v7  ;;  %v2604_v39 = vand.u32 2147483648, %v8930_v26  ;;  %vm2153_vm9 = vcmp.eq.f32.partialorder %v8894_v44, inf  ;;  %v10296_v1 = vld [vmem:[#allocation66_spill] sm:$0xff] }
 0x25f   :  { %vm2155_vm10 = vcmp.eq.f32.partialorder %v8894_v44, 0.0  ;;  %5452 = vrcp.f32 %v2868_v16  ;;  %v2600_v37 = vmul.f32 %v5437_v10, %v8930_v26  ;;  %v2156_v34 = vand.u32 2147483648, %v8894_v44  ;;  %v10295_v16 = vld [vmem:[#allocation62_spill] sm:$0xff] }
 0x260   :  { %v3559_v24 = vsel %vm1486_vm2, %v3441_v53, 0.0  ;;  %v2152_v36 = vmul.f32 %v5439_v41, %v8894_v44  ;;  %v3376_v5 = vmul.f32 %v9007_v56, %v3305_v59  ;;  %v3180_v12 = vmul.f32 %v8859_v42, %v10293_v47  ;;  %v9098_v38 = vpop.eup %5440 }
 0x261   :  { %3560 = vadd.xlane.f32.xlu1 %v3559_v24  ;;  %v3244_v45 = vmul.f32 %v8871_v33, %v10294_v2  ;;  %5454 = vrcp.f32 %v2804_v29  ;;  %v2873_v50 = vadd.f32 1e-10, %v2619_v49  ;;  %v2168_v62 = vsel %vm2167_vm6, %v8857_v55, %v2166_v40  ;;  %v10297_v24 = vld [vmem:[#allocation63_spill] sm:$0xff] }
 0x262   :  { %vm2622_vm11 = vcmp.eq.f32.partialorder %v8965_v15, inf  ;;  %v3440_v21 = vmul.f32 %v3376_v5, %v3305_v59  ;;  %5456 = vrsqrt.f32 %v8967_v11  ;;  %v3179_v33 = vmul.f32 %v8778_v22, %v10295_v16  ;;  %v10299_v16 = vld [vmem:[#allocation61_spill] sm:$0xff] }
 0x263   :  { %v3308_v42 = vsub.f32 %v3180_v12, %v3244_v45  ;;  %v5443_v7 = vpop.eup %5442  ;;  %v2602_v30 = vsel %vm2601_vm8, %v8930_v26, %v2600_v37  ;;  %v2625_v51 = vand.u32 2147483648, %v8965_v15  ;;  %5458 = vrsqrt.f32 %v9036_v13  ;;  %v10298_v12 = vld [vmem:[#allocation67_spill] sm:$0xff]  ;;  %v9143_v26 = vpop.xlane.xlu1 %1815 }
 0x264   :  { %v3243_v10 = vmul.f32 %v8751_v20, %v10296_v1  ;;  %v5445_v23 = vpop.eup %5444  ;;  %v2154_v41 = vsel %vm2153_vm9, %v8894_v44, %v2152_v36  ;;  %vm2624_vm12 = vcmp.eq.f32.partialorder %v8965_v15, 0.0  ;;  %vm2174_vm13 = vcmp.eq.f32.partialorder %v8932_v6, inf }
 0x265   :  { %v3556_v22 = vsel %vm1486_vm2, %v3440_v21, 0.0  ;;  %v3379_v29 = vmul.f32 %v9007_v56, %v3308_v42  ;;  %5460 = vrcp.f32 %v2873_v50  ;;  %v2171_v40 = vsel %vm2169_vm7, %v2170_v3, %v2168_v62  ;;  %v9128_v53 = vpop.eup %5446 }
 0x266   :  { %vm2176_vm14 = vcmp.eq.f32.partialorder %v8932_v6, 0.0  ;;  %3557 = vadd.xlane.f32.xlu0 %v3556_v22  ;;  %v3307_v20 = vsub.f32 %v3179_v33, %v3243_v10  ;;  %v2605_v59 = vsel %vm2603_vm1, %v2604_v39, %v2602_v30  ;;  %v2621_v49 = vmul.f32 %v5443_v7, %v8965_v15  ;;  %v9135_v5 = vpop.eup %5448  ;;  %v9145_v39 = vpop.xlane.xlu0 %1638  ;;  %v10300_v10 = vld [vmem:[#allocation64_spill] sm:$0xff] }
 0x267   :  { %v3443_v37 = vmul.f32 %v3379_v29, %v3308_v42  ;;  %v3182_v36 = vmul.f32 %v8814_v0, %v10297_v24  ;;  %v2157_v55 = vsel %vm2155_vm10, %v2156_v34, %v2154_v41  ;;  %v2173_v3 = vmul.f32 %v5445_v23, %v8932_v6 }
 0x268   :  { %v3378_v47 = vmul.f32 %v9007_v56, %v3307_v20  ;;  %v3246_v2 = vmul.f32 %v8805_v43, %v10298_v12  ;;  %v2809_v45 = vadd.f32 1e-10, %v2171_v40  ;;  %v2177_v50 = vand.u32 2147483648, %v8932_v6 }
 0x269   :  { %v3565_v0 = vsel %vm1486_vm2, %v3443_v37, 0.0  ;;  %5462 = vrsqrt.f32 %v8999_v61  ;;  %v5451_v44 = vpop.eup %5450  ;;  %vm2608_vm15 = vcmp.eq.f32.partialorder %v8997_v46, inf  ;;  %v2871_v43 = vadd.f32 1e-10, %v2605_v59  ;;  %v9172_v59 = vpop.xlane.xlu1 %1830 }
 0x26a   :  { %3566 = vadd.xlane.f32.xlu1 %v3565_v0  ;;  %v3442_v34 = vmul.f32 %v3378_v47, %v3307_v20  ;;  %v3310_v62 = vsub.f32 %v3182_v36, %v3246_v2  ;;  %5464 = vrsqrt.f32 %v9073_v54  ;;  %v2807_v21 = vadd.f32 1e-10, %v2157_v55  ;;  %v10302_v2 = vld [vmem:[#allocation74_spill] sm:$0xff] }
 0x26b   :  { %v2623_v42 = vsel %vm2622_vm11, %v8965_v15, %v2621_v49  ;;  %v3181_v33 = vmul.f32 %v8736_v35, %v10299_v16  ;;  %v2175_v7 = vsel %vm2174_vm13, %v8932_v6, %v2173_v3  ;;  %v3245_v23 = vmul.f32 %v8710_v32, %v10300_v10  ;;  %v9174_v32 = vpop.xlane.xlu0 %1632  ;;  %v10301_v6 = vld [vmem:[#allocation70_spill] sm:$0xff] }
 0x26c   :  { %v3562_v30 = vsel %vm1486_vm2, %v3442_v34, 0.0  ;;  %v3381_v1 = vmul.f32 %v9007_v56, %v3310_v62  ;;  %v9164_v41 = vpop.eup %5452  ;;  %5466 = vrcp.f32 %v2809_v45  ;;  %v2607_v22 = vmul.f32 %v5451_v44, %v8997_v46  ;;  %v10303_v44 = vld [vmem:[#allocation73_spill] sm:$0xff] }
 0x26d   :  { %vm2610_vm0 = vcmp.eq.f32.partialorder %v8997_v46, 0.0  ;;  %v2611_v35 = vand.u32 2147483648, %v8997_v46  ;;  %3563 = vadd.xlane.f32.xlu0 %v3562_v30  ;;  %v2626_v29 = vsel %vm2624_vm12, %v2625_v51, %v2623_v42  ;;  %v3309_v20 = vsub.f32 %v3181_v33, %v3245_v23  ;;  %v10304_v42 = vld [vmem:[#allocation76_spill] sm:$0xff] }
 0x26e   :  { %v3445_v40 = vmul.f32 %v3381_v1, %v3310_v62  ;;  %5468 = vrsqrt.f32 %v9038_v57  ;;  %v9176_v49 = vpop.eup %5454  ;;  %v2178_v37 = vsel %vm2176_vm14, %v2177_v50, %v2175_v7  ;;  %vm2160_vm3 = vcmp.eq.f32.partialorder %v8967_v11, inf }
 0x26f   :  { %5470 = vrcp.f32 %v2871_v43  ;;  %v2163_v24 = vand.u32 2147483648, %v8967_v11  ;;  %v5457_v15 = vpop.eup %5456  ;;  %vm2643_vm4 = vcmp.eq.f32.partialorder %v9036_v13, inf  ;;  %v3380_v36 = vmul.f32 %v9007_v56, %v3309_v20  ;;  %v9209_v7 = vpop.xlane.xlu0 %1641 }
 0x270   :  { %5472 = vrcp.f32 %v2807_v21  ;;  %v3571_v51 = vsel %vm1486_vm2, %v3445_v40, 0.0  ;;  %v5459_v55 = vpop.eup %5458  ;;  %v2874_v3 = vadd.f32 1e-10, %v2626_v29  ;;  %v2609_v47 = vsel %vm2608_vm15, %v8997_v46, %v2607_v22 }
 0x271   :  { %vm2162_vm5 = vcmp.eq.f32.partialorder %v8967_v11, 0.0  ;;  %3572 = vadd.xlane.f32.xlu1 %v3571_v51  ;;  %v3183_v12 = vmul.f32 %v8934_v8, %v10301_v6  ;;  %v3247_v45 = vmul.f32 %v8912_v28, %v10302_v2  ;;  %v2810_v50 = vadd.f32 1e-10, %v2178_v37  ;;  %v10305_v37 = vld [vmem:[#allocation69_spill] sm:$0xff] }
 0x272   :  { %v3444_v0 = vmul.f32 %v3380_v36, %v3309_v20  ;;  %5474 = vrsqrt.f32 %v9104_v19  ;;  %v3184_v34 = vmul.f32 %v9030_v48, %v10303_v44  ;;  %v9196_v62 = vpop.eup %5460  ;;  %v2159_v43 = vmul.f32 %v5457_v15, %v8967_v11  ;;  %v9207_v48 = vpop.xlane.xlu1 %1824 }
 0x273   :  { %vm2645_vm6 = vcmp.eq.f32.partialorder %v9036_v13, 0.0  ;;  %v3311_v21 = vsub.f32 %v3183_v12, %v3247_v45  ;;  %v3248_v8 = vmul.f32 %v9001_v58, %v10304_v42  ;;  %v2612_v28 = vsel %vm2610_vm0, %v2611_v35, %v2609_v47  ;;  %v10307_v45 = vld [vmem:[#allocation71_spill] sm:$0xff] }
 0x274   :  { %v2642_v16 = vmul.f32 %v5459_v55, %v9036_v13  ;;  %v3568_v33 = vsel %vm1486_vm2, %v3444_v0, 0.0  ;;  %5476 = vrsqrt.f32 %v9075_v14  ;;  %v2646_v30 = vand.u32 2147483648, %v9036_v13 }
 0x275   :  { %5478 = vrcp.f32 %v2874_v3  ;;  %3569 = vadd.xlane.f32.xlu0 %v3568_v33  ;;  %v3382_v1 = vmul.f32 %v9007_v56, %v3311_v21  ;;  %v3312_v58 = vsub.f32 %v3184_v34, %v3248_v8  ;;  %vm2195_vm7 = vcmp.eq.f32.partialorder %v8999_v61, inf  ;;  %v10306_v3 = vld [vmem:[#allocation72_spill] sm:$0xff]  ;;  %v9243_v34 = vpop.xlane.xlu0 %1635 }
 0x276   :  { %v5463_v10 = vpop.eup %5462  ;;  %5480 = vrcp.f32 %v2810_v50  ;;  %v2198_v46 = vand.u32 2147483648, %v8999_v61  ;;  %vm2629_vm8 = vcmp.eq.f32.partialorder %v9073_v54, inf  ;;  %v2872_v22 = vadd.f32 1e-10, %v2612_v28  ;;  %v9241_v44 = vpop.xlane.xlu1 %1833 }
 0x277   :  { %v5465_v23 = vpop.eup %5464  ;;  %v2161_v35 = vsel %vm2160_vm3, %v8967_v11, %v2159_v43  ;;  %vm2197_vm1 = vcmp.eq.f32.partialorder %v8999_v61, 0.0  ;;  %v3446_v29 = vmul.f32 %v3382_v1, %v3311_v21  ;;  %v3383_v40 = vmul.f32 %v9007_v56, %v3312_v58 }
 0x278   :  { %v2644_v20 = vsel %vm2643_vm4, %v9036_v13, %v2642_v16  ;;  %vm2631_vm9 = vcmp.eq.f32.partialorder %v9073_v54, 0.0  ;;  %5482 = vrsqrt.f32 %v9143_v26  ;;  %v3185_v15 = vmul.f32 %v8906_v63, %v10305_v37  ;;  %v10308_v63 = vld [vmem:[#allocation75_spill] sm:$0xff] }
 0x279   :  { %v2194_v51 = vmul.f32 %v5463_v10, %v8999_v61  ;;  %v3574_v36 = vsel %vm1486_vm2, %v3446_v29, 0.0  ;;  %v3447_v55 = vmul.f32 %v3383_v40, %v3312_v58  ;;  %v3249_v47 = vmul.f32 %v8896_v31, %v10306_v3  ;;  %v9232_v6 = vpop.eup %5466  ;;  %v10309_v29 = vld [vmem:[#allocation78_spill] sm:$0xff]  ;;  %v9275_v37 = vpop.xlane.xlu0 %1650 }
 0x27a   :  { %v2164_v12 = vsel %vm2162_vm5, %v2163_v24, %v2161_v35  ;;  %v2628_v2 = vmul.f32 %v5465_v23, %v9073_v54  ;;  %3575 = vadd.xlane.f32.xlu0 %v3574_v36  ;;  %v3186_v50 = vmul.f32 %v8975_v27, %v10307_v45  ;;  %v3250_v0 = vmul.f32 %v8948_v52, %v10308_v63 }
 0x27b   :  { %v5469_v43 = vpop.eup %5468  ;;  %5484 = vrcp.f32 %v2872_v22  ;;  %v2632_v31 = vand.u32 2147483648, %v9073_v54  ;;  %v3577_v11 = vsel %vm1486_vm2, %v3447_v55, 0.0  ;;  %v3313_v24 = vsub.f32 %v3185_v15, %v3249_v47  ;;  %v10310_v55 = vld [vmem:[#allocation82_spill] sm:$0xff] }
 0x27c   :  { %v9247_v21 = vpop.eup %5470  ;;  %v2647_v42 = vsel %vm2645_vm6, %v2646_v30, %v2644_v20  ;;  %vm2181_vm10 = vcmp.eq.f32.partialorder %v9038_v57, inf  ;;  %vm2183_vm11 = vcmp.eq.f32.partialorder %v9038_v57, 0.0  ;;  %3578 = vadd.xlane.f32.xlu1 %v3577_v11  ;;  %v3314_v52 = vsub.f32 %v3186_v50, %v3250_v0  ;;  %v9273_v20 = vpop.xlane.xlu1 %1827 }
 0x27d   :  { %v9253_v27 = vpop.eup %5472  ;;  %v2808_v8 = vadd.f32 1e-10, %v2164_v12  ;;  %v2196_v28 = vsel %vm2195_vm7, %v8999_v61, %v2194_v51  ;;  %v2184_v16 = vand.u32 2147483648, %v9038_v57  ;;  %v3384_v33 = vmul.f32 %v9007_v56, %v3313_v24 }
 0x27e   :  { %v2630_v13 = vsel %vm2629_vm8, %v9073_v54, %v2628_v2  ;;  %v2180_v30 = vmul.f32 %v5469_v43, %v9038_v57  ;;  %v3385_v1 = vmul.f32 %v9007_v56, %v3314_v52  ;;  %5486 = vrsqrt.f32 %v9106_v60 }
 0x27f   :  { %v5475_v58 = vpop.eup %5474  ;;  %v2877_v10 = vadd.f32 1e-10, %v2647_v42  ;;  %vm2650_vm12 = vcmp.eq.f32.partialorder %v9104_v19, inf  ;;  %v3448_v23 = vmul.f32 %v3384_v33, %v3313_v24  ;;  %5488 = vrsqrt.f32 %v9172_v59  ;;  %v10311_v24 = vld [vmem:[#allocation77_spill] sm:$0xff] }
 0x280   :  { %v2199_v22 = vsel %vm2197_vm1, %v2198_v46, %v2196_v28  ;;  %vm2652_vm13 = vcmp.eq.f32.partialorder %v9104_v19, 0.0  ;;  %v3449_v35 = vmul.f32 %v3385_v1, %v3314_v52  ;;  %v3187_v40 = vmul.f32 %v9098_v38, %v10309_v29  ;;  %v10312_v52 = vld [vmem:[#allocation80_spill] sm:$0xff]  ;;  %v9309_v28 = vpop.xlane.xlu1 %1842 }
 0x281   :  { %v5477_v15 = vpop.eup %5476  ;;  %5490 = vrcp.f32 %v2808_v8  ;;  %v2633_v51 = vsel %vm2631_vm9, %v2632_v31, %v2630_v13  ;;  %v3580_v36 = vsel %vm1486_vm2, %v3448_v23, 0.0  ;;  %v3251_v61 = vmul.f32 %v9065_v18, %v10310_v55 }
 0x282   :  { %v9282_v46 = vpop.eup %5478  ;;  %v2182_v38 = vsel %vm2181_vm10, %v9038_v57, %v2180_v30  ;;  %v2649_v3 = vmul.f32 %v5475_v58, %v9104_v19  ;;  %3581 = vadd.xlane.f32.xlu0 %v3580_v36  ;;  %v3583_v47 = vsel %vm1486_vm2, %v3449_v35, 0.0  ;;  %5492 = vrsqrt.f32 %v9145_v39  ;;  %v9311_v57 = vpop.xlane.xlu0 %1644 }
 0x283   :  { %v9290_v54 = vpop.eup %5480  ;;  %5494 = vrcp.f32 %v2877_v10  ;;  %v2813_v12 = vadd.f32 1e-10, %v2199_v22  ;;  %v2653_v2 = vand.u32 2147483648, %v9104_v19  ;;  %3584 = vadd.xlane.f32.xlu1 %v3583_v47  ;;  %v3315_v18 = vsub.f32 %v3187_v40, %v3251_v61 }
 0x284   :  { %v2201_v45 = vmul.f32 %v5477_v15, %v9075_v14  ;;  %vm2202_vm14 = vcmp.eq.f32.partialorder %v9075_v14, inf  ;;  %vm2204_vm15 = vcmp.eq.f32.partialorder %v9075_v14, 0.0  ;;  %5496 = vrsqrt.f32 %v9207_v48  ;;  %v10314_v15 = vld [vmem:[#allocation84_spill] sm:$0xff] }
 0x285   :  { %v5483_v50 = vpop.eup %5482  ;;  %v2875_v63 = vadd.f32 1e-10, %v2633_v51  ;;  %v2185_v0 = vsel %vm2183_vm11, %v2184_v16, %v2182_v38  ;;  %v2205_v43 = vand.u32 2147483648, %v9075_v14  ;;  %v3386_v31 = vmul.f32 %v9007_v56, %v3315_v18 }
 0x286   :  { %v2651_v11 = vsel %vm2650_vm12, %v9104_v19, %v2649_v3  ;;  %v3189_v42 = vmul.f32 %v9057_v4, %v10311_v24  ;;  %v3253_v8 = vmul.f32 %v9045_v25, %v10312_v52  ;;  %5498 = vrsqrt.f32 %v9174_v32  ;;  %v10313_v19 = vld [vmem:[#allocation81_spill] sm:$0xff]  ;;  %v9342_v3 = vpop.xlane.xlu0 %1653 }
 0x287   :  { %5500 = vrcp.f32 %v2813_v12  ;;  %vm2636_vm0 = vcmp.eq.f32.partialorder %v9143_v26, inf  ;;  %vm2638_vm3 = vcmp.eq.f32.partialorder %v9143_v26, 0.0  ;;  %v3450_v16 = vmul.f32 %v3386_v31, %v3315_v18 }
 0x288   :  { %v9315_v33 = vpop.eup %5484  ;;  %v2811_v13 = vadd.f32 1e-10, %v2185_v0  ;;  %v2203_v4 = vsel %vm2202_vm14, %v9075_v14, %v2201_v45  ;;  %v2635_v25 = vmul.f32 %v5483_v50, %v9143_v26  ;;  %v3317_v30 = vsub.f32 %v3189_v42, %v3253_v8  ;;  %v9340_v14 = vpop.xlane.xlu1 %1836  ;;  %v10316_v8 = vld [vmem:[#allocation83_spill] sm:$0xff] }
 0x289   :  { %v2654_v1 = vsel %vm2652_vm13, %v2653_v2, %v2651_v11  ;;  %v2639_v58 = vand.u32 2147483648, %v9143_v26  ;;  %v3586_v10 = vsel %vm1486_vm2, %v3450_v16, 0.0  ;;  %5502 = vrsqrt.f32 %v9241_v44  ;;  %v10315_v11 = vld [vmem:[#allocation79_spill] sm:$0xff] }
 0x28a   :  { %5504 = vrcp.f32 %v2875_v63  ;;  %vm2188_vm4 = vcmp.eq.f32.partialorder %v9106_v60, inf  ;;  %v2191_v23 = vand.u32 2147483648, %v9106_v60  ;;  %3587 = vadd.xlane.f32.xlu0 %v3586_v10  ;;  %v3388_v22 = vmul.f32 %v9007_v56, %v3317_v30 }
 0x28b   :  { %v5487_v35 = vpop.eup %5486  ;;  %v2206_v29 = vsel %vm2204_vm15, %v2205_v43, %v2203_v4  ;;  %vm2671_vm5 = vcmp.eq.f32.partialorder %v9172_v59, inf  ;;  %v3188_v40 = vmul.f32 %v9176_v49, %v10313_v19  ;;  %v3252_v51 = vmul.f32 %v9164_v41, %v10314_v15 }
 0x28c   :  { %v5489_v36 = vpop.eup %5488  ;;  %5506 = vrcp.f32 %v2811_v13  ;;  %v2878_v55 = vadd.f32 1e-10, %v2654_v1  ;;  %v2637_v61 = vsel %vm2636_vm0, %v9143_v26, %v2635_v25  ;;  %vm2190_vm6 = vcmp.eq.f32.partialorder %v9106_v60, 0.0 }
 0x28d   :  { %v3452_v38 = vmul.f32 %v3388_v22, %v3317_v30  ;;  %vm2673_vm7 = vcmp.eq.f32.partialorder %v9172_v59, 0.0  ;;  %v2674_v49 = vand.u32 2147483648, %v9172_v59  ;;  %v3316_v47 = vsub.f32 %v3188_v40, %v3252_v51  ;;  %v9375_v30 = vpop.xlane.xlu0 %1647 }
 0x28e   :  { %5508 = vrsqrt.f32 %v9209_v7  ;;  %v9347_v41 = vpop.eup %5490  ;;  %v2814_v12 = vadd.f32 1e-10, %v2206_v29  ;;  %v2187_v2 = vmul.f32 %v5487_v35, %v9106_v60  ;;  %vm2223_vm8 = vcmp.eq.f32.partialorder %v9145_v39, inf }
 0x28f   :  { %v3592_v18 = vsel %vm1486_vm2, %v3452_v38, 0.0  ;;  %v5493_v45 = vpop.eup %5492  ;;  %v2640_v50 = vsel %vm2638_vm3, %v2639_v58, %v2637_v61  ;;  %v2670_v63 = vmul.f32 %v5489_v36, %v9172_v59  ;;  %vm2225_vm1 = vcmp.eq.f32.partialorder %v9145_v39, 0.0 }
 0x290   :  { %3593 = vadd.xlane.f32.xlu0 %v3592_v18  ;;  %v3387_v0 = vmul.f32 %v9007_v56, %v3316_v47  ;;  %5510 = vrsqrt.f32 %v9273_v20  ;;  %v9358_v43 = vpop.eup %5494  ;;  %v2226_v31 = vand.u32 2147483648, %v9145_v39  ;;  %vm2657_vm9 = vcmp.eq.f32.partialorder %v9207_v48, inf  ;;  %v10318_v18 = vld [vmem:[#allocation90_spill] sm:$0xff] }
 0x291   :  { %5512 = vrcp.f32 %v2878_v55  ;;  %v3190_v26 = vmul.f32 %v9135_v5, %v10315_v11  ;;  %v5497_v24 = vpop.eup %5496  ;;  %v2222_v42 = vmul.f32 %v5493_v45, %v9145_v39  ;;  %vm2659_vm10 = vcmp.eq.f32.partialorder %v9207_v48, 0.0  ;;  %v9373_v5 = vpop.xlane.xlu1 %1845 }
 0x292   :  { %v3451_v52 = vmul.f32 %v3387_v0, %v3316_v47  ;;  %v3254_v16 = vmul.f32 %v9128_v53, %v10316_v8  ;;  %5514 = vrsqrt.f32 %v9243_v34  ;;  %v2876_v13 = vadd.f32 1e-10, %v2640_v50  ;;  %v10317_v47 = vld [vmem:[#allocation86_spill] sm:$0xff] }
 0x293   :  { %5516 = vrcp.f32 %v2814_v12  ;;  %v2189_v4 = vsel %vm2188_vm4, %v9106_v60, %v2187_v2  ;;  %v2660_v25 = vand.u32 2147483648, %v9207_v48  ;;  %v5499_v1 = vpop.eup %5498  ;;  %v2672_v58 = vsel %vm2671_vm5, %v9172_v59, %v2670_v63  ;;  %v9414_v63 = vpop.xlane.xlu0 %1662 }
 0x294   :  { %v2656_v53 = vmul.f32 %v5497_v24, %v9207_v48  ;;  %v3589_v10 = vsel %vm1486_vm2, %v3451_v52, 0.0  ;;  %v3318_v22 = vsub.f32 %v3190_v26, %v3254_v16  ;;  %v9382_v35 = vpop.eup %5500  ;;  %vm2209_vm11 = vcmp.eq.f32.partialorder %v9174_v32, inf }
 0x295   :  { %vm2211_vm12 = vcmp.eq.f32.partialorder %v9174_v32, 0.0  ;;  %v2212_v29 = vand.u32 2147483648, %v9174_v32  ;;  %3590 = vadd.xlane.f32.xlu1 %v3589_v10  ;;  %5518 = vrsqrt.f32 %v9309_v28  ;;  %v2192_v19 = vsel %vm2190_vm6, %v2191_v23, %v2189_v4  ;;  %v9412_v50 = vpop.xlane.xlu1 %1839  ;;  %v10319_v10 = vld [vmem:[#allocation85_spill] sm:$0xff] }
 0x296   :  { %v2224_v40 = vsel %vm2223_vm8, %v9145_v39, %v2222_v42  ;;  %v2208_v15 = vmul.f32 %v5499_v1, %v9174_v32  ;;  %v3389_v51 = vmul.f32 %v9007_v56, %v3318_v22  ;;  %v5503_v36 = vpop.eup %5502  ;;  %5520 = vrcp.f32 %v2876_v13 }
 0x297   :  { %v2675_v55 = vsel %vm2673_vm7, %v2674_v49, %v2672_v58  ;;  %vm2678_vm13 = vcmp.eq.f32.partialorder %v9241_v44, inf  ;;  %vm2680_vm14 = vcmp.eq.f32.partialorder %v9241_v44, 0.0  ;;  %v9399_v61 = vpop.eup %5504  ;;  %v2658_v60 = vsel %vm2657_vm9, %v9207_v48, %v2656_v53 }
 0x298   :  { %v2677_v23 = vmul.f32 %v5503_v36, %v9241_v44  ;;  %v3453_v38 = vmul.f32 %v3389_v51, %v3318_v22  ;;  %v3191_v12 = vmul.f32 %v9253_v27, %v10317_v47  ;;  %v2812_v2 = vadd.f32 1e-10, %v2192_v19 }
 0x299   :  { %v2227_v59 = vsel %vm2225_vm1, %v2226_v31, %v2224_v40  ;;  %v2681_v49 = vand.u32 2147483648, %v9241_v44  ;;  %v3255_v45 = vmul.f32 %v9247_v21, %v10318_v18  ;;  %v9416_v0 = vpop.eup %5506  ;;  %v2881_v11 = vadd.f32 1e-10, %v2675_v55  ;;  %v9448_v40 = vpop.xlane.xlu1 %1854 }
 0x29a   :  { %v2210_v27 = vsel %vm2209_vm11, %v9174_v32, %v2208_v15  ;;  %v3595_v26 = vsel %vm1486_vm2, %v3453_v38, 0.0  ;;  %5522 = vrsqrt.f32 %v9275_v37  ;;  %v2661_v31 = vsel %vm2659_vm10, %v2660_v25, %v2658_v60  ;;  %v9450_v15 = vpop.xlane.xlu0 %1656 }
 0x29b   :  { %v5509_v39 = vpop.eup %5508  ;;  %vm2230_vm15 = vcmp.eq.f32.partialorder %v9209_v7, inf  ;;  %v2233_v21 = vand.u32 2147483648, %v9209_v7  ;;  %3596 = vadd.xlane.f32.xlu1 %v3595_v26  ;;  %v3319_v24 = vsub.f32 %v3191_v12, %v3255_v45  ;;  %v2817_v42 = vadd.f32 1e-10, %v2227_v59 }
 0x29c   :  { %v2679_v52 = vsel %vm2678_vm13, %v9241_v44, %v2677_v23  ;;  %vm2232_vm0 = vcmp.eq.f32.partialorder %v9209_v7, 0.0  ;;  %vm2664_vm3 = vcmp.eq.f32.partialorder %v9273_v20, inf  ;;  %5524 = vrsqrt.f32 %v9340_v14 }
 0x29d   :  { %v5511_v8 = vpop.eup %5510  ;;  %5526 = vrcp.f32 %v2812_v2  ;;  %v2213_v48 = vsel %vm2211_vm12, %v2212_v29, %v2210_v27  ;;  %v2667_v16 = vand.u32 2147483648, %v9273_v20  ;;  %v3390_v13 = vmul.f32 %v9007_v56, %v3319_v24  ;;  %v10320_v29 = vld [vmem:[#allocation88_spill] sm:$0xff]  ;;  %v10321_v27 = vld [vmem:[#allocation89_spill] sm:$0xff] }
 0x29e   :  { %v9437_v4 = vpop.eup %5512  ;;  %5528 = vrcp.f32 %v2881_v11  ;;  %v2879_v25 = vadd.f32 1e-10, %v2661_v31  ;;  %v2229_v1 = vmul.f32 %v5509_v39, %v9209_v7  ;;  %vm2666_vm4 = vcmp.eq.f32.partialorder %v9273_v20, 0.0  ;;  %v10322_v39 = vld [vmem:[#allocation92_spill] sm:$0xff] }
 0x29f   :  { %vm2216_vm5 = vcmp.eq.f32.partialorder %v9243_v34, inf  ;;  %v5515_v58 = vpop.eup %5514  ;;  %v2682_v53 = vsel %vm2680_vm14, %v2681_v49, %v2679_v52  ;;  %v3454_v32 = vmul.f32 %v3390_v13, %v3319_v24  ;;  %v3193_v22 = vmul.f32 %v9232_v6, %v10319_v10  ;;  %v9482_v24 = vpop.xlane.xlu1 %1848 }
 0x2a0   :  { %v3257_v19 = vmul.f32 %v9196_v62, %v10320_v29  ;;  %v9452_v51 = vpop.eup %5516  ;;  %5530 = vrcp.f32 %v2817_v42  ;;  %v2815_v36 = vadd.f32 1e-10, %v2213_v48  ;;  %v2663_v55 = vmul.f32 %v5511_v8, %v9273_v20  ;;  %v9484_v42 = vpop.xlane.xlu0 %1857 }
 0x2a1   :  { %vm2218_vm6 = vcmp.eq.f32.partialorder %v9243_v34, 0.0  ;;  %v2219_v44 = vand.u32 2147483648, %v9243_v34  ;;  %vm2699_vm7 = vcmp.eq.f32.partialorder %v9309_v28, inf  ;;  %v3598_v6 = vsel %vm1486_vm2, %v3454_v32, 0.0 }
 0x2a2   :  { %v3321_v60 = vsub.f32 %v3193_v22, %v3257_v19  ;;  %5532 = vrsqrt.f32 %v9311_v57  ;;  %v5519_v62 = vpop.eup %5518  ;;  %v2882_v23 = vadd.f32 1e-10, %v2682_v53  ;;  %v2231_v38 = vsel %vm2230_vm15, %v9209_v7, %v2229_v1  ;;  %3599 = vadd.xlane.f32.xlu0 %v3598_v6  ;;  %v10323_v22 = vld [vmem:[#allocation87_spill] sm:$0xff] }
 0x2a3   :  { %v2215_v47 = vmul.f32 %v5515_v58, %v9243_v34  ;;  %vm2701_vm8 = vcmp.eq.f32.partialorder %v9309_v28, 0.0  ;;  %5534 = vrsqrt.f32 %v9373_v5  ;;  %v2702_v12 = vand.u32 2147483648, %v9309_v28  ;;  %v9469_v59 = vpop.eup %5520  ;;  %v10324_v19 = vld [vmem:[#allocation91_spill] sm:$0xff] }
 0x2a4   :  { %5536 = vrcp.f32 %v2879_v25  ;;  %vm2251_vm1 = vcmp.eq.f32.partialorder %v9275_v37, inf  ;;  %v3392_v2 = vmul.f32 %v9007_v56, %v3321_v60  ;;  %v2665_v49 = vsel %vm2664_vm3, %v9273_v20, %v2663_v55 }
 0x2a5   :  { %5538 = vrcp.f32 %v2815_v36  ;;  %v2698_v18 = vmul.f32 %v5519_v62, %v9309_v28  ;;  %vm2253_vm9 = vcmp.eq.f32.partialorder %v9275_v37, 0.0  ;;  %v2234_v45 = vsel %vm2232_vm0, %v2233_v21, %v2231_v38  ;;  %v9522_v62 = vpop.xlane.xlu0 %1659 }
 0x2a6   :  { %v3456_v11 = vmul.f32 %v3392_v2, %v3321_v60  ;;  %v3192_v26 = vmul.f32 %v9347_v41, %v10321_v27  ;;  %v3256_v31 = vmul.f32 %v9315_v33, %v10322_v39  ;;  %5540 = vrcp.f32 %v2882_v23  ;;  %v9520_v60 = vpop.xlane.xlu1 %1665  ;;  %v10325_v27 = vld [vmem:[#allocation94_spill] sm:$0xff] }
 0x2a7   :  { %v2217_v52 = vsel %vm2216_vm5, %v9243_v34, %v2215_v47  ;;  %v2254_v8 = vand.u32 2147483648, %v9275_v37  ;;  %vm2685_vm10 = vcmp.eq.f32.partialorder %v9340_v14, inf  ;;  %v5523_v7 = vpop.eup %5522  ;;  %v2668_v41 = vsel %vm2666_vm4, %v2667_v16, %v2665_v49 }
 0x2a8   :  { %v3604_v21 = vsel %vm1486_vm2, %v3456_v11, 0.0  ;;  %v3320_v33 = vsub.f32 %v3192_v26, %v3256_v31  ;;  %5542 = vrsqrt.f32 %v9342_v3  ;;  %v2818_v48 = vadd.f32 1e-10, %v2234_v45 }
 0x2a9   :  { %v2700_v13 = vsel %vm2699_vm7, %v9309_v28, %v2698_v18  ;;  %v2250_v25 = vmul.f32 %v5523_v7, %v9275_v37  ;;  %3605 = vadd.xlane.f32.xlu0 %v3604_v21  ;;  %5544 = vrsqrt.f32 %v9412_v50  ;;  %v5525_v1 = vpop.eup %5524  ;;  %v2220_v20 = vsel %vm2218_vm6, %v2219_v44, %v2217_v52 }
 0x2aa   :  { %vm2687_vm11 = vcmp.eq.f32.partialorder %v9340_v14, 0.0  ;;  %v2688_v16 = vand.u32 2147483648, %v9340_v14  ;;  %v3391_v58 = vmul.f32 %v9007_v56, %v3320_v33  ;;  %v9505_v53 = vpop.eup %5526  ;;  %v2880_v32 = vadd.f32 1e-10, %v2668_v41 }
 0x2ab   :  { %v2252_v10 = vsel %vm2251_vm1, %v9275_v37, %v2250_v25  ;;  %v3194_v29 = vmul.f32 %v9290_v54, %v10323_v22  ;;  %v3258_v34 = vmul.f32 %v9282_v46, %v10324_v19  ;;  %v9514_v36 = vpop.eup %5528  ;;  %v2703_v55 = vsel %vm2701_vm8, %v2702_v12, %v2700_v13  ;;  %v10327_v19 = vld [vmem:[#allocation93_spill] sm:$0xff] }
 0x2ac   :  { %v2684_v44 = vmul.f32 %v5525_v1, %v9340_v14  ;;  %v3455_v6 = vmul.f32 %v3391_v58, %v3320_v33  ;;  %5546 = vrsqrt.f32 %v9375_v30  ;;  %v2816_v23 = vadd.f32 1e-10, %v2220_v20  ;;  %v9553_v33 = vpop.xlane.xlu1 %1851 }
 0x2ad   :  { %5548 = vrcp.f32 %v2818_v48  ;;  %vm2237_vm12 = vcmp.eq.f32.partialorder %v9311_v57, inf  ;;  %v3322_v54 = vsub.f32 %v3194_v29, %v3258_v34  ;;  %v9525_v46 = vpop.eup %5530  ;;  %v2255_v28 = vsel %vm2253_vm9, %v2254_v8, %v2252_v10 }
 0x2ae   :  { %vm2239_vm13 = vcmp.eq.f32.partialorder %v9311_v57, 0.0  ;;  %v2240_v38 = vand.u32 2147483648, %v9311_v57  ;;  %v3601_v47 = vsel %vm1486_vm2, %v3455_v6, 0.0  ;;  %5550 = vrsqrt.f32 %v9448_v40 }
 0x2af   :  { %v5533_v12 = vpop.eup %5532  ;;  %5552 = vrcp.f32 %v2880_v32  ;;  %v2885_v2 = vadd.f32 1e-10, %v2703_v55  ;;  %vm2706_vm14 = vcmp.eq.f32.partialorder %v9373_v5, inf  ;;  %3602 = vadd.xlane.f32.xlu1 %v3601_v47  ;;  %v3393_v49 = vmul.f32 %v9007_v56, %v3322_v54  ;;  %v10326_v56 = vld [vmem:[#allocation98_spill] sm:$0xff] }
 0x2b0   :  { %v5535_v18 = vpop.eup %5534  ;;  %v2686_v37 = vsel %vm2685_vm10, %v9340_v14, %v2684_v44  ;;  %v2236_v45 = vmul.f32 %v5533_v12, %v9311_v57  ;;  %vm2708_vm15 = vcmp.eq.f32.partialorder %v9373_v5, 0.0  ;;  %v2709_v11 = vand.u32 2147483648, %v9373_v5  ;;  %v9593_v47 = vpop.xlane.xlu1 %1866 }
 0x2b1   :  { %v3195_v26 = vmul.f32 %v9416_v0, %v10325_v27  ;;  %v9543_v39 = vpop.eup %5536  ;;  %5554 = vrcp.f32 %v2816_v23  ;;  %v2821_v31 = vadd.f32 1e-10, %v2255_v28  ;;  %v3457_v52 = vmul.f32 %v3393_v49, %v3322_v54  ;;  %v9555_v0 = vpop.xlane.xlu0 %1674  ;;  %v10328_v23 = vld [vmem:[#allocation96_spill] sm:$0xff] }
 0x2b2   :  { %v3259_v8 = vmul.f32 %v9399_v61, %v10326_v56  ;;  %v9547_v7 = vpop.eup %5538  ;;  %v2705_v41 = vmul.f32 %v5535_v18, %v9373_v5  ;;  %vm2258_vm0 = vcmp.eq.f32.partialorder %v9342_v3, inf  ;;  %v2261_v21 = vand.u32 2147483648, %v9342_v3 }
 0x2b3   :  { %5556 = vrsqrt.f32 %v9414_v63  ;;  %v2689_v48 = vsel %vm2687_vm11, %v2688_v16, %v2686_v37  ;;  %vm2260_vm3 = vcmp.eq.f32.partialorder %v9342_v3, 0.0  ;;  %v3607_v61 = vsel %vm1486_vm2, %v3457_v52, 0.0  ;;  %v9561_v25 = vpop.eup %5540  ;;  %v9574_v16 = vld [vmem:[%s9928_s3] ss:$0 sm:$0xff]  ;;  %s5660_s3 = smov [#allocation2]  }
 0x2b4   :  { %5558 = vrcp.f32 %v2885_v2  ;;  %v3323_v13 = vsub.f32 %v3195_v26, %v3259_v8  ;;  %v2238_v1 = vsel %vm2237_vm12, %v9311_v57, %v2236_v45  ;;  %vm2692_vm4 = vcmp.eq.f32.partialorder %v9412_v50, inf  ;;  %3608 = vadd.xlane.f32.xlu1 %v3607_v61  ;;  %s4391_s16 = sshll.u32 %s5660_s3, 4  ;;  %s4392_s16 = int_to_ptr.vmem [resolvable:$true] %s4391_s16 }
 0x2b5   :  { %vm2694_vm5 = vcmp.eq.f32.partialorder %v9412_v50, 0.0  ;;  %5560 = vrsqrt.f32 %v9482_v24  ;;  %v5543_v14 = vpop.eup %5542  ;;  %v2695_v20 = vand.u32 2147483648, %v9412_v50  ;;  %vm2244_vm6 = vcmp.eq.f32.partialorder %v9375_v30, inf  ;;  %s5638_s17 = scalar_lea.vmem %s4392_s16, 16  ;;  %s5642_s18 = scalar_lea.vmem %s4392_s16, 32 }
 0x2b6   :  { %5562 = vrcp.f32 %v2821_v31  ;;  %v3394_v58 = vmul.f32 %v9574_v16, %v3323_v13  ;;  %v5545_v32 = vpop.eup %5544  ;;  %v2883_v10 = vadd.f32 1e-10, %v2689_v48  ;;  %v2707_v22 = vsel %vm2706_vm14, %v9373_v5, %v2705_v41  ;;  %p5639_p0 = scmp.ne.s32.totalorder %s4392_s16, %s5638_s17  ;;  %p5643_p1 = scmp.lt.s32.totalorder %s4392_s16, %s4392_s16 }
 0x2b7   :  { %v2257_v29 = vmul.f32 %v5543_v14, %v9342_v3  ;;  %vm2246_vm7 = vcmp.eq.f32.partialorder %v9375_v30, 0.0  ;;  %v3197_v34 = vmul.f32 %v9382_v35, %v10327_v19  ;;  %v2241_v55 = vsel %vm2239_vm13, %v2240_v38, %v2238_v1  ;;  %v9595_v35 = vpop.xlane.xlu0 %1668  ;;  %v10330_v14 = vld [vmem:[#allocation100_spill] sm:$0xff]  ;;  %p5644_p2 = scmp.lt.s32.totalorder %s5642_s18, %s5638_s17 }
 0x2b8   :  { %v2691_v44 = vmul.f32 %v5545_v32, %v9412_v50  ;;  %v3458_v6 = vmul.f32 %v3394_v58, %v3323_v13  ;;  %v3261_v54 = vmul.f32 %v9358_v43, %v10328_v23  ;;  %v2247_v28 = vand.u32 2147483648, %v9375_v30 }
 0x2b9   :  { %vm2727_vm8 = vcmp.eq.f32.partialorder %v9448_v40, inf  ;;  %vm2729_vm1 = vcmp.eq.f32.partialorder %v9448_v40, 0.0  ;;  %5564 = vrsqrt.f32 %v9450_v15  ;;  %v5547_v57 = vpop.eup %5546  ;;  %v2710_v38 = vsel %vm2708_vm15, %v2709_v11, %v2707_v22  ;;  %p5645_p3 = por %p5644_p2, %p5643_p1 }
 0x2ba   :  { %v2259_v43 = vsel %vm2258_vm0, %v9342_v3, %v2257_v29  ;;  %v3610_v12 = vsel %vm1486_vm2, %v3458_v6, 0.0  ;;  %v3325_v2 = vsub.f32 %v3197_v34, %v3261_v54  ;;  %v9603_v49 = vpop.eup %5548  ;;  %5566 = vrcp.f32 %v2883_v10 }
 0x2bb   :  { %v2819_v18 = vadd.f32 1e-10, %v2241_v55  ;;  %v2693_v37 = vsel %vm2692_vm4, %v9412_v50, %v2691_v44  ;;  %v2243_v45 = vmul.f32 %v5547_v57, %v9375_v30  ;;  %3611 = vadd.xlane.f32.xlu0 %v3610_v12  ;;  %v5551_v5 = vpop.eup %5550  ;;  %v2730_v11 = vand.u32 2147483648, %v9448_v40  ;;  %v9638_v58 = vpop.xlane.xlu0 %1863  ;;  %p5646_p4 = pnand %p5645_p3, %p5639_p0 }
 0x2bc   :  { %vm2279_vm9 = vcmp.eq.f32.partialorder %v9414_v63, inf  ;;  %v3396_v27 = vmul.f32 %v9574_v16, %v3325_v2  ;;  %5568 = vrsqrt.f32 %v9520_v60  ;;  %v9613_v26 = vpop.eup %5552  ;;  %v2886_v31 = vadd.f32 1e-10, %v2710_v38  ;;  %v10331_v38 = vld [vmem:[#allocation95_spill] sm:$0xff] }
 0x2bd   :  { %v2262_v52 = vsel %vm2260_vm3, %v2261_v21, %v2259_v43  ;;  %v2245_v56 = vsel %vm2244_vm6, %v9375_v30, %v2243_v45  ;;  %v2726_v8 = vmul.f32 %v5551_v5, %v9448_v40  ;;  %vm2281_vm10 = vcmp.eq.f32.partialorder %v9414_v63, 0.0  ;;  %v10329_v21 = vld [vmem:[#allocation97_spill] sm:$0xff] }
 0x2be   :  { %v2696_v41 = vsel %vm2694_vm5, %v2695_v20, %v2693_v37  ;;  %v2282_v48 = vand.u32 2147483648, %v9414_v63  ;;  %vm2713_vm11 = vcmp.eq.f32.partialorder %v9482_v24, inf  ;;  %v3460_v61 = vmul.f32 %v3396_v27, %v3325_v2  ;;  %v9626_v13 = vpop.eup %5554  ;;  %v9636_v20 = vpop.xlane.xlu1 %1860  ;;  %v10332_v27 = vld [vmem:[#allocation99_spill] sm:$0xff] }
 0x2bf   :  { %5570 = vrcp.f32 %v2819_v18  ;;  %v2728_v3 = vsel %vm2727_vm8, %v9448_v40, %v2726_v8  ;;  %vm2715_vm12 = vcmp.eq.f32.partialorder %v9482_v24, 0.0  ;;  %v3196_v1 = vmul.f32 %v9505_v53, %v10329_v21  ;;  %v9669_v45 = vpop.xlane.xlu0 %3485 }
 0x2c0   :  { %v3260_v50 = vmul.f32 %v9469_v59, %v10330_v14  ;;  %v5557_v32 = vpop.eup %5556  ;;  %v2822_v10 = vadd.f32 1e-10, %v2262_v52  ;;  %v2248_v22 = vsel %vm2246_vm7, %v2247_v28, %v2245_v56  ;;  %v3616_v29 = vsel %vm1486_vm2, %v3460_v61, 0.0 }
 0x2c1   :  { %5572 = vrsqrt.f32 %v9484_v42  ;;  %v9644_v19 = vpop.eup %5558  ;;  %v2884_v53 = vadd.f32 1e-10, %v2696_v41  ;;  %v2278_v34 = vmul.f32 %v5557_v32, %v9414_v63  ;;  %3617 = vadd.xlane.f32.xlu0 %v3616_v29  ;;  %v2731_v44 = vsel %vm2729_vm1, %v2730_v11, %v2728_v3  ;;  %v10334_v32 = vld [vmem:[#allocation106_spill] sm:$0xff] }
 0x2c2   :  { %5574 = vrcp.f32 %v2886_v31  ;;  %v3324_v59 = vsub.f32 %v3196_v1, %v3260_v50  ;;  %v5561_v55 = vpop.eup %5560  ;;  %v2716_v6 = vand.u32 2147483648, %v9482_v24  ;;  %vm2265_vm13 = vcmp.eq.f32.partialorder %v9450_v15, inf  ;;  %v9667_v37 = vpop.xlane.xlu1 %1671  ;;  %v10333_v1 = vld [vmem:[#allocation102_spill] sm:$0xff] }
 0x2c3   :  { %5576 = vrsqrt.f32 %v9553_v33  ;;  %v9652_v30 = vpop.eup %5562  ;;  %v2820_v23 = vadd.f32 1e-10, %v2248_v22  ;;  %v2280_v54 = vsel %vm2279_vm9, %v9414_v63, %v2278_v34  ;;  %v2712_v28 = vmul.f32 %v5561_v55, %v9482_v24  ;;  %v9701_v29 = vpop.xlane.xlu0 %3479 }
 0x2c4   :  { %v3395_v57 = vmul.f32 %v9574_v16, %v3324_v59  ;;  %5578 = vrcp.f32 %v2822_v10  ;;  %vm2267_vm14 = vcmp.eq.f32.partialorder %v9450_v15, 0.0  ;;  %v2268_v40 = vand.u32 2147483648, %v9450_v15 }
 0x2c5   :  { %vm2286_vm15 = vcmp.eq.f32.partialorder %v9520_v60, inf  ;;  %v3198_v43 = vmul.f32 %v9452_v51, %v10331_v38  ;;  %5580 = vrcp.f32 %v2884_v53  ;;  %v2889_v12 = vadd.f32 1e-10, %v2731_v44  ;;  %v10335_v38 = vld [vmem:[#allocation101_spill] sm:$0xff] }
 0x2c6   :  { %v2714_v2 = vsel %vm2713_vm11, %v9482_v24, %v2712_v28  ;;  %v3459_v18 = vmul.f32 %v3395_v57, %v3324_v59  ;;  %v5565_v5 = vpop.eup %5564  ;;  %v2283_v11 = vsel %vm2281_vm10, %v2282_v48, %v2280_v54  ;;  %vm2288_vm0 = vcmp.eq.f32.partialorder %v9520_v60, 0.0  ;;  %v9699_v22 = vpop.xlane.xlu1 %3488 }
 0x2c7   :  { %v3262_v51 = vmul.f32 %v9437_v4, %v10332_v27  ;;  %5582 = vrsqrt.f32 %v9522_v62  ;;  %v2264_v31 = vmul.f32 %v5565_v5, %v9450_v15  ;;  %v2289_v52 = vand.u32 2147483648, %v9520_v60  ;;  %v9680_v8 = vpop.eup %5566 }
 0x2c8   :  { %5584 = vrcp.f32 %v2820_v23  ;;  %v3613_v56 = vsel %vm1486_vm2, %v3459_v18, 0.0  ;;  %v2717_v63 = vsel %vm2715_vm12, %v2716_v6, %v2714_v2  ;;  %vm2734_vm3 = vcmp.eq.f32.partialorder %v9484_v42, inf  ;;  %v10336_v18 = vld [vmem:[#allocation104_spill] sm:$0xff] }
 0x2c9   :  { %3614 = vadd.xlane.f32.xlu1 %v3613_v56  ;;  %v3326_v41 = vsub.f32 %v3198_v43, %v3262_v51  ;;  %5586 = vrsqrt.f32 %v9593_v47  ;;  %v5569_v4 = vpop.eup %5568  ;;  %v2825_v48 = vadd.f32 1e-10, %v2283_v11  ;;  %vm2736_vm4 = vcmp.eq.f32.partialorder %v9484_v42, 0.0 }
 0x2ca   :  { %5588 = vrcp.f32 %v2889_v12  ;;  %v2737_v61 = vand.u32 2147483648, %v9484_v42  ;;  %v2266_v3 = vsel %vm2265_vm13, %v9450_v15, %v2264_v31  ;;  %v2285_v24 = vmul.f32 %v5569_v4, %v9520_v60 }
 0x2cb   :  { %v3397_v21 = vmul.f32 %v9574_v16, %v3326_v41  ;;  %v3199_v14 = vmul.f32 %v9547_v7, %v10333_v1  ;;  %v2887_v50 = vadd.f32 1e-10, %v2717_v63  ;;  %vm2720_vm5 = vcmp.eq.f32.partialorder %v9553_v33, inf }
 0x2cc   :  { %v3263_v10 = vmul.f32 %v9543_v39, %v10334_v32  ;;  %5590 = vrsqrt.f32 %v9555_v0  ;;  %v9703_v53 = vpop.eup %5570  ;;  %v2287_v34 = vsel %vm2286_vm15, %v9520_v60, %v2285_v24  ;;  %vm2722_vm6 = vcmp.eq.f32.partialorder %v9553_v33, 0.0 }
 0x2cd   :  { %v2723_v7 = vand.u32 2147483648, %v9553_v33  ;;  %v3461_v59 = vmul.f32 %v3397_v21, %v3326_v41  ;;  %5592 = vrcp.f32 %v2825_v48  ;;  %v2269_v39 = vsel %vm2267_vm14, %v2268_v40, %v2266_v3 }
 0x2ce   :  { %v5573_v55 = vpop.eup %5572  ;;  %vm2272_vm7 = vcmp.eq.f32.partialorder %v9522_v62, inf  ;;  %v2275_v44 = vand.u32 2147483648, %v9522_v62  ;;  %v3327_v6 = vsub.f32 %v3199_v14, %v3263_v10  ;;  %v2290_v54 = vsel %vm2288_vm0, %v2289_v52, %v2287_v34  ;;  %v9740_v52 = vpop.xlane.xlu0 %3497 }
 0x2cf   :  { %v9714_v23 = vpop.eup %5574  ;;  %v2733_v28 = vmul.f32 %v5573_v55, %v9484_v42  ;;  %v3619_v57 = vsel %vm1486_vm2, %v3461_v59, 0.0  ;;  %vm2274_vm8 = vcmp.eq.f32.partialorder %v9522_v62, 0.0  ;;  %5594 = vrsqrt.f32 %v9636_v20 }
 0x2d0   :  { %v5577_v15 = vpop.eup %5576  ;;  %5596 = vrcp.f32 %v2887_v50  ;;  %3620 = vadd.xlane.f32.xlu1 %v3619_v57  ;;  %vm2755_vm1 = vcmp.eq.f32.partialorder %v9593_v47, inf  ;;  %v3398_v40 = vmul.f32 %v9574_v16, %v3327_v6  ;;  %v3201_v43 = vmul.f32 %v9525_v46, %v10335_v38  ;;  %v9738_v46 = vpop.xlane.xlu1 %3482  ;;  %v10337_v50 = vld [vmem:[#allocation105_spill] sm:$0xff] }
 0x2d1   :  { %v2823_v60 = vadd.f32 1e-10, %v2269_v39  ;;  %v2735_v12 = vsel %vm2734_vm3, %v9484_v42, %v2733_v28  ;;  %v2719_v2 = vmul.f32 %v5577_v15, %v9553_v33  ;;  %vm2757_vm9 = vcmp.eq.f32.partialorder %v9593_v47, 0.0  ;;  %v9733_v11 = vpop.eup %5578 }
 0x2d2   :  { %v3265_v5 = vmul.f32 %v9514_v36, %v10336_v18  ;;  %v2826_v27 = vadd.f32 1e-10, %v2290_v54  ;;  %v2738_v51 = vsel %vm2736_vm4, %v2737_v61, %v2735_v12  ;;  %v3462_v31 = vmul.f32 %v3398_v40, %v3327_v6  ;;  %v9742_v56 = vpop.eup %5580  ;;  %v10338_v54 = vld [vmem:[#allocation108_spill] sm:$0xff]  ;;  %v9778_v57 = vpop.xlane.xlu0 %3491  ;;  %v10339_v18 = vld [vmem:[#allocation103_spill] sm:$0xff] }
 0x2d3   :  { %5598 = vrsqrt.f32 %v9595_v35  ;;  %v2721_v63 = vsel %vm2720_vm5, %v9553_v33, %v2719_v2  ;;  %v2758_v36 = vand.u32 2147483648, %v9593_v47  ;;  %vm2307_vm10 = vcmp.eq.f32.partialorder %v9555_v0, inf }
 0x2d4   :  { %v3329_v41 = vsub.f32 %v3201_v43, %v3265_v5  ;;  %v5583_v42 = vpop.eup %5582  ;;  %v2724_v4 = vsel %vm2722_vm6, %v2723_v7, %v2721_v63  ;;  %v3622_v48 = vsel %vm1486_vm2, %v3462_v31, 0.0  ;;  %vm2309_vm11 = vcmp.eq.f32.partialorder %v9555_v0, 0.0  ;;  %v9776_v28 = vpop.xlane.xlu1 %1677 }
 0x2d5   :  { %v2310_v61 = vand.u32 2147483648, %v9555_v0  ;;  %5600 = vrsqrt.f32 %v9667_v37  ;;  %v9755_v3 = vpop.eup %5584  ;;  %v2890_v24 = vadd.f32 1e-10, %v2738_v51  ;;  %v2271_v21 = vmul.f32 %v5583_v42, %v9522_v62  ;;  %3623 = vadd.xlane.f32.xlu0 %v3622_v48  ;;  %v10342_v42 = vld [vmem:[#allocation114_spill] sm:$0xff] }
 0x2d6   :  { %5602 = vrcp.f32 %v2823_v60  ;;  %v3400_v1 = vmul.f32 %v9574_v16, %v3329_v41  ;;  %v5587_v14 = vpop.eup %5586  ;;  %vm2741_vm12 = vcmp.eq.f32.partialorder %v9636_v20, inf  ;;  %v2744_v33 = vand.u32 2147483648, %v9636_v20 }
 0x2d7   :  { %5604 = vrcp.f32 %v2826_v27  ;;  %v3200_v32 = vmul.f32 %v9626_v13, %v10337_v50  ;;  %v9763_v10 = vpop.eup %5588  ;;  %v2888_v34 = vadd.f32 1e-10, %v2724_v4  ;;  %v2273_v7 = vsel %vm2272_vm7, %v9522_v62, %v2271_v21  ;;  %v10340_v27 = vld [vmem:[#allocation107_spill] sm:$0xff] }
 0x2d8   :  { %v2754_v59 = vmul.f32 %v5587_v14, %v9593_v47  ;;  %vm2743_vm13 = vcmp.eq.f32.partialorder %v9636_v20, 0.0  ;;  %v3464_v55 = vmul.f32 %v3400_v1, %v3329_v41  ;;  %v2276_v39 = vsel %vm2274_vm8, %v2275_v44, %v2273_v7 }
 0x2d9   :  { %v2296_v6 = vand.u32 2147483648, %v9595_v35  ;;  %v3264_v13 = vmul.f32 %v9613_v26, %v10338_v54  ;;  %5606 = vrsqrt.f32 %v9638_v58  ;;  %v5591_v15 = vpop.eup %5590  ;;  %v2824_v40 = vadd.f32 1e-10, %v2276_v39 }
 0x2da   :  { %5608 = vrcp.f32 %v2890_v24  ;;  %v2756_v38 = vsel %vm2755_vm1, %v9593_v47, %v2754_v59  ;;  %v3628_v62 = vsel %vm1486_vm2, %v3464_v55, 0.0  ;;  %vm2293_vm14 = vcmp.eq.f32.partialorder %v9595_v35, inf  ;;  %v9790_v12 = vpop.eup %5592 }
 0x2db   :  { %v2759_v26 = vsel %vm2757_vm9, %v2758_v36, %v2756_v38  ;;  %v2306_v44 = vmul.f32 %v5591_v15, %v9555_v0  ;;  %3629 = vadd.xlane.f32.xlu0 %v3628_v62  ;;  %vm2295_vm15 = vcmp.eq.f32.partialorder %v9595_v35, 0.0  ;;  %v2303_v43 = vand.u32 2147483648, %v9667_v37  ;;  %v10341_v36 = vld [vmem:[#allocation110_spill] sm:$0xff] }
 0x2dc   :  { %v3328_v60 = vsub.f32 %v3200_v32, %v3264_v13  ;;  %5610 = vrcp.f32 %v2888_v34  ;;  %v2893_v2 = vadd.f32 1e-10, %v2759_v26  ;;  %vm2300_vm0 = vcmp.eq.f32.partialorder %v9667_v37, inf  ;;  %v5595_v51 = vpop.eup %5594  ;;  %v3495_v32 = vpop.xlane.xlu1 %3494 }
 0x2dd   :  { %v3202_v5 = vmul.f32 %v9603_v49, %v10339_v18  ;;  %v3266_v47 = vmul.f32 %v9561_v25, %v10340_v27  ;;  %v2308_v31 = vsel %vm2307_vm10, %v9555_v0, %v2306_v44  ;;  %vm2302_vm3 = vcmp.eq.f32.partialorder %v9667_v37, 0.0  ;;  %v9806_v48 = vpop.eup %5596 }
 0x2de   :  { %v3399_v63 = vmul.f32 %v9574_v16, %v3328_v60  ;;  %v3203_v41 = vmul.f32 %v9703_v53, %v10341_v36  ;;  %v3267_v4 = vmul.f32 %v9680_v8, %v10342_v42  ;;  %5612 = vrcp.f32 %v2824_v40  ;;  %v9813_v53 = vpop.xlane.xlu0 %1869  ;;  %v10346_v42 = vld [vmem:[#allocation116_spill] sm:$0xff] }
 0x2df   :  { %v2311_v25 = vsel %vm2309_vm11, %v2310_v61, %v2308_v31  ;;  %v2740_v49 = vmul.f32 %v5595_v51, %v9636_v20  ;;  %v3330_v24 = vsub.f32 %v3202_v5, %v3266_v47  ;;  %v3670_v50 = vadd.f32 %v9738_v46, %v9701_v29  ;;  %v10344_v51 = vld [vmem:[#allocation112_spill] sm:$0xff] }
 0x2e0   :  { %v2829_v21 = vadd.f32 1e-10, %v2311_v25  ;;  %v3463_v1 = vmul.f32 %v3399_v63, %v3328_v60  ;;  %v3331_v14 = vsub.f32 %v3203_v41, %v3267_v4  ;;  %v5599_v34 = vpop.eup %5598  ;;  %vm2748_vm4 = vcmp.eq.f32.partialorder %v9638_v58, inf  ;;  %v3501_v5 = vpop.xlane.xlu1 %3500  ;;  %v10345_v63 = vld [vmem:[#allocation113_spill] sm:$0xff]  ;;  %v10347_v25 = vld [vmem:[#allocation111_spill] sm:$0xff] }
 0x2e1   :  { %v2742_v8 = vsel %vm2741_vm12, %v9636_v20, %v2740_v49  ;;  %v3401_v0 = vmul.f32 %v9574_v16, %v3330_v24  ;;  %5614 = vrsqrt.f32 %v9776_v28  ;;  %v2292_v29 = vmul.f32 %v5599_v34, %v9595_v35 }
 0x2e2   :  { %5616 = vrcp.f32 %v2893_v2  ;;  %v2745_v61 = vsel %vm2743_vm13, %v2744_v33, %v2742_v8  ;;  %v3625_v46 = vsel %vm1486_vm2, %v3463_v1, 0.0  ;;  %v5601_v7 = vpop.eup %5600  ;;  %v3402_v39 = vmul.f32 %v9574_v16, %v3331_v14  ;;  %v10343_v2 = vld [vmem:[#allocation109_spill] sm:$0xff]  ;;  %v3504_v27 = vpop.xlane.xlu0 %3503 }
 0x2e3   :  { %v2891_v59 = vadd.f32 1e-10, %v2745_v61  ;;  %3626 = vadd.xlane.f32.xlu1 %v3625_v46  ;;  %v3465_v55 = vmul.f32 %v3401_v0, %v3330_v24  ;;  %v3671_v54 = vadd.f32 %v3670_v50, %v9669_v45  ;;  %v5603_v13 = vpop.eup %5602  ;;  %5618 = vrcp.f32 %v2829_v21  ;;  %v10348_v24 = vld [vmem:[#allocation115_spill] sm:$0xff] }
 0x2e4   :  { %v2294_v15 = vsel %vm2293_vm14, %v9595_v35, %v2292_v29  ;;  %v2299_v20 = vmul.f32 %v5601_v7, %v9667_v37  ;;  %v2751_v33 = vand.u32 2147483648, %v9638_v58  ;;  %v9832_v40 = vpop.eup %5604  ;;  %v3466_v62 = vmul.f32 %v3402_v39, %v3331_v14 }
 0x2e5   :  { %5620 = vrcp.f32 %v2891_v59  ;;  %v2297_v38 = vsel %vm2295_vm15, %v2296_v6, %v2294_v15  ;;  %v3631_v45 = vsel %vm1486_vm2, %v3465_v55, 0.0  ;;  %v3672_v60 = vadd.f32 %v3671_v54, %v9699_v22  ;;  %v10350_v55 = vld [vmem:[#allocation122_spill] sm:$0xff] }
 0x2e6   :  { %v2827_v26 = vadd.f32 1e-10, %v2297_v38  ;;  %v2301_v44 = vsel %vm2300_vm0, %v9667_v37, %v2299_v20  ;;  %v3205_v18 = vmul.f32 %v9652_v30, %v10343_v2  ;;  %v5607_v47 = vpop.eup %5606  ;;  %v3634_v6 = vsel %vm1486_vm2, %v3466_v62, 0.0  ;;  %v3510_v0 = vpop.xlane.xlu0 %3509  ;;  %v10351_v62 = vld [vmem:[#allocation117_spill] sm:$0xff] }
 0x2e7   :  { %v2304_v35 = vsel %vm2302_vm3, %v2303_v43, %v2301_v44  ;;  %3632 = vadd.xlane.f32.xlu1 %v3631_v45  ;;  %v3269_v31 = vmul.f32 %v9644_v19, %v10344_v51  ;;  %v3204_v36 = vmul.f32 %v9755_v3, %v10345_v63  ;;  %v5609_v41 = vpop.eup %5608  ;;  %v2747_v30 = vmul.f32 %v5607_v47, %v9638_v58  ;;  %v10352_v44 = vld [vmem:[#allocation120_spill] sm:$0xff] }
 0x2e8   :  { %5622 = vrcp.f32 %v2827_v26  ;;  %v2828_v22 = vadd.f32 1e-10, %v2304_v35  ;;  %3635 = vadd.xlane.f32.xlu0 %v3634_v6  ;;  %v3268_v4 = vmul.f32 %v9742_v56, %v10346_v42  ;;  %v3673_v43 = vadd.f32 %v3672_v60, %v9778_v57 }
 0x2e9   :  { %v3333_v37 = vsub.f32 %v3205_v18, %v3269_v31  ;;  %v3206_v49 = vmul.f32 %v9733_v11, %v10347_v25  ;;  %v3270_v19 = vmul.f32 %v9714_v23, %v10348_v24  ;;  %v5611_v21 = vpop.eup %5610  ;;  %v2749_v3 = vsel %vm2748_vm4, %v9638_v58, %v2747_v30  ;;  %v3507_v23 = vpop.xlane.xlu1 %3506  ;;  %v10353_v18 = vld [vmem:[#allocation121_spill] sm:$0xff]  ;;  %v10354_v31 = vld [vmem:[#allocation124_spill] sm:$0xff]  ;;  %v10355_v30 = vld [vmem:[#allocation119_spill] sm:$0xff] }
 0x2ea   :  { %5624 = vrcp.f32 %v2828_v22  ;;  %vm2750_vm5 = vcmp.eq.f32.partialorder %v9638_v58, 0.0  ;;  %v3332_v1 = vsub.f32 %v3204_v36, %v3268_v4  ;;  %v3674_v50 = vadd.f32 %v3673_v43, %v3495_v32  ;;  %v10349_v32 = vld [vmem:[#allocation118_spill] sm:$0xff]  ;;  %v3516_v63 = vpop.xlane.xlu0 %3515  ;;  %v10356_v4 = vld [vmem:[#allocation123_spill] sm:$0xff] }
 0x2eb   :  { %v2752_v14 = vsel %vm2750_vm5, %v2751_v33, %v2749_v3  ;;  %v3404_v56 = vmul.f32 %v9574_v16, %v3333_v37  ;;  %v3334_v57 = vsub.f32 %v3206_v49, %v3270_v19  ;;  %v5613_v34 = vpop.eup %5612  ;;  %5626 = vrsqrt.f32 %v9813_v53  ;;  %v10357_v3 = vld [vmem:[#allocation131_spill] sm:$0xff] }
 0x2ec   :  { %v2892_v8 = vadd.f32 1e-10, %v2752_v14  ;;  %v3403_v11 = vmul.f32 %v9574_v16, %v3332_v1  ;;  %vm2314_vm6 = vcmp.eq.f32.partialorder %v9776_v28, inf  ;;  %v3675_v29 = vadd.f32 %v3674_v50, %v9740_v52 }
 0x2ed   :  { %v3468_v61 = vmul.f32 %v3404_v56, %v3333_v37  ;;  %v3405_v58 = vmul.f32 %v9574_v16, %v3334_v57  ;;  %v3207_v59 = vmul.f32 %v5603_v13, %v10349_v32  ;;  %v3271_v39 = vmul.f32 %v9806_v48, %v10350_v55 }
 0x2ee   :  { %v5615_v46 = vpop.eup %5614  ;;  %5628 = vrcp.f32 %v2892_v8  ;;  %v3467_v7 = vmul.f32 %v3403_v11, %v3332_v1  ;;  %v3676_v33 = vadd.f32 %v3675_v29, %v3501_v5  ;;  %v3209_v26 = vmul.f32 %v9790_v12, %v10351_v62  ;;  %v3513_v12 = vpop.xlane.xlu1 %3512  ;;  %v10358_v1 = vld [vmem:[#allocation125_spill] sm:$0xff] }
 0x2ef   :  { %v5617_v54 = vpop.eup %5616  ;;  %v2313_v15 = vmul.f32 %v5615_v46, %v9776_v28  ;;  %v3640_v20 = vsel %vm1486_vm2, %v3468_v61, 0.0  ;;  %v3469_v38 = vmul.f32 %v3405_v58, %v3334_v57  ;;  %v3335_v45 = vsub.f32 %v3207_v59, %v3271_v39  ;;  %v10359_v57 = vld [vmem:[#allocation126_spill] sm:$0xff]  ;;  %v3522_v58 = vpop.xlane.xlu0 %3521 }
 0x2f0   :  { %3641 = vadd.xlane.f32.xlu0 %v3640_v20  ;;  %v3637_v52 = vsel %vm1486_vm2, %v3467_v7, 0.0  ;;  %v3273_v13 = vmul.f32 %v9763_v10, %v10352_v44  ;;  %v5619_v60 = vpop.eup %5618  ;;  %vm2316_vm7 = vcmp.eq.f32.partialorder %v9776_v28, 0.0  ;;  %v3677_v2 = vadd.f32 %v3676_v33, %v3504_v27 }
 0x2f1   :  { %v2315_v48 = vsel %vm2314_vm6, %v9776_v28, %v2313_v15  ;;  %3638 = vadd.xlane.f32.xlu1 %v3637_v52  ;;  %v3208_v5 = vmul.f32 %v5613_v34, %v10353_v18  ;;  %v2317_v35 = vand.u32 2147483648, %v9776_v28  ;;  %v3406_v6 = vmul.f32 %v9574_v16, %v3335_v45 }
 0x2f2   :  { %v5621_v47 = vpop.eup %5620  ;;  %v3337_v51 = vsub.f32 %v3209_v26, %v3273_v13  ;;  %v3272_v10 = vmul.f32 %v5611_v21, %v10354_v31  ;;  %v3643_v36 = vsel %vm1486_vm2, %v3469_v38, 0.0  ;;  %v3678_v22 = vadd.f32 %v3677_v2, %v3507_v23  ;;  %v10360_v23 = vld [vmem:[#allocation127_spill] sm:$0xff]  ;;  %v10361_v13 = vld [vmem:[#allocation132_spill] sm:$0xff] }
 0x2f3   :  { %v3210_v42 = vmul.f32 %v9832_v40, %v10355_v30  ;;  %v3274_v27 = vmul.f32 %v5609_v41, %v10356_v4  ;;  %v2318_v37 = vsel %vm2316_vm7, %v2317_v35, %v2315_v48  ;;  %v3470_v43 = vmul.f32 %v3406_v6, %v3335_v45  ;;  %v10362_v48 = vld [vmem:[#allocation133_spill] sm:$0xff] }
 0x2f4   :  { %v3408_v25 = vmul.f32 %v9574_v16, %v3337_v51  ;;  %v3336_v28 = vsub.f32 %v3208_v5, %v3272_v10  ;;  %v3679_v24 = vadd.f32 %v3678_v22, %v3510_v0  ;;  %v3275_v21 = vmul.f32 %v5621_v47, %v10357_v3  ;;  %v3519_v0 = vpop.xlane.xlu1 %3518 }
 0x2f5   :  { %v5623_v49 = vpop.eup %5622  ;;  %3644 = vadd.xlane.f32.xlu1 %v3643_v36  ;;  %v3338_v19 = vsub.f32 %v3210_v42, %v3274_v27  ;;  %v3213_v14 = vmul.f32 %v5619_v60, %v10358_v1  ;;  %v3646_v56 = vsel %vm1486_vm2, %v3470_v43, 0.0  ;;  %v3277_v61 = vmul.f32 %v5617_v54, %v10360_v23 }
 0x2f6   :  { %v3472_v50 = vmul.f32 %v3408_v25, %v3337_v51  ;;  %v3407_v40 = vmul.f32 %v9574_v16, %v3336_v28  ;;  %v3211_v41 = vmul.f32 %v5623_v49, %v10359_v57  ;;  %3647 = vadd.xlane.f32.xlu0 %v3646_v56  ;;  %v3680_v8 = vadd.f32 %v3679_v24, %v3513_v12  ;;  %v3528_v51 = vpop.xlane.xlu0 %3527 }
 0x2f7   :  { %v5625_v34 = vpop.eup %5624  ;;  %v3409_v11 = vmul.f32 %v9574_v16, %v3338_v19  ;;  %vm2762_vm8 = vcmp.eq.f32.partialorder %v9813_v53, inf  ;;  %v2830_v32 = vadd.f32 1e-10, %v2318_v37  ;;  %v3341_v39 = vsub.f32 %v3213_v14, %v3277_v61 }
 0x2f8   :  { %v3471_v29 = vmul.f32 %v3407_v40, %v3336_v28  ;;  %v3339_v46 = vsub.f32 %v3211_v41, %v3275_v21  ;;  %v5627_v7 = vpop.eup %5626  ;;  %v3681_v59 = vadd.f32 %v3680_v8, %v3516_v63  ;;  %v3652_v20 = vsel %vm1486_vm2, %v3472_v50, 0.0  ;;  %v3525_v6 = vpop.xlane.xlu1 %3524 }
 0x2f9   :  { %v3473_v55 = vmul.f32 %v3409_v11, %v3338_v19  ;;  %v2761_v15 = vmul.f32 %v5627_v7, %v9813_v53  ;;  %vm2764_vm1 = vcmp.eq.f32.partialorder %v9813_v53, 0.0  ;;  %v2765_v52 = vand.u32 2147483648, %v9813_v53 }
 0x2fa   :  { %v3649_v33 = vsel %vm1486_vm2, %v3471_v29, 0.0  ;;  %v3410_v38 = vmul.f32 %v9574_v16, %v3339_v46  ;;  %3653 = vadd.xlane.f32.xlu0 %v3652_v20  ;;  %v3682_v45 = vadd.f32 %v3681_v59, %v3519_v0  ;;  %v3412_v62 = vmul.f32 %v9574_v16, %v3341_v39  ;;  %v3534_v37 = vpop.xlane.xlu0 %3533 }
 0x2fb   :  { %v5629_v54 = vpop.eup %5628  ;;  %3650 = vadd.xlane.f32.xlu1 %v3649_v33  ;;  %v2763_v26 = vsel %vm2762_vm8, %v9813_v53, %v2761_v15  ;;  %v3212_v60 = vmul.f32 %v5625_v34, %v10361_v13  ;;  %5630 = vrcp.f32 %v2830_v32  ;;  %v3655_v5 = vsel %vm1486_vm2, %v3473_v55, 0.0 }
 0x2fc   :  { %v3474_v44 = vmul.f32 %v3410_v38, %v3339_v46  ;;  %v3276_v2 = vmul.f32 %v5629_v54, %v10362_v48  ;;  %v2766_v18 = vsel %vm2764_vm1, %v2765_v52, %v2763_v26  ;;  %v3683_v47 = vadd.f32 %v3682_v45, %v3522_v58  ;;  %v3531_v42 = vpop.xlane.xlu1 %3530 }
 0x2fd   :  { %v2894_v35 = vadd.f32 1e-10, %v2766_v18  ;;  %v3476_v31 = vmul.f32 %v3412_v62, %v3341_v39 }
 0x2fe   :  { %v3658_v12 = vsel %vm1486_vm2, %v3474_v44, 0.0  ;;  %v3340_v10 = vsub.f32 %v3212_v60, %v3276_v2  ;;  %v3684_v63 = vadd.f32 %v3683_v47, %v3525_v6  ;;  %v3540_v19 = vpop.xlane.xlu0 %3539 }
 0x2ff   :  { %3656 = vadd.xlane.f32.xlu1 %v3655_v5  ;;  %3659 = vadd.xlane.f32.xlu0 %v3658_v12  ;;  %5632 = vrcp.f32 %v2894_v35  ;;  %v3664_v22 = vsel %vm1486_vm2, %v3476_v31, 0.0 }
 0x300   :  { %v3411_v53 = vmul.f32 %v9574_v16, %v3340_v10  ;;  %v3685_v36 = vadd.f32 %v3684_v63, %v3528_v51  ;;  %v3537_v28 = vpop.xlane.xlu1 %3536 }
 0x302   :  { %v3475_v30 = vmul.f32 %v3411_v53, %v3340_v10  ;;  %v3686_v27 = vadd.f32 %v3685_v36, %v3531_v42  ;;  %v3546_v41 = vpop.xlane.xlu0 %3545 }
 0x303   :  { %3665 = vadd.xlane.f32.xlu0 %v3664_v22 }
 0x304   :  { %v3661_v4 = vsel %vm1486_vm2, %v3475_v30, 0.0  ;;  %v3687_v43 = vadd.f32 %v3686_v27, %v3534_v37  ;;  %v3543_v50 = vpop.xlane.xlu1 %3542 }
 0x305   :  { %3662 = vadd.xlane.f32.xlu1 %v3661_v4 }
 0x306   :  { %v3688_v24 = vadd.f32 %v3687_v43, %v3537_v28  ;;  %v3552_v61 = vpop.xlane.xlu0 %3551 }
 0x308   :  { %v5631_v25 = vpop.eup %5630  ;;  %v3689_v14 = vadd.f32 %v3688_v24, %v3540_v19  ;;  %v3549_v11 = vpop.xlane.xlu1 %3548 }
 0x309   :  { %v3214_v3 = vmul.f32 %v5631_v25, %v10233_v17 }
 0x30a   :  { %v3690_v57 = vadd.f32 %v3689_v14, %v3543_v50  ;;  %v3558_v58 = vpop.xlane.xlu0 %3557 }
 0x30c   :  { %v5633_v49 = vpop.eup %5632  ;;  %v3691_v8 = vadd.f32 %v3690_v57, %v3546_v41  ;;  %v3555_v29 = vpop.xlane.xlu1 %3554 }
 0x30d   :  { %v3278_v21 = vmul.f32 %v5633_v49, %v8253_v9 }
 0x30e   :  { %v3692_v23 = vadd.f32 %v3691_v8, %v3549_v11  ;;  %v3564_v32 = vpop.xlane.xlu0 %3563 }
 0x30f   :  { %v3342_v1 = vsub.f32 %v3214_v3, %v3278_v21 }
 0x310   :  { %v3693_v0 = vadd.f32 %v3692_v23, %v3552_v61  ;;  %v3561_v46 = vpop.xlane.xlu1 %3560 }
 0x311   :  { %v3413_v56 = vmul.f32 %v9574_v16, %v3342_v1 }
 0x312   :  { %v3694_v17 = vadd.f32 %v3693_v0, %v3555_v29  ;;  %v3570_v39 = vpop.xlane.xlu0 %3569 }
 0x313   :  { %v3477_v40 = vmul.f32 %v3413_v56, %v3342_v1 }
 0x314   :  { %v3695_v9 = vadd.f32 %v3694_v17, %v3558_v58  ;;  %v3567_v59 = vpop.xlane.xlu1 %3566 }
 0x315   :  { %v3667_v34 = vsel %vm1486_vm2, %v3477_v40, 0.0  ;;  %vm3739_vm2 = vcmask 0  }
 0x316   :  { %3668 = vadd.xlane.f32.xlu1 %v3667_v34  ;;  %v3696_v7 = vadd.f32 %v3695_v9, %v3561_v46  ;;  %v3576_v38 = vpop.xlane.xlu0 %3575 }
 0x318   :  { %v3697_v16 = vadd.f32 %v3696_v7, %v3564_v32  ;;  %v3573_v20 = vpop.xlane.xlu1 %3572 }
 0x31a   :  { %v3698_v55 = vadd.f32 %v3697_v16, %v3567_v59  ;;  %v3582_v62 = vpop.xlane.xlu0 %3581 }
 0x31c   :  { %v3699_v15 = vadd.f32 %v3698_v55, %v3570_v39  ;;  %v3579_v52 = vpop.xlane.xlu1 %3578 }
 0x31e   :  { %v3700_v33 = vadd.f32 %v3699_v15, %v3573_v20  ;;  %v3588_v60 = vpop.xlane.xlu0 %3587 }
 0x320   :  { %v3701_v54 = vadd.f32 %v3700_v33, %v3576_v38  ;;  %v3585_v44 = vpop.xlane.xlu1 %3584 }
 0x322   :  { %v3702_v45 = vadd.f32 %v3701_v54, %v3579_v52  ;;  %v3594_v5 = vpop.xlane.xlu0 %3593 }
 0x324   :  { %v3703_v26 = vadd.f32 %v3702_v45, %v3582_v62  ;;  %v3591_v48 = vpop.xlane.xlu1 %3590 }
 0x326   :  { %v3704_v13 = vadd.f32 %v3703_v26, %v3585_v44 }
 0x328   :  { %v3705_v2 = vadd.f32 %v3704_v13, %v3588_v60  ;;  %v3597_v35 = vpop.xlane.xlu1 %3596 }
 0x32a   :  { %v3706_v18 = vadd.f32 %v3705_v2, %v3591_v48 }
 0x32b   :  { %v3600_v6 = vpop.xlane.xlu0 %3599 }
 0x32c   :  { %v3707_v47 = vadd.f32 %v3706_v18, %v3594_v5 }
 0x32e   :  { %v3708_v12 = vadd.f32 %v3707_v47, %v3597_v35 }
 0x330   :  { %v3709_v31 = vadd.f32 %v3708_v12, %v3600_v6 }
 0x332   :  { %v3606_v63 = vpop.xlane.xlu0 %3605 }
 0x338   :  { %v3603_v51 = vpop.xlane.xlu1 %3602 }
 0x339   :  { %v3710_v10 = vadd.f32 %v3709_v31, %v3603_v51 }
 0x33b   :  { %v3711_v53 = vadd.f32 %v3710_v10, %v3606_v63 }
 0x33d   :  { %v3609_v36 = vpop.xlane.xlu1 %3608 }
 0x33e   :  { %v3712_v30 = vadd.f32 %v3711_v53, %v3609_v36 }
 0x344   :  { %v3612_v22 = vpop.xlane.xlu0 %3611 }
 0x345   :  { %v3713_v4 = vadd.f32 %v3712_v30, %v3612_v22 }
 0x34a   :  { %v3618_v37 = vpop.xlane.xlu0 %3617 }
 0x352   :  { %v3615_v42 = vpop.xlane.xlu1 %3614 }
 0x353   :  { %v3714_v27 = vadd.f32 %v3713_v4, %v3615_v42 }
 0x355   :  { %v3715_v43 = vadd.f32 %v3714_v27, %v3618_v37 }
 0x359   :  { %v3621_v25 = vpop.xlane.xlu1 %3620 }
 0x35a   :  { %v3716_v49 = vadd.f32 %v3715_v43, %v3621_v25 }
 0x35e   :  { %v3624_v28 = vpop.xlane.xlu0 %3623 }
 0x35f   :  { %v3717_v19 = vadd.f32 %v3716_v49, %v3624_v28 }
 0x364   :  { %v3630_v21 = vpop.xlane.xlu0 %3629 }
 0x36c   :  { %v3627_v24 = vpop.xlane.xlu1 %3626 }
 0x36d   :  { %v3718_v3 = vadd.f32 %v3717_v19, %v3627_v24 }
 0x36f   :  { %v3719_v1 = vadd.f32 %v3718_v3, %v3630_v21 }
 0x370   :  { %v3633_v14 = vpop.xlane.xlu1 %3632 }
 0x371   :  { %v3636_v56 = vpop.xlane.xlu0 %3635  ;;  %v3720_v50 = vadd.f32 %v3719_v1, %v3633_v14 }
 0x373   :  { %v3721_v57 = vadd.f32 %v3720_v50, %v3636_v56 }
 0x379   :  { %v3642_v34 = vpop.xlane.xlu0 %3641 }
 0x37a   :  { %v3639_v40 = vpop.xlane.xlu1 %3638 }
 0x37b   :  { %v3722_v41 = vadd.f32 %v3721_v57, %v3639_v40 }
 0x37d   :  { %v3723_v8 = vadd.f32 %v3722_v41, %v3642_v34 }
 0x37e   :  { %v3645_v11 = vpop.xlane.xlu1 %3644 }
 0x37f   :  { %v3648_v23 = vpop.xlane.xlu0 %3647  ;;  %v3724_v61 = vadd.f32 %v3723_v8, %v3645_v11 }
 0x381   :  { %v3725_v29 = vadd.f32 %v3724_v61, %v3648_v23 }
 0x383   :  { %v3654_v58 = vpop.xlane.xlu0 %3653 }
 0x384   :  { %v3651_v0 = vpop.xlane.xlu1 %3650 }
 0x385   :  { %v3726_v17 = vadd.f32 %v3725_v29, %v3651_v0 }
 0x387   :  { %v3727_v9 = vadd.f32 %v3726_v17, %v3654_v58 }
 0x388   :  { %v3657_v46 = vpop.xlane.xlu1 %3656  ;;  %v3660_v7 = vpop.xlane.xlu0 %3659 }
 0x389   :  { %v3728_v32 = vadd.f32 %v3727_v9, %v3657_v46 }
 0x38b   :  { %v3729_v59 = vadd.f32 %v3728_v32, %v3660_v7 }
 0x38c   :  { %v3666_v39 = vpop.xlane.xlu0 %3665 }
 0x38e   :  { %v3663_v16 = vpop.xlane.xlu1 %3662 }
 0x38f   :  { %v3730_v55 = vadd.f32 %v3729_v59, %v3663_v16 }
 0x391   :  { %v3731_v15 = vadd.f32 %v3730_v55, %v3666_v39 }
 0x39f   :  { %v3669_v20 = vpop.xlane.xlu1 %3668 }
 0x3a0   :  { %v3732_v33 = vadd.f32 %v3731_v15, %v3669_v20 }
 0x3a2   :  { %v3733_v38 = vrot.slane %v3732_v33, 4 }
 0x3a4   :  { %v3734_v54 = vadd.f32 %v3733_v38, %v3732_v33 }
 0x3a6   :  { %v3735_v52 = vrot.slane %v3734_v54, 2 }
 0x3a8   :  { %v3736_v45 = vadd.f32 %v3735_v52, %v3734_v54 }
 0x3aa   :  { %v3737_v62 = vrot.slane %v3736_v45, 1 }
 0x3ac   :  { %v3738_v26 = vadd.f32 %v3737_v62, %v3736_v45 }
 0x3ae   :  { %3740 = vst.msk [vmem:[#allocation2] sm:$0x1] %vm3739_vm2, %v3738_v26 }
 0x3af   :  { %5649 = shalt.err (!%p5646_p4)
}
 0x3b0   :  { %4394 = dma.vmem_to_hbm [thread:$0]  %s4392_s16, 16, %s9930_s5, [#allocation3]  }
 0x3b1   :  { %5658 = dma.done.wait [#allocation3], 16  }
 0x3b2   :  { %5659 = vsyncadd [#allocation3], 4294967280 }
 0x3b3   :  { %4400 = vsyncpa [#allocation3], 1 }

// kernel: lpips_loss.5
= control target key start
LH: loop header
LB: loop body
LE: loop exit
PB: predicated region body
PF: predicated region fallthrough
CT: control target
= control target key end

     0   :  { %s970_s0 = inlined_call_operand.vmem [shape: bf16[2,32,288], index: 0, kind: input, shape index: {}]   ;;  %s971_s1 = inlined_call_operand.vmem [shape: bf16[288,64], index: 1, kind: input, shape index: {}]   ;;  %s972_s2 = inlined_call_operand.vmem [shape: f32[1,64], index: 2, kind: input, shape index: {}]   ;;  %s973_s3 = inlined_call_operand.vmem [shape: f32[1,64], index: 3, kind: input, shape index: {}]   ;;  %s974_s4 = inlined_call_operand.hbm [shape: f32[1,1,1], index: 4, kind: output, shape index: {}]  }
   0x1   :  { %v685_v0 = vld [vmem:[%s971_s1 + $0x78] sm:$0xff]   ;;  %v687_v2 = vld [vmem:[%s971_s1 + $0x70] sm:$0xff]   ;;  %v689_v4 = vld [vmem:[%s971_s1 + $0x68] sm:$0xff]  }
   0x2   :  { %v686_v1 = vld [vmem:[%s971_s1 + $0x38] sm:$0xff]   ;;  %610 = vmatprep.subr.bf16.mxu0 %v685_v0  ;;  %668 = vmatprep.subr.bf16.mxu1 %v685_v0  ;;  %v688_v3 = vld [vmem:[%s971_s1 + $0x30] sm:$0xff]   ;;  %v690_v5 = vld [vmem:[%s971_s1 + $0x28] sm:$0xff]  }
   0x3   :  { %611 = vmatpush3.bf16.msra.mxu0 %v686_v1  ;;  %676 = vmatpush3.bf16.msra.mxu1 %v686_v1  ;;  %v691_v6 = vld [vmem:[%s971_s1 + $0x60] sm:$0xff]   ;;  %v693_v8 = vld [vmem:[%s971_s1 + $0x58] sm:$0xff]   ;;  %v695_v10 = vld [vmem:[%s971_s1 + $0x50] sm:$0xff]  }
   0x4   :  { %612 = vmatprep.subr.bf16.mxu0 %v687_v2  ;;  %669 = vmatprep.subr.bf16.mxu1 %v687_v2  ;;  %v692_v7 = vld [vmem:[%s971_s1 + $0x20] sm:$0xff]   ;;  %v694_v9 = vld [vmem:[%s971_s1 + $0x18] sm:$0xff]   ;;  %v696_v13 = vld [vmem:[%s971_s1 + $0x10] sm:$0xff]  }
   0x5   :  { %v703_v11 = vld [vmem:[%s970_s0 + $0x4] ss:$12 sps:$4 sm:$0xff]   ;;  %v706_v12 = vld [vmem:[%s970_s0 + $0x4c] ss:$12 sps:$4 sm:$0xff]  }
   0x6   :  { %v697_v14 = vld [vmem:[%s971_s1 + $0x48] sm:$0xff]   ;;  %291 = vmatprep.mubr.bf16.mxu0 %v703_v11  ;;  %315 = vmatprep.mubr.bf16.mxu1 %v706_v12  ;;  %v699_v16 = vld [vmem:[%s971_s1 + $0x40] sm:$0xff]  }
   0x7   :  { %613 = vmatpush3.bf16.msra.mxu0 %v688_v3  ;;  %677 = vmatpush3.bf16.msra.mxu1 %v688_v3  ;;  %v698_v15 = vld [vmem:[%s971_s1 + $0x8] sm:$0xff]   ;;  %v700_v17 = vld [vmem:[%s971_s1] sm:$0xff]  }
   0x8   :  { %614 = vmatprep.subr.bf16.mxu0 %v689_v4  ;;  %670 = vmatprep.subr.bf16.mxu1 %v689_v4 }
   0xb   :  { %615 = vmatpush3.bf16.msra.mxu0 %v690_v5  ;;  %678 = vmatpush3.bf16.msra.mxu1 %v690_v5 }
   0xc   :  { %616 = vmatprep.subr.bf16.mxu0 %v691_v6  ;;  %671 = vmatprep.subr.bf16.mxu1 %v691_v6 }
   0xf   :  { %617 = vmatpush3.bf16.msra.mxu0 %v692_v7  ;;  %679 = vmatpush3.bf16.msra.mxu1 %v692_v7 }
  0x10   :  { %618 = vmatprep.subr.bf16.mxu0 %v693_v8  ;;  %672 = vmatprep.subr.bf16.mxu1 %v693_v8 }
  0x13   :  { %619 = vmatpush3.bf16.msra.mxu0 %v694_v9  ;;  %680 = vmatpush3.bf16.msra.mxu1 %v694_v9 }
  0x14   :  { %620 = vmatprep.subr.bf16.mxu0 %v695_v10  ;;  %673 = vmatprep.subr.bf16.mxu1 %v695_v10 }
  0x17   :  { %621 = vmatpush3.bf16.msra.mxu0 %v696_v13  ;;  %681 = vmatpush3.bf16.msra.mxu1 %v696_v13 }
  0x18   :  { %622 = vmatprep.subr.bf16.mxu0 %v697_v14  ;;  %674 = vmatprep.subr.bf16.mxu1 %v697_v14 }
  0x1b   :  { %623 = vmatpush3.bf16.msra.mxu0 %v698_v15  ;;  %682 = vmatpush3.bf16.msra.mxu1 %v698_v15 }
  0x1c   :  { %9 = vsyncpa [#allocation3], 0  ;;  %624 = vmatprep.subr.bf16.mxu0 %v699_v16  ;;  %675 = vmatprep.subr.bf16.mxu1 %v699_v16  ;;  %v707_v18 = vld [vmem:[%s971_s1 + $0x88] sm:$0xff]   ;;  %v708_v22 = vld [vmem:[%s971_s1 + $0x80] sm:$0xff]   ;;  %vm246_vm0 = vcmask 261120   ;;  %vm405_vm1 = vcmask 523264  }
  0x1d   :  { %v701_v19 = vld [vmem:[%s970_s0] ss:$12 sps:$4 sm:$0xff]   ;;  %v704_v20 = vld [vmem:[%s970_s0 + $0x48] ss:$12 sps:$4 sm:$0xff]   ;;  %v712_v24 = vld [vmem:[%s970_s0 + $0x18] ss:$12 sps:$4 sm:$0xff]  }
  0x1e   :  { %v709_v21 = vld [vmem:[%s970_s0 + $0x1c] ss:$12 sps:$4 sm:$0xff]   ;;  %v713_v25 = vld [vmem:[%s970_s0 + $0x20] ss:$12 sps:$4 sm:$0xff]   ;;  %v716_v27 = vld [vmem:[%s970_s0 + $0x38] ss:$12 sps:$4 sm:$0xff]  }
  0x1f   :  { %625 = vmatpush3.bf16.msra.mxu0 %v700_v17  ;;  %683 = vmatpush3.bf16.msra.mxu1 %v700_v17  ;;  %v711_v23 = vld [vmem:[%s970_s0 + $0x8] ss:$12 sps:$4 sm:$0xff]   ;;  %v717_v28 = vld [vmem:[%s970_s0 + $0x30] ss:$12 sps:$4 sm:$0xff]   ;;  %v574_v39 = vld [vmem:[%s972_s2] ss:$0 sm:$0xff] }
  0x20   :  { %656 = vmatprep.subr.bf16.mxu1 %v707_v18  ;;  %v714_v26 = vld [vmem:[%s970_s0 + $0x34] ss:$12 sps:$4 sm:$0xff]   ;;  %v718_v29 = vld [vmem:[%s970_s0 + $0x50] ss:$12 sps:$4 sm:$0xff]  }
  0x22   :  { %292 = vmatmul.mubr.bf16.vlgmr.msra.gmra.mxu0 %v701_v19  ;;  %316 = vmatmul.mubr.bf16.vlgmr.msra.gmra.mxu1 %v704_v20 }
  0x23   :  { %657 = vmatpush3.bf16.msra.mxu1 %v707_v18  ;;  %299 = vmatprep.mubr.bf16.mxu0 %v709_v21 }
  0x24   :  { %658 = vmatprep.subr.bf16.mxu1 %v708_v22  ;;  %660 = vmatprep.mubr.msk.bf16.mxu1 %vm246_vm0, %v711_v23 }
  0x27   :  { %659 = vmatpush3.bf16.msra.mxu1 %v708_v22 }
  0x2a   :  { %300 = vmatmul.mubr.bf16.gmra.mxu0 %v712_v24  ;;  %661 = vmatmul.mubr.msk.bf16.vlgmr.msra.gmra.mxu1 %vm246_vm0, %v713_v25 }
  0x2b   :  { %307 = vmatprep.mubr.bf16.mxu0 %v714_v26  ;;  %664 = vmatprep.mubr.msk.bf16.mxu1 %vm246_vm0, %v716_v27 }
  0x32   :  { %308 = vmatmul.mubr.bf16.gmra.mxu0 %v717_v28  ;;  %665 = vmatmul.mubr.msk.bf16.gmra.mxu1 %vm246_vm0, %v718_v29 }
  0xe2   :  { %v626_v30 = vpop.f32.mrf.mxu0  ;;  %v644_v31 = vpop.f32.mrf.mxu1 }
  0xe4   :  { %v627_v32 = vpop.f32.mrf.mxu0  ;;  %v645_v33 = vpop.f32.mrf.mxu1 }
  0xe5   :  { %v628_v36 = vadd.f32 %v627_v32, %v626_v30  ;;  %v646_v44 = vadd.f32 %v645_v33, %v644_v31 }
  0xe6   :  { %v629_v34 = vpop.f32.mrf.mxu0  ;;  %v647_v35 = vpop.f32.mrf.mxu1 }
  0xe7   :  { %v294_v43 = vadd.f32 %v628_v36, %v574_v39  ;;  %v318_v56 = vadd.f32 %v646_v44, %v574_v39 }
  0xe8   :  { %v630_v37 = vpop.f32.mrf.mxu0  ;;  %v648_v38 = vpop.f32.mrf.mxu1 }
  0xe9   :  { %v631_v42 = vadd.f32 %v630_v37, %v629_v34  ;;  %v649_v3 = vadd.f32 %v648_v38, %v647_v35 }
  0xea   :  { %v632_v40 = vpop.f32.mrf.mxu0  ;;  %v662_v41 = vpop.f32.mrf.mxu1 }
  0xeb   :  { %v297_v53 = vadd.f32 %v631_v42, %v574_v39  ;;  %v321_v17 = vadd.f32 %v649_v3, %v574_v39 }
  0xec   :  { %v633_v45 = vpop.f32.mrf.mxu0  ;;  %v358_v46 = vpop.f32.mrf.mxu1 }
  0xed   :  { %v634_v47 = vadd.f32 %v633_v45, %v632_v40  ;;  %v359_v48 = vadd.f32 %v358_v46, %v294_v43 }
  0xee   :  { %v635_v49 = vpop.f32.mrf.mxu0  ;;  %v663_v50 = vpop.f32.mrf.mxu1 }
  0xef   :  { %v302_v51 = vadd.f32 %v634_v47, %v574_v39  ;;  %v896_v52 = vmax.f32 %v359_v48, 0.0 }
  0xf0   :  { %v636_v54 = vpop.f32.mrf.mxu0  ;;  %v361_v55 = vpop.f32.mrf.mxu1 }
  0xf1   :  { %v367_v57 = vadd.f32 %v662_v41, %v302_v51  ;;  %v637_v58 = vadd.f32 %v636_v54, %v635_v49  ;;  %v362_v59 = vadd.f32 %v361_v55, %v297_v53  ;;  %v397_v60 = vmul.f32 %v896_v52, %v896_v52 }
  0xf2   :  { %v638_v61 = vpop.f32.mrf.mxu0  ;;  %v666_v62 = vpop.f32.mrf.mxu1 }
  0xf3   :  { %v305_v63 = vadd.f32 %v637_v58, %v574_v39  ;;  %v900_v0 = vmax.f32 %v362_v59, 0.0  ;;  %v383_v1 = vadd.f32 %v666_v62, %v318_v56  ;;  %v406_v2 = vsel %vm405_vm1, %v397_v60, 0.0 }
  0xf4   :  { %v639_v4 = vpop.f32.mrf.mxu0  ;;  %v374_v5 = vpop.f32.mrf.mxu1  ;;  %407 = vadd.xlane.f32.xlu0 %v406_v2  ;;  %v903_v6 = vmax.f32 %v367_v57, 0.0 }
  0xf5   :  { %v370_v7 = vadd.f32 %v663_v50, %v305_v63  ;;  %v905_v8 = vmax.f32 %v383_v1, 0.0  ;;  %v640_v9 = vadd.f32 %v639_v4, %v638_v61  ;;  %v398_v10 = vmul.f32 %v900_v0, %v900_v0 }
  0xf6   :  { %v641_v11 = vpop.f32.mrf.mxu0  ;;  %v667_v13 = vpop.f32.mrf.mxu1  ;;  %v399_v16 = vmul.f32 %v903_v6, %v903_v6 }
  0xf7   :  { %v310_v12 = vadd.f32 %v640_v9, %v574_v39  ;;  %v409_v14 = vsel %vm405_vm1, %v398_v10, 0.0  ;;  %v403_v15 = vmul.f32 %v905_v8, %v905_v8  ;;  %v914_v19 = vmax.f32 %v370_v7, 0.0 }
  0xf8   :  { %v642_v18 = vpop.f32.mrf.mxu0  ;;  %410 = vadd.xlane.f32.xlu0 %v409_v14  ;;  %v386_v23 = vadd.f32 %v667_v13, %v321_v17  ;;  %v412_v26 = vsel %vm405_vm1, %v399_v16, 0.0  ;;  %v377_v28 = vpop.f32.mrf.mxu1 }
  0xf9   :  { %v375_v20 = vadd.f32 %v374_v5, %v310_v12  ;;  %v643_v21 = vadd.f32 %v642_v18, %v641_v11  ;;  %v424_v22 = vsel %vm405_vm1, %v403_v15, 0.0  ;;  %v400_v27 = vmul.f32 %v914_v19, %v914_v19 }
  0xfa   :  { %425 = vadd.xlane.f32.xlu1 %v424_v22  ;;  %v924_v31 = vmax.f32 %v386_v23, 0.0 }
  0xfb   :  { %v917_v24 = vmax.f32 %v375_v20, 0.0  ;;  %v313_v25 = vadd.f32 %v643_v21, %v574_v39  ;;  %v415_v34 = vsel %vm405_vm1, %v400_v27, 0.0 }
  0xfc   :  { %413 = vadd.xlane.f32.xlu0 %v412_v26  ;;  %v404_v37 = vmul.f32 %v924_v31, %v924_v31 }
  0xfd   :  { %v378_v29 = vadd.f32 %v377_v28, %v313_v25  ;;  %v401_v30 = vmul.f32 %v917_v24, %v917_v24 }
  0xfe   :  { %v427_v38 = vsel %vm405_vm1, %v404_v37, 0.0 }
  0xff   :  { %v926_v32 = vmax.f32 %v378_v29, 0.0  ;;  %v418_v33 = vsel %vm405_vm1, %v401_v30, 0.0 }
 0x100   :  { %419 = vadd.xlane.f32.xlu1 %v418_v33  ;;  %416 = vadd.xlane.f32.xlu0 %v415_v34 }
 0x101   :  { %v402_v35 = vmul.f32 %v926_v32, %v926_v32 }
 0x103   :  { %v421_v36 = vsel %vm405_vm1, %v402_v35, 0.0 }
 0x104   :  { %422 = vadd.xlane.f32.xlu1 %v421_v36 }
 0x108   :  { %428 = vadd.xlane.f32.xlu1 %v427_v38 }
 0x17d   :  { %v408_v39 = vpop.xlane.xlu0 %407 }
 0x17e   :  { %719 = vrsqrt.f32 %v408_v39  ;;  %vm432_vm2 = vcmp.eq.f32.partialorder %v408_v39, inf  ;;  %vm434_vm3 = vcmp.eq.f32.partialorder %v408_v39, 0.0  ;;  %v435_v56 = vand.u32 2147483648, %v408_v39 }
 0x181   :  { %v411_v40 = vpop.xlane.xlu0 %410 }
 0x182   :  { %721 = vrsqrt.f32 %v411_v40  ;;  %vm439_vm5 = vcmp.eq.f32.partialorder %v411_v40, inf  ;;  %vm441_vm9 = vcmp.eq.f32.partialorder %v411_v40, 0.0  ;;  %v442_v4 = vand.u32 2147483648, %v411_v40 }
 0x183   :  { %v426_v41 = vpop.xlane.xlu1 %425 }
 0x184   :  { %723 = vrsqrt.f32 %v426_v41  ;;  %vm474_vm4 = vcmp.eq.f32.partialorder %v426_v41, inf  ;;  %v477_v57 = vand.u32 2147483648, %v426_v41  ;;  %vm476_vm6 = vcmp.eq.f32.partialorder %v426_v41, 0.0 }
 0x185   :  { %v414_v42 = vpop.xlane.xlu0 %413 }
 0x186   :  { %725 = vrsqrt.f32 %v414_v42  ;;  %vm446_vm7 = vcmp.eq.f32.partialorder %v414_v42, inf  ;;  %v449_v62 = vand.u32 2147483648, %v414_v42  ;;  %vm448_vm8 = vcmp.eq.f32.partialorder %v414_v42, 0.0 }
 0x189   :  { %v420_v43 = vpop.xlane.xlu1 %419  ;;  %v936_v44 = vpop.xlane.xlu0 %416 }
 0x18a   :  { %727 = vrsqrt.f32 %v420_v43  ;;  %vm460_vm10 = vcmp.eq.f32.partialorder %v420_v43, inf  ;;  %v463_v13 = vand.u32 2147483648, %v420_v43  ;;  %vm462_vm11 = vcmp.eq.f32.partialorder %v420_v43, 0.0 }
 0x18b   :  { %v720_v45 = vpop.eup %719  ;;  %729 = vrsqrt.f32 %v936_v44  ;;  %vm453_vm12 = vcmp.eq.f32.partialorder %v936_v44, inf  ;;  %v456_v20 = vand.u32 2147483648, %v936_v44  ;;  %vm455_vm13 = vcmp.eq.f32.partialorder %v936_v44, 0.0 }
 0x18c   :  { %v431_v47 = vmul.f32 %v720_v45, %v408_v39 }
 0x18d   :  { %v423_v46 = vpop.xlane.xlu1 %422 }
 0x18e   :  { %731 = vrsqrt.f32 %v423_v46  ;;  %v433_v51 = vsel %vm432_vm2, %v408_v39, %v431_v47  ;;  %vm467_vm14 = vcmp.eq.f32.partialorder %v423_v46, inf  ;;  %v470_v25 = vand.u32 2147483648, %v423_v46 }
 0x18f   :  { %v722_v48 = vpop.eup %721  ;;  %v436_v60 = vsel %vm434_vm3, %v435_v56, %v433_v51  ;;  %vm469_vm15 = vcmp.eq.f32.partialorder %v423_v46, 0.0  ;;  %vm558_vm3 = vcmask 0  }
 0x190   :  { %v438_v53 = vmul.f32 %v722_v48, %v411_v40  ;;  %v486_v9 = vadd.f32 1e-10, %v436_v60 }
 0x191   :  { %v724_v49 = vpop.eup %723  ;;  %v939_v50 = vpop.xlane.xlu1 %428 }
 0x192   :  { %v473_v54 = vmul.f32 %v724_v49, %v426_v41  ;;  %733 = vrsqrt.f32 %v939_v50  ;;  %v440_v63 = vsel %vm439_vm5, %v411_v40, %v438_v53  ;;  %vm481_vm0 = vcmp.eq.f32.partialorder %v939_v50, inf  ;;  %v609_v49 = vld [vmem:[%s973_s3] ss:$0 sm:$0xff]  ;;  %s773_s3 = smov [#allocation2]  }
 0x193   :  { %v726_v55 = vpop.eup %725  ;;  %v443_v12 = vsel %vm441_vm9, %v442_v4, %v440_v63  ;;  %v484_v35 = vand.u32 2147483648, %v939_v50  ;;  %vm483_vm2 = vcmp.eq.f32.partialorder %v939_v50, 0.0  ;;  %s566_s24 = sshll.u32 %s773_s3, 4  ;;  %s567_s24 = int_to_ptr.vmem [resolvable:$true] %s566_s24 }
 0x194   :  { %v475_v58 = vsel %vm474_vm4, %v426_v41, %v473_v54  ;;  %v445_v59 = vmul.f32 %v726_v55, %v414_v42  ;;  %v487_v21 = vadd.f32 1e-10, %v443_v12  ;;  %s751_s25 = scalar_lea.vmem %s567_s24, 16  ;;  %s755_s26 = scalar_lea.vmem %s567_s24, 32 }
 0x195   :  { %v478_v61 = vsel %vm476_vm6, %v477_v57, %v475_v58  ;;  %p752_p0 = scmp.ne.s32.totalorder %s567_s24, %s751_s25  ;;  %p756_p1 = scmp.lt.s32.totalorder %s567_s24, %s567_s24 }
 0x196   :  { %v492_v1 = vadd.f32 1e-10, %v478_v61  ;;  %v447_v2 = vsel %vm446_vm7, %v414_v42, %v445_v59  ;;  %p757_p2 = scmp.lt.s32.totalorder %s755_s26, %s751_s25 }
 0x197   :  { %v728_v3 = vpop.eup %727  ;;  %v450_v5 = vsel %vm448_vm8, %v449_v62, %v447_v2 }
 0x198   :  { %v730_v7 = vpop.eup %729  ;;  %v488_v10 = vadd.f32 1e-10, %v450_v5  ;;  %v459_v11 = vmul.f32 %v728_v3, %v420_v43  ;;  %735 = vrcp.f32 %v492_v1  ;;  %p758_p3 = por %p757_p2, %p756_p1 }
 0x199   :  { %v452_v14 = vmul.f32 %v730_v7, %v936_v44 }
 0x19a   :  { %737 = vrcp.f32 %v488_v10  ;;  %v461_v15 = vsel %vm460_vm10, %v420_v43, %v459_v11  ;;  %p759_p4 = pnand %p758_p3, %p752_p0 }
 0x19b   :  { %v732_v16 = vpop.eup %731  ;;  %v464_v17 = vsel %vm462_vm11, %v463_v13, %v461_v15  ;;  %v454_v18 = vsel %vm453_vm12, %v936_v44, %v452_v14  ;;  %739 = vrcp.f32 %v486_v9 }
 0x19c   :  { %v490_v22 = vadd.f32 1e-10, %v464_v17  ;;  %v466_v23 = vmul.f32 %v732_v16, %v423_v46  ;;  %v457_v26 = vsel %vm455_vm13, %v456_v20, %v454_v18 }
 0x19d   :  { %v489_v33 = vadd.f32 1e-10, %v457_v26 }
 0x19e   :  { %741 = vrcp.f32 %v490_v22  ;;  %v468_v27 = vsel %vm467_vm14, %v423_v46, %v466_v23 }
 0x19f   :  { %v471_v28 = vsel %vm469_vm15, %v470_v25, %v468_v27  ;;  %v734_v29 = vpop.eup %733  ;;  %743 = vrcp.f32 %v487_v21 }
 0x1a0   :  { %v491_v30 = vadd.f32 1e-10, %v471_v28  ;;  %v480_v34 = vmul.f32 %v734_v29, %v939_v50 }
 0x1a2   :  { %745 = vrcp.f32 %v491_v30  ;;  %v482_v36 = vsel %vm481_vm0, %v939_v50, %v480_v34 }
 0x1a3   :  { %v485_v37 = vsel %vm483_vm2, %v484_v35, %v482_v36  ;;  %747 = vrcp.f32 %v489_v33 }
 0x1a4   :  { %v493_v38 = vadd.f32 1e-10, %v485_v37 }
 0x1a5   :  { %v736_v39 = vpop.eup %735 }
 0x1a6   :  { %749 = vrcp.f32 %v493_v38  ;;  %v516_v43 = vmul.f32 %v736_v39, %v905_v8 }
 0x1a7   :  { %v738_v40 = vpop.eup %737 }
 0x1a8   :  { %v512_v41 = vmul.f32 %v738_v40, %v903_v6  ;;  %v740_v42 = vpop.eup %739 }
 0x1a9   :  { %v510_v45 = vmul.f32 %v740_v42, %v896_v52 }
 0x1aa   :  { %v520_v47 = vsub.f32 %v512_v41, %v516_v43 }
 0x1ab   :  { %v742_v44 = vpop.eup %741 }
 0x1ac   :  { %v514_v46 = vmul.f32 %v742_v44, %v917_v24  ;;  %v744_v48 = vpop.eup %743  ;;  %v531_v55 = vmul.f32 %v609_v49, %v520_v47 }
 0x1ad   :  { %v511_v54 = vmul.f32 %v744_v48, %v900_v0 }
 0x1ae   :  { %v518_v50 = vsub.f32 %v510_v45, %v514_v46  ;;  %v535_v59 = vmul.f32 %v531_v55, %v520_v47 }
 0x1af   :  { %v746_v51 = vpop.eup %745 }
 0x1b0   :  { %v529_v53 = vmul.f32 %v609_v49, %v518_v50  ;;  %v515_v6 = vmul.f32 %v746_v51, %v926_v32  ;;  %v748_v8 = vpop.eup %747  ;;  %v543_v32 = vsel %vm405_vm1, %v535_v59, 0.0 }
 0x1b1   :  { %v513_v60 = vmul.f32 %v748_v8, %v914_v19 }
 0x1b2   :  { %v533_v56 = vmul.f32 %v529_v53, %v518_v50  ;;  %v519_v57 = vsub.f32 %v511_v54, %v515_v6 }
 0x1b3   :  { %v750_v52 = vpop.eup %749 }
 0x1b4   :  { %v537_v24 = vsel %vm405_vm1, %v533_v56, 0.0  ;;  %v530_v58 = vmul.f32 %v609_v49, %v519_v57  ;;  %v517_v61 = vmul.f32 %v750_v52, %v924_v31 }
 0x1b5   :  { %538 = vadd.xlane.f32.xlu0 %v537_v24 }
 0x1b6   :  { %v534_v62 = vmul.f32 %v530_v58, %v519_v57  ;;  %v521_v63 = vsub.f32 %v513_v60, %v517_v61 }
 0x1b8   :  { %v540_v0 = vsel %vm405_vm1, %v534_v62, 0.0  ;;  %v532_v1 = vmul.f32 %v609_v49, %v521_v63 }
 0x1b9   :  { %541 = vadd.xlane.f32.xlu1 %v540_v0  ;;  %544 = vadd.xlane.f32.xlu0 %v543_v32 }
 0x1ba   :  { %v536_v2 = vmul.f32 %v532_v1, %v521_v63 }
 0x1bc   :  { %v546_v3 = vsel %vm405_vm1, %v536_v2, 0.0 }
 0x1bd   :  { %547 = vadd.xlane.f32.xlu1 %v546_v3 }
 0x23e   :  { %v539_v4 = vpop.xlane.xlu0 %538 }
 0x242   :  { %v542_v5 = vpop.xlane.xlu1 %541  ;;  %v545_v9 = vpop.xlane.xlu0 %544 }
 0x243   :  { %v549_v7 = vadd.f32 %v542_v5, %v539_v4 }
 0x245   :  { %v550_v19 = vadd.f32 %v549_v7, %v545_v9 }
 0x246   :  { %v548_v10 = vpop.xlane.xlu1 %547 }
 0x247   :  { %v551_v31 = vadd.f32 %v550_v19, %v548_v10 }
 0x249   :  { %v552_v11 = vrot.slane %v551_v31, 4 }
 0x24b   :  { %v553_v12 = vadd.f32 %v552_v11, %v551_v31 }
 0x24d   :  { %v554_v13 = vrot.slane %v553_v12, 2 }
 0x24f   :  { %v555_v14 = vadd.f32 %v554_v13, %v553_v12 }
 0x251   :  { %v556_v15 = vrot.slane %v555_v14, 1 }
 0x253   :  { %v557_v16 = vadd.f32 %v556_v15, %v555_v14 }
 0x255   :  { %559 = vst.msk [vmem:[#allocation2] sm:$0x1] %vm558_vm3, %v557_v16 }
 0x256   :  { %762 = shalt.err (!%p759_p4)
}
 0x257   :  { %569 = dma.vmem_to_hbm [thread:$0]  %s567_s24, 16, %s974_s4, [#allocation3]  }
 0x258   :  { %771 = dma.done.wait [#allocation3], 16  }
 0x259   :  { %772 = vsyncadd [#allocation3], 4294967280 }
 0x25a   :  { %573 = vsyncpa [#allocation3], 1 }

</bundles_post_ra>
